<compile_context>
chip_gen: v6e
topology: v6e:2x2x1
jax: 0.10.0
libtpu: 0.0.40
codegen_flags: <defaults>
</compile_context>

<pallas_src>
import functools
import math

import jax
import jax.numpy as jnp
from jax import lax
from jax.experimental import pallas as pl
from jax.experimental.pallas import tpu as pltpu

ACT_BITWIDTH = 4          # stands in for FLAGS.activation_bitwidth
BN_EPS = 1e-5
_LANE = 128               # TPU lane width; channel dims are padded to this
_LPAD = 16                # left halo pad (keeps the bf16 h1 store sublane-aligned)


def _round_up(n, m):
    return ((n + m - 1) // m) * m


def _default_pack_taps():
    """Pack 3x3 taps to K=256 only on chips with a 256-deep MXU (v6e/v7x)."""
    try:
        kind = jax.devices()[0].device_kind.lower()
    except Exception:
        return True
    return not any(v in kind for v in ("v2", "v3", "v4", "v5"))


# ---------------------------------------------------------------------------
# Pallas kernel: the whole bottleneck, one image per grid step.
# ---------------------------------------------------------------------------
def _bottleneck_kernel(x_ref, w1_ref, b1_ref, *rest,
                       H, W, stride, has_shortcut, pack_taps, row_tile,
                       qlevels, qinv):
    idx = 0
    if pack_taps:
        w2p_ref = rest[idx]; idx += 1      # (4, 2*midP, midP): taps 0..7 paired on K
        w2l_ref = rest[idx]; idx += 1      # (midP, midP):      tap 8
    else:
        w2_ref = rest[idx]; idx += 1       # (9, midP, midP)
    b2_ref = rest[idx]; idx += 1
    w3_ref = rest[idx]; idx += 1
    b3_ref = rest[idx]; idx += 1
    if has_shortcut:
        wsc_ref = rest[idx]; idx += 1
        bsc_ref = rest[idx]; idx += 1
    o_ref = rest[idx]; idx += 1
    h1pad_ref = rest[idx]; idx += 1

    f32, bf16 = jnp.float32, jnp.bfloat16
    Ho = (H - 1) // stride + 1             # 3x3 conv, pad=1 output size
    Wo = (W - 1) // stride + 1
    midP = h1pad_ref.shape[-1]
    w_buf = h1pad_ref.shape[1]
    CinP = x_ref.shape[-1]

    def act_quant(v):                      # k-bit uniform quantizer on [0, 1]
        # clip's lower bound subsumes the ReLU that precedes every quant.
        return jnp.round(jnp.clip(v, 0.0, 1.0) * qlevels) * qinv

    # ---- stage 1: 1x1 conv (BN folded into weights) -> ReLU -> ActQuant -----
    x_img = x_ref[0]                                     # (H, W, CinP) bf16
    x_rows = x_img.reshape(H * W, CinP)                  # (H*W, CinP)  bf16
    h1 = jnp.dot(x_rows, w1_ref[...], preferred_element_type=f32)
    h1 = act_quant(h1 + b1_ref[...]).astype(bf16)

    # ---- halo: zero ONLY the 1-px border the taps read, then store interior --
    h1pad_ref[pl.ds(0, 1), :, :] = jnp.zeros((1, w_buf, midP), bf16)
    h1pad_ref[pl.ds(H + 1, 1), :, :] = jnp.zeros((1, w_buf, midP), bf16)
    h1pad_ref[pl.ds(1, H), pl.ds(_LPAD - 1, 1), :] = jnp.zeros((H, 1, midP), bf16)
    h1pad_ref[pl.ds(1, H), pl.ds(_LPAD + W, 1), :] = jnp.zeros((H, 1, midP), bf16)
    h1pad_ref[pl.ds(1, H), pl.ds(_LPAD, W), :] = h1.reshape(H, W, midP)

    def tap_patch(t, r0, tr):              # (tr*Wo, midP) bf16 window for tap t
        dy, dx = divmod(t, 3)
        if stride == 1:
            p = h1pad_ref[pl.ds(r0 + dy, tr), pl.ds(_LPAD - 1 + dx, Wo), :]
        else:
            p = h1pad_ref[pl.ds(stride * r0 + dy, tr, stride),
                          pl.ds(_LPAD - 1 + dx, Wo, stride), :]
        return p.reshape(tr * Wo, midP)

    # ---- stages 2 + 3, tiled over output rows (small, resident accumulator) --
    r0 = 0
    while r0 < Ho:
        tr = min(row_tile, Ho - r0)
        rows = tr * Wo

        # 3x3 conv (stride, pad=1) over this row tile; acc init from 1st dot.
        if pack_taps:                      # two taps per MXU pass (K = 2*midP)
            acc = jnp.dot(
                jnp.concatenate([tap_patch(0, r0, tr), tap_patch(1, r0, tr)],
                                axis=-1),
                w2p_ref[0], preferred_element_type=f32)
            for g in range(1, 4):
                acc = acc + jnp.dot(
                    jnp.concatenate([tap_patch(2 * g, r0, tr),
                                     tap_patch(2 * g + 1, r0, tr)], axis=-1),
                    w2p_ref[g], preferred_element_type=f32)
            acc = acc + jnp.dot(tap_patch(8, r0, tr), w2l_ref[...],
                                preferred_element_type=f32)
        else:
            acc = jnp.dot(tap_patch(0, r0, tr), w2_ref[0],
                          preferred_element_type=f32)
            for t in range(1, 9):
                acc = acc + jnp.dot(tap_patch(t, r0, tr), w2_ref[t],
                                    preferred_element_type=f32)
        h2 = act_quant(acc + b2_ref[...]).astype(bf16)

        # stage 3: 1x1 conv + residual / fused shortcut -> ReLU -> ActQuant
        y = jnp.dot(h2, w3_ref[...], preferred_element_type=f32) + b3_ref[...]
        if has_shortcut:
            if stride == 1:
                xs = x_rows[r0 * W:(r0 + tr) * W]
            else:
                xs = x_ref[0, pl.ds(stride * r0, tr, stride),
                           pl.ds(0, Wo, stride), :]
                xs = xs.reshape(rows, CinP)
            y = y + jnp.dot(xs, wsc_ref[...], preferred_element_type=f32) \
                  + bsc_ref[...]
        else:
            y = y + x_rows[r0 * W:(r0 + tr) * W].astype(f32)

        o_ref[0, pl.ds(r0 * Wo, rows), :] = act_quant(y).astype(o_ref.dtype)
        r0 += tr


# ---------------------------------------------------------------------------
# Weight / BN preparation (plain JAX, once per call)
# ---------------------------------------------------------------------------
def bn_scale_bias(gamma, beta, mean, var):
    scale = gamma / jnp.sqrt(var + BN_EPS)
    return scale, beta - mean * scale


def _prep_1x1(w_oihw, bn, cin_p, cout_p):
    """(Cout,Cin,1,1) conv weight + BN -> folded (cin_p,cout_p) bf16 + f32 bias."""
    scale, bias = bn_scale_bias(**bn)
    w = jnp.transpose(w_oihw[:, :, 0, 0], (1, 0)) * scale[None, :]      # (Cin,Cout)
    w = jnp.pad(w, ((0, cin_p - w.shape[0]), (0, cout_p - w.shape[1])))
    b = jnp.pad(bias, (0, cout_p - bias.shape[0])).reshape(1, cout_p)
    return w.astype(jnp.bfloat16), b.astype(jnp.float32)


def _prep_3x3(w_oihw, bn, cin_p, cout_p):
    """(Cout,Cin,3,3) conv weight + BN -> folded (9,cin_p,cout_p) bf16 + bias."""
    scale, bias = bn_scale_bias(**bn)
    w = jnp.transpose(w_oihw, (2, 3, 1, 0)) * scale[None, None, None, :]  # (3,3,Cin,Cout)
    w = w.reshape(9, w.shape[2], w.shape[3])
    w = jnp.pad(w, ((0, 0), (0, cin_p - w.shape[1]), (0, cout_p - w.shape[2])))
    b = jnp.pad(bias, (0, cout_p - bias.shape[0])).reshape(1, cout_p)
    return w.astype(jnp.bfloat16), b.astype(jnp.float32)


# ---------------------------------------------------------------------------
# Forward wrappers
# ---------------------------------------------------------------------------
def bottleneck_forward_nhwc(x_nhwc, params, *, stride, residual_connection,
                            row_tile=8, pack_taps=None):
    """Fused bottleneck on channel-padded NHWC bf16 activations.

    x_nhwc: (N, H, W, CinP), CinP a multiple of 128 (padded channels zero).
    Returns (N, Ho, Wo, CoutP) bf16.  Chain consecutive blocks in this layout to
    avoid per-block transpose / pad / slice HBM round trips.
    """
    assert stride in (1, 2)
    if pack_taps is None:
        pack_taps = _default_pack_taps()

    N, H, W, CinP = x_nhwc.shape
    assert CinP % _LANE == 0
    Cin = params["w1"].shape[1]
    mid = params["w1"].shape[0]
    Cout = params["w3"].shape[0]
    assert Cin <= CinP
    if residual_connection:
        assert stride == 1 and Cin == Cout

    midP = _round_up(mid, _LANE)
    CoutP = _round_up(Cout, _LANE)
    Ho = (H - 1) // stride + 1
    Wo = (W - 1) // stride + 1
    has_shortcut = not residual_connection

    x = x_nhwc.astype(jnp.bfloat16)

    w1, b1 = _prep_1x1(params["w1"], params["bn1"], CinP, midP)
    w2_9, b2 = _prep_3x3(params["w2"], params["bn2"], midP, midP)
    w3, b3 = _prep_1x1(params["w3"], params["bn3"], midP, CoutP)

    args = [x, w1, b1]
    in_specs = [
        pl.BlockSpec((1, H, W, CinP), lambda b: (b, 0, 0, 0)),
        pl.BlockSpec((CinP, midP), lambda b: (0, 0)),
        pl.BlockSpec((1, midP), lambda b: (0, 0)),
    ]
    if pack_taps:
        w2p = w2_9[:8].reshape(4, 2 * midP, midP)     # taps (0,1),(2,3),(4,5),(6,7)
        w2l = w2_9[8]                                 # tap 8
        args += [w2p, w2l]
        in_specs += [pl.BlockSpec((4, 2 * midP, midP), lambda b: (0, 0, 0)),
                     pl.BlockSpec((midP, midP), lambda b: (0, 0))]
    else:
        args += [w2_9]
        in_specs += [pl.BlockSpec((9, midP, midP), lambda b: (0, 0, 0))]
    args += [b2, w3, b3]
    in_specs += [pl.BlockSpec((1, midP), lambda b: (0, 0)),
                 pl.BlockSpec((midP, CoutP), lambda b: (0, 0)),
                 pl.BlockSpec((1, CoutP), lambda b: (0, 0))]
    if has_shortcut:
        wsc, bsc = _prep_1x1(params["w_sc"], params["bn_sc"], CinP, CoutP)
        args += [wsc, bsc]
        in_specs += [pl.BlockSpec((CinP, CoutP), lambda b: (0, 0)),
                     pl.BlockSpec((1, CoutP), lambda b: (0, 0))]

    qlevels = float(2 ** ACT_BITWIDTH - 1)
    kernel = functools.partial(
        _bottleneck_kernel, H=H, W=W, stride=stride,
        has_shortcut=has_shortcut, pack_taps=pack_taps,
        row_tile=max(1, min(row_tile, Ho)),
        qlevels=qlevels, qinv=1.0 / qlevels)

    w_buf = _LPAD + _round_up(W + 1, 16)              # halo buffer width

    # Rough per-step VMEM residency: double-buffered in/out blocks + halo +
    # (double-buffered) bf16 weights.  Used to set the scoped-VMEM limit.
    need = (2 * H * W * CinP * 2
            + 2 * Ho * Wo * CoutP * 2
            + (H + 2) * w_buf * midP * 2
            + 4 * (CinP * midP + 9 * midP * midP + midP * CoutP
                   + (CinP * CoutP if has_shortcut else 0)))
    vmem_limit = int(min(max(2 * need + (8 << 20), 32 << 20), 96 << 20))

    out = pl.pallas_call(
        kernel,
        out_shape=jax.ShapeDtypeStruct((N, Ho * Wo, CoutP), jnp.bfloat16),
        grid_spec=pltpu.PrefetchScalarGridSpec(
            num_scalar_prefetch=0,
            grid=(N,),
            in_specs=in_specs,
            out_specs=pl.BlockSpec((1, Ho * Wo, CoutP), lambda b: (b, 0, 0)),
            scratch_shapes=[pltpu.VMEM((H + 2, w_buf, midP), jnp.bfloat16)],
        ),
        compiler_params=pltpu.CompilerParams(
            dimension_semantics=("parallel",),
            vmem_limit_bytes=vmem_limit),
    )(*args)
    return out.reshape(N, Ho, Wo, CoutP)


def bottleneck_forward(x_nchw, params, *, stride, residual_connection):
    """NCHW f32 convenience wrapper matching the PyTorch module interface."""
    Cin = params["w1"].shape[1]
    Cout = params["w3"].shape[0]
    x = jnp.transpose(x_nchw, (0, 2, 3, 1)).astype(jnp.bfloat16)         # NHWC bf16
    CinP = _round_up(Cin, _LANE)
    xp = jnp.pad(x, ((0, 0), (0, 0), (0, 0), (0, CinP - Cin)))
    y = bottleneck_forward_nhwc(xp, params, stride=stride,
                                residual_connection=residual_connection)
    y = y[..., :Cout].astype(jnp.float32)
    return jnp.transpose(y, (0, 3, 1, 2))                                # -> NCHW


# ---------------------------------------------------------------------------
# Pure-JAX reference (lax.conv) with matching bf16 precision decisions
# ---------------------------------------------------------------------------
def bottleneck_reference(x_nchw, params, *, stride, residual_connection):
    bf16 = jnp.bfloat16
    x = jnp.transpose(x_nchw, (0, 2, 3, 1)).astype(jnp.float32)
    # the kernel consumes a bf16 input; model that cast once here too
    x = x.astype(bf16).astype(jnp.float32)
    q = float(2 ** ACT_BITWIDTH - 1)

    def fold(w_oihw, bn):
        s, b = bn_scale_bias(**bn)
        return w_oihw * s[:, None, None, None], b

    def conv(h, w_oihw, s, pad):
        w = jnp.transpose(w_oihw, (2, 3, 1, 0)).astype(bf16)             # HWIO
        return lax.conv_general_dilated(
            h.astype(bf16), w, (s, s), [(pad, pad), (pad, pad)],
            dimension_numbers=("NHWC", "HWIO", "NHWC"),
            preferred_element_type=jnp.float32)

    def act_quant(h):
        return jnp.round(jnp.clip(h, 0.0, 1.0) * q) / q

    w1, b1 = fold(params["w1"], params["bn1"])
    w2, b2 = fold(params["w2"], params["bn2"])
    w3, b3 = fold(params["w3"], params["bn3"])

    h = act_quant(jax.nn.relu(conv(x, w1, 1, 0) + b1))
    h = act_quant(jax.nn.relu(conv(h, w2, stride, 1) + b2))
    y = conv(h, w3, 1, 0) + b3
    if residual_connection:
        y = y + x
    else:
        wsc, bsc = fold(params["w_sc"], params["bn_sc"])
        y = y + conv(x, wsc, stride, 0) + bsc
    y = act_quant(jax.nn.relu(y))
    return jnp.transpose(y, (0, 3, 1, 2))


# ---------------------------------------------------------------------------
# Parameter init (stand-in for the PyTorch module's random init + BN stats)
# ---------------------------------------------------------------------------
def init_params(key, in_channels, out_channels, residual_connection):
    mid = out_channels // 4
    ks = jax.random.split(key, 8)

    def conv_w(k, cout, cin, kh, kw):
        fan_in = cin * kh * kw
        return jax.random.normal(k, (cout, cin, kh, kw), jnp.float32) / math.sqrt(fan_in)

    def bn(k, c):
        k1, k2, k3 = jax.random.split(k, 3)
        return dict(gamma=1.0 + 0.1 * jax.random.normal(k1, (c,), jnp.float32),
                    beta=0.1 * jax.random.normal(k2, (c,), jnp.float32),
                    mean=0.1 * jax.random.normal(k3, (c,), jnp.float32),
                    var=jnp.ones((c,), jnp.float32))

    p = dict(
        w1=conv_w(ks[0], mid, in_channels, 1, 1), bn1=bn(ks[1], mid),
        w2=conv_w(ks[2], mid, mid, 3, 3),          bn2=bn(ks[3], mid),
        w3=conv_w(ks[4], out_channels, mid, 1, 1), bn3=bn(ks[5], out_channels),
    )
    if not residual_connection:
        p["w_sc"] = conv_w(ks[6], out_channels, in_channels, 1, 1)
        p["bn_sc"] = bn(ks[7], out_channels)
    return p


def _run_and_check(x, params, *, stride, residual_connection, label):
    out = bottleneck_forward(x, params, stride=stride,
                             residual_connection=residual_connection)
    out = jax.block_until_ready(out)
    ref = jax.block_until_ready(
        bottleneck_reference(x, params, stride=stride,
                             residual_connection=residual_connection))

    assert out.shape == ref.shape, (label, out.shape, ref.shape)
    assert bool(jnp.all(jnp.isfinite(out))), label
    assert bool(jnp.all((out >= 0.0) & (out <= 1.0))), label        # ActQuant range
    q = float(2 ** ACT_BITWIDTH - 1)
    # output is stored as bf16, so quantization levels i/q carry ~2^-9 rel. error
    on_grid = float(jnp.max(jnp.abs(out * q - jnp.round(out * q))))
    assert on_grid < 0.05, (label, on_grid)
    diff = jnp.abs(out - ref)
    max_d, mean_d = float(jnp.max(diff)), float(jnp.mean(diff))
    # bf16 matmuls / bf16 output may flip an occasional 4-bit level (1/15).
    assert max_d <= 0.21, (label, max_d)
    assert mean_d <= 4e-3, (label, mean_d)


if __name__ == "__main__":
    key = jax.random.PRNGKey(0)
    k1, k2, k3, k4 = jax.random.split(key, 4)

    # Config A: projection-shortcut path (in != out, stride 1) -> fused shortcut conv.
    in_a, out_a, stride_a = 16, 32, 1
    res_a = (stride_a == 1 and in_a == out_a)        # False
    x_a = jax.random.normal(k1, (2, in_a, 16, 16), jnp.float32)      # NCHW
    p_a = init_params(k2, in_a, out_a, res_a)
    _run_and_check(x_a, p_a, stride=stride_a, residual_connection=res_a,
                   label="shortcut")

    # Config B: identity-residual path (in == out, stride 1).
    in_b, out_b, stride_b = 32, 32, 1
    res_b = (stride_b == 1 and in_b == out_b)        # True
    x_b = jax.random.normal(k3, (2, in_b, 16, 16), jnp.float32)
    p_b = init_params(k4, in_b, out_b, res_b)
    _run_and_check(x_b, p_b, stride=stride_b, residual_connection=res_b,
                   label="residual")

    print("KERNEL_OK")
</pallas_src>

<mosaic_0001>
module attributes {stable_mosaic.version = 11 : i64} {
  func.func @_bottleneck_kernel(%arg0: i32, %arg1: memref<1x16x16x128xbf16, #tpu.memory_space<vmem>>, %arg2: memref<128x128xbf16, #tpu.memory_space<vmem>>, %arg3: memref<1x128xf32, #tpu.memory_space<vmem>>, %arg4: memref<4x256x128xbf16, #tpu.memory_space<vmem>>, %arg5: memref<128x128xbf16, #tpu.memory_space<vmem>>, %arg6: memref<1x128xf32, #tpu.memory_space<vmem>>, %arg7: memref<128x128xbf16, #tpu.memory_space<vmem>>, %arg8: memref<1x128xf32, #tpu.memory_space<vmem>>, %arg9: memref<128x128xbf16, #tpu.memory_space<vmem>>, %arg10: memref<1x128xf32, #tpu.memory_space<vmem>>, %arg11: memref<1x256x128xbf16, #tpu.memory_space<vmem>>, %arg12: memref<18x48x128xbf16, #tpu.memory_space<vmem>>) attributes {dimension_semantics = [#tpu.dimension_semantics<parallel>], iteration_bounds = array<i64: 2>, scalar_prefetch = 0 : i64, scratch_operands = 1 : i64, tpu.core_type = #tpu.core_type<tc>, window_params = [{transform_indices = @transform_0, window_bounds = array<i64: 1, 16, 16, 128>}, {pipeline_mode = #tpu.pipeline_mode<synchronous>, transform_indices = @transform_1, window_bounds = array<i64: 128, 128>}, {pipeline_mode = #tpu.pipeline_mode<synchronous>, transform_indices = @transform_2, window_bounds = array<i64: 1, 128>}, {pipeline_mode = #tpu.pipeline_mode<synchronous>, transform_indices = @transform_3, window_bounds = array<i64: 4, 256, 128>}, {pipeline_mode = #tpu.pipeline_mode<synchronous>, transform_indices = @transform_4, window_bounds = array<i64: 128, 128>}, {pipeline_mode = #tpu.pipeline_mode<synchronous>, transform_indices = @transform_5, window_bounds = array<i64: 1, 128>}, {pipeline_mode = #tpu.pipeline_mode<synchronous>, transform_indices = @transform_6, window_bounds = array<i64: 128, 128>}, {pipeline_mode = #tpu.pipeline_mode<synchronous>, transform_indices = @transform_7, window_bounds = array<i64: 1, 128>}, {pipeline_mode = #tpu.pipeline_mode<synchronous>, transform_indices = @transform_8, window_bounds = array<i64: 128, 128>}, {pipeline_mode = #tpu.pipeline_mode<synchronous>, transform_indices = @transform_9, window_bounds = array<i64: 1, 128>}, {transform_indices = @transform_10, window_bounds = array<i64: 1, 256, 128>}]} {
    %c0 = arith.constant 0 : index
    %c0_0 = arith.constant 0 : index
    %c0_1 = arith.constant 0 : index
    %c0_2 = arith.constant 0 : index
    %0 = vector.load %arg1[%c0, %c0_0, %c0_1, %c0_2] : memref<1x16x16x128xbf16, #tpu.memory_space<vmem>>, vector<1x16x16x128xbf16>
    %1 = vector.shape_cast %0 : vector<1x16x16x128xbf16> to vector<16x16x128xbf16>
    %2 = vector.shape_cast %1 : vector<16x16x128xbf16> to vector<256x128xbf16>
    %c0_3 = arith.constant 0 : index
    %c0_4 = arith.constant 0 : index
    %3 = vector.load %arg2[%c0_3, %c0_4] : memref<128x128xbf16, #tpu.memory_space<vmem>>, vector<128x128xbf16>
    %cst = arith.constant dense<0.000000e+00> : vector<256x128xf32>
    %4 = tpu.matmul %2, %3, %cst {dimension_numbers = #tpu.dot_dimension_numbers<[1], [0], [0], [1], [0, 0, 1, 1], [], []>} : vector<256x128xbf16>, vector<128x128xbf16>, vector<256x128xf32> -> vector<256x128xf32>
    %c0_5 = arith.constant 0 : index
    %c0_6 = arith.constant 0 : index
    %5 = vector.load %arg3[%c0_5, %c0_6] : memref<1x128xf32, #tpu.memory_space<vmem>>, vector<1x128xf32>
    %6 = vector.broadcast %5 : vector<1x128xf32> to vector<256x128xf32>
    %7 = arith.addf %4, %6 : vector<256x128xf32>
    %cst_7 = arith.constant 0.000000e+00 : f32
    %cst_8 = arith.constant 1.000000e+00 : f32
    %8 = vector.broadcast %cst_7 : f32 to vector<256x128xf32>
    %9 = arith.maximumf %8, %7 : vector<256x128xf32>
    %10 = vector.broadcast %cst_8 : f32 to vector<256x128xf32>
    %11 = arith.minimumf %10, %9 : vector<256x128xf32>
    %cst_9 = arith.constant 1.500000e+01 : f32
    %12 = vector.broadcast %cst_9 : f32 to vector<256x128xf32>
    %13 = arith.mulf %11, %12 : vector<256x128xf32>
    %14 = math.roundeven %13 : vector<256x128xf32>
    %cst_10 = arith.constant 0.0666666701 : f32
    %15 = vector.broadcast %cst_10 : f32 to vector<256x128xf32>
    %16 = arith.mulf %14, %15 : vector<256x128xf32>
    %17 = arith.truncf %16 : vector<256x128xf32> to vector<256x128xbf16>
    %cst_11 = arith.constant 0.000000e+00 : bf16
    %18 = vector.broadcast %cst_11 : bf16 to vector<1x48x128xbf16>
    %c0_12 = arith.constant 0 : index
    %c0_13 = arith.constant 0 : index
    %c0_14 = arith.constant 0 : index
    %19 = vector.load %arg12[%c0_12, %c0_13, %c0_14] : memref<18x48x128xbf16, #tpu.memory_space<vmem>>, vector<1x48x128xbf16>
    tpu.vector_store %arg12[%c0_12, %c0_13, %c0_14], %18 {strides = array<i32>} : memref<18x48x128xbf16, #tpu.memory_space<vmem>>, vector<1x48x128xbf16>,
    %cst_15 = arith.constant 0.000000e+00 : bf16
    %20 = vector.broadcast %cst_15 : bf16 to vector<1x48x128xbf16>
    %c17 = arith.constant 17 : index
    %c0_16 = arith.constant 0 : index
    %c0_17 = arith.constant 0 : index
    %21 = vector.load %arg12[%c17, %c0_16, %c0_17] : memref<18x48x128xbf16, #tpu.memory_space<vmem>>, vector<1x48x128xbf16>
    tpu.vector_store %arg12[%c17, %c0_16, %c0_17], %20 {strides = array<i32>} : memref<18x48x128xbf16, #tpu.memory_space<vmem>>, vector<1x48x128xbf16>,
    %cst_18 = arith.constant 0.000000e+00 : bf16
    %22 = vector.broadcast %cst_18 : bf16 to vector<16x1x128xbf16>
    %c1 = arith.constant 1 : index
    %c15 = arith.constant 15 : index
    %c0_19 = arith.constant 0 : index
    %23 = vector.load %arg12[%c1, %c15, %c0_19] : memref<18x48x128xbf16, #tpu.memory_space<vmem>>, vector<16x1x128xbf16>
    tpu.vector_store %arg12[%c1, %c15, %c0_19], %22 {strides = array<i32>} : memref<18x48x128xbf16, #tpu.memory_space<vmem>>, vector<16x1x128xbf16>,
    %cst_20 = arith.constant 0.000000e+00 : bf16
    %24 = vector.broadcast %cst_20 : bf16 to vector<16x1x128xbf16>
    %c1_21 = arith.constant 1 : index
    %c32 = arith.constant 32 : index
    %c0_22 = arith.constant 0 : index
    %25 = vector.load %arg12[%c1_21, %c32, %c0_22] : memref<18x48x128xbf16, #tpu.memory_space<vmem>>, vector<16x1x128xbf16>
    tpu.vector_store %arg12[%c1_21, %c32, %c0_22], %24 {strides = array<i32>} : memref<18x48x128xbf16, #tpu.memory_space<vmem>>, vector<16x1x128xbf16>,
    %26 = vector.shape_cast %17 : vector<256x128xbf16> to vector<16x16x128xbf16>
    %c1_23 = arith.constant 1 : index
    %c16 = arith.constant 16 : index
    %c0_24 = arith.constant 0 : index
    %27 = vector.load %arg12[%c1_23, %c16, %c0_24] : memref<18x48x128xbf16, #tpu.memory_space<vmem>>, vector<16x16x128xbf16>
    tpu.vector_store %arg12[%c1_23, %c16, %c0_24], %26 {strides = array<i32>} : memref<18x48x128xbf16, #tpu.memory_space<vmem>>, vector<16x16x128xbf16>,
    %c0_25 = arith.constant 0 : index
    %c15_26 = arith.constant 15 : index
    %c0_27 = arith.constant 0 : index
    %28 = vector.load %arg12[%c0_25, %c15_26, %c0_27] : memref<18x48x128xbf16, #tpu.memory_space<vmem>>, vector<8x16x128xbf16>
    %29 = vector.shape_cast %28 : vector<8x16x128xbf16> to vector<128x128xbf16>
    %c0_28 = arith.constant 0 : index
    %c16_29 = arith.constant 16 : index
    %c0_30 = arith.constant 0 : index
    %30 = vector.load %arg12[%c0_28, %c16_29, %c0_30] : memref<18x48x128xbf16, #tpu.memory_space<vmem>>, vector<8x16x128xbf16>
    %31 = vector.shape_cast %30 : vector<8x16x128xbf16> to vector<128x128xbf16>
    %32 = tpu.concatenate %29, %31 in 1 : vector<128x128xbf16>, vector<128x128xbf16> -> vector<128x256xbf16>
    %c0_31 = arith.constant 0 : index
    %c0_32 = arith.constant 0 : index
    %c0_33 = arith.constant 0 : index
    %33 = vector.load %arg4[%c0_31, %c0_32, %c0_33] : memref<4x256x128xbf16, #tpu.memory_space<vmem>>, vector<1x256x128xbf16>
    %34 = vector.shape_cast %33 : vector<1x256x128xbf16> to vector<256x128xbf16>
    %cst_34 = arith.constant dense<0.000000e+00> : vector<128x128xf32>
    %35 = tpu.matmul %32, %34, %cst_34 {dimension_numbers = #tpu.dot_dimension_numbers<[1], [0], [0], [1], [0, 0, 1, 1], [], []>} : vector<128x256xbf16>, vector<256x128xbf16>, vector<128x128xf32> -> vector<128x128xf32>
    %c0_35 = arith.constant 0 : index
    %c17_36 = arith.constant 17 : index
    %c0_37 = arith.constant 0 : index
    %36 = vector.load %arg12[%c0_35, %c17_36, %c0_37] : memref<18x48x128xbf16, #tpu.memory_space<vmem>>, vector<8x16x128xbf16>
    %37 = vector.shape_cast %36 : vector<8x16x128xbf16> to vector<128x128xbf16>
    %c1_38 = arith.constant 1 : index
    %c15_39 = arith.constant 15 : index
    %c0_40 = arith.constant 0 : index
    %38 = vector.load %arg12[%c1_38, %c15_39, %c0_40] : memref<18x48x128xbf16, #tpu.memory_space<vmem>>, vector<8x16x128xbf16>
    %39 = vector.shape_cast %38 : vector<8x16x128xbf16> to vector<128x128xbf16>
    %40 = tpu.concatenate %37, %39 in 1 : vector<128x128xbf16>, vector<128x128xbf16> -> vector<128x256xbf16>
    %c1_41 = arith.constant 1 : index
    %c0_42 = arith.constant 0 : index
    %c0_43 = arith.constant 0 : index
    %41 = vector.load %arg4[%c1_41, %c0_42, %c0_43] : memref<4x256x128xbf16, #tpu.memory_space<vmem>>, vector<1x256x128xbf16>
    %42 = vector.shape_cast %41 : vector<1x256x128xbf16> to vector<256x128xbf16>
    %cst_44 = arith.constant dense<0.000000e+00> : vector<128x128xf32>
    %43 = tpu.matmul %40, %42, %cst_44 {dimension_numbers = #tpu.dot_dimension_numbers<[1], [0], [0], [1], [0, 0, 1, 1], [], []>} : vector<128x256xbf16>, vector<256x128xbf16>, vector<128x128xf32> -> vector<128x128xf32>
    %44 = arith.addf %35, %43 : vector<128x128xf32>
    %c1_45 = arith.constant 1 : index
    %c16_46 = arith.constant 16 : index
    %c0_47 = arith.constant 0 : index
    %45 = vector.load %arg12[%c1_45, %c16_46, %c0_47] : memref<18x48x128xbf16, #tpu.memory_space<vmem>>, vector<8x16x128xbf16>
    %46 = vector.shape_cast %45 : vector<8x16x128xbf16> to vector<128x128xbf16>
    %c1_48 = arith.constant 1 : index
    %c17_49 = arith.constant 17 : index
    %c0_50 = arith.constant 0 : index
    %47 = vector.load %arg12[%c1_48, %c17_49, %c0_50] : memref<18x48x128xbf16, #tpu.memory_space<vmem>>, vector<8x16x128xbf16>
    %48 = vector.shape_cast %47 : vector<8x16x128xbf16> to vector<128x128xbf16>
    %49 = tpu.concatenate %46, %48 in 1 : vector<128x128xbf16>, vector<128x128xbf16> -> vector<128x256xbf16>
    %c2 = arith.constant 2 : index
    %c0_51 = arith.constant 0 : index
    %c0_52 = arith.constant 0 : index
    %50 = vector.load %arg4[%c2, %c0_51, %c0_52] : memref<4x256x128xbf16, #tpu.memory_space<vmem>>, vector<1x256x128xbf16>
    %51 = vector.shape_cast %50 : vector<1x256x128xbf16> to vector<256x128xbf16>
    %cst_53 = arith.constant dense<0.000000e+00> : vector<128x128xf32>
    %52 = tpu.matmul %49, %51, %cst_53 {dimension_numbers = #tpu.dot_dimension_numbers<[1], [0], [0], [1], [0, 0, 1, 1], [], []>} : vector<128x256xbf16>, vector<256x128xbf16>, vector<128x128xf32> -> vector<128x128xf32>
    %53 = arith.addf %44, %52 : vector<128x128xf32>
    %c2_54 = arith.constant 2 : index
    %c15_55 = arith.constant 15 : index
    %c0_56 = arith.constant 0 : index
    %54 = vector.load %arg12[%c2_54, %c15_55, %c0_56] : memref<18x48x128xbf16, #tpu.memory_space<vmem>>, vector<8x16x128xbf16>
    %55 = vector.shape_cast %54 : vector<8x16x128xbf16> to vector<128x128xbf16>
    %c2_57 = arith.constant 2 : index
    %c16_58 = arith.constant 16 : index
    %c0_59 = arith.constant 0 : index
    %56 = vector.load %arg12[%c2_57, %c16_58, %c0_59] : memref<18x48x128xbf16, #tpu.memory_space<vmem>>, vector<8x16x128xbf16>
    %57 = vector.shape_cast %56 : vector<8x16x128xbf16> to vector<128x128xbf16>
    %58 = tpu.concatenate %55, %57 in 1 : vector<128x128xbf16>, vector<128x128xbf16> -> vector<128x256xbf16>
    %c3 = arith.constant 3 : index
    %c0_60 = arith.constant 0 : index
    %c0_61 = arith.constant 0 : index
    %59 = vector.load %arg4[%c3, %c0_60, %c0_61] : memref<4x256x128xbf16, #tpu.memory_space<vmem>>, vector<1x256x128xbf16>
    %60 = vector.shape_cast %59 : vector<1x256x128xbf16> to vector<256x128xbf16>
    %cst_62 = arith.constant dense<0.000000e+00> : vector<128x128xf32>
    %61 = tpu.matmul %58, %60, %cst_62 {dimension_numbers = #tpu.dot_dimension_numbers<[1], [0], [0], [1], [0, 0, 1, 1], [], []>} : vector<128x256xbf16>, vector<256x128xbf16>, vector<128x128xf32> -> vector<128x128xf32>
    %62 = arith.addf %53, %61 : vector<128x128xf32>
    %c2_63 = arith.constant 2 : index
    %c17_64 = arith.constant 17 : index
    %c0_65 = arith.constant 0 : index
    %63 = vector.load %arg12[%c2_63, %c17_64, %c0_65] : memref<18x48x128xbf16, #tpu.memory_space<vmem>>, vector<8x16x128xbf16>
    %64 = vector.shape_cast %63 : vector<8x16x128xbf16> to vector<128x128xbf16>
    %c0_66 = arith.constant 0 : index
    %c0_67 = arith.constant 0 : index
    %65 = vector.load %arg5[%c0_66, %c0_67] : memref<128x128xbf16, #tpu.memory_space<vmem>>, vector<128x128xbf16>
    %cst_68 = arith.constant dense<0.000000e+00> : vector<128x128xf32>
    %66 = tpu.matmul %64, %65, %cst_68 {dimension_numbers = #tpu.dot_dimension_numbers<[1], [0], [0], [1], [0, 0, 1, 1], [], []>} : vector<128x128xbf16>, vector<128x128xbf16>, vector<128x128xf32> -> vector<128x128xf32>
    %67 = arith.addf %62, %66 : vector<128x128xf32>
    %c0_69 = arith.constant 0 : index
    %c0_70 = arith.constant 0 : index
    %68 = vector.load %arg6[%c0_69, %c0_70] : memref<1x128xf32, #tpu.memory_space<vmem>>, vector<1x128xf32>
    %69 = vector.broadcast %68 : vector<1x128xf32> to vector<128x128xf32>
    %70 = arith.addf %67, %69 : vector<128x128xf32>
    %cst_71 = arith.constant 0.000000e+00 : f32
    %cst_72 = arith.constant 1.000000e+00 : f32
    %71 = vector.broadcast %cst_71 : f32 to vector<128x128xf32>
    %72 = arith.maximumf %71, %70 : vector<128x128xf32>
    %73 = vector.broadcast %cst_72 : f32 to vector<128x128xf32>
    %74 = arith.minimumf %73, %72 : vector<128x128xf32>
    %cst_73 = arith.constant 1.500000e+01 : f32
    %75 = vector.broadcast %cst_73 : f32 to vector<128x128xf32>
    %76 = arith.mulf %74, %75 : vector<128x128xf32>
    %77 = math.roundeven %76 : vector<128x128xf32>
    %cst_74 = arith.constant 0.0666666701 : f32
    %78 = vector.broadcast %cst_74 : f32 to vector<128x128xf32>
    %79 = arith.mulf %77, %78 : vector<128x128xf32>
    %80 = arith.truncf %79 : vector<128x128xf32> to vector<128x128xbf16>
    %c0_75 = arith.constant 0 : index
    %c0_76 = arith.constant 0 : index
    %81 = vector.load %arg7[%c0_75, %c0_76] : memref<128x128xbf16, #tpu.memory_space<vmem>>, vector<128x128xbf16>
    %cst_77 = arith.constant dense<0.000000e+00> : vector<128x128xf32>
    %82 = tpu.matmul %80, %81, %cst_77 {dimension_numbers = #tpu.dot_dimension_numbers<[1], [0], [0], [1], [0, 0, 1, 1], [], []>} : vector<128x128xbf16>, vector<128x128xbf16>, vector<128x128xf32> -> vector<128x128xf32>
    %c0_78 = arith.constant 0 : index
    %c0_79 = arith.constant 0 : index
    %83 = vector.load %arg8[%c0_78, %c0_79] : memref<1x128xf32, #tpu.memory_space<vmem>>, vector<1x128xf32>
    %84 = vector.broadcast %83 : vector<1x128xf32> to vector<128x128xf32>
    %85 = arith.addf %82, %84 : vector<128x128xf32>
    %86 = vector.extract_strided_slice %2 {offsets = [0, 0], sizes = [128, 128], strides = [1, 1]} : vector<256x128xbf16> to vector<128x128xbf16>
    %c0_80 = arith.constant 0 : index
    %c0_81 = arith.constant 0 : index
    %87 = vector.load %arg9[%c0_80, %c0_81] : memref<128x128xbf16, #tpu.memory_space<vmem>>, vector<128x128xbf16>
    %cst_82 = arith.constant dense<0.000000e+00> : vector<128x128xf32>
    %88 = tpu.matmul %86, %87, %cst_82 {dimension_numbers = #tpu.dot_dimension_numbers<[1], [0], [0], [1], [0, 0, 1, 1], [], []>} : vector<128x128xbf16>, vector<128x128xbf16>, vector<128x128xf32> -> vector<128x128xf32>
    %89 = arith.addf %85, %88 : vector<128x128xf32>
    %c0_83 = arith.constant 0 : index
    %c0_84 = arith.constant 0 : index
    %90 = vector.load %arg10[%c0_83, %c0_84] : memref<1x128xf32, #tpu.memory_space<vmem>>, vector<1x128xf32>
    %91 = vector.broadcast %90 : vector<1x128xf32> to vector<128x128xf32>
    %92 = arith.addf %89, %91 : vector<128x128xf32>
    %cst_85 = arith.constant 0.000000e+00 : f32
    %cst_86 = arith.constant 1.000000e+00 : f32
    %93 = vector.broadcast %cst_85 : f32 to vector<128x128xf32>
    %94 = arith.maximumf %93, %92 : vector<128x128xf32>
    %95 = vector.broadcast %cst_86 : f32 to vector<128x128xf32>
    %96 = arith.minimumf %95, %94 : vector<128x128xf32>
    %cst_87 = arith.constant 1.500000e+01 : f32
    %97 = vector.broadcast %cst_87 : f32 to vector<128x128xf32>
    %98 = arith.mulf %96, %97 : vector<128x128xf32>
    %99 = math.roundeven %98 : vector<128x128xf32>
    %cst_88 = arith.constant 0.0666666701 : f32
    %100 = vector.broadcast %cst_88 : f32 to vector<128x128xf32>
    %101 = arith.mulf %99, %100 : vector<128x128xf32>
    %102 = arith.truncf %101 : vector<128x128xf32> to vector<128x128xbf16>
    %c0_89 = arith.constant 0 : index
    %c0_90 = arith.constant 0 : index
    %c0_91 = arith.constant 0 : index
    %103 = vector.load %arg11[%c0_89, %c0_90, %c0_91] : memref<1x256x128xbf16, #tpu.memory_space<vmem>>, vector<1x128x128xbf16>
    %104 = vector.shape_cast %103 : vector<1x128x128xbf16> to vector<128x128xbf16>
    %105 = vector.shape_cast %102 : vector<128x128xbf16> to vector<1x128x128xbf16>
    tpu.vector_store %arg11[%c0_89, %c0_90, %c0_91], %105 {strides = array<i32>} : memref<1x256x128xbf16, #tpu.memory_space<vmem>>, vector<1x128x128xbf16>,
    %c8 = arith.constant 8 : index
    %c15_92 = arith.constant 15 : index
    %c0_93 = arith.constant 0 : index
    %106 = vector.load %arg12[%c8, %c15_92, %c0_93] : memref<18x48x128xbf16, #tpu.memory_space<vmem>>, vector<8x16x128xbf16>
    %107 = vector.shape_cast %106 : vector<8x16x128xbf16> to vector<128x128xbf16>
    %c8_94 = arith.constant 8 : index
    %c16_95 = arith.constant 16 : index
    %c0_96 = arith.constant 0 : index
    %108 = vector.load %arg12[%c8_94, %c16_95, %c0_96] : memref<18x48x128xbf16, #tpu.memory_space<vmem>>, vector<8x16x128xbf16>
    %109 = vector.shape_cast %108 : vector<8x16x128xbf16> to vector<128x128xbf16>
    %110 = tpu.concatenate %107, %109 in 1 : vector<128x128xbf16>, vector<128x128xbf16> -> vector<128x256xbf16>
    %c0_97 = arith.constant 0 : index
    %c0_98 = arith.constant 0 : index
    %c0_99 = arith.constant 0 : index
    %111 = vector.load %arg4[%c0_97, %c0_98, %c0_99] : memref<4x256x128xbf16, #tpu.memory_space<vmem>>, vector<1x256x128xbf16>
    %112 = vector.shape_cast %111 : vector<1x256x128xbf16> to vector<256x128xbf16>
    %cst_100 = arith.constant dense<0.000000e+00> : vector<128x128xf32>
    %113 = tpu.matmul %110, %112, %cst_100 {dimension_numbers = #tpu.dot_dimension_numbers<[1], [0], [0], [1], [0, 0, 1, 1], [], []>} : vector<128x256xbf16>, vector<256x128xbf16>, vector<128x128xf32> -> vector<128x128xf32>
    %c8_101 = arith.constant 8 : index
    %c17_102 = arith.constant 17 : index
    %c0_103 = arith.constant 0 : index
    %114 = vector.load %arg12[%c8_101, %c17_102, %c0_103] : memref<18x48x128xbf16, #tpu.memory_space<vmem>>, vector<8x16x128xbf16>
    %115 = vector.shape_cast %114 : vector<8x16x128xbf16> to vector<128x128xbf16>
    %c9 = arith.constant 9 : index
    %c15_104 = arith.constant 15 : index
    %c0_105 = arith.constant 0 : index
    %116 = vector.load %arg12[%c9, %c15_104, %c0_105] : memref<18x48x128xbf16, #tpu.memory_space<vmem>>, vector<8x16x128xbf16>
    %117 = vector.shape_cast %116 : vector<8x16x128xbf16> to vector<128x128xbf16>
    %118 = tpu.concatenate %115, %117 in 1 : vector<128x128xbf16>, vector<128x128xbf16> -> vector<128x256xbf16>
    %c1_106 = arith.constant 1 : index
    %c0_107 = arith.constant 0 : index
    %c0_108 = arith.constant 0 : index
    %119 = vector.load %arg4[%c1_106, %c0_107, %c0_108] : memref<4x256x128xbf16, #tpu.memory_space<vmem>>, vector<1x256x128xbf16>
    %120 = vector.shape_cast %119 : vector<1x256x128xbf16> to vector<256x128xbf16>
    %cst_109 = arith.constant dense<0.000000e+00> : vector<128x128xf32>
    %121 = tpu.matmul %118, %120, %cst_109 {dimension_numbers = #tpu.dot_dimension_numbers<[1], [0], [0], [1], [0, 0, 1, 1], [], []>} : vector<128x256xbf16>, vector<256x128xbf16>, vector<128x128xf32> -> vector<128x128xf32>
    %122 = arith.addf %113, %121 : vector<128x128xf32>
    %c9_110 = arith.constant 9 : index
    %c16_111 = arith.constant 16 : index
    %c0_112 = arith.constant 0 : index
    %123 = vector.load %arg12[%c9_110, %c16_111, %c0_112] : memref<18x48x128xbf16, #tpu.memory_space<vmem>>, vector<8x16x128xbf16>
    %124 = vector.shape_cast %123 : vector<8x16x128xbf16> to vector<128x128xbf16>
    %c9_113 = arith.constant 9 : index
    %c17_114 = arith.constant 17 : index
    %c0_115 = arith.constant 0 : index
    %125 = vector.load %arg12[%c9_113, %c17_114, %c0_115] : memref<18x48x128xbf16, #tpu.memory_space<vmem>>, vector<8x16x128xbf16>
    %126 = vector.shape_cast %125 : vector<8x16x128xbf16> to vector<128x128xbf16>
    %127 = tpu.concatenate %124, %126 in 1 : vector<128x128xbf16>, vector<128x128xbf16> -> vector<128x256xbf16>
    %c2_116 = arith.constant 2 : index
    %c0_117 = arith.constant 0 : index
    %c0_118 = arith.constant 0 : index
    %128 = vector.load %arg4[%c2_116, %c0_117, %c0_118] : memref<4x256x128xbf16, #tpu.memory_space<vmem>>, vector<1x256x128xbf16>
    %129 = vector.shape_cast %128 : vector<1x256x128xbf16> to vector<256x128xbf16>
    %cst_119 = arith.constant dense<0.000000e+00> : vector<128x128xf32>
    %130 = tpu.matmul %127, %129, %cst_119 {dimension_numbers = #tpu.dot_dimension_numbers<[1], [0], [0], [1], [0, 0, 1, 1], [], []>} : vector<128x256xbf16>, vector<256x128xbf16>, vector<128x128xf32> -> vector<128x128xf32>
    %131 = arith.addf %122, %130 : vector<128x128xf32>
    %c10 = arith.constant 10 : index
    %c15_120 = arith.constant 15 : index
    %c0_121 = arith.constant 0 : index
    %132 = vector.load %arg12[%c10, %c15_120, %c0_121] : memref<18x48x128xbf16, #tpu.memory_space<vmem>>, vector<8x16x128xbf16>
    %133 = vector.shape_cast %132 : vector<8x16x128xbf16> to vector<128x128xbf16>
    %c10_122 = arith.constant 10 : index
    %c16_123 = arith.constant 16 : index
    %c0_124 = arith.constant 0 : index
    %134 = vector.load %arg12[%c10_122, %c16_123, %c0_124] : memref<18x48x128xbf16, #tpu.memory_space<vmem>>, vector<8x16x128xbf16>
    %135 = vector.shape_cast %134 : vector<8x16x128xbf16> to vector<128x128xbf16>
    %136 = tpu.concatenate %133, %135 in 1 : vector<128x128xbf16>, vector<128x128xbf16> -> vector<128x256xbf16>
    %c3_125 = arith.constant 3 : index
    %c0_126 = arith.constant 0 : index
    %c0_127 = arith.constant 0 : index
    %137 = vector.load %arg4[%c3_125, %c0_126, %c0_127] : memref<4x256x128xbf16, #tpu.memory_space<vmem>>, vector<1x256x128xbf16>
    %138 = vector.shape_cast %137 : vector<1x256x128xbf16> to vector<256x128xbf16>
    %cst_128 = arith.constant dense<0.000000e+00> : vector<128x128xf32>
    %139 = tpu.matmul %136, %138, %cst_128 {dimension_numbers = #tpu.dot_dimension_numbers<[1], [0], [0], [1], [0, 0, 1, 1], [], []>} : vector<128x256xbf16>, vector<256x128xbf16>, vector<128x128xf32> -> vector<128x128xf32>
    %140 = arith.addf %131, %139 : vector<128x128xf32>
    %c10_129 = arith.constant 10 : index
    %c17_130 = arith.constant 17 : index
    %c0_131 = arith.constant 0 : index
    %141 = vector.load %arg12[%c10_129, %c17_130, %c0_131] : memref<18x48x128xbf16, #tpu.memory_space<vmem>>, vector<8x16x128xbf16>
    %142 = vector.shape_cast %141 : vector<8x16x128xbf16> to vector<128x128xbf16>
    %c0_132 = arith.constant 0 : index
    %c0_133 = arith.constant 0 : index
    %143 = vector.load %arg5[%c0_132, %c0_133] : memref<128x128xbf16, #tpu.memory_space<vmem>>, vector<128x128xbf16>
    %cst_134 = arith.constant dense<0.000000e+00> : vector<128x128xf32>
    %144 = tpu.matmul %142, %143, %cst_134 {dimension_numbers = #tpu.dot_dimension_numbers<[1], [0], [0], [1], [0, 0, 1, 1], [], []>} : vector<128x128xbf16>, vector<128x128xbf16>, vector<128x128xf32> -> vector<128x128xf32>
    %145 = arith.addf %140, %144 : vector<128x128xf32>
    %c0_135 = arith.constant 0 : index
    %c0_136 = arith.constant 0 : index
    %146 = vector.load %arg6[%c0_135, %c0_136] : memref<1x128xf32, #tpu.memory_space<vmem>>, vector<1x128xf32>
    %147 = vector.broadcast %146 : vector<1x128xf32> to vector<128x128xf32>
    %148 = arith.addf %145, %147 : vector<128x128xf32>
    %cst_137 = arith.constant 0.000000e+00 : f32
    %cst_138 = arith.constant 1.000000e+00 : f32
    %149 = vector.broadcast %cst_137 : f32 to vector<128x128xf32>
    %150 = arith.maximumf %149, %148 : vector<128x128xf32>
    %151 = vector.broadcast %cst_138 : f32 to vector<128x128xf32>
    %152 = arith.minimumf %151, %150 : vector<128x128xf32>
    %cst_139 = arith.constant 1.500000e+01 : f32
    %153 = vector.broadcast %cst_139 : f32 to vector<128x128xf32>
    %154 = arith.mulf %152, %153 : vector<128x128xf32>
    %155 = math.roundeven %154 : vector<128x128xf32>
    %cst_140 = arith.constant 0.0666666701 : f32
    %156 = vector.broadcast %cst_140 : f32 to vector<128x128xf32>
    %157 = arith.mulf %155, %156 : vector<128x128xf32>
    %158 = arith.truncf %157 : vector<128x128xf32> to vector<128x128xbf16>
    %c0_141 = arith.constant 0 : index
    %c0_142 = arith.constant 0 : index
    %159 = vector.load %arg7[%c0_141, %c0_142] : memref<128x128xbf16, #tpu.memory_space<vmem>>, vector<128x128xbf16>
    %cst_143 = arith.constant dense<0.000000e+00> : vector<128x128xf32>
    %160 = tpu.matmul %158, %159, %cst_143 {dimension_numbers = #tpu.dot_dimension_numbers<[1], [0], [0], [1], [0, 0, 1, 1], [], []>} : vector<128x128xbf16>, vector<128x128xbf16>, vector<128x128xf32> -> vector<128x128xf32>
    %c0_144 = arith.constant 0 : index
    %c0_145 = arith.constant 0 : index
    %161 = vector.load %arg8[%c0_144, %c0_145] : memref<1x128xf32, #tpu.memory_space<vmem>>, vector<1x128xf32>
    %162 = vector.broadcast %161 : vector<1x128xf32> to vector<128x128xf32>
    %163 = arith.addf %160, %162 : vector<128x128xf32>
    %164 = vector.extract_strided_slice %2 {offsets = [128, 0], sizes = [128, 128], strides = [1, 1]} : vector<256x128xbf16> to vector<128x128xbf16>
    %c0_146 = arith.constant 0 : index
    %c0_147 = arith.constant 0 : index
    %165 = vector.load %arg9[%c0_146, %c0_147] : memref<128x128xbf16, #tpu.memory_space<vmem>>, vector<128x128xbf16>
    %cst_148 = arith.constant dense<0.000000e+00> : vector<128x128xf32>
    %166 = tpu.matmul %164, %165, %cst_148 {dimension_numbers = #tpu.dot_dimension_numbers<[1], [0], [0], [1], [0, 0, 1, 1], [], []>} : vector<128x128xbf16>, vector<128x128xbf16>, vector<128x128xf32> -> vector<128x128xf32>
    %167 = arith.addf %163, %166 : vector<128x128xf32>
    %c0_149 = arith.constant 0 : index
    %c0_150 = arith.constant 0 : index
    %168 = vector.load %arg10[%c0_149, %c0_150] : memref<1x128xf32, #tpu.memory_space<vmem>>, vector<1x128xf32>
    %169 = vector.broadcast %168 : vector<1x128xf32> to vector<128x128xf32>
    %170 = arith.addf %167, %169 : vector<128x128xf32>
    %cst_151 = arith.constant 0.000000e+00 : f32
    %cst_152 = arith.constant 1.000000e+00 : f32
    %171 = vector.broadcast %cst_151 : f32 to vector<128x128xf32>
    %172 = arith.maximumf %171, %170 : vector<128x128xf32>
    %173 = vector.broadcast %cst_152 : f32 to vector<128x128xf32>
    %174 = arith.minimumf %173, %172 : vector<128x128xf32>
    %cst_153 = arith.constant 1.500000e+01 : f32
    %175 = vector.broadcast %cst_153 : f32 to vector<128x128xf32>
    %176 = arith.mulf %174, %175 : vector<128x128xf32>
    %177 = math.roundeven %176 : vector<128x128xf32>
    %cst_154 = arith.constant 0.0666666701 : f32
    %178 = vector.broadcast %cst_154 : f32 to vector<128x128xf32>
    %179 = arith.mulf %177, %178 : vector<128x128xf32>
    %180 = arith.truncf %179 : vector<128x128xf32> to vector<128x128xbf16>
    %c0_155 = arith.constant 0 : index
    %c128 = arith.constant 128 : index
    %c0_156 = arith.constant 0 : index
    %181 = vector.load %arg11[%c0_155, %c128, %c0_156] : memref<1x256x128xbf16, #tpu.memory_space<vmem>>, vector<1x128x128xbf16>
    %182 = vector.shape_cast %181 : vector<1x128x128xbf16> to vector<128x128xbf16>
    %183 = vector.shape_cast %180 : vector<128x128xbf16> to vector<1x128x128xbf16>
    tpu.vector_store %arg11[%c0_155, %c128, %c0_156], %183 {strides = array<i32>} : memref<1x256x128xbf16, #tpu.memory_space<vmem>>, vector<1x128x128xbf16>,
    return
  }
  func.func @transform_0(%arg0: i32) -> (i32, i32, i32, i32) {
    %c0_i32 = arith.constant 0 : i32
    %c0_i32_0 = arith.constant 0 : i32
    %c0_i32_1 = arith.constant 0 : i32
    %c0_i32_2 = arith.constant 0 : i32
    return %arg0, %c0_i32, %c0_i32_0, %c0_i32_1 : i32, i32, i32, i32
  }
  func.func @transform_1(%arg0: i32) -> (i32, i32) {
    %c0_i32 = arith.constant 0 : i32
    %c0_i32_0 = arith.constant 0 : i32
    %c0_i32_1 = arith.constant 0 : i32
    return %c0_i32, %c0_i32_0 : i32, i32
  }
  func.func @transform_2(%arg0: i32) -> (i32, i32) {
    %c0_i32 = arith.constant 0 : i32
    %c0_i32_0 = arith.constant 0 : i32
    %c0_i32_1 = arith.constant 0 : i32
    return %c0_i32, %c0_i32_0 : i32, i32
  }
  func.func @transform_3(%arg0: i32) -> (i32, i32, i32) {
    %c0_i32 = arith.constant 0 : i32
    %c0_i32_0 = arith.constant 0 : i32
    %c0_i32_1 = arith.constant 0 : i32
    %c0_i32_2 = arith.constant 0 : i32
    return %c0_i32, %c0_i32_0, %c0_i32_1 : i32, i32, i32
  }
  func.func @transform_4(%arg0: i32) -> (i32, i32) {
    %c0_i32 = arith.constant 0 : i32
    %c0_i32_0 = arith.constant 0 : i32
    %c0_i32_1 = arith.constant 0 : i32
    return %c0_i32, %c0_i32_0 : i32, i32
  }
  func.func @transform_5(%arg0: i32) -> (i32, i32) {
    %c0_i32 = arith.constant 0 : i32
    %c0_i32_0 = arith.constant 0 : i32
    %c0_i32_1 = arith.constant 0 : i32
    return %c0_i32, %c0_i32_0 : i32, i32
  }
  func.func @transform_6(%arg0: i32) -> (i32, i32) {
    %c0_i32 = arith.constant 0 : i32
    %c0_i32_0 = arith.constant 0 : i32
    %c0_i32_1 = arith.constant 0 : i32
    return %c0_i32, %c0_i32_0 : i32, i32
  }
  func.func @transform_7(%arg0: i32) -> (i32, i32) {
    %c0_i32 = arith.constant 0 : i32
    %c0_i32_0 = arith.constant 0 : i32
    %c0_i32_1 = arith.constant 0 : i32
    return %c0_i32, %c0_i32_0 : i32, i32
  }
  func.func @transform_8(%arg0: i32) -> (i32, i32) {
    %c0_i32 = arith.constant 0 : i32
    %c0_i32_0 = arith.constant 0 : i32
    %c0_i32_1 = arith.constant 0 : i32
    return %c0_i32, %c0_i32_0 : i32, i32
  }
  func.func @transform_9(%arg0: i32) -> (i32, i32) {
    %c0_i32 = arith.constant 0 : i32
    %c0_i32_0 = arith.constant 0 : i32
    %c0_i32_1 = arith.constant 0 : i32
    return %c0_i32, %c0_i32_0 : i32, i32
  }
  func.func @transform_10(%arg0: i32) -> (i32, i32, i32) {
    %c0_i32 = arith.constant 0 : i32
    %c0_i32_0 = arith.constant 0 : i32
    %c0_i32_1 = arith.constant 0 : i32
    return %arg0, %c0_i32, %c0_i32_0 : i32, i32, i32
  }
}

</mosaic_0001>

<bundles_post_ra>
// kernel: tpu_custom_call.1
= control target key start
LH: loop header
LB: loop body
LE: loop exit
PB: predicated region body
PF: predicated region fallthrough
CT: control target
= control target key end

     0   :  { %s14169_s0 = inlined_call_operand.hbm [shape: bf16[2,16,16,128], index: 0, kind: input, shape index: {}]   ;;  %s14170_s1 = inlined_call_operand.hbm [shape: bf16[128,128], index: 1, kind: input, shape index: {}]   ;;  %s14171_s2 = inlined_call_operand.vmem [shape: f32[1,128], index: 2, kind: input, shape index: {}]   ;;  %s14172_s3 = inlined_call_operand.hbm [shape: bf16[4,256,128], index: 3, kind: input, shape index: {}]   ;;  %s14173_s4 = inlined_call_operand.hbm [shape: bf16[128,128], index: 4, kind: input, shape index: {}]   ;;  %s14174_s5 = inlined_call_operand.vmem [shape: f32[1,128], index: 5, kind: input, shape index: {}]   ;;  %s14175_s6 = inlined_call_operand.hbm [shape: bf16[128,128], index: 6, kind: input, shape index: {}]   ;;  %s14176_s7 = inlined_call_operand.vmem [shape: f32[1,128], index: 7, kind: input, shape index: {}]   ;;  %s14177_s8 = inlined_call_operand.hbm [shape: bf16[128,128], index: 8, kind: input, shape index: {}]   ;;  %s14178_s9 = inlined_call_operand.vmem [shape: f32[1,128], index: 9, kind: input, shape index: {}]   ;;  %s14179_s10 = inlined_call_operand.hbm [shape: bf16[2,256,128], index: 10, kind: output, shape index: {}]  }
   0x1   :  { %14252 = sst [smem:[#allocation74_spill]] %s14170_s1 }
   0x2   :  { %14253 = sst [smem:[#allocation75_spill]] %s14172_s3 }
   0x3   :  { %14254 = sst [smem:[#allocation76_spill]] %s14173_s4 }
   0x4   :  { %14255 = sst [smem:[#allocation77_spill]] %s14175_s6 }
   0x5   :  { %15 = vsyncpa [#allocation4], 0 }
   0x6   :  { %17 = vsyncpa [#allocation4 + $0x1], 0 }
   0x7   :  { %18 = vsyncpa [#allocation7], 0 }
   0x8   :  { %19 = vsyncpa [#allocation10], 0 }
   0x9   :  { %20 = vsyncpa [#allocation13], 0 }
   0xa   :  { %21 = vsyncpa [#allocation5], 0 }
   0xb   :  { %23 = vsyncpa [#allocation5 + $0x1], 0  ;;  %s10924_s13 = smov 0   ;;  %s10926_s14 = smov 0  }
   0xc   :  { %s10928_s15 = smov 0   ;;  %s10930_s16 = smov 0  }
   0xd LB: > { %s10857_s17 = smov [#allocation6]   ;;  %s10945_s19 = sadd.s32 4294967295, %s10855_s16   ;;  %s10855_s16 = sphi %s10930_s16, %s14682_s16   ;;  %s10851_s15 = sphi %s10928_s15, %s14681_s15   ;;  %s10847_s14 = sphi %s10926_s14, %s14680_s14   ;;  %s10843_s13 = sphi %s10924_s13, %s14679_s13  }
   0xe   : > { %s287_s18 = sshll.u32 %s10857_s17, 4  ;;  %p7868_p0 = scmp.ge.s32.totalorder %s10855_s16, 1  ;;  %s288_s18 = int_to_ptr.vmem [resolvable:$true] %s287_s18 }
   0xf   : > { %p14182_p1 = scmp.eq.s32.totalorder %s10945_s19, 0  ;;  %p275_p2 = scmp.lt.s32.totalorder %s10855_s16, 3 }
  0x10   : > { %s10858_s21 = smov [#allocation9]   ;;  %s10859_s24 = smov [#allocation8]  }
  0x11   : > { %p10950_p3 = pnand %p7868_p0, %p275_p2  ;;  %s316_s22 = sshll.u32 %s10858_s21, 4  ;;  %s10963_s22 = int_to_ptr.vmem [resolvable:$true] %s316_s22 }
  0x12   : > { %s303_s25 = sshll.u32 %s10859_s24, 4  ;;  %s10632_s27 = scalar_lea.vmem %s288_s18, 1024  ;;  %s10965_s25 = int_to_ptr.vmem [resolvable:$true] %s303_s25 }
  0x13   : > { %s14256_s20 = scalar_select %p10950_p3, 1, 0 }
  0x14   : > { %p10275_p5 = pneg %p10950_p3  ;;  %p10633_p8 = scmp.ne.s32.totalorder %s288_s18, %s10632_s27 }
  0x15   : > { %p10640_p11 = scmp.lt.s32.totalorder %s288_s18, %s288_s18  ;;  %p10641_p12 = scmp.lt.s32.totalorder %s10632_s27, %s10632_s27 }
  0x16   : > { %p10959_p6 = pnand %p10275_p5, %p14182_p1 }
  0x17   : > { %p10642_p13 = por %p10641_p12, %p10640_p11 }
  0x18   : > { %p10969_p7 = pneg %p10959_p6 }
  0x1a   : > { %p10635_p9 = pnand %p10633_p8, %p10969_p7 }
  0x1c   : > { %p10636_p10 = pneg %p10635_p9 }
  0x1e   : > { %p10643_p0 = pnand %p10642_p13, %p10636_p10 }
  0x20   : > { %10646 = shalt.err (!%p10643_p0)
}
  0x21   : > { %s14180_s28 = smov 64   ;;  %s14181_s29 = smov 4  }
  0x22   : > { %s14259_s1 = sld [smem:[#allocation74_spill]]  ;;  %s10658_s12 = scalar_lea.vmem %s10963_s22, 1024 }
  0x23   : > { %p10659_p2 = scmp.ne.s32.totalorder %s10963_s22, %s10658_s12  ;;  %p10666_p9 = scmp.lt.s32.totalorder %s10963_s22, %s10963_s22 }
  0x24   : > { %p10667_p10 = scmp.lt.s32.totalorder %s10658_s12, %s10658_s12 }
  0x25   : > { %p10661_p5 = pnand %p10659_p2, %p10969_p7 }
  0x26   : > { %p10668_p11 = por %p10667_p10, %p10666_p9 }
  0x27   : > { %p10662_p8 = pneg %p10661_p5 }
  0x28   : > { %10278 = dma.hbm_to_vmem [thread:$0]  (!%p10959_p6), %s14259_s1, 1024, %s288_s18, [#allocation7], %s14180_s28, %s14180_s28, %s14181_s29  }
  0x29   : > { %p10669_p12 = pnand %p10668_p11, %p10662_p8 }
  0x2b   : > { %10672 = shalt.err (!%p10669_p12)
}
  0x2c   : > { %s14260_s4 = sld [smem:[#allocation76_spill]]  ;;  %s10684_s18 = scalar_lea.vmem %s10965_s25, 8192 }
  0x2d   : > { %p10685_p13 = scmp.ne.s32.totalorder %s10965_s25, %s10684_s18  ;;  %p10692_p5 = scmp.lt.s32.totalorder %s10965_s25, %s10965_s25 }
  0x2e   : > { %p10693_p8 = scmp.lt.s32.totalorder %s10684_s18, %s10684_s18 }
  0x2f   : > { %p10687_p0 = pnand %p10685_p13, %p10969_p7 }
  0x30   : > { %p10694_p9 = por %p10693_p8, %p10692_p5 }
  0x31   : > { %p10688_p2 = pneg %p10687_p0 }
  0x32   : > { %10284 = dma.hbm_to_vmem [thread:$0]  (!%p10959_p6), %s14260_s4, 1024, %s10963_s22, [#allocation10], %s14180_s28, %s14180_s28, %s14181_s29  }
  0x33   : > { %p10695_p10 = pnand %p10694_p9, %p10688_p2 }
  0x35   : > { %10698 = shalt.err (!%p10695_p10)
}
  0x36   : > { %s14261_s3 = sld [smem:[#allocation75_spill]]  ;;  %s10862_s22 = smov [#allocation11]  }
  0x37   : > { %s332_s30 = sshll.u32 %s10862_s22, 4  ;;  %s10863_s11 = smov [#allocation12]   ;;  %s333_s30 = int_to_ptr.vmem [resolvable:$true] %s332_s30 }
  0x38   : > { %s348_s12 = sshll.u32 %s10863_s11, 4  ;;  %s10710_s17 = scalar_lea.vmem %s333_s30, 1024  ;;  %s349_s12 = int_to_ptr.vmem [resolvable:$true] %s348_s12 }
  0x39   : > { %p10711_p11 = scmp.ne.s32.totalorder %s333_s30, %s10710_s17  ;;  %p10718_p0 = scmp.lt.s32.totalorder %s333_s30, %s333_s30 }
  0x3a   : > { %p10719_p2 = scmp.lt.s32.totalorder %s10710_s17, %s10710_s17 }
  0x3b   : > { %p10713_p12 = pnand %p10711_p11, %p10969_p7 }
  0x3c   : > { %10281 = dma.hbm_to_vmem [thread:$0]  (!%p10959_p6), %s14261_s3, 8192, %s10965_s25, [#allocation7], %s14180_s28, %s14180_s28, %s14181_s29  }
  0x3d   : > { %p10714_p13 = pneg %p10713_p12  ;;  %p10720_p5 = por %p10719_p2, %p10718_p0 }
  0x3f   : > { %p10721_p8 = pnand %p10720_p5, %p10714_p13 }
  0x41   : > { %10724 = shalt.err (!%p10721_p8)
}
  0x42   : > { %s14262_s6 = sld [smem:[#allocation77_spill]]  ;;  %s10736_s18 = scalar_lea.vmem %s349_s12, 1024 }
  0x43   : > { %p10737_p9 = scmp.ne.s32.totalorder %s349_s12, %s10736_s18  ;;  %p10744_p12 = scmp.lt.s32.totalorder %s349_s12, %s349_s12 }
  0x44   : > { %p10745_p0 = scmp.lt.s32.totalorder %s10736_s18, %s10736_s18 }
  0x45   : > { %p10739_p10 = pnand %p10737_p9, %p10969_p7 }
  0x46   : > { %p10746_p13 = por %p10745_p0, %p10744_p12 }
  0x47   : > { %p10740_p11 = pneg %p10739_p10 }
  0x48   : > { %10287 = dma.hbm_to_vmem [thread:$0]  (!%p10959_p6), %s14262_s6, 1024, %s333_s30, [#allocation10], %s14180_s28, %s14180_s28, %s14181_s29  }
  0x49   : > { %p10747_p2 = pnand %p10746_p13, %p10740_p11 }
  0x4b   : > { %10750 = shalt.err (!%p10747_p2)
}
  0x4c   : > { %10290 = dma.hbm_to_vmem [thread:$0]  (!%p10959_p6), %s14177_s8, 1024, %s349_s12, [#allocation13], %s14180_s28, %s14180_s28, %s14181_s29  }
  0x4d   : > { %s7867_s23 = sadd.s32 4294967294, %s10855_s16   ;;  %s11035_s26 = sadd.s32 1, %s10855_s16  }
  0x4e   : > { %s36_s22 = sadd.s32 1, %s10851_s15  ;;  %s33_s30 = ssub.s32 %s10855_s16, %s11035_s26 }
  0x4f   : > { %p43_p7 = scmp.ne.s32.totalorder %s10851_s15, %s10847_s14  ;;  %p34_p5 = scmp.eq.s32.totalorder %s33_s30, 0 }
  0x50   : > { %p44_p8 = scmp.eq.s32.totalorder %s10855_s16, 0  ;;  %p49_p9 = scmp.ne.s32.totalorder %s10847_s14, %s10843_s13 }
  0x51   : > { %p262_p10 = scmp.eq.s32.totalorder %s10945_s19, 1  ;;  %p268_p0 = scmp.eq.s32.totalorder %s7867_s23, 1 }
  0x52   : > { %s11047_s11 = scalar_select %p34_p5, %s10851_s15, %s36_s22  }
  0x53   : > { %p45_p11 = por %p44_p8, %p43_p7  ;;  %p11051_p12 = por %p14182_p1, %p49_p9 }
  0x54   : > { %p11055_p6 = por %p262_p10, %p43_p7  ;;  %p10304_p13 = scmp.lt.s32.totalorder %s10855_s16, 2 }
  0x55   : > { %s14263_s17 = scalar_select %p11051_p12, 1, 0 }
  0x56   : > { %s14264_s12 = scalar_select %p11055_p6, 1, 0 }
  0x57   : > { %s365_s25 = sand.u32 1, %s10851_s15   ;;  %p11061_p2 = por %p268_p0, %p49_p9 }
  0x58   : > { %s7875_s18 = sshll.u32 %s365_s25, 7  ;;  %s8354_s24 = sshll.u32 %s10855_s16, 11 }
  0x59   : > { %s14265_s21 = scalar_select %p11061_p2, 1, 0 }
  0x5a   : > { %s11069_s30 = scalar_lea.hbm %s14169_s0, %s8354_s24  ;;  %s369_s28 = scalar_lea.vmem [#allocation3], %s7875_s18 }
  0x5b   : > { %s376_s29 = sshll.u32 %s369_s28, 4  ;;  %p11071_p7 = pnand %p10304_p13, %p45_p11  ;;  %s11075_s29 = int_to_ptr.vmem [resolvable:$true] %s376_s29 }
  0x5c   : > { %s11077_s1 = scalar_lea.sflag [#allocation4], %s365_s25  ;;  %s10751_s3 = scalar_lea.hbm %s11069_s30, 2048 }
  0x5d   : > { %p10752_p5 = scmp.ne.s32.totalorder %s11069_s30, %s10751_s3  ;;  %p10753_p8 = pneg %p11071_p7 }
  0x5e   : > { %s10756_s18 = scalar_lea.hbm %s14169_s0, 4096  ;;  %p10757_p11 = scmp.lt.s32.totalorder %s11069_s30, %s14169_s0 }
  0x5f   : > { %p10754_p9 = pnand %p10753_p8, %p10752_p5  ;;  %p10758_p0 = scmp.lt.s32.totalorder %s10756_s18, %s10751_s3 }
  0x61   : > { %p10755_p10 = pneg %p10754_p9  ;;  %p10759_p13 = por %p10758_p0, %p10757_p11 }
  0x63   : > { %p10760_p4 = pnand %p10759_p13, %p10755_p10 }
  0x65   : > { %10763 = shalt.err (!%p10760_p4)
}
  0x66   : > { %s10764_s25 = scalar_lea.vmem %s11075_s29, 2048  ;;  %s10864_s4 = smov [#allocation3]  }
  0x67   : > { %p10765_p1 = scmp.ne.s32.totalorder %s11075_s29, %s10764_s25  ;;  %s10769_s6 = sshll.u32 %s10864_s4, 4  ;;  %s10770_s6 = int_to_ptr.vmem [resolvable:$false] %s10769_s6 }
  0x68   : > { %s10771_s24 = scalar_lea.vmem %s10770_s6, 4096  ;;  %p10772_p9 = scmp.lt.s32.totalorder %s11075_s29, %s10770_s6 }
  0x69   : > { %p10767_p2 = pnand %p10765_p1, %p10753_p8  ;;  %p10773_p6 = scmp.lt.s32.totalorder %s10771_s24, %s10764_s25 }
  0x6b   : > { %p10768_p5 = pneg %p10767_p2  ;;  %p10774_p12 = por %p10773_p6, %p10772_p9 }
  0x6d   : > { %p10775_p3 = pnand %p10774_p12, %p10768_p5 }
  0x6f   : > { %10778 = shalt.err (!%p10775_p3)
}
  0x70   : > { %s14267_s3 = smov 4   ;;  %s14268_s27 = smov 64  }
  0x71   : > { %10294 = dma.hbm_to_vmem [thread:$0]  (!%p11071_p7), %s11069_s30, 2048, %s11075_s29, %s11077_s1, %s14268_s27, %s14268_s27, %s14267_s3  }
  0x72   : > { %p14269_p1 = scmp.ne.s32.totalorder %s14256_s20, 0 }
  0x74   : > { %388 = sbr.rel (%p14269_p1) target bundleno = 1528 (0x5f8), region = 60 }
  0x79   : > { %s11104_s4 = sand.u32 1, %s10847_s14   ;;  %p14270_p3 = scmp.ne.s32.totalorder %s14263_s17, 0 }
  0x7a   : > { %s7879_s6 = sshll.u32 %s11104_s4, 7  ;;  %s391_s18 = scalar_lea.sflag [#allocation4], %s11104_s4 }
  0x7b   : > { %s11110_s23 = scalar_lea.vmem [#allocation3], %s7879_s6 }
  0x7c   : > { %10822 = dma.done.wait (%p14270_p3), %s391_s18, 2048  }
  0x7d   : > { %10824 = vsyncadd (%p14270_p3), %s391_s18, 4294965248  ;;  %p14271_p4 = scmp.eq.s32.totalorder %s10945_s19, 0 }
  0x7f   : > { %10826 = dma.done.wait (%p14271_p4), [#allocation7], 9216   ;;  %p14272_p12 = pmov %p14271_p4 }
  0x80   : > { %p14273_p6 = pmov %p14271_p4 }
  0x81   : > { %10828 = vsyncadd (%p14272_p12), [#allocation7], 4294958080 }
  0x82   : > { %10830 = dma.done.wait (%p14273_p6), [#allocation10], 2048   ;;  %p14274_p2 = pmov %p14271_p4 }
  0x84   : > { %10832 = vsyncadd (%p14274_p2), [#allocation10], 4294965248  ;;  %p14275_p7 = pmov %p14274_p2 }
  0x85   : > { %p14276_p8 = pmov %p14274_p2 }
  0x86   : > { %10834 = dma.done.wait (%p14275_p7), [#allocation13], 1024  }
  0x87   : > { %10836 = vsyncadd (%p14276_p8), [#allocation13], 4294966272  ;;  %v10353_v0 = vld [vmem:[#allocation6 + $0x38] sm:$0xff]   ;;  %v10354_v1 = vld [vmem:[#allocation6 + $0x30] sm:$0xff]   ;;  %v10865_v39 = vmov 0   ;;  %vm1002_vm3 = vcmask 1043459  }
  0x88   : > { %9243 = vmatprep.subr.bf16.mxu0 %v10353_v0  ;;  %v10355_v2 = vld [vmem:[#allocation6 + $0x28] sm:$0xff]   ;;  %v10356_v3 = vld [vmem:[#allocation6 + $0x20] sm:$0xff]   ;;  %v10357_v5 = vld [vmem:[#allocation6 + $0x18] sm:$0xff]   ;;  %990 = vst [vmem:[#allocation2 + $0x8] sm:$0xf] %v10865_v39  ;;  %vm1053_vm6 = vcmask 1040384  }
  0x89   : > { %9244 = vmatpush3.bf16.msra.mxu0 %v10353_v0  ;;  %v10361_v4 = vld [vmem:[%s11110_s23] sm:$0xff]   ;;  %v10358_v6 = vld [vmem:[#allocation6 + $0x10] sm:$0xff]   ;;  %v10359_v7 = vld [vmem:[#allocation6 + $0x8] sm:$0xff]   ;;  %991 = vst [vmem:[#allocation2 + $0xc] sm:$0xf] %v10865_v39  ;;  %s13526_s1 = scalar_lea.vmem [#allocation14], %s7879_s6 }
  0x8a   : > { %9245 = vmatprep.subr.bf16.mxu0 %v10354_v1  ;;  %9259 = vmatprep.mubr.bf16.mxu0 %v10361_v4  ;;  %v10360_v8 = vld [vmem:[#allocation6] sm:$0xff]   ;;  %v10362_v9 = vld [vmem:[%s11110_s23 + $0x8] sm:$0xff]   ;;  %v10363_v10 = vld [vmem:[%s11110_s23 + $0x10] sm:$0xff]   ;;  %989 = vst [vmem:[#allocation2 + $0x4] sm:$0xf] %v10865_v39  ;;  %s8419_s28 = sshll.u32 %s10945_s19, 11 }
  0x8b   : > { %v10364_v11 = vld [vmem:[%s11110_s23 + $0x18] sm:$0xff]   ;;  %v10365_v12 = vld [vmem:[%s11110_s23 + $0x20] sm:$0xff]   ;;  %v10366_v13 = vld [vmem:[%s11110_s23 + $0x28] sm:$0xff]   ;;  %992 = vst [vmem:[#allocation2 + $0x10] sm:$0xf] %v10865_v39  ;;  %s7746_s22 = sshll.u32 %s13526_s1, 4  ;;  %s14123_s3 = scalar_lea.hbm %s14179_s10, %s8419_s28  ;;  %s14125_s22 = int_to_ptr.vmem [resolvable:$true] %s7746_s22 }
  0x8c   : > { %v10367_v14 = vld [vmem:[%s11110_s23 + $0x30] sm:$0xff]   ;;  %v10368_v15 = vld [vmem:[%s11110_s23 + $0x38] sm:$0xff]   ;;  %v10369_v16 = vld [vmem:[%s11110_s23 + $0x40] sm:$0xff]   ;;  %996 = vst [vmem:[#allocation2 + $0x19c] sm:$0xf] %v10865_v39  ;;  %s7733_s27 = scalar_lea.sflag [#allocation5], %s11104_s4 }
  0x8d   : > { %9246 = vmatpush3.bf16.msra.mxu0 %v10354_v1  ;;  %v10370_v17 = vld [vmem:[%s11110_s23 + $0x48] sm:$0xff]   ;;  %v10371_v18 = vld [vmem:[%s11110_s23 + $0x50] sm:$0xff]   ;;  %v10372_v19 = vld [vmem:[%s11110_s23 + $0x58] sm:$0xff]   ;;  %997 = vst [vmem:[#allocation2 + $0x1a0] sm:$0xf] %v10865_v39  ;;  %s10779_s19 = scalar_lea.vmem %s14125_s22, 2048 }
  0x8e   : > { %9247 = vmatprep.subr.bf16.mxu0 %v10355_v2  ;;  %v10373_v20 = vld [vmem:[%s11110_s23 + $0x60] sm:$0xff]   ;;  %v10374_v21 = vld [vmem:[%s11110_s23 + $0x68] sm:$0xff]   ;;  %v10375_v22 = vld [vmem:[#allocation8 + $0x78] sm:$0xff]   ;;  %998 = vst [vmem:[#allocation2 + $0x1a4] sm:$0xf] %v10865_v39  ;;  %p10780_p10 = scmp.ne.s32.totalorder %s14125_s22, %s10779_s19  ;;  %p14676_p11 = scmp.ne.s32.totalorder %s14264_s12, 0 }
  0x8f   : > { %v10376_v23 = vld [vmem:[#allocation8 + $0x38] sm:$0xff]   ;;  %v10377_v24 = vld [vmem:[#allocation8 + $0x70] sm:$0xff]   ;;  %v10380_v26 = vld [vmem:[#allocation8 + $0x68] sm:$0xff]   ;;  %999 = vst [vmem:[#allocation2 + $0x1a8] sm:$0xf] %v10865_v39  ;;  %s10866_s18 = smov [#allocation14]  }
  0x90   : > { %v10378_v25 = vld [vmem:[#allocation8 + $0x30] sm:$0xff]   ;;  %v10379_v27 = vld [vmem:[#allocation8 + $0xf8] sm:$0xff]   ;;  %v10382_v28 = vld [vmem:[#allocation8 + $0x28] sm:$0xff]   ;;  %vm1054_vm0 = vsmask.f32 256  ;;  %p10781_p0 = pnand %p10780_p10, %p14676_p11  ;;  %s10783_s6 = sshll.u32 %s10866_s18, 4  ;;  %s10784_s6 = int_to_ptr.vmem [resolvable:$false] %s10783_s6 }
  0x91   : > { %9248 = vmatpush3.bf16.msra.mxu0 %v10355_v2  ;;  %v10381_v29 = vld [vmem:[#allocation8 + $0xb8] sm:$0xff]   ;;  %v10383_v30 = vld [vmem:[%s11110_s23 + $0x70] sm:$0xff]   ;;  %8635 = vmatprep.subr.bf16.mxu1 %v10379_v27  ;;  %v10386_v32 = vld [vmem:[#allocation8 + $0x60] sm:$0xff]   ;;  %vm1272_vm1 = vsmask.f32 4368  ;;  %v14277_v2 = vmov 0  ;;  %p10786_p5 = scmp.lt.s32.totalorder %s14125_s22, %s10784_s6 }
  0x92   : > { %9249 = vmatprep.subr.bf16.mxu0 %v10356_v3  ;;  %v10384_v31 = vld [vmem:[%s11110_s23 + $0x78] sm:$0xff]   ;;  %8636 = vmatpush3.bf16.msra.mxu1 %v10381_v29  ;;  %v10385_v33 = vld [vmem:[#allocation8 + $0xf0] sm:$0xff]   ;;  %v10388_v34 = vld [vmem:[#allocation8 + $0x20] sm:$0xff]   ;;  %vm1003_vm4 = vsmask.f32 7950  ;;  %p10782_p13 = pneg %p10781_p0 }
  0x93   : > { %v10387_v35 = vld [vmem:[#allocation8 + $0xb0] sm:$0xff]   ;;  %8637 = vmatprep.subr.bf16.mxu1 %v10385_v33  ;;  %v10390_v36 = vld [vmem:[#allocation8 + $0x58] sm:$0xff]   ;;  %v10389_v37 = vld [vmem:[#allocation8 + $0xe8] sm:$0xff]   ;;  %vm1570_vm8 = vsmask.f32 3328 }
  0x94   : > { %v10392_v38 = vld [vmem:[#allocation8 + $0x18] sm:$0xff]   ;;  %v10391_v40 = vld [vmem:[#allocation8 + $0xa8] sm:$0xff]   ;;  %v10394_v41 = vld [vmem:[#allocation8 + $0x50] sm:$0xff]   ;;  %vm1571_vm9 = vsmask.f32 7440 }
  0x95   : > { %9250 = vmatpush3.bf16.msra.mxu0 %v10356_v3  ;;  %v10393_v42 = vld [vmem:[#allocation8 + $0xe0] sm:$0xff]   ;;  %v10396_v43 = vld [vmem:[#allocation8 + $0x10] sm:$0xff]   ;;  %v10398_v45 = vld [vmem:[#allocation8 + $0x48] sm:$0xff]  }
  0x96   : > { %9251 = vmatprep.subr.bf16.mxu0 %v10357_v5  ;;  %8638 = vmatpush3.bf16.msra.mxu1 %v10387_v35  ;;  %v10395_v44 = vld [vmem:[#allocation8 + $0xa0] sm:$0xff]   ;;  %v1249_v46 = vld [vmem:[#allocation2 + $0x8] sm:$0xf]  ;;  %v1250_v47 = vld [vmem:[#allocation2 + $0xc] sm:$0xf] }
  0x97   : > { %8639 = vmatprep.subr.bf16.mxu1 %v10389_v37  ;;  %v10397_v48 = vld [vmem:[#allocation8 + $0xd8] sm:$0xff]   ;;  %v10400_v49 = vld [vmem:[#allocation8 + $0x8] sm:$0xff]   ;;  %v1280_v50 = vshrl.u32 %v1249_v46, 16  ;;  %v1289_v51 = vshrl.u32 %v1250_v47, 16  ;;  %v1248_v53 = vld [vmem:[#allocation2 + $0x4] sm:$0x8]  ;;  %v7959_v4 = vcombine.low %v1249_v46, %v1250_v47 }
  0x98   : > { %v10399_v52 = vld [vmem:[#allocation8 + $0x98] sm:$0xff]   ;;  %v1283_v55 = vshll.u32 %v1249_v46, 16  ;;  %v1292_v57 = vshll.u32 %v1250_v47, 16  ;;  %v10402_v58 = vld [vmem:[#allocation8 + $0x40] sm:$0xff]   ;;  %v1275_v59 = vshrl.u32 %v1248_v53, 16  ;;  %v10401_v60 = vld [vmem:[#allocation8 + $0xd0] sm:$0xff]  }
  0x99   : > { %9252 = vmatpush3.bf16.msra.mxu0 %v10357_v5  ;;  %v1282_v54 = vrot.slane %v1280_v50, 7  ;;  %v1291_v56 = vrot.slane %v1289_v51, 7  ;;  %v10404_v61 = vld [vmem:[#allocation8] sm:$0xff]   ;;  %v10403_v1 = vld [vmem:[#allocation8 + $0x90] sm:$0xff]   ;;  %vm11145_vm2 = vmor %vm1054_vm0, %vm1272_vm1 }
  0x9a   : > { %9253 = vmatprep.subr.bf16.mxu0 %v10358_v6  ;;  %8640 = vmatpush3.bf16.msra.mxu1 %v10391_v40  ;;  %v14278_v2 = vsel %vm11145_vm2, 4294967295, %v14277_v2  ;;  %v7943_v3 = vrot.slane %v1275_v59, 11  ;;  %vm11153_vm5 = vmand %vm1002_vm3, %vm1003_vm4  ;;  %v10411_v37 = vld [vmem:[#allocation8 + $0x178] sm:$0xff]   ;;  %v1014_v40 = vld [vmem:[#allocation2 + $0x64] sm:$0x8] }
  0x9b   : > { %8641 = vmatprep.subr.bf16.mxu1 %v10393_v42  ;;  %v1285_v62 = vor.u32 %v1283_v55, %v1282_v54  ;;  %v1287_v63 = vrot.slane %v1282_v54, 4  ;;  %v1294_v0 = vor.u32 %v1292_v57, %v1291_v56  ;;  %14279 = vst [vmem:[#allocation20_spill] sm:$0xff] %v14278_v2  ;;  %vm11162_vm7 = vmand %vm1053_vm6, %vm1054_vm0  ;;  %v1065_v42 = vld [vmem:[#allocation2 + $0x70] sm:$0x1]  ;;  %v1017_v46 = vld [vmem:[#allocation2 + $0x7c] sm:$0x8] }
  0x9c   : > { %vm11168_vm10 = vmor %vm1570_vm8, %vm1571_vm9  ;;  %v1018_v47 = vsel %vm11153_vm5, 0, %v1017_v46  ;;  %v1068_v53 = vld [vmem:[#allocation2 + $0x88] sm:$0x1]  ;;  %v10425_v56 = vld [vmem:[#allocation8 + $0x1f0] sm:$0xff]  }
  0x9d   : > { %9254 = vmatpush3.bf16.msra.mxu0 %v10358_v6  ;;  %v1295_v5 = vsel %vm11145_vm2, %v1287_v63, %v1294_v0  ;;  %v1286_v6 = vsel %vm11145_vm2, %v7943_v3, %v1285_v62  ;;  %1019 = vst [vmem:[#allocation2 + $0x7c] sm:$0x8] %v1018_v47  ;;  %v10431_v59 = vld [vmem:[#allocation8 + $0x1a8] sm:$0xff]   ;;  %v10433_v3 = vld [vmem:[#allocation8 + $0x1a0] sm:$0xff]  }
  0x9e   : > { %9255 = vmatprep.subr.bf16.mxu0 %v10359_v7  ;;  %8642 = vmatpush3.bf16.msra.mxu1 %v10395_v44  ;;  %v1062_v44 = vld [vmem:[#allocation2 + $0x58] sm:$0x1] }
  0x9f   : > { %8643 = vmatprep.subr.bf16.mxu1 %v10397_v48  ;;  %v10421_v48 = vld [vmem:[#allocation8 + $0x1f8] sm:$0xff]  }
  0xa1   : > { %9256 = vmatpush3.bf16.msra.mxu0 %v10359_v7  ;;  %v10406_v7 = vld [vmem:[#allocation8 + $0xc8] sm:$0xff]  }
  0xa2   : > { %9257 = vmatprep.subr.bf16.mxu0 %v10360_v8  ;;  %8644 = vmatpush3.bf16.msra.mxu1 %v10399_v52  ;;  %v1071_v52 = vld [vmem:[#allocation2 + $0xa0] sm:$0x1] }
  0xa3   : > { %8645 = vmatprep.subr.bf16.mxu1 %v10401_v60  ;;  %v1072_v54 = vsel %vm11162_vm7, 0, %v1071_v52 }
  0xa4   : > { %1073 = vst [vmem:[#allocation2 + $0xa0] sm:$0x1] %v1072_v54 }
  0xa5   : > { %9258 = vmatpush3.bf16.msra.mxu0 %v10360_v8  ;;  %v7951_v8 = vcombine.low %v1286_v6, %v1295_v5  ;;  %v10435_v5 = vld [vmem:[#allocation8 + $0x1d8] sm:$0xff]  }
  0xa6   : > { %8699 = vmatprep.subr.bf16.mxu0 %v10375_v22  ;;  %8646 = vmatpush3.bf16.msra.mxu1 %v10403_v1  ;;  %v10432_v1 = vld [vmem:[#allocation8 + $0x1e0] sm:$0xff]   ;;  %v1023_v6 = vld [vmem:[#allocation2 + $0xac] sm:$0x8] }
  0xa7   : > { %8647 = vmatprep.subr.bf16.mxu1 %v10406_v7 }
  0xa8   : > { %9260 = vmatmul.mubr.bf16.vlgmr.msra.gmra.mxu0 %v10362_v9  ;;  %v10407_v9 = vld [vmem:[#allocation8 + $0x88] sm:$0xff]  }
  0xa9   : > { %9263 = vmatprep.mubr.bf16.mxu0 %v10363_v10  ;;  %8700 = vmatpush3.bf16.msra.mxu0 %v10376_v23 }
  0xaa   : > { %8701 = vmatprep.subr.bf16.mxu0 %v10377_v24  ;;  %8648 = vmatpush3.bf16.msra.mxu1 %v10407_v9  ;;  %v1024_v9 = vsel %vm11153_vm5, 0, %v1023_v6 }
  0xab   : > { %1025 = vst [vmem:[#allocation2 + $0xac] sm:$0x8] %v1024_v9  ;;  %v1568_v47 = vld [vmem:[#allocation2 + $0xa0] sm:$0x1] }
  0xad   : > { %8702 = vmatpush3.bf16.msra.mxu0 %v10378_v25  ;;  %v14282_v25 = vmov 0 }
  0xae   : > { %8703 = vmatprep.subr.bf16.mxu0 %v10380_v26  ;;  %v14283_v25 = vsel %vm11162_vm7, 4294967295, %v14282_v25  ;;  %v1059_v26 = vld [vmem:[#allocation2 + $0x40] sm:$0x1] }
  0xaf   : > { %14284 = vst [vmem:[#allocation21_spill] sm:$0xff] %v14283_v25  ;;  %v1060_v27 = vsel %vm11162_vm7, 0, %v1059_v26 }
  0xb0   : > { %9264 = vmatmul.mubr.bf16.gmra.mxu0 %v10364_v11  ;;  %v1005_v11 = vld [vmem:[#allocation2 + $0x1c] sm:$0x8]  ;;  %1061 = vst [vmem:[#allocation2 + $0x40] sm:$0x1] %v1060_v27 }
  0xb1   : > { %9267 = vmatprep.mubr.bf16.mxu0 %v10365_v12  ;;  %8704 = vmatpush3.bf16.msra.mxu0 %v10382_v28  ;;  %v1006_v12 = vsel %vm11153_vm5, 0, %v1005_v11  ;;  %v14285_v28 = vmov 0 }
  0xb2   : > { %8705 = vmatprep.subr.bf16.mxu0 %v10386_v32  ;;  %1007 = vst [vmem:[#allocation2 + $0x1c] sm:$0x8] %v1006_v12  ;;  %v14286_v28 = vsel %vm11168_vm10, 4294967295, %v14285_v28  ;;  %v1056_v32 = vld [vmem:[#allocation2 + $0x28] sm:$0x1] }
  0xb3   : > { %14287 = vst [vmem:[#allocation22_spill] sm:$0xff] %v14286_v28  ;;  %v1057_v33 = vsel %vm11162_vm7, 0, %v1056_v32 }
  0xb4   : > { %1058 = vst [vmem:[#allocation2 + $0x28] sm:$0x1] %v1057_v33  ;;  %v11213_v33 = vld [vmem:[%s14171_s2] ss:$0 sm:$0xff] }
  0xb5   : > { %8706 = vmatpush3.bf16.msra.mxu0 %v10388_v34 }
  0xb6   : > { %8707 = vmatprep.subr.bf16.mxu0 %v10390_v36 }
  0xb7   : > { %v1564_v12 = vld [vmem:[#allocation2 + $0x40] sm:$0x1] }
  0xb8   : > { %9268 = vmatmul.mubr.bf16.gmra.mxu0 %v10366_v13  ;;  %v1008_v13 = vld [vmem:[#allocation2 + $0x34] sm:$0x8] }
  0xb9   : > { %9271 = vmatprep.mubr.bf16.mxu0 %v10367_v14  ;;  %8708 = vmatpush3.bf16.msra.mxu0 %v10392_v38  ;;  %v1573_v14 = vrot.slane %v1280_v50, 4  ;;  %v1011_v38 = vld [vmem:[#allocation2 + $0x4c] sm:$0x8]  ;;  %v1020_v50 = vld [vmem:[#allocation2 + $0x94] sm:$0x8] }
  0xba   : > { %8709 = vmatprep.subr.bf16.mxu0 %v10394_v41  ;;  %v1012_v39 = vsel %vm11153_vm5, 0, %v1011_v38  ;;  %v1015_v41 = vsel %vm11153_vm5, 0, %v1014_v40  ;;  %v1685_v60 = vld [vmem:[#allocation2 + $0x1c] sm:$0x8]  ;;  %v10439_v38 = vld [vmem:[#allocation8 + $0x1d0] sm:$0xff]  }
  0xbb   : > { %1013 = vst [vmem:[#allocation2 + $0x4c] sm:$0x8] %v1012_v39  ;;  %1016 = vst [vmem:[#allocation2 + $0x64] sm:$0x8] %v1015_v41  ;;  %v1563_v0 = vld [vmem:[#allocation2 + $0x28] sm:$0x1] }
  0xbc   : > { %v1710_v7 = vshrl.u32 %v1685_v60, 16  ;;  %v10440_v39 = vld [vmem:[#allocation8 + $0x190] sm:$0xff]  }
  0xbd   : > { %8710 = vmatpush3.bf16.msra.mxu0 %v10396_v43  ;;  %v1066_v43 = vsel %vm11162_vm7, 0, %v1065_v42 }
  0xbe   : > { %8711 = vmatprep.subr.bf16.mxu0 %v10398_v45  ;;  %1067 = vst [vmem:[#allocation2 + $0x70] sm:$0x1] %v1066_v43  ;;  %v1063_v45 = vsel %vm11162_vm7, 0, %v1062_v44  ;;  %v1263_v43 = vld [vmem:[#allocation2 + $0x7c] sm:$0x8] }
  0xbf   : > { %1064 = vst [vmem:[#allocation2 + $0x58] sm:$0x1] %v1063_v45  ;;  %v10442_v44 = vld [vmem:[#allocation8 + $0x1c8] sm:$0xff]   ;;  %v1385_v54 = vshrl.u32 %v1263_v43, 16 }
  0xc0   : > { %9272 = vmatmul.mubr.bf16.gmra.mxu0 %v10368_v15  ;;  %v1574_v15 = vrot.slane %v1283_v55, 5  ;;  %v1069_v55 = vsel %vm11162_vm7, 0, %v1068_v53 }
  0xc1   : > { %9275 = vmatprep.mubr.bf16.mxu0 %v10369_v16  ;;  %8712 = vmatpush3.bf16.msra.mxu0 %v10400_v49  ;;  %v1579_v16 = vrot.slane %v1289_v51, 4  ;;  %v10424_v49 = vld [vmem:[#allocation8 + $0x1b8] sm:$0xff]   ;;  %v1021_v51 = vsel %vm11153_vm5, 0, %v1020_v50  ;;  %1070 = vst [vmem:[#allocation2 + $0x88] sm:$0x1] %v1069_v55  ;;  %v10444_v50 = vld [vmem:[#allocation8 + $0x188] sm:$0xff]  }
  0xc2   : > { %8713 = vmatprep.subr.bf16.mxu0 %v10402_v58  ;;  %v1575_v22 = vor.u32 %v1574_v15, %v1573_v14  ;;  %1022 = vst [vmem:[#allocation2 + $0x94] sm:$0x8] %v1021_v51  ;;  %v10428_v58 = vld [vmem:[#allocation8 + $0x1e8] sm:$0xff]   ;;  %v10438_v14 = vld [vmem:[#allocation8 + $0x198] sm:$0xff]   ;;  %v1026_v51 = vld [vmem:[#allocation2 + $0xc4] sm:$0x8] }
  0xc4   : > { %v1576_v29 = vrot.slane %v1575_v22, 4  ;;  %v1260_v22 = vld [vmem:[#allocation2 + $0x64] sm:$0x8] }
  0xc5   : > { %8714 = vmatpush3.bf16.msra.mxu0 %v10404_v61  ;;  %v1251_v61 = vld [vmem:[#allocation2 + $0x1c] sm:$0x8]  ;;  %v1566_v32 = vld [vmem:[#allocation2 + $0x70] sm:$0x1] }
  0xc6   : > { %8827 = vmatprep.subr.bf16.mxu0 %v10421_v48  ;;  %v1297_v11 = vshrl.u32 %v1251_v61, 16  ;;  %v1565_v26 = vld [vmem:[#allocation2 + $0x58] sm:$0x1]  ;;  %v1639_v55 = vshll.u32 %v1566_v32, 16 }
  0xc7   : > { %v1625_v42 = vshll.u32 %v1565_v26, 16  ;;  %v1074_v32 = vld [vmem:[#allocation2 + $0xb8] sm:$0x1] }
  0xc8   : > { %9276 = vmatmul.mubr.bf16.gmra.mxu0 %v10370_v17  ;;  %v1009_v17 = vsel %vm11153_vm5, 0, %v1008_v13  ;;  %v1694_v13 = vld [vmem:[#allocation2 + $0x64] sm:$0x8] }
  0xc9   : > { %9279 = vmatprep.mubr.bf16.mxu0 %v10371_v18  ;;  %v10409_v18 = vld [vmem:[#allocation8 + $0xc0] sm:$0xff]   ;;  %1010 = vst [vmem:[#allocation2 + $0x34] sm:$0x8] %v1009_v17  ;;  %v1597_v17 = vshll.u32 %v1563_v0, 16 }
  0xca   : > { %8649 = vmatprep.subr.bf16.mxu1 %v10409_v18  ;;  %v1700_v45 = vld [vmem:[#allocation2 + $0x94] sm:$0x8] }
  0xcb   : > { %v1266_v46 = vld [vmem:[#allocation2 + $0x94] sm:$0x8] }
  0xd0   : > { %9280 = vmatmul.mubr.bf16.gmra.mxu0 %v10372_v19  ;;  %v10410_v19 = vld [vmem:[#allocation8 + $0x80] sm:$0xff]  }
  0xd1   : > { %9283 = vmatprep.mubr.bf16.mxu0 %v10373_v20  ;;  %v1577_v20 = vrot.slane %v1292_v57, 5  ;;  %8650 = vmatpush3.bf16.msra.mxu1 %v10410_v19  ;;  %v10426_v57 = vld [vmem:[#allocation8 + $0x1b0] sm:$0xff]   ;;  %v1688_v62 = vld [vmem:[#allocation2 + $0x34] sm:$0x8] }
  0xd2   : > { %8763 = vmatprep.subr.bf16.mxu1 %v10411_v37  ;;  %v1254_v63 = vld [vmem:[#allocation2 + $0x34] sm:$0x8]  ;;  %v1732_v15 = vshrl.u32 %v1688_v62, 16  ;;  %v1697_v37 = vld [vmem:[#allocation2 + $0x7c] sm:$0x8]  ;;  %v1820_v62 = vshrl.u32 %v1700_v45, 16 }
  0xd3   : > { %v1580_v23 = vor.u32 %v1579_v16, %v1577_v20  ;;  %v1578_v34 = vsel %vm11168_vm10, %v1576_v29, %v1577_v20  ;;  %v1319_v16 = vshrl.u32 %v1254_v63, 16  ;;  %v1611_v20 = vshll.u32 %v1564_v12, 16  ;;  %v2907_v60 = vld [vmem:[#allocation2 + $0x34] sm:$0x8] }
  0xd4   : > { %v11202_v27 = vrot.slane %v1732_v15, 11  ;;  %v1798_v48 = vshrl.u32 %v1697_v37, 16  ;;  %v1407_v63 = vshrl.u32 %v1266_v46, 16  ;;  %v2932_v12 = vshrl.u32 %v2907_v60, 16 }
  0xd5   : > { %v11204_v29 = vrot.slane %v1319_v16, 11  ;;  %v11217_v40 = vrot.slane %v1611_v20, 5  ;;  %v11234_v16 = vrot.slane %v1639_v55, 5  ;;  %v11236_v20 = vrot.slane %v1820_v62, 11 }
  0xd6   : > { %v11229_v6 = vrot.slane %v1798_v48, 11  ;;  %v11251_v46 = vrot.slane %v2932_v12, 11 }
  0xd8   : > { %9284 = vmatmul.mubr.bf16.gmra.mxu0 %v10374_v21  ;;  %v1562_v21 = vld [vmem:[#allocation2 + $0x10] sm:$0x1] }
  0xd9   : > { %9287 = vmatprep.mubr.bf16.mxu0 %v10383_v30  ;;  %v1583_v24 = vshll.u32 %v1562_v21, 16  ;;  %v1581_v30 = vrot.slane %v1580_v23, 4  ;;  %v1776_v21 = vshrl.u32 %v1694_v13, 16  ;;  %v11198_v23 = vrot.slane %v1710_v7, 11 }
  0xdb   : > { %v11219_v41 = vrot.slane %v1776_v21, 11  ;;  %v11238_v21 = vrot.slane %v1407_v63, 11 }
  0xe0   : > { %9288 = vmatmul.mubr.bf16.gmra.mxu0 %v10384_v31  ;;  %v1585_v31 = vrot.slane %v1583_v24, 5  ;;  %v11200_v24 = vrot.slane %v1297_v11, 11 }
  0xe1   : > { %2303 = vmatprep.mubr.bf16.mxu0 %v7959_v4  ;;  %v1691_v4 = vld [vmem:[#allocation2 + $0x4c] sm:$0x8] }
  0xe2   : > { %v1586_v35 = vsel %vm11168_vm10, %v1581_v30, %v1585_v31  ;;  %v1754_v18 = vshrl.u32 %v1691_v4, 16  ;;  %v11206_v30 = vrot.slane %v1597_v17, 5  ;;  %v10446_v17 = vld [vmem:[#allocation8 + $0x1c0] sm:$0xff]  }
  0xe3   : > { %v11178_v36 = vcombine.low %v1578_v34, %v1586_v35  ;;  %v1363_v35 = vshrl.u32 %v1260_v22, 16 }
  0xe4   : > { %v11208_v31 = vrot.slane %v1754_v18, 11  ;;  %v10447_v18 = vld [vmem:[#allocation8 + $0x180] sm:$0xff]  }
  0xe5   : > { %v11221_v53 = vrot.slane %v1363_v35, 11 }
  0xe8   : > { %2304 = vmatmul.mubr.bf16.vlgmr.msra.gmra.mxu0 %v7951_v8  ;;  %v1257_v8 = vld [vmem:[#allocation2 + $0x4c] sm:$0x8] }
  0xe9   : > { %8828 = vmatpush3.bf16.msra.mxu0 %v10424_v49  ;;  %v1341_v19 = vshrl.u32 %v1257_v8, 16  ;;  %v1567_v49 = vld [vmem:[#allocation2 + $0x88] sm:$0x1]  ;;  %v11231_v8 = vrot.slane %v1385_v54, 11 }
  0xea   : > { %8829 = vmatprep.subr.bf16.mxu0 %v10425_v56  ;;  %v1027_v56 = vsel %vm11153_vm5, 0, %v1026_v51  ;;  %v1653_v0 = vshll.u32 %v1567_v49, 16 }
  0xeb   : > { %v11215_v34 = vrot.slane %v1341_v19, 11  ;;  %1028 = vst [vmem:[#allocation2 + $0xc4] sm:$0x8] %v1027_v56 }
  0xec   : > { %v11240_v22 = vrot.slane %v1653_v0, 5 }
  0xed   : > { %8830 = vmatpush3.bf16.msra.mxu0 %v10426_v57 }
  0xee   : > { %8831 = vmatprep.subr.bf16.mxu0 %v10428_v58  ;;  %v1703_v58 = vld [vmem:[#allocation2 + $0xac] sm:$0x8] }
  0xef   : > { %v1842_v9 = vshrl.u32 %v1703_v58, 16 }
  0xf1   : > { %8832 = vmatpush3.bf16.msra.mxu0 %v10431_v59  ;;  %v1269_v59 = vld [vmem:[#allocation2 + $0xac] sm:$0x8]  ;;  %v11245_v43 = vrot.slane %v1842_v9, 11 }
  0xf2   : > { %8833 = vmatprep.subr.bf16.mxu0 %v10432_v1  ;;  %v1667_v1 = vshll.u32 %v1568_v47, 16  ;;  %v1429_v11 = vshrl.u32 %v1269_v59, 16  ;;  %v11249_v45 = vld [vmem:[#allocation2 + $0xc4] sm:$0x8]  ;;  %v1075_v47 = vsel %vm11162_vm7, 0, %v1074_v32 }
  0xf3   : > { %1076 = vst [vmem:[#allocation2 + $0xb8] sm:$0x1] %v1075_v47 }
  0xf4   : > { %v11242_v26 = vrot.slane %v1667_v1, 5 }
  0xf5   : > { %8834 = vmatpush3.bf16.msra.mxu0 %v10433_v3 }
  0xf6   : > { %8835 = vmatprep.subr.bf16.mxu0 %v10435_v5  ;;  %v11227_v5 = vrot.slane %v1625_v42, 5 }
  0xf9   : > { %8836 = vmatpush3.bf16.msra.mxu0 %v10438_v14 }
  0xfa   : > { %8837 = vmatprep.subr.bf16.mxu0 %v10439_v38 }
  0xfd   : > { %8838 = vmatpush3.bf16.msra.mxu0 %v10440_v39 }
  0xfe   : > { %8839 = vmatprep.subr.bf16.mxu0 %v10442_v44  ;;  %v11247_v44 = vrot.slane %v1429_v11, 11 }
 0x101   : > { %8840 = vmatpush3.bf16.msra.mxu0 %v10444_v50 }
 0x102   : > { %8841 = vmatprep.subr.bf16.mxu0 %v10446_v17 }
 0x105   : > { %8842 = vmatpush3.bf16.msra.mxu0 %v10447_v18 }
 0x168   : > { %v9261_v52 = vpop.f32.mrf.mxu0 }
 0x169   : > { %v694_v57 = vadd.f32 %v9261_v52, %v11213_v33 }
 0x16a   : > { %v685_v61 = vpop.f32.mrf.mxu0 }
 0x16b   : > { %v814_v3 = vmax.f32 %v694_v57, 0.0  ;;  %v686_v4 = vadd.f32 %v11213_v33, %v685_v61 }
 0x16c   : > { %v9262_v7 = vpop.f32.mrf.mxu0 }
 0x16d   : > { %v846_v13 = vmin.f32 %v814_v3, 1.0  ;;  %v812_v14 = vmax.f32 %v686_v4, 0.0  ;;  %v697_v15 = vadd.f32 %v9262_v7, %v11213_v33 }
 0x16e   : > { %v688_v19 = vpop.f32.mrf.mxu0 }
 0x16f   : > { %v878_v35 = vmul.f32 15.0, %v846_v13  ;;  %v844_v37 = vmin.f32 %v812_v14, 1.0  ;;  %v815_v38 = vmax.f32 %v697_v15, 0.0  ;;  %v689_v39 = vadd.f32 %v11213_v33, %v688_v19 }
 0x170   : > { %v9265_v42 = vpop.f32.mrf.mxu0 }
 0x171   : > { %v9499_v48 = vand.u32 2147483647, %v878_v35  ;;  %v9501_v49 = vcvt.f32.s32 %v878_v35  ;;  %v9504_v50 = vand.u32 2147483648, %v878_v35  ;;  %v876_v51 = vmul.f32 15.0, %v844_v37 }
 0x172   : > { %v847_v52 = vmin.f32 %v815_v38, 1.0  ;;  %v813_v54 = vmax.f32 %v689_v39, 0.0  ;;  %v710_v55 = vadd.f32 %v9265_v42, %v11213_v33  ;;  %v701_v56 = vpop.f32.mrf.mxu0 }
 0x173   : > { %vm11257_vm11 = vcmp.lt.f32.partialorder %v9499_v48, 8388608.0  ;;  %v9502_v59 = vcvt.s32.f32 %v9501_v49  ;;  %v9483_v60 = vand.u32 2147483647, %v876_v51  ;;  %v9485_v61 = vcvt.f32.s32 %v876_v51 }
 0x174   : > { %v9488_v62 = vand.u32 2147483648, %v876_v51  ;;  %v879_v63 = vmul.f32 15.0, %v847_v52  ;;  %v845_v0 = vmin.f32 %v813_v54, 1.0  ;;  %v818_v1 = vmax.f32 %v710_v55, 0.0  ;;  %v9266_v3 = vpop.f32.mrf.mxu0 }
 0x175   : > { %v9503_v4 = vand.u32 2147483647, %v9502_v59  ;;  %vm11261_vm12 = vcmp.lt.f32.partialorder %v9483_v60, 8388608.0  ;;  %v9486_v9 = vcvt.s32.f32 %v9485_v61  ;;  %v702_v11 = vadd.f32 %v11213_v33, %v701_v56 }
 0x176   : > { %v9507_v12 = vand.u32 2147483647, %v879_v63  ;;  %v9509_v13 = vcvt.f32.s32 %v879_v63  ;;  %v9512_v14 = vand.u32 2147483648, %v879_v63  ;;  %v877_v15 = vmul.f32 15.0, %v845_v0  ;;  %v704_v17 = vpop.f32.mrf.mxu0 }
 0x177   : > { %v9505_v18 = vor.u32 %v9504_v50, %v9503_v4  ;;  %v9487_v19 = vand.u32 2147483647, %v9486_v9  ;;  %v850_v32 = vmin.f32 %v818_v1, 1.0  ;;  %v816_v37 = vmax.f32 %v702_v11, 0.0 }
 0x178   : > { %vm11266_vm13 = vcmp.lt.f32.partialorder %v9507_v12, 8388608.0  ;;  %v9510_v39 = vcvt.s32.f32 %v9509_v13  ;;  %v9491_v42 = vand.u32 2147483647, %v877_v15  ;;  %v9493_v47 = vcvt.f32.s32 %v877_v15  ;;  %v9269_v55 = vpop.f32.mrf.mxu0 }
 0x179   : > { %v9506_v48 = vsel %vm11257_vm11, %v9505_v18, %v878_v35  ;;  %v9489_v49 = vor.u32 %v9488_v62, %v9487_v19  ;;  %v9496_v52 = vand.u32 2147483648, %v877_v15  ;;  %v882_v54 = vmul.f32 15.0, %v850_v32 }
 0x17a   : > { %v942_v56 = vmul.f32 0.06666667, %v9506_v48  ;;  %v9511_v59 = vand.u32 2147483647, %v9510_v39  ;;  %vm11272_vm14 = vcmp.lt.f32.partialorder %v9491_v42, 8388608.0  ;;  %v9494_v60 = vcvt.s32.f32 %v9493_v47  ;;  %v717_v19 = vpop.f32.mrf.mxu0 }
 0x17b   : > { %v9490_v61 = vsel %vm11261_vm12, %v9489_v49, %v876_v51  ;;  %v9531_v0 = vand.u32 2147483647, %v882_v54  ;;  %v9533_v1 = vcvt.f32.s32 %v882_v54  ;;  %v9536_v4 = vand.u32 2147483648, %v882_v54 }
 0x17c   : > { %v940_v9 = vmul.f32 0.06666667, %v9490_v61  ;;  %v9513_v58 = vor.u32 %v9512_v14, %v9511_v59  ;;  %v9495_v35 = vand.u32 2147483647, %v9494_v60  ;;  %v848_v62 = vmin.f32 %v816_v37, 1.0  ;;  %v9270_v38 = vpop.f32.mrf.mxu0 }
 0x17d   : > { %vm11278_vm15 = vcmp.lt.f32.partialorder %v9531_v0, 8388608.0  ;;  %v9534_v12 = vcvt.s32.f32 %v9533_v1  ;;  %v713_v13 = vadd.f32 %v9266_v3, %v11213_v33  ;;  %v705_v18 = vadd.f32 %v11213_v33, %v704_v17 }
 0x17e   : > { %v9514_v51 = vsel %vm11266_vm13, %v9513_v58, %v879_v63  ;;  %v9497_v7 = vor.u32 %v9496_v52, %v9495_v35  ;;  %v880_v32 = vmul.f32 15.0, %v848_v62  ;;  %v726_v39 = vadd.f32 %v9269_v55, %v11213_v33 }
 0x17f   : > { %v943_v14 = vmul.f32 0.06666667, %v9514_v51  ;;  %v9535_v42 = vand.u32 2147483647, %v9534_v12  ;;  %v819_v37 = vmax.f32 %v713_v13, 0.0  ;;  %v817_v47 = vmax.f32 %v705_v18, 0.0 }
 0x180   : > { %v9498_v48 = vsel %vm11272_vm14, %v9497_v7, %v877_v15  ;;  %v9515_v49 = vand.u32 2147483647, %v880_v32  ;;  %v9517_v59 = vcvt.f32.s32 %v880_v32  ;;  %v9520_v3 = vand.u32 2147483648, %v880_v32 }
 0x181   : > { %v8428_v60 = vpack.c.bf16 %v943_v14, %v942_v56  ;;  %v941_v17 = vmul.f32 0.06666667, %v9498_v48  ;;  %v9537_v61 = vor.u32 %v9536_v4, %v9535_v42  ;;  %v851_v0 = vmin.f32 %v819_v37, 1.0  ;;  %v720_v14 = vpop.f32.mrf.mxu0 }
 0x182   : > { %vm11289_vm0 = vcmp.lt.f32.partialorder %v9515_v49, 8388608.0  ;;  %v9518_v52 = vcvt.s32.f32 %v9517_v59  ;;  %v849_v55 = vmin.f32 %v817_v47, 1.0  ;;  %v822_v1 = vmax.f32 %v726_v39, 0.0 }
 0x183   : > { %8581 = vst [vmem:[#allocation2 + $0x38] sm:$0xff] %v8428_v60   ;;  %v8423_v58 = vpack.c.bf16 %v941_v17, %v940_v9  ;;  %v9538_v15 = vsel %vm11278_vm15, %v9537_v61, %v882_v54  ;;  %v883_v50 = vmul.f32 15.0, %v851_v0  ;;  %v718_v35 = vadd.f32 %v11213_v33, %v717_v19  ;;  %v9273_v48 = vpop.f32.mrf.mxu0 }
 0x184   : > { %v946_v56 = vmul.f32 0.06666667, %v9538_v15  ;;  %v9519_v62 = vand.u32 2147483647, %v9518_v52  ;;  %v881_v4 = vmul.f32 15.0, %v849_v55  ;;  %v854_v12 = vmin.f32 %v822_v1, 1.0 }
 0x185   : > { %8580 = vst [vmem:[#allocation2 + $0x20] sm:$0xff] %v8423_v58   ;;  %v9539_v13 = vand.u32 2147483647, %v883_v50  ;;  %v9541_v18 = vcvt.f32.s32 %v883_v50  ;;  %v9544_v51 = vand.u32 2147483648, %v883_v50  ;;  %v820_v7 = vmax.f32 %v718_v35, 0.0 }
 0x186   : > { %v9521_v42 = vor.u32 %v9520_v3, %v9519_v62  ;;  %v9523_v39 = vand.u32 2147483647, %v881_v4  ;;  %v9525_v37 = vcvt.f32.s32 %v881_v4  ;;  %v9528_v9 = vand.u32 2147483648, %v881_v4 }
 0x187   : > { %vm11296_vm1 = vcmp.lt.f32.partialorder %v9539_v13, 8388608.0  ;;  %v9542_v54 = vcvt.s32.f32 %v9541_v18  ;;  %v886_v19 = vmul.f32 15.0, %v854_v12  ;;  %v852_v47 = vmin.f32 %v820_v7, 1.0  ;;  %v733_v12 = vpop.f32.mrf.mxu0 }
 0x188   : > { %v9522_v49 = vsel %vm11289_vm0, %v9521_v42, %v880_v32  ;;  %vm11302_vm3 = vcmp.lt.f32.partialorder %v9523_v39, 8388608.0  ;;  %v9526_v60 = vcvt.s32.f32 %v9525_v37  ;;  %v729_v3 = vadd.f32 %v9270_v38, %v11213_v33 }
 0x189   : > { %v944_v17 = vmul.f32 0.06666667, %v9522_v49  ;;  %v9543_v61 = vand.u32 2147483647, %v9542_v54  ;;  %v9563_v0 = vand.u32 2147483647, %v886_v19  ;;  %v9565_v52 = vcvt.f32.s32 %v886_v19 }
 0x18a   : > { %v9527_v55 = vand.u32 2147483647, %v9526_v60  ;;  %v9568_v1 = vand.u32 2147483648, %v886_v19  ;;  %v884_v58 = vmul.f32 15.0, %v852_v47  ;;  %v823_v15 = vmax.f32 %v729_v3, 0.0 }
 0x18b   : > { %v9545_v35 = vor.u32 %v9544_v51, %v9543_v61  ;;  %vm11307_vm4 = vcmp.lt.f32.partialorder %v9563_v0, 8388608.0  ;;  %v9566_v32 = vcvt.s32.f32 %v9565_v52  ;;  %v721_v63 = vadd.f32 %v11213_v33, %v720_v14  ;;  %v9274_v0 = vpop.f32.mrf.mxu0 }
 0x18c   : > { %v9529_v13 = vor.u32 %v9528_v9, %v9527_v55  ;;  %v9547_v18 = vand.u32 2147483647, %v884_v58  ;;  %v9549_v38 = vcvt.f32.s32 %v884_v58  ;;  %v9552_v7 = vand.u32 2147483648, %v884_v58 }
 0x18d   : > { %v9546_v42 = vsel %vm11296_vm1, %v9545_v35, %v883_v50  ;;  %v9567_v39 = vand.u32 2147483647, %v9566_v32  ;;  %v855_v37 = vmin.f32 %v823_v15, 1.0  ;;  %v821_v54 = vmax.f32 %v721_v63, 0.0 }
 0x18e   : > { %v947_v47 = vmul.f32 0.06666667, %v9546_v42  ;;  %v9530_v51 = vsel %vm11302_vm3, %v9529_v13, %v881_v4  ;;  %vm11316_vm6 = vcmp.lt.f32.partialorder %v9547_v18, 8388608.0  ;;  %v9550_v14 = vcvt.s32.f32 %v9549_v38 }
 0x18f   : > { %v945_v60 = vmul.f32 0.06666667, %v9530_v51  ;;  %v9569_v9 = vor.u32 %v9568_v1, %v9567_v39  ;;  %v887_v3 = vmul.f32 15.0, %v855_v37  ;;  %v853_v61 = vmin.f32 %v821_v54, 1.0  ;;  %v11330_v39 = vld [vmem:[#allocation2 + $0x20] sm:$0xf] }
 0x190   : > { %v8438_v52 = vpack.c.bf16 %v947_v47, %v946_v56  ;;  %v9551_v11 = vand.u32 2147483647, %v9550_v14  ;;  %v742_v50 = vadd.f32 %v9273_v48, %v11213_v33  ;;  %v734_v55 = vadd.f32 %v11213_v33, %v733_v12  ;;  %v736_v12 = vpop.f32.mrf.mxu0 }
 0x191   : > { %v8433_v15 = vpack.c.bf16 %v945_v60, %v944_v17  ;;  %v9570_v4 = vsel %vm11307_vm4, %v9569_v9, %v886_v19  ;;  %v9571_v59 = vand.u32 2147483647, %v887_v3  ;;  %v9573_v35 = vcvt.f32.s32 %v887_v3 }
 0x192   : > { %8583 = vst [vmem:[#allocation2 + $0x68] sm:$0xff] %v8438_v52   ;;  %v950_v32 = vmul.f32 0.06666667, %v9570_v4  ;;  %v9553_v63 = vor.u32 %v9552_v7, %v9551_v11  ;;  %v9576_v13 = vand.u32 2147483648, %v887_v3  ;;  %v885_v1 = vmul.f32 15.0, %v853_v61 }
 0x193   : > { %8582 = vst [vmem:[#allocation2 + $0x50] sm:$0xff] %v8433_v15   ;;  %vm11324_vm8 = vcmp.lt.f32.partialorder %v9571_v59, 8388608.0  ;;  %v9574_v56 = vcvt.s32.f32 %v9573_v35  ;;  %v826_v48 = vmax.f32 %v742_v50, 0.0  ;;  %v824_v38 = vmax.f32 %v734_v55, 0.0 }
 0x194   : > { %v9554_v17 = vsel %vm11316_vm6, %v9553_v63, %v884_v58  ;;  %v9555_v19 = vand.u32 2147483647, %v885_v1  ;;  %v9557_v62 = vcvt.f32.s32 %v885_v1  ;;  %v9560_v42 = vand.u32 2147483648, %v885_v1 }
 0x195   : > { %v948_v7 = vmul.f32 0.06666667, %v9554_v17  ;;  %v9575_v37 = vand.u32 2147483647, %v9574_v56  ;;  %v858_v54 = vmin.f32 %v826_v48, 1.0  ;;  %v856_v47 = vmin.f32 %v824_v38, 1.0 }
 0x196   : > { %vm11332_vm9 = vcmp.lt.f32.partialorder %v9555_v19, 8388608.0  ;;  %v9558_v14 = vcvt.s32.f32 %v9557_v62  ;;  %v745_v60 = vadd.f32 %v9274_v0, %v11213_v33  ;;  %v737_v9 = vadd.f32 %v11213_v33, %v736_v12  ;;  %v11346_v19 = vld [vmem:[#allocation2 + $0x24] sm:$0xf] }
 0x197   : > { %v9577_v49 = vor.u32 %v9576_v13, %v9575_v37  ;;  %v890_v58 = vmul.f32 15.0, %v858_v54  ;;  %v888_v61 = vmul.f32 15.0, %v856_v47  ;;  %v1302_v52 = vshrl.u32 %v11330_v39, 16 }
 0x198   : > { %v9559_v11 = vand.u32 2147483647, %v9558_v14  ;;  %v827_v50 = vmax.f32 %v745_v60, 0.0  ;;  %v825_v55 = vmax.f32 %v737_v9, 0.0  ;;  %v1305_v15 = vshll.u32 %v11330_v39, 16 }
 0x199   : > { %v9578_v4 = vsel %vm11324_vm8, %v9577_v49, %v887_v3  ;;  %v9595_v59 = vand.u32 2147483647, %v890_v58  ;;  %v9597_v35 = vcvt.f32.s32 %v890_v58  ;;  %v9600_v63 = vand.u32 2147483648, %v890_v58 }
 0x19a   : > { %v951_v56 = vmul.f32 0.06666667, %v9578_v4  ;;  %v9561_v0 = vor.u32 %v9560_v42, %v9559_v11  ;;  %v9579_v48 = vand.u32 2147483647, %v888_v61  ;;  %v9581_v33 = vcvt.f32.s32 %v888_v61 }
 0x19b   : > { %vm11342_vm11 = vcmp.lt.f32.partialorder %v9595_v59, 8388608.0  ;;  %v9598_v38 = vcvt.s32.f32 %v9597_v35  ;;  %v9584_v12 = vand.u32 2147483648, %v888_v61  ;;  %v859_v17 = vmin.f32 %v827_v50, 1.0 }
 0x19c   : > { %v8448_v62 = vpack.c.bf16 %v951_v56, %v950_v32  ;;  %v9562_v3 = vsel %vm11332_vm9, %v9561_v0, %v885_v1  ;;  %vm11350_vm12 = vcmp.lt.f32.partialorder %v9579_v48, 8388608.0  ;;  %v9582_v42 = vcvt.s32.f32 %v9581_v33  ;;  %v11356_v0 = vld [vmem:[#allocation12 + $0x38] sm:$0xff]  }
 0x19d   : > { %v949_v37 = vmul.f32 0.06666667, %v9562_v3  ;;  %v9599_v54 = vand.u32 2147483647, %v9598_v38  ;;  %v891_v47 = vmul.f32 15.0, %v859_v17  ;;  %v857_v14 = vmin.f32 %v825_v55, 1.0  ;;  %9355 = vmatprep.subr.bf16.mxu0 %v11356_v0 }
 0x19e   : > { %8585 = vst [vmem:[#allocation2 + $0x98] sm:$0xff] %v8448_v62   ;;  %v9583_v60 = vand.u32 2147483647, %v9582_v42  ;;  %v1304_v9 = vrot.slane %v1302_v52, 7  ;;  %v1311_v49 = vshrl.u32 %v11346_v19, 16  ;;  %v1314_v11 = vshll.u32 %v11346_v19, 16 }
 0x19f   : > { %v8443_v32 = vpack.c.bf16 %v949_v37, %v948_v7  ;;  %v9601_v50 = vor.u32 %v9600_v63, %v9599_v54  ;;  %v9603_v51 = vand.u32 2147483647, %v891_v47  ;;  %v9605_v1 = vcvt.f32.s32 %v891_v47  ;;  %v11366_v63 = vld [vmem:[#allocation2 + $0x20] sm:$0xf]  ;;  %v11370_v3 = vld [vmem:[#allocation2 + $0x24] sm:$0xf] }
 0x1a0   : > { %v9585_v4 = vor.u32 %v9584_v12, %v9583_v60  ;;  %v9608_v59 = vand.u32 2147483648, %v891_v47  ;;  %v889_v35 = vmul.f32 15.0, %v857_v14  ;;  %v1313_v56 = vrot.slane %v1311_v49, 7 }
 0x1a1   : > { %8584 = vst [vmem:[#allocation2 + $0x80] sm:$0xff] %v8443_v32   ;;  %v9602_v55 = vsel %vm11342_vm11, %v9601_v50, %v890_v58  ;;  %vm11360_vm13 = vcmp.lt.f32.partialorder %v9603_v51, 8388608.0  ;;  %v9606_v33 = vcvt.s32.f32 %v9605_v1  ;;  %v7960_v7 = vcombine.low %v11330_v39, %v11346_v19  ;;  %v1255_v51 = vld [vmem:[#allocation2 + $0x38] sm:$0xf] }
 0x1a2   : > { %v954_v38 = vmul.f32 0.06666667, %v9602_v55  ;;  %v9586_v12 = vsel %vm11350_vm12, %v9585_v4, %v888_v61  ;;  %v9587_v17 = vand.u32 2147483647, %v889_v35  ;;  %v9589_v62 = vcvt.f32.s32 %v889_v35 }
 0x1a3   : > { %v952_v58 = vmul.f32 0.06666667, %v9586_v12  ;;  %v9607_v13 = vand.u32 2147483647, %v9606_v33  ;;  %v9592_v42 = vand.u32 2147483648, %v889_v35  ;;  %v11373_v37 = vrot.slane %v1302_v52, 4  ;;  %2311 = vmatprep.mubr.bf16.mxu0 %v7960_v7 }
 0x1a4   : > { %vm11375_vm14 = vcmp.lt.f32.partialorder %v9587_v17, 8388608.0  ;;  %v9590_v14 = vcvt.s32.f32 %v9589_v62  ;;  %v11381_v61 = vrot.slane %v1305_v15, 5  ;;  %v11383_v18 = vrot.slane %v1311_v49, 4 }
 0x1a5   : > { %v9609_v60 = vor.u32 %v9608_v59, %v9607_v13  ;;  %v1715_v32 = vshrl.u32 %v11366_v63, 16  ;;  %v1718_v50 = vshll.u32 %v11366_v63, 16  ;;  %v1724_v52 = vshrl.u32 %v11370_v3, 16 }
 0x1a6   : > { %v9591_v1 = vand.u32 2147483647, %v9590_v14  ;;  %v1727_v4 = vshll.u32 %v11370_v3, 16  ;;  %v1307_v55 = vor.u32 %v1305_v15, %v1304_v9  ;;  %v1309_v33 = vrot.slane %v1304_v9, 4  ;;  %v11400_v9 = vld [vmem:[#allocation2 + $0x3c] sm:$0xf] }
 0x1a7   : > { %v9610_v7 = vsel %vm11360_vm13, %v9609_v60, %v891_v47  ;;  %v1717_v49 = vrot.slane %v1715_v32, 7  ;;  %v1726_v12 = vrot.slane %v1724_v52, 7  ;;  %v1316_v59 = vor.u32 %v1314_v11, %v1313_v56 }
 0x1a8   : > { %v955_v17 = vmul.f32 0.06666667, %v9610_v7  ;;  %v9593_v62 = vor.u32 %v9592_v42, %v9591_v1  ;;  %v1308_v13 = vsel %vm11145_vm2, %v11200_v24, %v1307_v55  ;;  %v1324_v14 = vshrl.u32 %v1255_v51, 16  ;;  %v11404_v42 = vld [vmem:[#allocation2 + $0x38] sm:$0xf]  ;;  %v10413_v55 = vld [vmem:[#allocation8 + $0x138] sm:$0xff]  }
 0x1a9   : > { %v1720_v57 = vor.u32 %v1718_v50, %v1717_v49  ;;  %v1722_v25 = vrot.slane %v1717_v49, 4  ;;  %v1729_v39 = vor.u32 %v1727_v4, %v1726_v12  ;;  %v1317_v15 = vsel %vm11145_vm2, %v1309_v33, %v1316_v59  ;;  %v11411_v1 = vld [vmem:[#allocation2 + $0x3c] sm:$0xf] }
 0x1aa   : > { %v8458_v47 = vpack.c.bf16 %v955_v17, %v954_v38  ;;  %v9594_v48 = vsel %vm11375_vm14, %v9593_v62, %v889_v35  ;;  %v7952_v56 = vcombine.low %v1308_v13, %v1317_v15  ;;  %v1326_v60 = vrot.slane %v1324_v14, 7  ;;  %v1258_v62 = vld [vmem:[#allocation2 + $0x50] sm:$0xf] }
 0x1ab   : > { %v953_v32 = vmul.f32 0.06666667, %v9594_v48  ;;  %v1721_v24 = vsel %vm11145_vm2, %v11198_v23, %v1720_v57  ;;  %v1730_v50 = vsel %vm11145_vm2, %v1722_v25, %v1729_v39  ;;  %v1327_v52 = vshll.u32 %v1255_v51, 16  ;;  %v10414_v57 = vld [vmem:[#allocation8 + $0x170] sm:$0xff]  }
 0x1ac   : > { %8587 = vst [vmem:[#allocation2 + $0xc8] sm:$0xff] %v8458_v47   ;;  %v7983_v38 = vcombine.low %v1721_v24, %v1730_v50  ;;  %2312 = vmatmul.mubr.bf16.gmra.mxu0 %v7952_v56  ;;  %v1333_v35 = vshrl.u32 %v11400_v9, 16  ;;  %v1336_v54 = vshll.u32 %v11400_v9, 16  ;;  %v7961_v4 = vcombine.low %v1255_v51, %v11400_v9  ;;  %v10416_v56 = vld [vmem:[#allocation8 + $0x130] sm:$0xff]  }
 0x1ad   : > { %v8453_v33 = vpack.c.bf16 %v953_v32, %v952_v58  ;;  %v11416_v7 = vrot.slane %v1324_v14, 4  ;;  %v11418_v23 = vrot.slane %v1327_v52, 5  ;;  %v1737_v25 = vshrl.u32 %v11404_v42, 16 }
 0x1ae   : > { %2110 = vmatprep.mubr.bf16.mxu1 %v7983_v38  ;;  %v1335_v49 = vrot.slane %v1333_v35, 7  ;;  %v11421_v12 = vrot.slane %v1333_v35, 4  ;;  %2319 = vmatprep.mubr.bf16.mxu0 %v7961_v4  ;;  %v1740_v59 = vshll.u32 %v11404_v42, 16  ;;  %v1746_v17 = vshrl.u32 %v11411_v1, 16 }
 0x1af   : > { %8586 = vst [vmem:[#allocation2 + $0xb0] sm:$0xff] %v8453_v33   ;;  %2111 = vmatmul.mubr.bf16.vlgmr.msra.gmra.mxu1 %v11178_v36  ;;  %v1739_v58 = vrot.slane %v1737_v25, 7  ;;  %v1749_v51 = vshll.u32 %v11411_v1, 16  ;;  %v1329_v13 = vor.u32 %v1327_v52, %v1326_v60  ;;  %v1331_v14 = vrot.slane %v1326_v60, 4  ;;  %v11436_v60 = vld [vmem:[#allocation2 + $0x54] sm:$0xf] }
 0x1b0   : > { %8764 = vmatpush3.bf16.msra.mxu1 %v10413_v55  ;;  %v1748_v39 = vrot.slane %v1746_v17, 7  ;;  %v1338_v15 = vor.u32 %v1336_v54, %v1335_v49  ;;  %v1589_v47 = vor.u32 %v11381_v61, %v11373_v37  ;;  %v1591_v48 = vrot.slane %v1314_v11, 5  ;;  %v10417_v52 = vld [vmem:[#allocation8 + $0x168] sm:$0xff]  }
 0x1b1   : > { %v1742_v32 = vor.u32 %v1740_v59, %v1739_v58  ;;  %v1744_v24 = vrot.slane %v1739_v58, 4  ;;  %v1330_v36 = vsel %vm11145_vm2, %v11204_v29, %v1329_v13  ;;  %8765 = vmatprep.subr.bf16.mxu1 %v10414_v57  ;;  %v1346_v50 = vshrl.u32 %v1258_v62, 16  ;;  %v10419_v29 = vld [vmem:[#allocation8 + $0x128] sm:$0xff]   ;;  %v11449_v59 = vld [vmem:[#allocation2 + $0x50] sm:$0xf] }
 0x1b2   : > { %v1751_v38 = vor.u32 %v1749_v51, %v1748_v39  ;;  %v1339_v35 = vsel %vm11145_vm2, %v1331_v14, %v1338_v15  ;;  %v1590_v37 = vrot.slane %v1589_v47, 4  ;;  %v1594_v19 = vor.u32 %v11383_v18, %v1591_v48  ;;  %v11451_v18 = vld [vmem:[#allocation2 + $0x54] sm:$0xf] }
 0x1b3   : > { %v1743_v11 = vsel %vm11145_vm2, %v11202_v27, %v1742_v32  ;;  %v7953_v61 = vcombine.low %v1330_v36, %v1339_v35  ;;  %v1348_v4 = vrot.slane %v1346_v50, 7  ;;  %v1349_v55 = vshll.u32 %v1258_v62, 16  ;;  %v10420_v13 = vld [vmem:[#allocation8 + $0x160] sm:$0xff]  }
 0x1b4   : > { %v1752_v33 = vsel %vm11145_vm2, %v1744_v24, %v1751_v38  ;;  %v1592_v25 = vsel %vm11168_vm10, %v1590_v37, %v1591_v48  ;;  %v1595_v57 = vrot.slane %v1594_v19, 4  ;;  %v1355_v49 = vshrl.u32 %v11436_v60, 16  ;;  %8766 = vmatpush3.bf16.msra.mxu1 %v10416_v56  ;;  %v1261_v24 = vld [vmem:[#allocation2 + $0x68] sm:$0xf]  ;;  %v10423_v38 = vld [vmem:[#allocation8 + $0x120] sm:$0xff]  }
 0x1b5   : > { %v7984_v17 = vcombine.low %v1743_v11, %v1752_v33  ;;  %2320 = vmatmul.mubr.bf16.gmra.mxu0 %v7953_v61  ;;  %v1358_v27 = vshll.u32 %v11436_v60, 16  ;;  %v7962_v58 = vcombine.low %v1258_v62, %v11436_v60  ;;  %v11455_v51 = vrot.slane %v1346_v50, 4  ;;  %8767 = vmatprep.subr.bf16.mxu1 %v10417_v52  ;;  %v11474_v61 = vld [vmem:[#allocation2 + $0x6c] sm:$0xf]  ;;  %v10443_v60 = vld [vmem:[#allocation8 + $0x108] sm:$0xff]  }
 0x1b6   : > { %v1600_v14 = vsel %vm11168_vm10, %v1595_v57, %v11206_v30  ;;  %v1357_v39 = vrot.slane %v1355_v49, 7  ;;  %v11460_v15 = vrot.slane %v1349_v55, 5  ;;  %v11462_v47 = vrot.slane %v1355_v49, 4  ;;  %v10427_v33 = vld [vmem:[#allocation8 + $0x158] sm:$0xff]  }
 0x1b7   : > { %2118 = vmatprep.mubr.bf16.mxu1 %v7984_v17  ;;  %v7976_v48 = vcombine.low %v1592_v25, %v1600_v14  ;;  %2327 = vmatprep.mubr.bf16.mxu0 %v7962_v58  ;;  %v1759_v56 = vshrl.u32 %v11449_v59, 16  ;;  %v1762_v62 = vshll.u32 %v11449_v59, 16  ;;  %v1768_v32 = vshrl.u32 %v11451_v18, 16  ;;  %v10430_v14 = vld [vmem:[#allocation8 + $0x118] sm:$0xff]  }
 0x1b8   : > { %v1771_v36 = vshll.u32 %v11451_v18, 16  ;;  %v1351_v50 = vor.u32 %v1349_v55, %v1348_v4  ;;  %v1353_v52 = vrot.slane %v1348_v4, 4  ;;  %v1360_v30 = vor.u32 %v1358_v27, %v1357_v39  ;;  %8768 = vmatpush3.bf16.msra.mxu1 %v10419_v29 }
 0x1b9   : > { %2119 = vmatmul.mubr.bf16.gmra.mxu1 %v7976_v48  ;;  %v1761_v35 = vrot.slane %v1759_v56, 7  ;;  %v1770_v37 = vrot.slane %v1768_v32, 7  ;;  %v1603_v19 = vor.u32 %v11418_v23, %v11416_v7  ;;  %v1605_v11 = vrot.slane %v1336_v54, 5  ;;  %8769 = vmatprep.subr.bf16.mxu1 %v10420_v13  ;;  %v11483_v13 = vld [vmem:[#allocation2 + $0x68] sm:$0xf] }
 0x1ba   : > { %v1352_v4 = vsel %vm11145_vm2, %v11215_v34, %v1351_v50  ;;  %v1361_v55 = vsel %vm11145_vm2, %v1353_v52, %v1360_v30  ;;  %v1368_v29 = vshrl.u32 %v1261_v24, 16  ;;  %v1371_v25 = vshll.u32 %v1261_v24, 16 }
 0x1bb   : > { %v1764_v57 = vor.u32 %v1762_v62, %v1761_v35  ;;  %v1766_v49 = vrot.slane %v1761_v35, 4  ;;  %v1773_v17 = vor.u32 %v1771_v36, %v1770_v37  ;;  %v7954_v7 = vcombine.low %v1352_v4, %v1361_v55  ;;  %v10434_v62 = vld [vmem:[#allocation8 + $0x150] sm:$0xff]  }
 0x1bc   : > { %v1604_v23 = vrot.slane %v1603_v19, 4  ;;  %v1608_v9 = vor.u32 %v11421_v12, %v1605_v11  ;;  %v1370_v54 = vrot.slane %v1368_v29, 7  ;;  %v1377_v58 = vshrl.u32 %v11474_v61, 16  ;;  %8770 = vmatpush3.bf16.msra.mxu1 %v10423_v38  ;;  %v11492_v12 = vld [vmem:[#allocation2 + $0x6c] sm:$0xf]  ;;  %v10437_v4 = vld [vmem:[#allocation8 + $0x110] sm:$0xff]  }
 0x1bd   : > { %v1765_v34 = vsel %vm11145_vm2, %v11208_v31, %v1764_v57  ;;  %v1774_v39 = vsel %vm11145_vm2, %v1766_v49, %v1773_v17  ;;  %2328 = vmatmul.mubr.bf16.gmra.mxu0 %v7954_v7  ;;  %v1380_v48 = vshll.u32 %v11474_v61, 16  ;;  %v7963_v56 = vcombine.low %v1261_v24, %v11474_v61  ;;  %8771 = vmatprep.subr.bf16.mxu1 %v10427_v33  ;;  %v1264_v33 = vld [vmem:[#allocation2 + $0x80] sm:$0xf]  ;;  %v10441_v17 = vld [vmem:[#allocation8 + $0x148] sm:$0xff]  }
 0x1be   : > { %v7985_v32 = vcombine.low %v1765_v34, %v1774_v39  ;;  %v1606_v36 = vsel %vm11168_vm10, %v1604_v23, %v1605_v11  ;;  %v1609_v50 = vrot.slane %v1608_v9, 4  ;;  %v1379_v52 = vrot.slane %v1377_v58, 7 }
 0x1bf   : > { %v11496_v30 = vrot.slane %v1368_v29, 4  ;;  %v11498_v31 = vrot.slane %v1371_v25, 5  ;;  %v11500_v38 = vrot.slane %v1377_v58, 4  ;;  %2335 = vmatprep.mubr.bf16.mxu0 %v7963_v56  ;;  %v1781_v35 = vshrl.u32 %v11483_v13, 16 }
 0x1c0   : > { %2126 = vmatprep.mubr.bf16.mxu1 %v7985_v32  ;;  %v1614_v24 = vsel %vm11168_vm10, %v1609_v50, %v11217_v40  ;;  %v1784_v37 = vshll.u32 %v11483_v13, 16  ;;  %v1790_v19 = vshrl.u32 %v11492_v12, 16  ;;  %v1793_v11 = vshll.u32 %v11492_v12, 16  ;;  %8772 = vmatpush3.bf16.msra.mxu1 %v10430_v14 }
 0x1c1   : > { %v7977_v55 = vcombine.low %v1606_v36, %v1614_v24  ;;  %v1783_v29 = vrot.slane %v1781_v35, 7  ;;  %v1373_v57 = vor.u32 %v1371_v25, %v1370_v54  ;;  %v1375_v49 = vrot.slane %v1370_v54, 4  ;;  %8773 = vmatprep.subr.bf16.mxu1 %v10434_v62  ;;  %v11518_v54 = vld [vmem:[#allocation2 + $0x84] sm:$0xf]  ;;  %v11531_v24 = vld [vmem:[#allocation2 + $0x80] sm:$0xf] }
 0x1c2   : > { %v1792_v7 = vrot.slane %v1790_v19, 7  ;;  %v1382_v23 = vor.u32 %v1380_v48, %v1379_v52  ;;  %v1617_v40 = vor.u32 %v11460_v15, %v11455_v51  ;;  %v1619_v9 = vrot.slane %v1358_v27, 5 }
 0x1c3   : > { %2127 = vmatmul.mubr.bf16.gmra.mxu1 %v7977_v55  ;;  %v1786_v58 = vor.u32 %v1784_v37, %v1783_v29  ;;  %v1788_v14 = vrot.slane %v1783_v29, 4  ;;  %v1374_v25 = vsel %vm11145_vm2, %v11221_v53, %v1373_v57  ;;  %v1390_v34 = vshrl.u32 %v1264_v33, 16  ;;  %v10448_v53 = vld [vmem:[#allocation8 + $0x140] sm:$0xff]   ;;  %v11533_v37 = vld [vmem:[#allocation2 + $0x84] sm:$0xf] }
 0x1c4   : > { %v1795_v39 = vor.u32 %v1793_v11, %v1792_v7  ;;  %v1383_v56 = vsel %vm11145_vm2, %v1375_v49, %v1382_v23  ;;  %v1618_v62 = vrot.slane %v1617_v40, 4  ;;  %v1622_v51 = vor.u32 %v11462_v47, %v1619_v9  ;;  %8774 = vmatpush3.bf16.msra.mxu1 %v10437_v4 }
 0x1c5   : > { %v1787_v27 = vsel %vm11145_vm2, %v11219_v41, %v1786_v58  ;;  %v7955_v15 = vcombine.low %v1374_v25, %v1383_v56  ;;  %v1392_v32 = vrot.slane %v1390_v34, 7  ;;  %v1393_v36 = vshll.u32 %v1264_v33, 16  ;;  %8775 = vmatprep.subr.bf16.mxu1 %v10441_v17  ;;  %v10449_v17 = vld [vmem:[#allocation8 + $0x100] sm:$0xff]   ;;  %v11549_v58 = vld [vmem:[#allocation9 + $0x38] sm:$0xff]  }
 0x1c6   : > { %v1796_v50 = vsel %vm11145_vm2, %v1788_v14, %v1795_v39  ;;  %v1620_v52 = vsel %vm11168_vm10, %v1618_v62, %v1619_v9  ;;  %v1623_v35 = vrot.slane %v1622_v51, 4  ;;  %v1399_v47 = vshrl.u32 %v11518_v54, 16  ;;  %v1267_v9 = vld [vmem:[#allocation2 + $0x98] sm:$0xf] }
 0x1c7   : > { %v7986_v19 = vcombine.low %v1787_v27, %v1796_v50  ;;  %2336 = vmatmul.mubr.bf16.gmra.mxu0 %v7955_v15  ;;  %v1402_v41 = vshll.u32 %v11518_v54, 16  ;;  %v7964_v11 = vcombine.low %v1264_v33, %v11518_v54  ;;  %v11537_v4 = vrot.slane %v1390_v34, 4 }
 0x1c8   : > { %v1628_v55 = vsel %vm11168_vm10, %v1623_v35, %v11227_v5  ;;  %v1401_v29 = vrot.slane %v1399_v47, 7  ;;  %v11542_v57 = vrot.slane %v1393_v36, 5  ;;  %v11544_v49 = vrot.slane %v1399_v47, 4  ;;  %8776 = vmatpush3.bf16.msra.mxu1 %v10443_v60  ;;  %v11558_v60 = vld [vmem:[#allocation2 + $0x9c] sm:$0xf] }
 0x1c9   : > { %2134 = vmatprep.mubr.bf16.mxu1 %v7986_v19  ;;  %v7978_v7 = vcombine.low %v1620_v52, %v1628_v55  ;;  %2343 = vmatprep.mubr.bf16.mxu0 %v7964_v11  ;;  %v1803_v23 = vshrl.u32 %v11531_v24, 16  ;;  %v1806_v33 = vshll.u32 %v11531_v24, 16  ;;  %v1812_v40 = vshrl.u32 %v11533_v37, 16  ;;  %v11568_v47 = vld [vmem:[#allocation2 + $0x98] sm:$0xf] }
 0x1ca   : > { %v1815_v5 = vshll.u32 %v11533_v37, 16  ;;  %v1395_v14 = vor.u32 %v1393_v36, %v1392_v32  ;;  %v1397_v25 = vrot.slane %v1392_v32, 4  ;;  %v1404_v34 = vor.u32 %v1402_v41, %v1401_v29  ;;  %8777 = vmatprep.subr.bf16.mxu1 %v10448_v53  ;;  %v11577_v29 = vld [vmem:[#allocation2 + $0x9c] sm:$0xf] }
 0x1cb   : > { %2135 = vmatmul.mubr.bf16.gmra.mxu1 %v7978_v7  ;;  %v1805_v39 = vrot.slane %v1803_v23, 7  ;;  %v1814_v56 = vrot.slane %v1812_v40, 7  ;;  %v1631_v62 = vor.u32 %v11498_v31, %v11496_v30  ;;  %v1633_v51 = vrot.slane %v1380_v48, 5 }
 0x1cc   : > { %v1396_v27 = vsel %vm11145_vm2, %v11231_v8, %v1395_v14  ;;  %v1405_v15 = vsel %vm11145_vm2, %v1397_v25, %v1404_v34  ;;  %v1412_v32 = vshrl.u32 %v1267_v9, 16  ;;  %v1415_v36 = vshll.u32 %v1267_v9, 16  ;;  %8778 = vmatpush3.bf16.msra.mxu1 %v10449_v17 }
 0x1cd   : > { %v1808_v53 = vor.u32 %v1806_v33, %v1805_v39  ;;  %v1810_v50 = vrot.slane %v1805_v39, 4  ;;  %v1817_v52 = vor.u32 %v1815_v5, %v1814_v56  ;;  %v7956_v35 = vcombine.low %v1396_v27, %v1405_v15  ;;  %9291 = vmatprep.subr.bf16.mxu1 %v11549_v58  ;;  %v1270_v39 = vld [vmem:[#allocation2 + $0xb0] sm:$0xf] }
 0x1ce   : > { %v1632_v61 = vrot.slane %v1631_v62, 4  ;;  %v1636_v48 = vor.u32 %v11500_v38, %v1633_v51  ;;  %v1414_v30 = vrot.slane %v1412_v32, 7  ;;  %v1421_v31 = vshrl.u32 %v11558_v60, 16 }
 0x1cf   : > { %v1809_v8 = vsel %vm11145_vm2, %v11229_v6, %v1808_v53  ;;  %v1818_v19 = vsel %vm11145_vm2, %v1810_v50, %v1817_v52  ;;  %2344 = vmatmul.mubr.bf16.gmra.mxu0 %v7956_v35  ;;  %v1424_v11 = vshll.u32 %v11558_v60, 16  ;;  %v7965_v55 = vcombine.low %v1267_v9, %v11558_v60 }
 0x1d0   : > { %v7987_v38 = vcombine.low %v1809_v8, %v1818_v19  ;;  %v1634_v17 = vsel %vm11168_vm10, %v1632_v61, %v1633_v51  ;;  %v1637_v7 = vrot.slane %v1636_v48, 4  ;;  %v1423_v23 = vrot.slane %v1421_v31, 7  ;;  %v11603_v61 = vld [vmem:[#allocation2 + $0xb4] sm:$0xf] }
 0x1d1   : > { %v11581_v33 = vrot.slane %v1412_v32, 4  ;;  %v11583_v40 = vrot.slane %v1415_v36, 5  ;;  %v11585_v6 = vrot.slane %v1421_v31, 4  ;;  %2351 = vmatprep.mubr.bf16.mxu0 %v7965_v55  ;;  %v1825_v5 = vshrl.u32 %v11568_v47, 16 }
 0x1d2   : > { %2142 = vmatprep.mubr.bf16.mxu1 %v7987_v38  ;;  %v1642_v9 = vsel %vm11168_vm10, %v1637_v7, %v11234_v16  ;;  %v1828_v14 = vshll.u32 %v11568_v47, 16  ;;  %v1834_v25 = vshrl.u32 %v11577_v29, 16  ;;  %v1837_v34 = vshll.u32 %v11577_v29, 16  ;;  %v11618_v7 = vld [vmem:[#allocation2 + $0xb4] sm:$0xf] }
 0x1d3   : > { %v7979_v56 = vcombine.low %v1634_v17, %v1642_v9  ;;  %v1827_v62 = vrot.slane %v1825_v5, 7  ;;  %v1417_v51 = vor.u32 %v1415_v36, %v1414_v30  ;;  %v1419_v27 = vrot.slane %v1414_v30, 4  ;;  %v11616_v17 = vld [vmem:[#allocation2 + $0xb0] sm:$0xf] }
 0x1d4   : > { %v1836_v15 = vrot.slane %v1834_v25, 7  ;;  %v1426_v32 = vor.u32 %v1424_v11, %v1423_v23  ;;  %v1645_v53 = vor.u32 %v11542_v57, %v11537_v4  ;;  %v1647_v16 = vrot.slane %v1402_v41, 5 }
 0x1d5   : > { %2143 = vmatmul.mubr.bf16.gmra.mxu1 %v7979_v56  ;;  %v1830_v50 = vor.u32 %v1828_v14, %v1827_v62  ;;  %v1832_v52 = vrot.slane %v1827_v62, 4  ;;  %v1418_v35 = vsel %vm11145_vm2, %v11238_v21, %v1417_v51  ;;  %v1434_v36 = vshrl.u32 %v1270_v39, 16 }
 0x1d6   : > { %v1839_v48 = vor.u32 %v1837_v34, %v1836_v15  ;;  %v1427_v30 = vsel %vm11145_vm2, %v1419_v27, %v1426_v32  ;;  %v1646_v31 = vrot.slane %v1645_v53, 4  ;;  %v1650_v4 = vor.u32 %v11544_v49, %v1647_v16  ;;  %v2908_v27 = vld [vmem:[#allocation2 + $0x38] sm:$0xf] }
 0x1d7   : > { %v1831_v54 = vsel %vm11145_vm2, %v11236_v20, %v1830_v50  ;;  %v7957_v41 = vcombine.low %v1418_v35, %v1427_v30  ;;  %v1436_v57 = vrot.slane %v1434_v36, 7  ;;  %v1437_v8 = vshll.u32 %v1270_v39, 16 }
 0x1d8   : > { %v1840_v21 = vsel %vm11145_vm2, %v1832_v52, %v1839_v48  ;;  %v1648_v19 = vsel %vm11168_vm10, %v1646_v31, %v1647_v16  ;;  %v1651_v55 = vrot.slane %v1650_v4, 4  ;;  %v1443_v38 = vshrl.u32 %v11603_v61, 16 }
 0x1d9   : > { %v7988_v49 = vcombine.low %v1831_v54, %v1840_v21  ;;  %2352 = vmatmul.mubr.bf16.gmra.mxu0 %v7957_v41  ;;  %v1446_v20 = vshll.u32 %v11603_v61, 16  ;;  %v7966_v23 = vcombine.low %v1270_v39, %v11603_v61  ;;  %v11622_v5 = vrot.slane %v1434_v36, 4  ;;  %v2909_v36 = vld [vmem:[#allocation2 + $0x3c] sm:$0xf] }
 0x1da   : > { %v1656_v9 = vsel %vm11168_vm10, %v1651_v55, %v11240_v22  ;;  %v1445_v14 = vrot.slane %v1443_v38, 7  ;;  %v11627_v25 = vrot.slane %v1437_v8, 5  ;;  %v11629_v34 = vrot.slane %v1443_v38, 4 }
 0x1db   : > { %2150 = vmatprep.mubr.bf16.mxu1 %v7988_v49  ;;  %v7980_v56 = vcombine.low %v1648_v19, %v1656_v9  ;;  %2359 = vmatprep.mubr.bf16.mxu0 %v7966_v23  ;;  %v1847_v62 = vshrl.u32 %v11616_v17, 16  ;;  %v1850_v51 = vshll.u32 %v11616_v17, 16  ;;  %v1856_v39 = vshrl.u32 %v11618_v7, 16  ;;  %v11654_v49 = vld [vmem:[#allocation2 + $0xcc] sm:$0xf] }
 0x1dc   : > { %v1859_v15 = vshll.u32 %v11618_v7, 16  ;;  %v1439_v32 = vor.u32 %v1437_v8, %v1436_v57  ;;  %v1441_v53 = vrot.slane %v1436_v57, 4  ;;  %v1448_v22 = vor.u32 %v1446_v20, %v1445_v14 }
 0x1dd   : > { %2151 = vmatmul.mubr.bf16.gmra.mxu1 %v7980_v56  ;;  %v1849_v16 = vrot.slane %v1847_v62, 7  ;;  %v1858_v50 = vrot.slane %v1856_v39, 7  ;;  %v1659_v52 = vor.u32 %v11583_v40, %v11581_v33  ;;  %v1661_v35 = vrot.slane %v1424_v11, 5  ;;  %v11647_v11 = vld [vmem:[#allocation2 + $0xc8] sm:$0xf] }
 0x1de   : > { %v1440_v48 = vsel %vm11145_vm2, %v11247_v44, %v1439_v32  ;;  %v1449_v30 = vsel %vm11145_vm2, %v1441_v53, %v1448_v22  ;;  %v2937_v31 = vshrl.u32 %v2908_v27, 16  ;;  %v2940_v4 = vshll.u32 %v2908_v27, 16 }
 0x1df   : > { %v1852_v54 = vor.u32 %v1850_v51, %v1849_v16  ;;  %v1854_v41 = vrot.slane %v1849_v16, 4  ;;  %v1861_v57 = vor.u32 %v1859_v15, %v1858_v50  ;;  %v7958_v8 = vcombine.low %v1440_v48, %v1449_v30  ;;  %v1569_v15 = vld [vmem:[#allocation2 + $0xb8] sm:$0x1]  ;;  %v2911_v16 = vld [vmem:[#allocation2 + $0x50] sm:$0xf] }
 0x1e0   : > { %v1660_v21 = vrot.slane %v1659_v52, 4  ;;  %v1664_v33 = vor.u32 %v11585_v6, %v1661_v35  ;;  %v2939_v40 = vrot.slane %v2937_v31, 7  ;;  %v2946_v60 = vshrl.u32 %v2909_v36, 16 }
 0x1e1   : > { %v1853_v44 = vsel %vm11145_vm2, %v11245_v43, %v1852_v54  ;;  %v1862_v19 = vsel %vm11145_vm2, %v1854_v41, %v1861_v57  ;;  %2360 = vmatmul.mubr.bf16.gmra.mxu0 %v7958_v8  ;;  %v2949_v55 = vshll.u32 %v2909_v36, 16  ;;  %v8071_v38 = vcombine.low %v2908_v27, %v2909_v36  ;;  %v2912_v41 = vld [vmem:[#allocation2 + $0x54] sm:$0xf] }
 0x1e2   : > { %v7989_v23 = vcombine.low %v1853_v44, %v1862_v19  ;;  %v1662_v6 = vsel %vm11168_vm10, %v1660_v21, %v1661_v35  ;;  %v1665_v9 = vrot.slane %v1664_v33, 4  ;;  %v2942_v14 = vor.u32 %v2940_v4, %v2939_v40  ;;  %v2369_v44 = vld [vmem:[#allocation2 + $0x24] sm:$0xf] }
 0x1e3   : > { %v2944_v56 = vrot.slane %v2939_v40, 4  ;;  %v2948_v62 = vrot.slane %v2946_v60, 7  ;;  %3348 = vmatprep.mubr.bf16.mxu0 %v8071_v38  ;;  %v14320_v51 = vshrl.u32 %v11249_v45, 16  ;;  %v1869_v39 = vshrl.u32 %v11647_v11, 16  ;;  %v2368_v40 = vld [vmem:[#allocation2 + $0x20] sm:$0xf] }
 0x1e4   : > { %2158 = vmatprep.mubr.bf16.mxu1 %v7989_v23  ;;  %v1670_v27 = vsel %vm11168_vm10, %v1665_v9, %v11242_v26  ;;  %v1872_v32 = vshll.u32 %v11647_v11, 16  ;;  %v1878_v53 = vshrl.u32 %v11654_v49, 16  ;;  %v1881_v22 = vshll.u32 %v11654_v49, 16  ;;  %v10464_v60 = vld [vmem:[#allocation12 + $0x30] sm:$0xff]  }
 0x1e5   : > { %v7974_v43 = vrot.slane %v14320_v51, 11  ;;  %v7981_v50 = vcombine.low %v1662_v6, %v1670_v27  ;;  %v2951_v52 = vor.u32 %v2949_v55, %v2948_v62  ;;  %v1871_v35 = vrot.slane %v1869_v39, 7  ;;  %v2370_v6 = vld [vmem:[#allocation2 + $0x28] sm:$0x1]  ;;  %v2910_v62 = vld [vmem:[#allocation2 + $0x4c] sm:$0x8]  ;;  %v9277_v27 = vpop.f32.mrf.mxu0 }
 0x1e6   : > { %v2943_v45 = vsel %vm11145_vm2, %v11251_v46, %v2942_v14  ;;  %v1880_v36 = vrot.slane %v1878_v53, 7  ;;  %v1673_v48 = vor.u32 %v11627_v25, %v11622_v5  ;;  %v1675_v26 = vrot.slane %v1446_v20, 5 }
 0x1e7   : > { %v1681_v30 = vshll.u32 %v1569_v15, 16  ;;  %2159 = vmatmul.mubr.bf16.gmra.mxu1 %v7981_v50  ;;  %v1874_v31 = vor.u32 %v1872_v32, %v1871_v35  ;;  %v1876_v4 = vrot.slane %v1871_v35, 4  ;;  %v2952_v54 = vsel %vm11145_vm2, %v2944_v56, %v2951_v52  ;;  %v10466_v32 = vld [vmem:[#allocation12 + $0x28] sm:$0xff]  }
 0x1e8   : > { %v2959_v57 = vshrl.u32 %v2911_v16, 16  ;;  %v1883_v8 = vor.u32 %v1881_v22, %v1880_v36  ;;  %v8063_v21 = vcombine.low %v2943_v45, %v2952_v54  ;;  %v1674_v33 = vrot.slane %v1673_v48, 4  ;;  %v11688_v48 = vld [vmem:[#allocation2 + $0x6c] sm:$0xf] }
 0x1e9   : > { %v1678_v46 = vor.u32 %v11629_v34, %v1675_v26  ;;  %v1875_v61 = vsel %vm11145_vm2, %v7974_v43, %v1874_v31  ;;  %v1683_v20 = vrot.slane %v1681_v30, 5  ;;  %v2962_v25 = vshll.u32 %v2911_v16, 16 }
 0x1ea   : > { %v2961_v5 = vrot.slane %v2959_v57, 7  ;;  %v1884_v19 = vsel %vm11145_vm2, %v1876_v4, %v1883_v8  ;;  %3349 = vmatmul.mubr.bf16.vlgmr.msra.gmra.mxu0 %v8063_v21  ;;  %v1676_v55 = vsel %vm11168_vm10, %v1674_v33, %v1675_v26  ;;  %v2968_v23 = vshrl.u32 %v2912_v41, 16  ;;  %v749_v21 = vpop.f32.mrf.mxu0  ;;  %v10469_v33 = vld [vmem:[#allocation12 + $0x20] sm:$0xff]  }
 0x1eb   : > { %v1679_v38 = vrot.slane %v1678_v46, 4  ;;  %v7990_v34 = vcombine.low %v1875_v61, %v1884_v19  ;;  %v2971_v9 = vshll.u32 %v2912_v41, 16  ;;  %v8072_v14 = vcombine.low %v2911_v16, %v2912_v41  ;;  %9356 = vmatpush3.bf16.msra.mxu0 %v11356_v0  ;;  %v11686_v16 = vld [vmem:[#allocation2 + $0x68] sm:$0xf]  ;;  %v2373_v19 = vld [vmem:[#allocation2 + $0x40] sm:$0x1] }
 0x1ec   : > { %v2393_v56 = vshrl.u32 %v2368_v40, 16  ;;  %v2970_v43 = vrot.slane %v2968_v23, 7  ;;  %v2396_v39 = vshll.u32 %v2368_v40, 16  ;;  %v2402_v15 = vshll.u32 %v2369_v44, 16  ;;  %9357 = vmatprep.subr.bf16.mxu0 %v10464_v60 }
 0x1ed   : > { %v1684_v51 = vsel %vm11168_vm10, %v1679_v38, %v1683_v20  ;;  %2166 = vmatprep.mubr.bf16.mxu1 %v7990_v34  ;;  %3356 = vmatprep.mubr.bf16.mxu0 %v8072_v14  ;;  %v2406_v50 = vshrl.u32 %v2369_v44, 16  ;;  %v2412_v52 = vshll.u32 %v2370_v6, 16  ;;  %v2954_v0 = vshrl.u32 %v2910_v62, 16  ;;  %v9278_v62 = vpop.f32.mrf.mxu0 }
 0x1ee   : > { %v7982_v53 = vcombine.low %v1676_v55, %v1684_v51  ;;  %v2395_v22 = vrot.slane %v2393_v56, 4  ;;  %v2398_v35 = vrot.slane %v2396_v39, 5  ;;  %v2404_v45 = vrot.slane %v2402_v15, 5  ;;  %v10471_v51 = vld [vmem:[#allocation12 + $0x18] sm:$0xff]  }
 0x1ef   : > { %v2964_v36 = vor.u32 %v2962_v25, %v2961_v5  ;;  %v2408_v26 = vrot.slane %v2406_v50, 4  ;;  %v2414_v30 = vrot.slane %v2412_v52, 5  ;;  %v2966_v31 = vrot.slane %v2961_v5, 4  ;;  %9358 = vmatpush3.bf16.msra.mxu0 %v10464_v60  ;;  %v2371_v5 = vld [vmem:[#allocation2 + $0x38] sm:$0xf] }
 0x1f0   : > { %2167 = vmatmul.mubr.bf16.gmra.mxu1 %v7982_v53  ;;  %v2973_v4 = vor.u32 %v2971_v9, %v2970_v43  ;;  %v2399_v54 = vor.u32 %v2398_v35, %v2395_v22  ;;  %v8056_v41 = vrot.slane %v2954_v0, 11  ;;  %v8023_v57 = vcombine.low %v11366_v63, %v11370_v3  ;;  %9359 = vmatprep.subr.bf16.mxu0 %v10466_v32  ;;  %v2372_v60 = vld [vmem:[#allocation2 + $0x3c] sm:$0xf]  ;;  %v11711_v53 = vld [vmem:[%s14171_s2] ss:$0 sm:$0xff] }
 0x1f1   : > { %v2981_v8 = vshrl.u32 %v11686_v16, 16  ;;  %v2409_v46 = vor.u32 %v2408_v26, %v2404_v45  ;;  %v2984_v61 = vshll.u32 %v11686_v16, 16  ;;  %v2990_v20 = vshrl.u32 %v11688_v48, 16  ;;  %v2913_v22 = vld [vmem:[#allocation2 + $0x64] sm:$0x8] }
 0x1f2   : > { %v2974_v40 = vsel %vm11145_vm2, %v2966_v31, %v2973_v4  ;;  %v2400_v25 = vrot.slane %v2399_v54, 4  ;;  %v2965_v44 = vsel %vm11145_vm2, %v8056_v41, %v2964_v36  ;;  %v2993_v3 = vshll.u32 %v11688_v48, 16  ;;  %v10454_v26 = vld [vmem:[#allocation9 + $0x30] sm:$0xff]   ;;  %v752_v54 = vpop.f32.mrf.mxu0 }
 0x1f3   : > { %v11699_v63 = vrot.slane %v2981_v8, 7  ;;  %v2410_v55 = vrot.slane %v2409_v46, 4  ;;  %v8064_v38 = vcombine.low %v2965_v44, %v2974_v40  ;;  %v2992_v23 = vrot.slane %v2990_v20, 7  ;;  %9360 = vmatpush3.bf16.msra.mxu0 %v10466_v32  ;;  %v10473_v41 = vld [vmem:[#allocation12 + $0x10] sm:$0xff]  }
 0x1f4   : > { %v8073_v6 = vcombine.low %v11686_v16, %v11688_v48  ;;  %v2405_v34 = vsel %vm11168_vm10, %v2400_v25, %v2404_v45  ;;  %v2417_v9 = vshrl.u32 %v2371_v5, 16  ;;  %v2420_v14 = vshll.u32 %v2371_v5, 16  ;;  %9361 = vmatprep.subr.bf16.mxu0 %v10469_v33 }
 0x1f5   : > { %v2426_v56 = vshll.u32 %v2372_v60, 16  ;;  %v2415_v43 = vsel %vm11168_vm10, %v2410_v55, %v2414_v30  ;;  %3357 = vmatmul.mubr.bf16.gmra.mxu0 %v8064_v38  ;;  %v2430_v39 = vshrl.u32 %v2372_v60, 16  ;;  %v2436_v15 = vshll.u32 %v2373_v19, 16  ;;  %v10457_v55 = vld [vmem:[#allocation9 + $0x28] sm:$0xff]  }
 0x1f6   : > { %v758_v32 = vadd.f32 %v11711_v53, %v9277_v27  ;;  %v8031_v50 = vcombine.low %v2405_v34, %v2415_v43  ;;  %3364 = vmatprep.mubr.bf16.mxu0 %v8073_v6  ;;  %v2419_v52 = vrot.slane %v2417_v9, 4  ;;  %v2422_v16 = vrot.slane %v2420_v14, 5  ;;  %v10476_v9 = vld [vmem:[#allocation12 + $0x8] sm:$0xff]  }
 0x1f7   : > { %v2428_v35 = vrot.slane %v2426_v56, 5  ;;  %v2432_v45 = vrot.slane %v2430_v39, 4  ;;  %v2438_v0 = vrot.slane %v2436_v15, 5  ;;  %v750_v48 = vadd.f32 %v11711_v53, %v749_v21  ;;  %9362 = vmatpush3.bf16.msra.mxu0 %v10469_v33 }
 0x1f8   : > { %v830_v36 = vmax.f32 %v758_v32, 0.0  ;;  %2825 = vmatprep.mubr.bf16.mxu1 %v8031_v50  ;;  %v2423_v30 = vor.u32 %v2422_v16, %v2419_v52  ;;  %v761_v31 = vadd.f32 %v11711_v53, %v9278_v62  ;;  %v2976_v4 = vshrl.u32 %v2913_v22, 16  ;;  %9363 = vmatprep.subr.bf16.mxu0 %v10471_v51  ;;  %v11743_v22 = vld [vmem:[#allocation2 + $0x80] sm:$0xf]  ;;  %v10460_v50 = vld [vmem:[#allocation9 + $0x20] sm:$0xff]  }
 0x1f9   : > { %v2986_v27 = vor.u32 %v2984_v61, %v11699_v63  ;;  %2826 = vmatmul.mubr.bf16.vlgmr.msra.gmra.mxu1 %v8023_v57  ;;  %v2433_v8 = vor.u32 %v2432_v45, %v2428_v35  ;;  %v828_v40 = vmax.f32 %v750_v48, 0.0  ;;  %v2988_v20 = vrot.slane %v11699_v63, 4 }
 0x1fa   : > { %v862_v46 = vmin.f32 %v830_v36, 1.0  ;;  %9292 = vmatpush3.bf16.msra.mxu1 %v11549_v58  ;;  %v2424_v21 = vrot.slane %v2423_v30, 4  ;;  %v831_v33 = vmax.f32 %v761_v31, 0.0  ;;  %v8057_v5 = vrot.slane %v2976_v4, 11  ;;  %v10475_v30 = vld [vmem:[#allocation9 + $0x8] sm:$0xff]  }
 0x1fb   : > { %v2995_v60 = vor.u32 %v2993_v3, %v2992_v23  ;;  %v2434_v25 = vrot.slane %v2433_v8, 4  ;;  %v860_v19 = vmin.f32 %v828_v40, 1.0  ;;  %9293 = vmatprep.subr.bf16.mxu1 %v10454_v26  ;;  %v753_v61 = vadd.f32 %v11711_v53, %v752_v54  ;;  %9364 = vmatpush3.bf16.msra.mxu0 %v10471_v51  ;;  %v2374_v40 = vld [vmem:[#allocation2 + $0x50] sm:$0xf]  ;;  %v2920_v4 = vld [vmem:[#allocation2 + $0x98] sm:$0xf] }
 0x1fc   : > { %v11719_v44 = vmul.f32 15.0, %v862_v46  ;;  %v2429_v57 = vsel %vm11168_vm10, %v2424_v21, %v2428_v35  ;;  %v863_v38 = vmin.f32 %v831_v33, 1.0  ;;  %v2987_v58 = vsel %vm11145_vm2, %v8057_v5, %v2986_v27  ;;  %9365 = vmatprep.subr.bf16.mxu0 %v10473_v41 }
 0x1fd   : > { %v2996_v63 = vsel %vm11145_vm2, %v2988_v20, %v2995_v60  ;;  %v2439_v3 = vsel %vm11168_vm10, %v2434_v25, %v2438_v0  ;;  %v11733_v56 = vmul.f32 15.0, %v860_v19  ;;  %v829_v15 = vmax.f32 %v753_v61, 0.0  ;;  %v10478_v0 = vld [vmem:[#allocation12] sm:$0xff]   ;;  %v10465_v20 = vld [vmem:[#allocation9 + $0x18] sm:$0xff]  }
 0x1fe   : > { %v9627_v23 = vand.u32 2147483647, %v11719_v44  ;;  %v9629_v6 = vcvt.f32.s32 %v11719_v44  ;;  %v9632_v34 = vand.u32 2147483648, %v11719_v44  ;;  %v8032_v14 = vcombine.low %v2429_v57, %v2439_v3  ;;  %9294 = vmatpush3.bf16.msra.mxu1 %v10454_v26  ;;  %v11751_v26 = vld [vmem:[#allocation2 + $0x84] sm:$0xf]  ;;  %v10480_v25 = vld [vmem:[#allocation8 + $0x78] sm:$0xff]  }
 0x1ff   : > { %v11735_v62 = vmul.f32 15.0, %v863_v38  ;;  %v8065_v51 = vcombine.low %v2987_v58, %v2996_v63  ;;  %v8024_v32 = vcombine.low %v11404_v42, %v11411_v1  ;;  %9295 = vmatprep.subr.bf16.mxu1 %v10457_v55  ;;  %9366 = vmatpush3.bf16.msra.mxu0 %v10473_v41  ;;  %v9611_v52 = vand.u32 2147483647, %v11733_v56  ;;  %v2375_v38 = vld [vmem:[#allocation2 + $0x54] sm:$0xf] }
 0x200   : > { %vm11737_vm15 = vcmp.lt.f32.partialorder %v9627_v23, 8388608.0  ;;  %v9630_v39 = vcvt.s32.f32 %v9629_v6  ;;  %2833 = vmatprep.mubr.bf16.mxu1 %v8032_v14  ;;  %v9613_v16 = vcvt.f32.s32 %v11733_v56  ;;  %v9616_v35 = vand.u32 2147483648, %v11733_v56  ;;  %9367 = vmatprep.subr.bf16.mxu0 %v10476_v9  ;;  %v2376_v14 = vld [vmem:[#allocation2 + $0x58] sm:$0x1] }
 0x201   : > { %v9635_v45 = vand.u32 2147483647, %v11735_v62  ;;  %3365 = vmatmul.mubr.bf16.gmra.mxu0 %v8065_v51  ;;  %v9637_v48 = vcvt.f32.s32 %v11735_v62  ;;  %v9640_v42 = vand.u32 2147483648, %v11735_v62  ;;  %v861_v1 = vmin.f32 %v829_v15, 1.0  ;;  %2834 = vmatmul.mubr.bf16.gmra.mxu1 %v8024_v32  ;;  %v10470_v51 = vld [vmem:[#allocation9 + $0x10] sm:$0xff]  }
 0x202   : > { %v9631_v36 = vand.u32 2147483647, %v9630_v39  ;;  %vm11753_vm0 = vcmp.lt.f32.partialorder %v9611_v52, 8388608.0  ;;  %v9614_v31 = vcvt.s32.f32 %v9613_v16  ;;  %v3003_v27 = vshrl.u32 %v11743_v22, 16  ;;  %9296 = vmatpush3.bf16.msra.mxu1 %v10457_v55 }
 0x203   : > { %vm11757_vm1 = vcmp.lt.f32.partialorder %v9635_v45, 8388608.0  ;;  %v9638_v41 = vcvt.s32.f32 %v9637_v48  ;;  %v11762_v8 = vmul.f32 15.0, %v861_v1  ;;  %v3006_v46 = vshll.u32 %v11743_v22, 16  ;;  %9297 = vmatprep.subr.bf16.mxu1 %v10460_v50  ;;  %9368 = vmatpush3.bf16.msra.mxu0 %v10476_v9 }
 0x204   : > { %v9633_v54 = vor.u32 %v9632_v34, %v9631_v36  ;;  %v9615_v21 = vand.u32 2147483647, %v9614_v31  ;;  %v11765_v33 = vrot.slane %v3003_v27, 7  ;;  %v3012_v5 = vshrl.u32 %v11751_v26, 16  ;;  %9369 = vmatprep.subr.bf16.mxu0 %v10478_v0 }
 0x205   : > { %v3015_v60 = vshll.u32 %v11751_v26, 16  ;;  %v9639_v61 = vand.u32 2147483647, %v9638_v41  ;;  %v9619_v55 = vand.u32 2147483647, %v11762_v8  ;;  %v9621_v57 = vcvt.f32.s32 %v11762_v8 }
 0x206   : > { %v9634_v19 = vsel %vm11737_vm15, %v9633_v54, %v11719_v44  ;;  %v9617_v63 = vor.u32 %v9616_v35, %v9615_v21  ;;  %v9624_v3 = vand.u32 2147483648, %v11762_v8  ;;  %v3014_v23 = vrot.slane %v3012_v5, 7  ;;  %9298 = vmatpush3.bf16.msra.mxu1 %v10460_v50  ;;  %v2916_v50 = vld [vmem:[#allocation2 + $0x7c] sm:$0x8] }
 0x207   : > { %v958_v58 = vmul.f32 0.06666667, %v9634_v19  ;;  %v9641_v6 = vor.u32 %v9640_v42, %v9639_v61  ;;  %vm11775_vm3 = vcmp.lt.f32.partialorder %v9619_v55, 8388608.0  ;;  %v9622_v9 = vcvt.s32.f32 %v9621_v57  ;;  %9299 = vmatprep.subr.bf16.mxu1 %v10465_v20  ;;  %9370 = vmatpush3.bf16.msra.mxu0 %v10478_v0  ;;  %v2921_v5 = vld [vmem:[#allocation2 + $0x9c] sm:$0xf] }
 0x208   : > { %v8074_v44 = vcombine.low %v11743_v22, %v11751_v26  ;;  %v9618_v43 = vsel %vm11753_vm0, %v9617_v63, %v11733_v56  ;;  %v2441_v39 = vshrl.u32 %v2374_v40, 16  ;;  %v2444_v15 = vshll.u32 %v2374_v40, 16  ;;  %9003 = vmatprep.subr.bf16.mxu0 %v10480_v25 }
 0x209   : > { %v2450_v32 = vshll.u32 %v2375_v38, 16  ;;  %v956_v52 = vmul.f32 0.06666667, %v9618_v43  ;;  %v9642_v16 = vsel %vm11757_vm1, %v9641_v6, %v11735_v62  ;;  %v9623_v35 = vand.u32 2147483647, %v9622_v9 }
 0x20a   : > { %3372 = vmatprep.mubr.bf16.mxu0 %v8074_v44  ;;  %v2454_v22 = vshrl.u32 %v2375_v38, 16  ;;  %v959_v45 = vmul.f32 0.06666667, %v9642_v16  ;;  %v2443_v36 = vrot.slane %v2441_v39, 4  ;;  %v2446_v0 = vrot.slane %v2444_v15, 5  ;;  %9300 = vmatpush3.bf16.msra.mxu1 %v10465_v20 }
 0x20b   : > { %v2452_v48 = vrot.slane %v2450_v32, 5  ;;  %v9625_v42 = vor.u32 %v9624_v3, %v9623_v35  ;;  %v2460_v1 = vshll.u32 %v2376_v14, 16  ;;  %v2998_v26 = vshrl.u32 %v2916_v50, 16  ;;  %9301 = vmatprep.subr.bf16.mxu1 %v10470_v51  ;;  %v2378_v6 = vld [vmem:[#allocation2 + $0x6c] sm:$0xf] }
 0x20c   : > { %v2456_v56 = vrot.slane %v2454_v22, 4  ;;  %v8468_v31 = vpack.c.bf16 %v959_v45, %v958_v58  ;;  %v2447_v27 = vor.u32 %v2446_v0, %v2443_v36  ;;  %v3008_v54 = vor.u32 %v3006_v46, %v11765_v33  ;;  %v2377_v58 = vld [vmem:[#allocation2 + $0x68] sm:$0xf]  ;;  %v2919_v14 = vld [vmem:[#allocation2 + $0x94] sm:$0x8] }
 0x20d   : > { %v3010_v62 = vrot.slane %v11765_v33, 4  ;;  %v9626_v41 = vsel %vm11775_vm3, %v9625_v42, %v11762_v8  ;;  %v2462_v21 = vrot.slane %v2460_v1, 5  ;;  %v8058_v20 = vrot.slane %v2998_v26, 11  ;;  %v10479_v8 = vld [vmem:[#allocation9] sm:$0xff]  }
 0x20e   : > { %v2457_v40 = vor.u32 %v2456_v56, %v2452_v48  ;;  %8589 = vst [vmem:[#allocation2 + $0xf8] sm:$0xff] %v8468_v31   ;;  %v957_v25 = vmul.f32 0.06666667, %v9626_v41  ;;  %v2448_v19 = vrot.slane %v2447_v27, 4  ;;  %v3017_v61 = vor.u32 %v3015_v60, %v3014_v23  ;;  %9302 = vmatpush3.bf16.msra.mxu1 %v10470_v51  ;;  %v2923_v35 = vld [vmem:[#allocation2 + $0xb0] sm:$0xf] }
 0x20f   : > { %v8025_v55 = vcombine.low %v11449_v59, %v11451_v18  ;;  %v3009_v33 = vsel %vm11145_vm2, %v8058_v20, %v3008_v54  ;;  %v3025_v57 = vshrl.u32 %v2920_v4, 16  ;;  %v3028_v38 = vshll.u32 %v2920_v4, 16  ;;  %9303 = vmatprep.subr.bf16.mxu1 %v10475_v30  ;;  %v2379_v59 = vld [vmem:[#allocation2 + $0x70] sm:$0x1]  ;;  %v2381_v20 = vld [vmem:[#allocation2 + $0x84] sm:$0xf] }
 0x210   : > { %v2458_v46 = vrot.slane %v2457_v40, 4  ;;  %v8463_v63 = vpack.c.bf16 %v957_v25, %v956_v52  ;;  %v2453_v3 = vsel %vm11168_vm10, %v2448_v19, %v2452_v48  ;;  %v3018_v60 = vsel %vm11145_vm2, %v3010_v62, %v3017_v61  ;;  %v2924_v48 = vld [vmem:[#allocation2 + $0xb4] sm:$0xf] }
 0x211   : > { %v3034_v23 = vshrl.u32 %v2921_v5, 16  ;;  %v8066_v34 = vcombine.low %v3009_v33, %v3018_v60  ;;  %v3027_v9 = vrot.slane %v3025_v57, 7  ;;  %v3037_v44 = vshll.u32 %v2921_v5, 16 }
 0x212   : > { %v2463_v18 = vsel %vm11168_vm10, %v2458_v46, %v2462_v21  ;;  %8588 = vst [vmem:[#allocation2 + $0xe0] sm:$0xff] %v8463_v63   ;;  %v8075_v39 = vcombine.low %v2920_v4, %v2921_v5  ;;  %v2465_v15 = vshrl.u32 %v2377_v58, 16  ;;  %9304 = vmatpush3.bf16.msra.mxu1 %v10475_v30  ;;  %v2468_v32 = vshll.u32 %v2377_v58, 16  ;;  %v2380_v21 = vld [vmem:[#allocation2 + $0x80] sm:$0xf] }
 0x213   : > { %v8033_v51 = vcombine.low %v2453_v3, %v2463_v18  ;;  %v3036_v43 = vrot.slane %v3034_v23, 7  ;;  %3373 = vmatmul.mubr.bf16.gmra.mxu0 %v8066_v34  ;;  %v2474_v50 = vshll.u32 %v2378_v6, 16  ;;  %v2478_v52 = vshrl.u32 %v2378_v6, 16  ;;  %9305 = vmatprep.subr.bf16.mxu1 %v10479_v8  ;;  %v2922_v63 = vld [vmem:[#allocation2 + $0xac] sm:$0x8] }
 0x214   : > { %v2484_v16 = vshll.u32 %v2379_v59, 16  ;;  %3380 = vmatprep.mubr.bf16.mxu0 %v8075_v39  ;;  %v2467_v22 = vrot.slane %v2465_v15, 4  ;;  %v3020_v45 = vshrl.u32 %v2919_v14, 16  ;;  %v3030_v36 = vor.u32 %v3028_v38, %v3027_v9  ;;  %v2927_v15 = vld [vmem:[#allocation2 + $0xcc] sm:$0xf] }
 0x215   : > { %2841 = vmatprep.mubr.bf16.mxu1 %v8033_v51  ;;  %v3032_v0 = vrot.slane %v3027_v9, 4  ;;  %v2470_v42 = vrot.slane %v2468_v32, 5  ;;  %v2476_v56 = vrot.slane %v2474_v50, 5  ;;  %v2480_v1 = vrot.slane %v2478_v52, 4 }
 0x216   : > { %2842 = vmatmul.mubr.bf16.gmra.mxu1 %v8025_v55  ;;  %v2486_v26 = vrot.slane %v2484_v16, 5  ;;  %v8059_v30 = vrot.slane %v3020_v45, 11  ;;  %v3039_v31 = vor.u32 %v3037_v44, %v3036_v43  ;;  %v8026_v27 = vcombine.low %v11483_v13, %v11492_v12  ;;  %v2382_v55 = vld [vmem:[#allocation2 + $0x88] sm:$0x1] }
 0x217   : > { %v3047_v54 = vshrl.u32 %v2923_v35, 16  ;;  %9306 = vmatpush3.bf16.msra.mxu1 %v10479_v8  ;;  %v2471_v62 = vor.u32 %v2470_v42, %v2467_v22  ;;  %v2481_v4 = vor.u32 %v2480_v1, %v2476_v56  ;;  %v3050_v41 = vshll.u32 %v2923_v35, 16  ;;  %v2926_v44 = vld [vmem:[#allocation2 + $0xc8] sm:$0xf] }
 0x218   : > { %v3056_v40 = vshrl.u32 %v2924_v48, 16  ;;  %v3031_v5 = vsel %vm11145_vm2, %v8059_v30, %v3030_v36  ;;  %v3040_v25 = vsel %vm11145_vm2, %v3032_v0, %v3039_v31  ;;  %v3059_v61 = vshll.u32 %v2924_v48, 16  ;;  %v2383_v0 = vld [vmem:[#allocation2 + $0x98] sm:$0xf] }
 0x219   : > { %v3049_v19 = vrot.slane %v3047_v54, 7  ;;  %v2472_v46 = vrot.slane %v2471_v62, 4  ;;  %v2482_v33 = vrot.slane %v2481_v4, 4  ;;  %v8067_v13 = vcombine.low %v3031_v5, %v3040_v25 }
 0x21a   : > { %v3058_v12 = vrot.slane %v3056_v40, 7  ;;  %v8076_v57 = vcombine.low %v2923_v35, %v2924_v48  ;;  %v2489_v38 = vshrl.u32 %v2380_v21, 16  ;;  %v2492_v58 = vshll.u32 %v2380_v21, 16 }
 0x21b   : > { %v2498_v8 = vshll.u32 %v2381_v20, 16  ;;  %v2477_v3 = vsel %vm11168_vm10, %v2472_v46, %v2476_v56  ;;  %v2487_v60 = vsel %vm11168_vm10, %v2482_v33, %v2486_v26  ;;  %3381 = vmatmul.mubr.bf16.gmra.mxu0 %v8067_v13  ;;  %v2502_v23 = vshrl.u32 %v2381_v20, 16  ;;  %v2384_v26 = vld [vmem:[#allocation2 + $0x9c] sm:$0xf]  ;;  %v2386_v33 = vld [vmem:[#allocation2 + $0xb0] sm:$0xf] }
 0x21c   : > { %v2508_v6 = vshll.u32 %v2382_v55, 16  ;;  %v8034_v59 = vcombine.low %v2477_v3, %v2487_v60  ;;  %3388 = vmatprep.mubr.bf16.mxu0 %v8076_v57  ;;  %v2491_v18 = vrot.slane %v2489_v38, 4  ;;  %v2494_v34 = vrot.slane %v2492_v58, 5  ;;  %v2387_v58 = vld [vmem:[#allocation2 + $0xb4] sm:$0xf] }
 0x21d   : > { %v2500_v9 = vrot.slane %v2498_v8, 5  ;;  %v2504_v14 = vrot.slane %v2502_v23, 4  ;;  %v3042_v43 = vshrl.u32 %v2922_v63, 16  ;;  %v3052_v39 = vor.u32 %v3050_v41, %v3049_v19 }
 0x21e   : > { %v2510_v51 = vrot.slane %v2508_v6, 5  ;;  %2849 = vmatprep.mubr.bf16.mxu1 %v8034_v59  ;;  %v2495_v32 = vor.u32 %v2494_v34, %v2491_v18  ;;  %v3054_v50 = vrot.slane %v3049_v19, 4  ;;  %v3061_v52 = vor.u32 %v3059_v61, %v3058_v12  ;;  %v2388_v18 = vld [vmem:[#allocation2 + $0xb8] sm:$0x1] }
 0x21f   : > { %v8027_v16 = vcombine.low %v11531_v24, %v11533_v37  ;;  %2850 = vmatmul.mubr.bf16.gmra.mxu1 %v8026_v27  ;;  %v2505_v35 = vor.u32 %v2504_v14, %v2500_v9  ;;  %v8060_v22 = vrot.slane %v3042_v43, 11  ;;  %v3069_v45 = vshrl.u32 %v2926_v44, 16  ;;  %v2385_v24 = vld [vmem:[#allocation2 + $0xa0] sm:$0x1]  ;;  %v2925_v37 = vld [vmem:[#allocation2 + $0xc4] sm:$0x8] }
 0x220   : > { %v3072_v36 = vshll.u32 %v2926_v44, 16  ;;  %v2496_v48 = vrot.slane %v2495_v32, 4  ;;  %v3062_v42 = vsel %vm11145_vm2, %v3054_v50, %v3061_v52  ;;  %v3078_v56 = vshrl.u32 %v2927_v15, 16  ;;  %v2929_v43 = vld [vmem:[#allocation2 + $0xe0] sm:$0xf] }
 0x221   : > { %v3081_v1 = vshll.u32 %v2927_v15, 16  ;;  %v2506_v30 = vrot.slane %v2505_v35, 4  ;;  %v3053_v31 = vsel %vm11145_vm2, %v8060_v22, %v3052_v39  ;;  %v3071_v54 = vrot.slane %v3069_v45, 7 }
 0x222   : > { %v8077_v62 = vcombine.low %v2926_v44, %v2927_v15  ;;  %v2501_v27 = vsel %vm11168_vm10, %v2496_v48, %v2500_v9  ;;  %v8068_v4 = vcombine.low %v3053_v31, %v3062_v42  ;;  %v3080_v41 = vrot.slane %v3078_v56, 7  ;;  %v1029_v48 = vld [vmem:[#allocation2 + $0xdc] sm:$0x8] }
 0x223   : > { %v2513_v40 = vshrl.u32 %v2383_v0, 16  ;;  %v2511_v21 = vsel %vm11168_vm10, %v2506_v30, %v2510_v51  ;;  %v2516_v20 = vshll.u32 %v2383_v0, 16  ;;  %v2522_v5 = vshll.u32 %v2384_v26, 16  ;;  %v1077_v30 = vld [vmem:[#allocation2 + $0xd0] sm:$0x1] }
 0x224   : > { %v2526_v25 = vshrl.u32 %v2384_v26, 16  ;;  %v8035_v19 = vcombine.low %v2501_v27, %v2511_v21  ;;  %3389 = vmatmul.mubr.bf16.gmra.mxu0 %v8068_v4  ;;  %v2532_v55 = vshll.u32 %v2385_v24, 16  ;;  %v3064_v46 = vshrl.u32 %v2925_v37, 16  ;;  %v2389_v37 = vld [vmem:[#allocation2 + $0xc8] sm:$0xf] }
 0x225   : > { %v2515_v61 = vrot.slane %v2513_v40, 4  ;;  %3396 = vmatprep.mubr.bf16.mxu0 %v8077_v62  ;;  %v2518_v13 = vrot.slane %v2516_v20, 5  ;;  %v2524_v12 = vrot.slane %v2522_v5, 5  ;;  %v3074_v38 = vor.u32 %v3072_v36, %v3071_v54  ;;  %v2390_v21 = vld [vmem:[#allocation2 + $0xcc] sm:$0xf] }
 0x226   : > { %v2528_v57 = vrot.slane %v2526_v25, 4  ;;  %2857 = vmatprep.mubr.bf16.mxu1 %v8035_v19  ;;  %v2534_v8 = vrot.slane %v2532_v55, 5  ;;  %v8061_v63 = vrot.slane %v3064_v46, 11  ;;  %v3076_v3 = vrot.slane %v3071_v54, 4  ;;  %v3429_v55 = vld [vmem:[#allocation2 + $0x38] sm:$0xf] }
 0x227   : > { %v3083_v60 = vor.u32 %v3081_v1, %v3080_v41  ;;  %2858 = vmatmul.mubr.bf16.gmra.mxu1 %v8027_v16  ;;  %v2519_v23 = vor.u32 %v2518_v13, %v2515_v61  ;;  %v8028_v59 = vcombine.low %v11568_v47, %v11577_v29  ;;  %v2537_v34 = vshrl.u32 %v2386_v33, 16  ;;  %v2930_v47 = vld [vmem:[#allocation2 + $0xe4] sm:$0xf] }
 0x228   : > { %v2529_v6 = vor.u32 %v2528_v57, %v2524_v12  ;;  %v3075_v9 = vsel %vm11145_vm2, %v8061_v63, %v3074_v38  ;;  %v2540_v14 = vshll.u32 %v2386_v33, 16  ;;  %v2546_v51 = vshll.u32 %v2387_v58, 16 }
 0x229   : > { %v3084_v44 = vsel %vm11145_vm2, %v3076_v3, %v3083_v60  ;;  %v2520_v39 = vrot.slane %v2519_v23, 4  ;;  %v2539_v50 = vrot.slane %v2537_v34, 4  ;;  %v2550_v35 = vshrl.u32 %v2387_v58, 16  ;;  %v3430_v58 = vld [vmem:[#allocation2 + $0x3c] sm:$0xf] }
 0x22a   : > { %v2530_v15 = vrot.slane %v2529_v6, 4  ;;  %v8069_v32 = vcombine.low %v3075_v9, %v3084_v44  ;;  %v2542_v52 = vrot.slane %v2540_v14, 5  ;;  %v2548_v16 = vrot.slane %v2546_v51, 5  ;;  %v3432_v6 = vld [vmem:[#allocation2 + $0x50] sm:$0xf] }
 0x22b   : > { %v2556_v22 = vshll.u32 %v2388_v18, 16  ;;  %v2525_v29 = vsel %vm11168_vm10, %v2520_v39, %v2524_v12  ;;  %v3091_v36 = vshrl.u32 %v2929_v43, 16  ;;  %v3094_v0 = vshll.u32 %v2929_v43, 16 }
 0x22c   : > { %v2535_v45 = vsel %vm11168_vm10, %v2530_v15, %v2534_v8  ;;  %3397 = vmatmul.mubr.bf16.gmra.mxu0 %v8069_v32  ;;  %v2543_v56 = vor.u32 %v2542_v52, %v2539_v50  ;;  %v2552_v1 = vrot.slane %v2550_v35, 4  ;;  %v3100_v54 = vshrl.u32 %v2930_v47, 16  ;;  %v3431_v8 = vld [vmem:[#allocation2 + $0x40] sm:$0x1]  ;;  %v3433_v15 = vld [vmem:[#allocation2 + $0x54] sm:$0xf] }
 0x22d   : > { %v8036_v42 = vcombine.low %v2525_v29, %v2535_v45  ;;  %v2558_v26 = vrot.slane %v2556_v22, 5  ;;  %v3093_v31 = vrot.slane %v3091_v36, 7  ;;  %v3103_v62 = vshll.u32 %v2930_v47, 16 }
 0x22e   : > { %v8078_v24 = vcombine.low %v2929_v43, %v2930_v47  ;;  %v2544_v27 = vrot.slane %v2543_v56, 4  ;;  %v2553_v4 = vor.u32 %v2552_v1, %v2548_v16  ;;  %v1030_v41 = vsel %vm11153_vm5, 0, %v1029_v48 }
 0x22f   : > { %2865 = vmatprep.mubr.bf16.mxu1 %v8036_v42  ;;  %v8029_v40 = vcombine.low %v11616_v17, %v11618_v7  ;;  %v3102_v20 = vrot.slane %v3100_v54, 7  ;;  %1031 = vst [vmem:[#allocation2 + $0xdc] sm:$0x8] %v1030_v41  ;;  %v11836_v5 = vor.u32 %v3094_v0, %v3093_v31  ;;  %v3098_v25 = vrot.slane %v3093_v31, 4 }
 0x230   : > { %2866 = vmatmul.mubr.bf16.gmra.mxu1 %v8028_v59  ;;  %3404 = vmatprep.mubr.bf16.mxu0 %v8078_v24  ;;  %v1078_v61 = vsel %vm11162_vm7, 0, %v1077_v30  ;;  %v2549_v46 = vsel %vm11168_vm10, %v2544_v27, %v2548_v16  ;;  %v2554_v33 = vrot.slane %v2553_v4, 4  ;;  %v2561_v13 = vshrl.u32 %v2389_v37, 16  ;;  %v11846_v59 = vpop.f32.mrf.mxu0  ;;  %v3434_v16 = vld [vmem:[#allocation2 + $0x58] sm:$0x1] }
 0x231   : > { %1079 = vst [vmem:[#allocation2 + $0xd0] sm:$0x1] %v1078_v61  ;;  %v2564_v12 = vshll.u32 %v2389_v37, 16  ;;  %v3105_v17 = vor.u32 %v3103_v62, %v3102_v20  ;;  %v2570_v7 = vshll.u32 %v2390_v21, 16  ;;  %v2574_v57 = vshrl.u32 %v2390_v21, 16 }
 0x232   : > { %v8030_v38 = vcombine.low %v11647_v11, %v11654_v49  ;;  %v2559_v63 = vsel %vm11168_vm10, %v2554_v33, %v2558_v26  ;;  %v2563_v3 = vrot.slane %v2561_v13, 4  ;;  %v3454_v23 = vshrl.u32 %v3429_v55, 16  ;;  %v765_v0 = vpop.f32.mrf.mxu0  ;;  %v3435_v13 = vld [vmem:[#allocation2 + $0x68] sm:$0xf] }
 0x233   : > { %v2566_v60 = vrot.slane %v2564_v12, 5  ;;  %v8037_v18 = vcombine.low %v2549_v46, %v2559_v63  ;;  %v3106_v34 = vsel %vm11145_vm2, %v3098_v25, %v3105_v17  ;;  %v2572_v9 = vrot.slane %v2570_v7, 5 }
 0x234   : > { %v2576_v44 = vrot.slane %v2574_v57, 4  ;;  %v3456_v51 = vrot.slane %v3454_v23, 4  ;;  %v3457_v43 = vshll.u32 %v3429_v55, 16  ;;  %v3463_v39 = vshll.u32 %v3430_v58, 16  ;;  %v9282_v61 = vpop.f32.mrf.mxu0 }
 0x235   : > { %v2567_v14 = vor.u32 %v2566_v60, %v2563_v3  ;;  %2873 = vmatprep.mubr.bf16.mxu1 %v8037_v18  ;;  %v3467_v50 = vshrl.u32 %v3430_v58, 16  ;;  %v3473_v52 = vshll.u32 %v3431_v8, 16  ;;  %v3478_v35 = vshrl.u32 %v3432_v6, 16  ;;  %v3436_v58 = vld [vmem:[#allocation2 + $0x6c] sm:$0xf] }
 0x236   : > { %v2577_v32 = vor.u32 %v2576_v44, %v2572_v9  ;;  %v2928_v22 = vld [vmem:[#allocation2 + $0xdc] sm:$0x8]  ;;  %v3459_v29 = vrot.slane %v3457_v43, 5  ;;  %v3465_v45 = vrot.slane %v3463_v39, 5  ;;  %v3481_v36 = vshll.u32 %v3432_v6, 16  ;;  %v10602_v44 = vld [vmem:[%s11110_s23] sm:$0xff]  }
 0x237   : > { %v2568_v47 = vrot.slane %v2567_v14, 4  ;;  %v3086_v48 = vshrl.u32 %v2928_v22, 16  ;;  %v3469_v1 = vrot.slane %v3467_v50, 4  ;;  %v3475_v26 = vrot.slane %v3473_v52, 5  ;;  %v3437_v8 = vld [vmem:[#allocation2 + $0x70] sm:$0x1] }
 0x238   : > { %2874 = vmatmul.mubr.bf16.gmra.mxu1 %v8029_v40  ;;  %v2391_v42 = vld [vmem:[#allocation2 + $0xd0] sm:$0x1]  ;;  %v2578_v56 = vrot.slane %v2577_v32, 4  ;;  %v3460_v54 = vor.u32 %v3459_v29, %v3456_v51  ;;  %v3480_v62 = vrot.slane %v3478_v35, 4  ;;  %v3483_v27 = vrot.slane %v3481_v36, 5 }
 0x239   : > { %v2573_v30 = vsel %vm11168_vm10, %v2568_v47, %v2572_v9  ;;  %v2580_v31 = vshll.u32 %v2391_v42, 16  ;;  %v8062_v24 = vrot.slane %v3086_v48, 11  ;;  %v3470_v37 = vor.u32 %v3469_v1, %v3465_v45  ;;  %v768_v9 = vpop.f32.mrf.mxu0  ;;  %v10482_v48 = vld [vmem:[#allocation8 + $0x38] sm:$0xff]  }
 0x23a   : > { %v3487_v4 = vshll.u32 %v3433_v15, 16  ;;  %v3461_v21 = vrot.slane %v3460_v54, 4  ;;  %v3491_v20 = vshrl.u32 %v3433_v15, 16  ;;  %v3497_v25 = vshll.u32 %v3434_v16, 16 }
 0x23b   : > { %v2582_v41 = vrot.slane %v2580_v31, 5  ;;  %v3097_v40 = vsel %vm11145_vm2, %v8062_v24, %v11836_v5  ;;  %v3471_v55 = vrot.slane %v3470_v37, 4  ;;  %v3484_v46 = vor.u32 %v3483_v27, %v3480_v62  ;;  %v11869_v16 = vpop.f32.mrf.mxu0 }
 0x23c   : > { %v3489_v33 = vrot.slane %v3487_v4, 5  ;;  %v8070_v12 = vcombine.low %v3097_v40, %v3106_v34  ;;  %v3466_v7 = vsel %vm11168_vm10, %v3461_v21, %v3465_v45  ;;  %v3493_v57 = vrot.slane %v3491_v20, 4  ;;  %v3438_v45 = vld [vmem:[#allocation2 + $0x80] sm:$0xf] }
 0x23d   : > { %v2583_v17 = vsel %vm11168_vm10, %v2578_v56, %v2582_v41  ;;  %v3476_v3 = vsel %vm11168_vm10, %v3471_v55, %v3475_v26  ;;  %v3485_v5 = vrot.slane %v3484_v46, 4  ;;  %v3499_v60 = vrot.slane %v3497_v25, 5  ;;  %v10483_v26 = vld [vmem:[#allocation8 + $0x70] sm:$0xff]   ;;  %v11876_v62 = vpop.f32.mrf.mxu0  ;;  %v10603_v41 = vld [vmem:[%s11110_s23 + $0x8] sm:$0xff]  }
 0x23e   : > { %v8038_v63 = vcombine.low %v2573_v30, %v2583_v17  ;;  %3405 = vmatmul.mubr.bf16.gmra.mxu0 %v8070_v12  ;;  %v8095_v23 = vcombine.low %v3466_v7, %v3476_v3  ;;  %v3494_v6 = vor.u32 %v3493_v57, %v3489_v33  ;;  %v3502_v18 = vshrl.u32 %v3435_v13, 16  ;;  %v10604_v40 = vld [vmem:[%s11110_s23 + $0x10] sm:$0xff]   ;;  %v10485_v12 = vld [vmem:[#allocation8 + $0x68] sm:$0xff]  }
 0x23f   : > { %v3505_v34 = vshll.u32 %v3435_v13, 16  ;;  %9371 = vmatprep.mubr.bf16.mxu0 %v10602_v44  ;;  %v3490_v14 = vsel %vm11168_vm10, %v3485_v5, %v3489_v33  ;;  %v3511_v51 = vshll.u32 %v3436_v58, 16  ;;  %v3515_v43 = vshrl.u32 %v3436_v58, 16  ;;  %v10486_v44 = vld [vmem:[#allocation8 + $0x28] sm:$0xff]  }
 0x240   : > { %2881 = vmatprep.mubr.bf16.mxu1 %v8038_v63  ;;  %v3521_v39 = vshll.u32 %v3437_v8, 16  ;;  %v3495_v15 = vrot.slane %v3494_v6, 4  ;;  %v3504_v32 = vrot.slane %v3502_v18, 4  ;;  %v774_v52 = vadd.f32 %v11711_v53, %v11846_v59  ;;  %v11891_v8 = vpop.f32.mrf.mxu0 }
 0x241   : > { %2882 = vmatmul.mubr.bf16.gmra.mxu1 %v8030_v38  ;;  %v3507_v50 = vrot.slane %v3505_v34, 5  ;;  %v3513_v35 = vrot.slane %v3511_v51, 5  ;;  %v3517_v22 = vrot.slane %v3515_v43, 4  ;;  %v766_v29 = vadd.f32 %v11711_v53, %v765_v0  ;;  %v3439_v34 = vld [vmem:[#allocation2 + $0x84] sm:$0xf] }
 0x242   : > { %9307 = vmatprep.mubr.bf16.mxu1 %v8095_v23  ;;  %v3523_v47 = vrot.slane %v3521_v39, 5  ;;  %v3500_v36 = vsel %vm11168_vm10, %v3495_v15, %v3499_v60  ;;  %v834_v49 = vmax.f32 %v774_v52, 0.0  ;;  %v777_v38 = vadd.f32 %v11711_v53, %v9282_v61  ;;  %v10484_v61 = vld [vmem:[#allocation8 + $0x30] sm:$0xff]   ;;  %v3440_v15 = vld [vmem:[#allocation2 + $0x88] sm:$0x1] }
 0x243   : > { %v3508_v11 = vor.u32 %v3507_v50, %v3504_v32  ;;  %v8096_v42 = vcombine.low %v3490_v14, %v3500_v36  ;;  %v3518_v59 = vor.u32 %v3517_v22, %v3513_v35  ;;  %v832_v56 = vmax.f32 %v766_v29, 0.0  ;;  %v10487_v50 = vld [vmem:[#allocation8 + $0x60] sm:$0xff]  }
 0x244   : > { %v769_v1 = vadd.f32 %v11711_v53, %v768_v9  ;;  %v866_v31 = vmin.f32 %v834_v49, 1.0  ;;  %v835_v0 = vmax.f32 %v777_v38, 0.0  ;;  %v3526_v54 = vshrl.u32 %v3438_v45, 16  ;;  %v3441_v49 = vld [vmem:[#allocation2 + $0x98] sm:$0xf]  ;;  %v10605_v38 = vld [vmem:[%s11110_s23 + $0x18] sm:$0xff]  }
 0x245   : > { %v3509_v30 = vrot.slane %v3508_v11, 4  ;;  %v3519_v24 = vrot.slane %v3518_v59, 4  ;;  %v864_v37 = vmin.f32 %v832_v56, 1.0  ;;  %v3529_v4 = vshll.u32 %v3438_v45, 16  ;;  %v3445_v14 = vld [vmem:[#allocation2 + $0xb4] sm:$0xf] }
 0x246   : > { %v833_v27 = vmax.f32 %v769_v1, 0.0  ;;  %9372 = vmatmul.mubr.bf16.vlgmr.msra.gmra.mxu0 %v10603_v41  ;;  %v11881_v20 = vmul.f32 15.0, %v866_v31  ;;  %v867_v53 = vmin.f32 %v835_v0, 1.0  ;;  %v3528_v25 = vrot.slane %v3526_v54, 4  ;;  %v10606_v0 = vld [vmem:[%s11110_s23 + $0x20] sm:$0xff]  }
 0x247   : > { %v3514_v21 = vsel %vm11168_vm10, %v3509_v30, %v3513_v35  ;;  %9004 = vmatpush3.bf16.msra.mxu0 %v10482_v48  ;;  %9375 = vmatprep.mubr.bf16.mxu0 %v10604_v40  ;;  %v3524_v55 = vsel %vm11168_vm10, %v3519_v24, %v3523_v47  ;;  %v11886_v46 = vmul.f32 15.0, %v864_v37  ;;  %v3531_v13 = vrot.slane %v3529_v4, 5  ;;  %v11913_v47 = vpop.f32.mrf.mxu0  ;;  %v10488_v30 = vld [vmem:[#allocation8 + $0x20] sm:$0xff]  }
 0x248   : > { %v865_v33 = vmin.f32 %v833_v27, 1.0  ;;  %9005 = vmatprep.subr.bf16.mxu0 %v10483_v26  ;;  %v8097_v17 = vcombine.low %v3514_v21, %v3524_v55  ;;  %v9659_v7 = vand.u32 2147483647, %v11881_v20  ;;  %v9661_v57 = vcvt.f32.s32 %v11881_v20  ;;  %v10489_v27 = vld [vmem:[#allocation8 + $0x58] sm:$0xff]   ;;  %v3442_v55 = vld [vmem:[#allocation2 + $0x9c] sm:$0xf] }
 0x249   : > { %9308 = vmatmul.mubr.bf16.vlgmr.msra.gmra.mxu1 %v8096_v42  ;;  %v9664_v58 = vand.u32 2147483648, %v11881_v20  ;;  %v9643_v63 = vand.u32 2147483647, %v11886_v46  ;;  %v9645_v3 = vcvt.f32.s32 %v11886_v46  ;;  %v9648_v5 = vand.u32 2147483648, %v11886_v46  ;;  %v11927_v1 = vpop.f32.mrf.mxu0 }
 0x24a   : > { %v11896_v60 = vmul.f32 15.0, %v867_v53  ;;  %9311 = vmatprep.mubr.bf16.mxu1 %v8097_v17  ;;  %vm11898_vm4 = vcmp.lt.f32.partialorder %v9659_v7, 8388608.0  ;;  %v9662_v6 = vcvt.s32.f32 %v9661_v57  ;;  %v11902_v18 = vmul.f32 15.0, %v865_v33  ;;  %v3443_v7 = vld [vmem:[#allocation2 + $0xa0] sm:$0x1] }
 0x24b   : > { %v3532_v9 = vor.u32 %v3531_v13, %v3528_v25  ;;  %9006 = vmatpush3.bf16.msra.mxu0 %v10484_v61  ;;  %vm11904_vm6 = vcmp.lt.f32.partialorder %v9643_v63, 8388608.0  ;;  %v9646_v51 = vcvt.s32.f32 %v9645_v3  ;;  %v3535_v54 = vshll.u32 %v3439_v34, 16  ;;  %v11936_v57 = vpop.f32.mrf.mxu0 }
 0x24c   : > { %v9667_v43 = vand.u32 2147483647, %v11896_v60  ;;  %v9669_v39 = vcvt.f32.s32 %v11896_v60  ;;  %9007 = vmatprep.subr.bf16.mxu0 %v10485_v12  ;;  %v9663_v32 = vand.u32 2147483647, %v9662_v6  ;;  %v9672_v52 = vand.u32 2147483648, %v11896_v60 }
 0x24d   : > { %v9651_v35 = vand.u32 2147483647, %v11902_v18  ;;  %v9653_v22 = vcvt.f32.s32 %v11902_v18  ;;  %v9647_v29 = vand.u32 2147483647, %v9646_v51  ;;  %v9656_v11 = vand.u32 2147483648, %v11902_v18 }
 0x24e   : > { %vm11915_vm8 = vcmp.lt.f32.partialorder %v9667_v43, 8388608.0  ;;  %v9670_v36 = vcvt.s32.f32 %v9669_v39  ;;  %9376 = vmatmul.mubr.bf16.gmra.mxu0 %v10605_v38  ;;  %v9665_v48 = vor.u32 %v9664_v58, %v9663_v32  ;;  %v11925_v56 = vrot.slane %v3532_v9, 4  ;;  %v10607_v32 = vld [vmem:[%s11110_s23 + $0x28] sm:$0xff]  }
 0x24f   : > { %vm11921_vm9 = vcmp.lt.f32.partialorder %v9651_v35, 8388608.0  ;;  %v9654_v59 = vcvt.s32.f32 %v9653_v22  ;;  %9008 = vmatpush3.bf16.msra.mxu0 %v10486_v44  ;;  %v9649_v26 = vor.u32 %v9648_v5, %v9647_v29  ;;  %9379 = vmatprep.mubr.bf16.mxu0 %v10606_v0  ;;  %v3539_v24 = vshrl.u32 %v3439_v34, 16  ;;  %v3444_v5 = vld [vmem:[#allocation2 + $0xb0] sm:$0xf]  ;;  %v10491_v44 = vld [vmem:[#allocation8 + $0x50] sm:$0xff]   ;;  %v11948_v29 = vpop.f32.mrf.mxu0 }
 0x250   : > { %v9671_v31 = vand.u32 2147483647, %v9670_v36  ;;  %v9666_v37 = vsel %vm11898_vm4, %v9665_v48, %v11881_v20  ;;  %9009 = vmatprep.subr.bf16.mxu0 %v10487_v50  ;;  %v3545_v41 = vshll.u32 %v3440_v15, 16  ;;  %v3550_v21 = vshrl.u32 %v3441_v49, 16  ;;  %v10492_v35 = vld [vmem:[#allocation8 + $0x10] sm:$0xff]  }
 0x251   : > { %v9655_v4 = vand.u32 2147483647, %v9654_v59  ;;  %v962_v53 = vmul.f32 0.06666667, %v9666_v37  ;;  %v9650_v25 = vsel %vm11904_vm6, %v9649_v26, %v11886_v46  ;;  %v3537_v40 = vrot.slane %v3535_v54, 5  ;;  %v10490_v46 = vld [vmem:[#allocation8 + $0x18] sm:$0xff]  }
 0x252   : > { %v9673_v61 = vor.u32 %v9672_v52, %v9671_v31  ;;  %v960_v33 = vmul.f32 0.06666667, %v9650_v25  ;;  %v3541_v12 = vrot.slane %v3539_v24, 4  ;;  %v3547_v17 = vrot.slane %v3545_v41, 5  ;;  %v3446_v38 = vld [vmem:[#allocation2 + $0xb8] sm:$0x1]  ;;  %v11953_v25 = vpop.f32.mrf.mxu0 }
 0x253   : > { %v9657_v13 = vor.u32 %v9656_v11, %v9655_v4  ;;  %9010 = vmatpush3.bf16.msra.mxu0 %v10488_v30  ;;  %v3538_v58 = vsel %vm11168_vm10, %v11925_v56, %v3537_v40  ;;  %v3552_v63 = vrot.slane %v3550_v21, 4  ;;  %v3553_v3 = vshll.u32 %v3441_v49, 16  ;;  %v10608_v49 = vld [vmem:[%s11110_s23 + $0x30] sm:$0xff]   ;;  %v10493_v59 = vld [vmem:[#allocation8 + $0x48] sm:$0xff]   ;;  %v4495_v31 = vld [vmem:[#allocation2 + $0xc8] sm:$0xf] }
 0x254   : > { %v9674_v20 = vsel %vm11915_vm8, %v9673_v61, %v11896_v60  ;;  %9011 = vmatprep.subr.bf16.mxu0 %v10489_v27  ;;  %v3542_v34 = vor.u32 %v3541_v12, %v3537_v40  ;;  %v3559_v9 = vshll.u32 %v3442_v55, 16  ;;  %v3563_v43 = vshrl.u32 %v3442_v55, 16  ;;  %v4494_v48 = vld [vmem:[#allocation2 + $0xc4] sm:$0x8]  ;;  %v4496_v21 = vld [vmem:[#allocation2 + $0xcc] sm:$0xf] }
 0x255   : > { %v963_v23 = vmul.f32 0.06666667, %v9674_v20  ;;  %v9658_v6 = vsel %vm11921_vm9, %v9657_v13, %v11902_v18  ;;  %v3555_v51 = vrot.slane %v3553_v3, 5  ;;  %v3569_v39 = vshll.u32 %v3443_v7, 16 }
 0x256   : > { %v961_v60 = vmul.f32 0.06666667, %v9658_v6  ;;  %9380 = vmatmul.mubr.bf16.gmra.mxu0 %v10607_v32  ;;  %v3543_v50 = vrot.slane %v3542_v34, 4  ;;  %v3561_v52 = vrot.slane %v3559_v9, 5  ;;  %v3574_v22 = vshrl.u32 %v3444_v5, 16  ;;  %v10609_v34 = vld [vmem:[%s11110_s23 + $0x38] sm:$0xff]  }
 0x257   : > { %v8478_v15 = vpack.c.bf16 %v963_v23, %v962_v53  ;;  %9012 = vmatpush3.bf16.msra.mxu0 %v10490_v46  ;;  %v3556_v18 = vor.u32 %v3555_v51, %v3552_v63  ;;  %v3565_v36 = vrot.slane %v3563_v43, 4  ;;  %v3571_v11 = vrot.slane %v3569_v39, 5  ;;  %9383 = vmatprep.mubr.bf16.mxu0 %v10608_v49  ;;  %v10496_v23 = vld [vmem:[#allocation8 + $0x40] sm:$0xff]  }
 0x258   : > { %v8473_v45 = vpack.c.bf16 %v961_v60, %v960_v33  ;;  %v3548_v42 = vsel %vm11168_vm10, %v3543_v50, %v3547_v17  ;;  %9013 = vmatprep.subr.bf16.mxu0 %v10491_v44  ;;  %v3576_v56 = vrot.slane %v3574_v22, 4  ;;  %v3577_v26 = vshll.u32 %v3444_v5, 16  ;;  %v10494_v33 = vld [vmem:[#allocation8 + $0x8] sm:$0xff]   ;;  %v10497_v32 = vld [vmem:[#allocation8] sm:$0xff]  }
 0x259   : > { %8591 = vst [vmem:[#allocation2 + $0x128] sm:$0xff] %v8478_v15   ;;  %v3583_v30 = vshll.u32 %v3445_v14, 16  ;;  %v8098_v0 = vcombine.low %v3538_v58, %v3548_v42  ;;  %v3557_v54 = vrot.slane %v3556_v18, 4  ;;  %v3566_v24 = vor.u32 %v3565_v36, %v3561_v52  ;;  %v11957_v58 = vpop.f32.mrf.mxu0  ;;  %v3447_v15 = vld [vmem:[#allocation2 + $0xc8] sm:$0xf] }
 0x25a   : > { %8590 = vst [vmem:[#allocation2 + $0x110] sm:$0xff] %v8473_v45   ;;  %v3587_v37 = vshrl.u32 %v3445_v14, 16  ;;  %v3579_v27 = vrot.slane %v3577_v26, 5  ;;  %v3593_v41 = vshll.u32 %v3446_v38, 16  ;;  %v4519_v53 = vshrl.u32 %v4494_v48, 16  ;;  %14338 = vst [vmem:[#allocation23_spill] sm:$0xff] %v11957_v58 }
 0x25b   : > { %v3585_v4 = vrot.slane %v3583_v30, 5  ;;  %9312 = vmatmul.mubr.bf16.gmra.mxu1 %v8098_v0  ;;  %v3562_v61 = vsel %vm11168_vm10, %v3557_v54, %v3561_v52  ;;  %v3567_v40 = vrot.slane %v3566_v24, 4  ;;  %9014 = vmatpush3.bf16.msra.mxu0 %v10492_v35  ;;  %v4524_v13 = vshrl.u32 %v4495_v31, 16  ;;  %v3448_v45 = vld [vmem:[#allocation2 + $0xcc] sm:$0xf]  ;;  %v11970_v36 = vpop.f32.mrf.mxu0 }
 0x25c   : > { %v3589_v55 = vrot.slane %v3587_v37, 4  ;;  %9015 = vmatprep.subr.bf16.mxu0 %v10493_v59  ;;  %v3580_v12 = vor.u32 %v3579_v27, %v3576_v56  ;;  %v3595_v17 = vrot.slane %v3593_v41, 5  ;;  %v8146_v7 = vrot.slane %v4519_v53, 11  ;;  %v10502_v18 = vld [vmem:[#allocation8 + $0x1f8] sm:$0xff]   ;;  %14342 = vst [vmem:[#allocation27_spill] sm:$0xff] %v11970_v36 }
 0x25d   : > { %v4527_v20 = vshll.u32 %v4495_v31, 16  ;;  %v3572_v46 = vsel %vm11168_vm10, %v3567_v40, %v3571_v11  ;;  %v4526_v3 = vrot.slane %v4524_v13, 7  ;;  %v4533_v5 = vshrl.u32 %v4496_v21, 16  ;;  %v3449_v56 = vld [vmem:[#allocation2 + $0xd0] sm:$0x1]  ;;  %v10503_v37 = vld [vmem:[#allocation8 + $0x1b8] sm:$0xff]   ;;  %v11984_v53 = vpop.f32.mrf.mxu0 }
 0x25e   : > { %v3590_v63 = vor.u32 %v3589_v55, %v3585_v4  ;;  %v8099_v6 = vcombine.low %v3562_v61, %v3572_v46  ;;  %9384 = vmatmul.mubr.bf16.gmra.mxu0 %v10609_v34  ;;  %v3581_v9 = vrot.slane %v3580_v12, 4  ;;  %v4536_v44 = vshll.u32 %v4496_v21, 16  ;;  %14344 = vst [vmem:[#allocation29_spill] sm:$0xff] %v11984_v53  ;;  %v10504_v61 = vld [vmem:[#allocation8 + $0x1f0] sm:$0xff]  }
 0x25f   : > { %v8162_v14 = vcombine.low %v4495_v31, %v4496_v21  ;;  %9016 = vmatpush3.bf16.msra.mxu0 %v10494_v33  ;;  %v4529_v51 = vor.u32 %v4527_v20, %v4526_v3  ;;  %v4531_v43 = vrot.slane %v4526_v3, 4  ;;  %v4535_v39 = vrot.slane %v4533_v5, 7  ;;  %v1080_v21 = vld [vmem:[#allocation2 + $0xe8] sm:$0x1]  ;;  %v11989_v12 = vld [vmem:[%s14171_s2] ss:$0 sm:$0xff] }
 0x260   : > { %v3591_v60 = vrot.slane %v3590_v63, 4  ;;  %9315 = vmatprep.mubr.bf16.mxu1 %v8099_v6  ;;  %v3586_v50 = vsel %vm11168_vm10, %v3581_v9, %v3585_v4  ;;  %v11964_v52 = vrot.slane %v4524_v13, 4  ;;  %v11966_v35 = vrot.slane %v4527_v20, 5  ;;  %9017 = vmatprep.subr.bf16.mxu0 %v10496_v23  ;;  %v3450_v46 = vld [vmem:[#allocation2 + $0xe0] sm:$0xf] }
 0x261   : > { %v11968_v22 = vrot.slane %v4536_v44, 5  ;;  %5544 = vmatprep.mubr.bf16.mxu0 %v8162_v14  ;;  %v4530_v49 = vsel %vm11145_vm2, %v8146_v7, %v4529_v51  ;;  %v4538_v38 = vor.u32 %v4536_v44, %v4535_v39  ;;  %v11976_v48 = vrot.slane %v4533_v5, 4  ;;  %v10505_v6 = vld [vmem:[#allocation8 + $0x1b0] sm:$0xff]  }
 0x262   : > { %14339 = vst [vmem:[#allocation24_spill] sm:$0xff] %v11964_v52  ;;  %14340 = vst [vmem:[#allocation25_spill] sm:$0xff] %v11966_v35  ;;  %v3596_v11 = vsel %vm11168_vm10, %v3591_v60, %v3595_v17  ;;  %v3598_v26 = vshrl.u32 %v3447_v15, 16  ;;  %v3601_v30 = vshll.u32 %v3447_v15, 16  ;;  %v3607_v54 = vshll.u32 %v3448_v45, 16 }
 0x263   : > { %14341 = vst [vmem:[#allocation26_spill] sm:$0xff] %v11968_v22  ;;  %14343 = vst [vmem:[#allocation28_spill] sm:$0xff] %v11976_v48  ;;  %v8100_v42 = vcombine.low %v3586_v50, %v3596_v11  ;;  %v4539_v31 = vsel %vm11145_vm2, %v4531_v43, %v4538_v38  ;;  %v3611_v24 = vshrl.u32 %v3448_v45, 16  ;;  %9018 = vmatpush3.bf16.msra.mxu0 %v10497_v32  ;;  %v3617_v33 = vshll.u32 %v3449_v56, 16  ;;  %v3451_v50 = vld [vmem:[#allocation2 + $0xe4] sm:$0xf] }
 0x264   : > { %v8154_v27 = vcombine.low %v4530_v49, %v4539_v31  ;;  %v3600_v4 = vrot.slane %v3598_v26, 4  ;;  %v3603_v41 = vrot.slane %v3601_v30, 5  ;;  %9131 = vmatprep.subr.bf16.mxu0 %v10502_v18  ;;  %v3609_v40 = vrot.slane %v3607_v54, 5  ;;  %v10508_v38 = vld [vmem:[#allocation8 + $0x1a8] sm:$0xff]   ;;  %v10509_v54 = vld [vmem:[#allocation8 + $0x1e0] sm:$0xff]  }
 0x265   : > { %9316 = vmatmul.mubr.bf16.gmra.mxu1 %v8100_v42  ;;  %v3613_v55 = vrot.slane %v3611_v24, 4  ;;  %v790_v17 = vadd.f32 %v11989_v12, %v11869_v16  ;;  %v782_v7 = vadd.f32 %v11989_v12, %v11876_v62  ;;  %v793_v20 = vadd.f32 %v11989_v12, %v11891_v8  ;;  %v12001_v62 = vpop.f32.mrf.mxu0  ;;  %v10507_v8 = vld [vmem:[#allocation8 + $0x1e8] sm:$0xff]  }
 0x266   : > { %v3604_v13 = vor.u32 %v3603_v41, %v3600_v4  ;;  %5545 = vmatmul.mubr.bf16.vlgmr.msra.gmra.mxu0 %v8154_v27  ;;  %v3619_v3 = vrot.slane %v3617_v33, 5  ;;  %v785_v5 = vadd.f32 %v11989_v12, %v11913_v47  ;;  %v1081_v23 = vsel %vm11162_vm7, 0, %v1080_v21  ;;  %14345 = vst [vmem:[#allocation30_spill] sm:$0xff] %v12001_v62 }
 0x267   : > { %v3614_v63 = vor.u32 %v3613_v55, %v3609_v40  ;;  %9132 = vmatpush3.bf16.msra.mxu0 %v10503_v37  ;;  %v838_v16 = vmax.f32 %v790_v17, 0.0  ;;  %v836_v9 = vmax.f32 %v782_v7, 0.0  ;;  %v839_v44 = vmax.f32 %v793_v20, 0.0  ;;  %1082 = vst [vmem:[#allocation2 + $0xe8] sm:$0x1] %v1081_v23  ;;  %v10510_v20 = vld [vmem:[#allocation8 + $0x1a0] sm:$0xff]  }
 0x268   : > { %v3605_v34 = vrot.slane %v3604_v13, 4  ;;  %9133 = vmatprep.subr.bf16.mxu0 %v10504_v61  ;;  %v837_v60 = vmax.f32 %v785_v5, 0.0  ;;  %v3622_v51 = vshrl.u32 %v3450_v46, 16  ;;  %v3625_v43 = vshll.u32 %v3450_v46, 16  ;;  %v12037_v23 = vld [vmem:[#allocation2 + $0xe0] sm:$0xf] }
 0x269   : > { %v3615_v14 = vrot.slane %v3614_v63, 4  ;;  %v870_v39 = vmin.f32 %v838_v16, 1.0  ;;  %v868_v15 = vmin.f32 %v836_v9, 1.0  ;;  %v871_v32 = vmin.f32 %v839_v44, 1.0  ;;  %14350 = vst [vmem:[#allocation31_spill] sm:$0xff] %v12037_v23 }
 0x26a   : > { %v3610_v47 = vsel %vm11168_vm10, %v3605_v34, %v3609_v40  ;;  %v869_v18 = vmin.f32 %v837_v60, 1.0  ;;  %v3624_v11 = vrot.slane %v3622_v51, 4  ;;  %v3627_v49 = vrot.slane %v3625_v43, 5  ;;  %v10512_v34 = vld [vmem:[#allocation8 + $0x1d8] sm:$0xff]  }
 0x26b   : > { %v3620_v45 = vsel %vm11168_vm10, %v3615_v14, %v3619_v3  ;;  %9134 = vmatpush3.bf16.msra.mxu0 %v10505_v6  ;;  %v12007_v56 = vmul.f32 15.0, %v870_v39  ;;  %v12009_v26 = vmul.f32 15.0, %v868_v15  ;;  %v12011_v30 = vmul.f32 15.0, %v871_v32  ;;  %v10513_v32 = vld [vmem:[#allocation8 + $0x198] sm:$0xff]  }
 0x26c   : > { %v8101_v42 = vcombine.low %v3610_v47, %v3620_v45  ;;  %v12013_v31 = vpop.f32.mrf.mxu0  ;;  %9135 = vmatprep.subr.bf16.mxu0 %v10507_v8  ;;  %v12015_v24 = vmul.f32 15.0, %v869_v18  ;;  %v3628_v37 = vor.u32 %v3627_v49, %v3624_v11  ;;  %v3631_v27 = vshll.u32 %v3451_v50, 16 }
 0x26d   : > { %v9691_v4 = vand.u32 2147483647, %v12007_v56  ;;  %v9693_v41 = vcvt.f32.s32 %v12007_v56  ;;  %v9675_v21 = vand.u32 2147483647, %v12009_v26  ;;  %v3635_v61 = vshrl.u32 %v3451_v50, 16 }
 0x26e   : > { %9319 = vmatprep.mubr.bf16.mxu1 %v8101_v42  ;;  %v12020_v40 = vpop.f32.mrf.mxu0  ;;  %v9696_v55 = vand.u32 2147483648, %v12007_v56  ;;  %v9677_v33 = vcvt.f32.s32 %v12009_v26  ;;  %v9699_v13 = vand.u32 2147483647, %v12011_v30  ;;  %v9701_v17 = vcvt.f32.s32 %v12011_v30  ;;  %v3452_v14 = vld [vmem:[#allocation2 + $0xe8] sm:$0x1] }
 0x26f   : > { %v12026_v7 = vpop.f32.mrf.mxu1  ;;  %9136 = vmatpush3.bf16.msra.mxu0 %v10508_v38  ;;  %vm12028_vm11 = vcmp.lt.f32.partialorder %v9691_v4, 8388608.0  ;;  %v9694_v63 = vcvt.s32.f32 %v9693_v41  ;;  %vm12032_vm12 = vcmp.lt.f32.partialorder %v9675_v21, 8388608.0  ;;  %v9680_v5 = vand.u32 2147483648, %v12009_v26  ;;  %v10514_v41 = vld [vmem:[#allocation8 + $0x1d0] sm:$0xff]  }
 0x270   : > { %v12039_v6 = vpop.f32.mrf.mxu0  ;;  %9137 = vmatprep.subr.bf16.mxu0 %v10509_v54  ;;  %v9678_v16 = vcvt.s32.f32 %v9677_v33  ;;  %v9702_v9 = vcvt.s32.f32 %v9701_v17  ;;  %v9704_v44 = vand.u32 2147483648, %v12011_v30  ;;  %v9683_v8 = vand.u32 2147483647, %v12015_v24 }
 0x271   : > { %v12043_v60 = vpop.f32.mrf.mxu1  ;;  %v9695_v51 = vand.u32 2147483647, %v9694_v63  ;;  %vm12045_vm13 = vcmp.lt.f32.partialorder %v9699_v13, 8388608.0  ;;  %v9685_v47 = vcvt.f32.s32 %v12015_v24  ;;  %v9688_v39 = vand.u32 2147483648, %v12015_v24  ;;  %v10518_v13 = vld [vmem:[#allocation8 + $0x188] sm:$0xff]  }
 0x272   : > { %v12051_v15 = vpop.f32.mrf.mxu0  ;;  %v9679_v50 = vand.u32 2147483647, %v9678_v16  ;;  %v9703_v45 = vand.u32 2147483647, %v9702_v9  ;;  %v3629_v18 = vrot.slane %v3628_v37, 4  ;;  %v3633_v11 = vrot.slane %v3631_v27, 5 }
 0x273   : > { %v12053_v49 = vpop.f32.mrf.mxu1  ;;  %9138 = vmatpush3.bf16.msra.mxu0 %v10510_v20  ;;  %v9697_v38 = vor.u32 %v9696_v55, %v9695_v51  ;;  %v9686_v42 = vcvt.s32.f32 %v9685_v47  ;;  %v3637_v54 = vrot.slane %v3635_v61, 4  ;;  %v3641_v4 = vshll.u32 %v3452_v14, 16 }
 0x274   : > { %14353 = vst [vmem:[#allocation32_spill] sm:$0xff] %v12053_v49  ;;  %9139 = vmatprep.subr.bf16.mxu0 %v10512_v34  ;;  %v9681_v21 = vor.u32 %v9680_v5, %v9679_v50  ;;  %v9705_v33 = vor.u32 %v9704_v44, %v9703_v45  ;;  %vm12055_vm14 = vcmp.lt.f32.partialorder %v9683_v8, 8388608.0  ;;  %v14195_v17 = vshrl.u32 %v12037_v23, 16  ;;  %v12067_v34 = vld [vmem:[#allocation2 + $0xe4] sm:$0xf] }
 0x275   : > { %v12060_v63 = vpop.f32.mrf.mxu1  ;;  %v12062_v37 = vpop.f32.mrf.mxu0  ;;  %v9698_v27 = vsel %vm12028_vm11, %v9697_v38, %v12007_v56  ;;  %v9687_v61 = vand.u32 2147483647, %v9686_v42  ;;  %v3638_v55 = vor.u32 %v3637_v54, %v3633_v11  ;;  %v3643_v20 = vrot.slane %v3641_v4, 5  ;;  %14357 = vst [vmem:[#allocation34_spill] sm:$0xff] %v12067_v34  ;;  %v10515_v56 = vld [vmem:[#allocation8 + $0x190] sm:$0xff]  }
 0x276   : > { %14356 = vst [vmem:[#allocation33_spill] sm:$0xff] %v12060_v63  ;;  %v966_v5 = vmul.f32 0.06666667, %v9698_v27  ;;  %v9682_v16 = vsel %vm12032_vm12, %v9681_v21, %v12009_v26  ;;  %v9706_v9 = vsel %vm12045_vm13, %v9705_v33, %v12011_v30  ;;  %v4548_v44 = vrot.slane %v14195_v17, 7  ;;  %v4497_v50 = vld [vmem:[#allocation2 + $0xdc] sm:$0x8] }
 0x277   : > { %9140 = vmatpush3.bf16.msra.mxu0 %v10513_v32  ;;  %v12077_v46 = vpop.f32.mrf.mxu0  ;;  %v967_v8 = vmul.f32 0.06666667, %v9706_v9  ;;  %v9689_v14 = vor.u32 %v9688_v39, %v9687_v61  ;;  %v3634_v51 = vsel %vm11168_vm10, %v3629_v18, %v3633_v11  ;;  %v3639_v47 = vrot.slane %v3638_v55, 4  ;;  %v10517_v26 = vld [vmem:[#allocation8 + $0x1c8] sm:$0xff]  }
 0x278   : > { %9141 = vmatprep.subr.bf16.mxu0 %v10514_v41  ;;  %v964_v3 = vmul.f32 0.06666667, %v9682_v16  ;;  %v14194_v43 = vshll.u32 %v12037_v23, 16  ;;  %v4553_v30 = vrot.slane %v4548_v44, 4  ;;  %v14190_v45 = vshrl.u32 %v12067_v34, 16 }
 0x279   : > { %v12083_v38 = vpop.f32.mrf.mxu1  ;;  %v12085_v32 = vpop.f32.mrf.mxu0  ;;  %v8488_v42 = vpack.c.bf16 %v967_v8, %v966_v5  ;;  %v9690_v39 = vsel %vm12055_vm14, %v9689_v14, %v12015_v24  ;;  %v3644_v18 = vsel %vm11168_vm10, %v3639_v47, %v3643_v20  ;;  %v8163_v11 = vcombine.low %v12037_v23, %v12067_v34  ;;  %v12094_v54 = vld [vmem:[#allocation2 + $0xf8] sm:$0xf]  ;;  %v12096_v4 = vld [vmem:[#allocation2 + $0xfc] sm:$0xf]  ;;  %v10520_v5 = vld [vmem:[#allocation8 + $0x1c0] sm:$0xff]  }
 0x27a   : > { %14358 = vst [vmem:[#allocation35_spill] sm:$0xff] %v12094_v54  ;;  %14359 = vst [vmem:[#allocation36_spill] sm:$0xff] %v12096_v4  ;;  %v965_v41 = vmul.f32 0.06666667, %v9690_v39  ;;  %v8102_v21 = vcombine.low %v3634_v51, %v3644_v18  ;;  %v4557_v33 = vrot.slane %v14190_v45, 7  ;;  %v14189_v27 = vshll.u32 %v12067_v34, 16 }
 0x27b   : > { %v12101_v61 = vpop.f32.mrf.mxu1  ;;  %9142 = vmatpush3.bf16.msra.mxu0 %v10515_v56  ;;  %v12103_v24 = vpop.f32.mrf.mxu0  ;;  %8593 = vst [vmem:[#allocation2 + $0x158] sm:$0xff] %v8488_v42   ;;  %v4551_v55 = vor.u32 %v14194_v43, %v4548_v44  ;;  %5552 = vmatprep.mubr.bf16.mxu0 %v8163_v11  ;;  %v4541_v20 = vshrl.u32 %v4497_v50, 16  ;;  %v14193_v51 = vshrl.u32 %v12094_v54, 16  ;;  %v14188_v47 = vshrl.u32 %v12096_v4, 16  ;;  %v1032_v50 = vld [vmem:[#allocation2 + $0xf4] sm:$0x8] }
 0x27c   : > { %9143 = vmatprep.subr.bf16.mxu0 %v10517_v26  ;;  %v8483_v16 = vpack.c.bf16 %v965_v41, %v964_v3  ;;  %9320 = vmatmul.mubr.bf16.gmra.mxu1 %v8102_v21  ;;  %v4560_v9 = vor.u32 %v14189_v27, %v4557_v33  ;;  %v806_v11 = vadd.f32 %v11989_v12, %v11927_v1  ;;  %v14191_v21 = vshll.u32 %v12096_v4, 16  ;;  %v12153_v27 = vld [vmem:[#allocation2 + $0x114] sm:$0xf]  ;;  %v1035_v23 = vld [vmem:[#allocation2 + $0x10c] sm:$0x8] }
 0x27d   : > { %v12109_v8 = vpop.f32.mrf.mxu1  ;;  %v12111_v14 = vpop.f32.mrf.mxu0  ;;  %v8147_v56 = vrot.slane %v4541_v20, 11  ;;  %v4570_v39 = vrot.slane %v14193_v51, 7  ;;  %v4579_v18 = vrot.slane %v14188_v47, 7  ;;  %v798_v33 = vadd.f32 %v11989_v12, %v11936_v57  ;;  %v12148_v47 = vld [vmem:[#allocation2 + $0x110] sm:$0xf]  ;;  %14361 = vst [vmem:[#allocation38_spill] sm:$0xff] %v12153_v27 }
 0x27e   : > { %8592 = vst [vmem:[#allocation2 + $0x140] sm:$0xff] %v8483_v16   ;;  %v4561_v44 = vsel %vm11145_vm2, %v4553_v30, %v4560_v9  ;;  %v10521_v30 = vld [vmem:[#allocation8 + $0x180] sm:$0xff]   ;;  %v842_v20 = vmax.f32 %v806_v11, 0.0  ;;  %v809_v16 = vadd.f32 %v11989_v12, %v11948_v29  ;;  %v1033_v1 = vsel %vm11153_vm5, 0, %v1032_v50  ;;  %14360 = vst [vmem:[#allocation37_spill] sm:$0xff] %v12148_v47 }
 0x27f   : > { %v12117_v26 = vpop.f32.mrf.mxu1  ;;  %9144 = vmatpush3.bf16.msra.mxu0 %v10518_v13  ;;  %v12119_v3 = vpop.f32.mrf.mxu0  ;;  %v4552_v42 = vsel %vm11145_vm2, %v8147_v56, %v4551_v55  ;;  %v8164_v55 = vcombine.low %v12094_v54, %v12096_v4  ;;  %1034 = vst [vmem:[#allocation2 + $0xf4] sm:$0x8] %v1033_v1  ;;  %v801_v9 = vadd.f32 %v11989_v12, %v11953_v25  ;;  %v14192_v50 = vshll.u32 %v12094_v54, 16  ;;  %v10528_v4 = vld [vmem:[#allocation11 + $0x38] sm:$0xff]  }
 0x280   : > { %9145 = vmatprep.subr.bf16.mxu0 %v10520_v5  ;;  %v8155_v41 = vcombine.low %v4552_v42, %v4561_v44  ;;  %v840_v5 = vmax.f32 %v798_v33, 0.0  ;;  %v4575_v44 = vrot.slane %v4570_v39, 4  ;;  %v4582_v42 = vor.u32 %v14191_v21, %v4579_v18  ;;  %9323 = vmatprep.subr.bf16.mxu1 %v10528_v4 }
 0x281   : > { %v12132_v13 = vpop.f32.mrf.mxu0  ;;  %v874_v11 = vmin.f32 %v842_v20, 1.0  ;;  %v843_v29 = vmax.f32 %v809_v16, 0.0  ;;  %v841_v33 = vmax.f32 %v801_v9, 0.0  ;;  %v4573_v45 = vor.u32 %v14192_v50, %v4570_v39  ;;  %9324 = vmatpush3.bf16.msra.mxu1 %v10528_v4 }
 0x282   : > { %5553 = vmatmul.mubr.bf16.gmra.mxu0 %v8155_v41  ;;  %v872_v41 = vmin.f32 %v840_v5, 1.0  ;;  %v8165_v63 = vcombine.low %v12148_v47, %v12153_v27 }
 0x283   : > { %v12142_v56 = vpop.f32.mrf.mxu1  ;;  %v12144_v57 = vpop.f32.mrf.mxu0  ;;  %5560 = vmatprep.mubr.bf16.mxu0 %v8164_v55  ;;  %9146 = vmatpush3.bf16.msra.mxu0 %v10521_v30  ;;  %v906_v25 = vmul.f32 15.0, %v874_v11  ;;  %v875_v12 = vmin.f32 %v843_v29, 1.0  ;;  %v873_v55 = vmin.f32 %v841_v33, 1.0  ;;  %v4583_v11 = vsel %vm11145_vm2, %v4575_v44, %v4582_v42 }
 0x284   : > { %v12157_v18 = vmul.f32 15.0, %v872_v41  ;;  %v12229_v41 = vld [vmem:[#allocation2 + $0x12c] sm:$0xf] }
 0x285   : > { %v12151_v1 = vpop.f32.mrf.mxu1  ;;  %v9723_v5 = vand.u32 2147483647, %v906_v25  ;;  %v9725_v9 = vcvt.f32.s32 %v906_v25  ;;  %v907_v21 = vmul.f32 15.0, %v875_v12  ;;  %v12168_v39 = vmul.f32 15.0, %v873_v55 }
 0x286   : > { %v9707_v29 = vand.u32 2147483647, %v12157_v18  ;;  %v9709_v0 = vcvt.f32.s32 %v12157_v18  ;;  %v9728_v43 = vand.u32 2147483648, %v906_v25  ;;  %v4500_v12 = vld [vmem:[#allocation2 + $0xf4] sm:$0x8]  ;;  %v9712_v44 = vand.u32 2147483648, %v12157_v18 }
 0x287   : > { %v12160_v16 = vpop.f32.mrf.mxu1  ;;  %v12162_v30 = vpop.f32.mrf.mxu0  ;;  %v9726_v51 = vcvt.s32.f32 %v9725_v9  ;;  %v9731_v17 = vand.u32 2147483647, %v907_v21  ;;  %v9733_v59 = vcvt.f32.s32 %v907_v21  ;;  %v4563_v42 = vshrl.u32 %v4500_v12, 16 }
 0x288   : > { %v9710_v20 = vcvt.s32.f32 %v9709_v0  ;;  %vm12182_vm15 = vcmp.lt.f32.partialorder %v9723_v5, 8388608.0  ;;  %v9736_v53 = vand.u32 2147483648, %v907_v21  ;;  %vm12186_vm0 = vcmp.lt.f32.partialorder %v9707_v29, 8388608.0 }
 0x289   : > { %v12171_v33 = vpop.f32.mrf.mxu1  ;;  %v12173_v50 = vpop.f32.mrf.mxu0  ;;  %v9727_v9 = vand.u32 2147483647, %v9726_v51  ;;  %v9734_v62 = vcvt.s32.f32 %v9733_v59  ;;  %v8148_v19 = vrot.slane %v4563_v42, 11  ;;  %v9717_v34 = vcvt.f32.s32 %v12168_v39 }
 0x28a   : > { %v9711_v12 = vand.u32 2147483647, %v9710_v20  ;;  %vm12195_vm1 = vcmp.lt.f32.partialorder %v9731_v17, 8388608.0  ;;  %v9715_v51 = vand.u32 2147483647, %v12168_v39  ;;  %v9720_v54 = vand.u32 2147483648, %v12168_v39 }
 0x28b   : > { %v12178_v55 = vpop.f32.mrf.mxu1  ;;  %v12180_v49 = vpop.f32.mrf.mxu0  ;;  %v9729_v5 = vor.u32 %v9728_v43, %v9727_v9  ;;  %v9735_v59 = vand.u32 2147483647, %v9734_v62  ;;  %v4574_v20 = vsel %vm11145_vm2, %v8148_v19, %v4573_v45  ;;  %v9718_v42 = vcvt.s32.f32 %v9717_v34  ;;  %v12209_v9 = vld [vmem:[#allocation2 + $0x128] sm:$0xf] }
 0x28c   : > { %v9713_v29 = vor.u32 %v9712_v44, %v9711_v12  ;;  %v8156_v43 = vcombine.low %v4574_v20, %v4583_v11  ;;  %v1038_v44 = vld [vmem:[#allocation2 + $0x124] sm:$0x8]  ;;  %v14368_v45 = vshrl.u32 %v12148_v47, 16  ;;  %vm12222_vm3 = vcmp.lt.f32.partialorder %v9715_v51, 8388608.0 }
 0x28d   : > { %v12191_v28 = vpop.f32.mrf.mxu1  ;;  %v12193_v22 = vpop.f32.mrf.mxu0  ;;  %v9730_v17 = vsel %vm12182_vm15, %v9729_v5, %v906_v25  ;;  %v9737_v62 = vor.u32 %v9736_v53, %v9735_v59  ;;  %v9719_v34 = vand.u32 2147483647, %v9718_v42  ;;  %v14213_v11 = vshll.u32 %v12153_v27, 16 }
 0x28e   : > { %v970_v12 = vmul.f32 0.06666667, %v9730_v17  ;;  %v9714_v19 = vsel %vm12186_vm0, %v9713_v29, %v12157_v18  ;;  %v4592_v36 = vrot.slane %v14368_v45, 7  ;;  %5561 = vmatmul.mubr.bf16.gmra.mxu0 %v8156_v43  ;;  %v1036_v18 = vsel %vm11153_vm5, 0, %v1035_v23  ;;  %v1041_v43 = vld [vmem:[#allocation2 + $0x13c] sm:$0x8] }
 0x28f   : > { %v12203_v52 = vpop.f32.mrf.mxu1  ;;  %v12205_v35 = vpop.f32.mrf.mxu0  ;;  %v9738_v53 = vsel %vm12195_vm1, %v9737_v62, %v907_v21  ;;  %v9721_v5 = vor.u32 %v9720_v54, %v9719_v34  ;;  %v14371_v59 = vshrl.u32 %v12153_v27, 16  ;;  %5568 = vmatprep.mubr.bf16.mxu0 %v8165_v63  ;;  %1037 = vst [vmem:[#allocation2 + $0x10c] sm:$0x8] %v1036_v18  ;;  %v4612_v48 = vshrl.u32 %v12209_v9, 16 }
 0x290   : > { %v971_v0 = vmul.f32 0.06666667, %v9738_v53  ;;  %v968_v51 = vmul.f32 0.06666667, %v9714_v19  ;;  %v14212_v20 = vshll.u32 %v12209_v9, 16  ;;  %v4624_v42 = vshll.u32 %v12229_v41, 16 }
 0x291   : > { %v12216_v58 = vpop.f32.mrf.mxu1  ;;  %v12218_v4 = vpop.f32.mrf.mxu0  ;;  %v4601_v29 = vrot.slane %v14371_v59, 7  ;;  %v1039_v23 = vsel %vm11153_vm5, 0, %v1038_v44  ;;  %v9722_v54 = vsel %vm12222_vm3, %v9721_v5, %v12168_v39  ;;  %v4621_v63 = vshrl.u32 %v12229_v41, 16  ;;  %v12263_v5 = vld [vmem:[#allocation2 + $0x144] sm:$0xf] }
 0x292   : > { %v8498_v17 = vpack.c.bf16 %v971_v0, %v970_v12  ;;  %v12244_v62 = vrot.slane %v4612_v48, 4  ;;  %1040 = vst [vmem:[#allocation2 + $0x124] sm:$0x8] %v1039_v23  ;;  %v969_v45 = vmul.f32 0.06666667, %v9722_v54  ;;  %v12252_v53 = vrot.slane %v14212_v20, 5 }
 0x293   : > { %v12234_v21 = vpop.f32.mrf.mxu0  ;;  %v12254_v44 = vrot.slane %v4624_v42, 5  ;;  %v12256_v12 = vld [vmem:[#allocation2 + $0x140] sm:$0xf]  ;;  %v4597_v25 = vrot.slane %v4592_v36, 4  ;;  %v4604_v18 = vor.u32 %v14213_v11, %v4601_v29  ;;  %v12261_v0 = vrot.slane %v4621_v63, 4 }
 0x294   : > { %14372 = vst [vmem:[#allocation39_spill] sm:$0xff] %v12234_v21  ;;  %14373 = vst [vmem:[#allocation40_spill] sm:$0xff] %v12244_v62  ;;  %v8493_v23 = vpack.c.bf16 %v969_v45, %v968_v51  ;;  %v4614_v20 = vrot.slane %v4612_v48, 7  ;;  %v4634_v39 = vshrl.u32 %v12256_v12, 16  ;;  %v4637_v27 = vshll.u32 %v12256_v12, 16 }
 0x295   : > { %v12246_v34 = vpop.f32.mrf.mxu1  ;;  %v12248_v19 = vpop.f32.mrf.mxu0  ;;  %14375 = vst [vmem:[#allocation42_spill] sm:$0xff] %v12252_v53  ;;  %14376 = vst [vmem:[#allocation43_spill] sm:$0xff] %v12254_v44  ;;  %v4643_v51 = vshrl.u32 %v12263_v5, 16  ;;  %v14223_v45 = vshll.u32 %v12263_v5, 16  ;;  %v1042_v48 = vsel %vm11153_vm5, 0, %v1041_v43 }
 0x296   : > { %14374 = vst [vmem:[#allocation41_spill] sm:$0xff] %v12248_v19  ;;  %8595 = vst [vmem:[#allocation2 + $0x188] sm:$0xff] %v8498_v17   ;;  %v4623_v19 = vrot.slane %v4621_v63, 7  ;;  %v4503_v11 = vld [vmem:[#allocation2 + $0x10c] sm:$0x8]  ;;  %v14381_v63 = vshll.u32 %v12148_v47, 16 }
 0x297   : > { %14377 = vst [vmem:[#allocation44_spill] sm:$0xff] %v12261_v0  ;;  %v12265_v59 = vpop.f32.mrf.mxu1  ;;  %8594 = vst [vmem:[#allocation2 + $0x170] sm:$0xff] %v8493_v23   ;;  %v4585_v54 = vshrl.u32 %v4503_v11, 16  ;;  %v4605_v0 = vsel %vm11145_vm2, %v4597_v25, %v4604_v18  ;;  %v12285_v44 = vrot.slane %v4634_v39, 4  ;;  %v12295_v43 = vrot.slane %v14223_v45, 5  ;;  %v10529_v11 = vld [vmem:[#allocation11 + $0x30] sm:$0xff]  }
 0x298   : > { %14378 = vst [vmem:[#allocation45_spill] sm:$0xff] %v12265_v59  ;;  %v4595_v17 = vor.u32 %v14381_v63, %v4592_v36  ;;  %1043 = vst [vmem:[#allocation2 + $0x13c] sm:$0x8] %v1042_v48  ;;  %v12297_v47 = vrot.slane %v4643_v51, 4  ;;  %v12301_v36 = vadd.f32 %v12020_v40, %v12013_v31  ;;  %v4619_v18 = vrot.slane %v4614_v20, 4  ;;  %9325 = vmatprep.subr.bf16.mxu1 %v10529_v11 }
 0x299   : > { %v12272_v21 = vpop.f32.mrf.mxu1  ;;  %v12274_v29 = vpop.f32.mrf.mxu0  ;;  %14382 = vst [vmem:[#allocation48_spill] sm:$0xff] %v12285_v44  ;;  %v4506_v53 = vld [vmem:[#allocation2 + $0x124] sm:$0x8]  ;;  %14386 = vst [vmem:[#allocation52_spill] sm:$0xff] %v12295_v43  ;;  %v8149_v25 = vrot.slane %v4585_v54, 11  ;;  %v8166_v48 = vcombine.low %v12209_v9, %v12229_v41  ;;  %v12315_v31 = vadd.f32 %v12043_v60, %v12026_v7  ;;  %9326 = vmatpush3.bf16.msra.mxu1 %v10529_v11  ;;  %v4636_v60 = vrot.slane %v4634_v39, 7 }
 0x29a   : > { %14379 = vst [vmem:[#allocation46_spill] sm:$0xff] %v12272_v21  ;;  %14380 = vst [vmem:[#allocation47_spill] sm:$0xff] %v12274_v29  ;;  %v12291_v29 = vrot.slane %v4637_v27, 5  ;;  %v4607_v63 = vshrl.u32 %v4506_v53, 16  ;;  %v4626_v21 = vor.u32 %v4624_v42, %v4623_v19  ;;  %v12317_v40 = vld [vmem:[#allocation2 + $0x158] sm:$0xf]  ;;  %v8726_v19 = vadd.f32 %v12051_v15, %v12039_v6 }
 0x29b   : > { %v12287_v23 = vpop.f32.mrf.mxu1  ;;  %v12289_v62 = vpop.f32.mrf.mxu0  ;;  %14387 = vst [vmem:[#allocation53_spill] sm:$0xff] %v12297_v47  ;;  %14388 = vst [vmem:[#allocation54_spill] sm:$0xff] %v12315_v31  ;;  %v4596_v41 = vsel %vm11145_vm2, %v8149_v25, %v4595_v17  ;;  %v14389_v53 = vshll.u32 %v12209_v9, 16  ;;  %v12325_v45 = vld [vmem:[#allocation2 + $0x15c] sm:$0xf]  ;;  %v4656_v43 = vshrl.u32 %v12317_v40, 16 }
 0x29c   : > { %14383 = vst [vmem:[#allocation49_spill] sm:$0xff] %v12287_v23  ;;  %14384 = vst [vmem:[#allocation50_spill] sm:$0xff] %v12289_v62  ;;  %v8150_v42 = vrot.slane %v4607_v63, 11  ;;  %v8157_v7 = vcombine.low %v4596_v41, %v4605_v0  ;;  %v14229_v17 = vshll.u32 %v12317_v40, 16  ;;  %v1044_v25 = vld [vmem:[#allocation2 + $0x154] sm:$0x8]  ;;  %v4627_v6 = vsel %vm11145_vm2, %v4619_v18, %v4626_v21 }
 0x29d   : > { %14385 = vst [vmem:[#allocation51_spill] sm:$0xff] %v12291_v29  ;;  %v12305_v62 = vpop.f32.mrf.mxu1  ;;  %v12307_v23 = vpop.f32.mrf.mxu0  ;;  %v4617_v54 = vor.u32 %v14389_v53, %v4614_v20  ;;  %v4645_v15 = vrot.slane %v4643_v51, 7  ;;  %v4665_v53 = vshrl.u32 %v12325_v45, 16  ;;  %v14230_v0 = vshll.u32 %v12325_v45, 16 }
 0x29e   : > { %5569 = vmatmul.mubr.bf16.gmra.mxu0 %v8157_v7  ;;  %v12343_v41 = vrot.slane %v4656_v43, 4  ;;  %v12347_v44 = vrot.slane %v14229_v17, 5  ;;  %v4639_v29 = vor.u32 %v4637_v27, %v4636_v60  ;;  %v12365_v17 = vld [vmem:[#allocation2 + $0x170] sm:$0xf]  ;;  %v8729_v27 = vadd.f32 %v12077_v46, %v12062_v37 }
 0x29f   : > { %v12327_v59 = vpop.f32.mrf.mxu1  ;;  %v12329_v47 = vpop.f32.mrf.mxu0  ;;  %v4509_v63 = vld [vmem:[#allocation2 + $0x13c] sm:$0x8]  ;;  %5576 = vmatprep.mubr.bf16.mxu0 %v8166_v48  ;;  %v4618_v39 = vsel %vm11145_vm2, %v8150_v42, %v4617_v54  ;;  %v12355_v51 = vrot.slane %v14230_v0, 5  ;;  %v12357_v18 = vrot.slane %v4665_v53, 4  ;;  %v8167_v54 = vcombine.low %v12256_v12, %v12263_v5 }
 0x2a0   : > { %v4629_v11 = vshrl.u32 %v4509_v63, 16  ;;  %14391 = vst [vmem:[#allocation56_spill] sm:$0xff] %v12343_v41  ;;  %14392 = vst [vmem:[#allocation57_spill] sm:$0xff] %v12347_v44  ;;  %v10530_v48 = vld [vmem:[#allocation11 + $0x28] sm:$0xff]   ;;  %v1045_v63 = vsel %vm11153_vm5, 0, %v1044_v25  ;;  %v8158_v0 = vcombine.low %v4618_v39, %v4627_v6  ;;  %v8659_v12 = vadd.f32 %v12101_v61, %v12083_v38 }
 0x2a1   : > { %v12333_v9 = vpop.f32.mrf.mxu1  ;;  %v12335_v20 = vpop.f32.mrf.mxu0  ;;  %14394 = vst [vmem:[#allocation59_spill] sm:$0xff] %v12355_v51  ;;  %14395 = vst [vmem:[#allocation60_spill] sm:$0xff] %v12357_v18  ;;  %9327 = vmatprep.subr.bf16.mxu1 %v10530_v48  ;;  %v4641_v42 = vrot.slane %v4636_v60, 4  ;;  %v14397_v25 = vshll.u32 %v12263_v5, 16  ;;  %v4678_v37 = vshrl.u32 %v12365_v17, 16  ;;  %v14234_v46 = vshll.u32 %v12365_v17, 16 }
 0x2a2   : > { %14390 = vst [vmem:[#allocation55_spill] sm:$0xff] %v12333_v9  ;;  %1046 = vst [vmem:[#allocation2 + $0x154] sm:$0x8] %v1045_v63  ;;  %v8151_v44 = vrot.slane %v4629_v11, 11  ;;  %9328 = vmatpush3.bf16.msra.mxu1 %v10530_v48  ;;  %v12386_v63 = vadd.f32 %v12301_v36, %v8659_v12  ;;  %v1047_v61 = vld [vmem:[#allocation2 + $0x16c] sm:$0x8] }
 0x2a3   : > { %v12349_v7 = vpop.f32.mrf.mxu1  ;;  %v12351_v21 = vpop.f32.mrf.mxu0  ;;  %v4648_v41 = vor.u32 %v14397_v25, %v4645_v15  ;;  %v4658_v5 = vrot.slane %v4656_v43, 7  ;;  %v4667_v15 = vrot.slane %v4665_v53, 7  ;;  %v12396_v11 = vrot.slane %v4678_v37, 4  ;;  %v10531_v25 = vld [vmem:[#allocation11 + $0x20] sm:$0xff]  }
 0x2a4   : > { %14393 = vst [vmem:[#allocation58_spill] sm:$0xff] %v12349_v7  ;;  %v12367_v7 = vld [vmem:[#allocation2 + $0x174] sm:$0xf]  ;;  %v12400_v36 = vrot.slane %v14234_v46, 5  ;;  %v4640_v43 = vsel %vm11145_vm2, %v8151_v44, %v4639_v29  ;;  %v1048_v53 = vsel %vm11153_vm5, 0, %v1047_v61  ;;  %9329 = vmatprep.subr.bf16.mxu1 %v10531_v25  ;;  %v14403_v61 = vshll.u32 %v12325_v45, 16 }
 0x2a5   : > { %v12369_v9 = vpop.f32.mrf.mxu0  ;;  %v4687_v38 = vshrl.u32 %v12367_v7, 16  ;;  %14399 = vst [vmem:[#allocation63_spill] sm:$0xff] %v12396_v11  ;;  %1049 = vst [vmem:[#allocation2 + $0x16c] sm:$0x8] %v1048_v53  ;;  %v4663_v46 = vrot.slane %v4658_v5, 4  ;;  %v14404_v53 = vshll.u32 %v12317_v40, 16  ;;  %v8168_v11 = vcombine.low %v12317_v40, %v12325_v45 }
 0x2a6   : > { %14396 = vst [vmem:[#allocation61_spill] sm:$0xff] %v12369_v9  ;;  %v8662_v9 = vadd.f32 %v12117_v26, %v12109_v8  ;;  %v14233_v8 = vshll.u32 %v12367_v7, 16  ;;  %5577 = vmatmul.mubr.bf16.gmra.mxu0 %v8158_v0  ;;  %14400 = vst [vmem:[#allocation64_spill] sm:$0xff] %v12400_v36  ;;  %9330 = vmatpush3.bf16.msra.mxu1 %v10531_v25  ;;  %v4670_v18 = vor.u32 %v14403_v61, %v4667_v15 }
 0x2a7   : > { %v12381_v6 = vpop.f32.mrf.mxu1  ;;  %v12383_v39 = vpop.f32.mrf.mxu0  ;;  %v12402_v48 = vrot.slane %v4687_v38, 4  ;;  %5584 = vmatprep.mubr.bf16.mxu0 %v8167_v54  ;;  %v4661_v31 = vor.u32 %v14404_v53, %v4658_v5  ;;  %v8735_v29 = vadd.f32 %v12119_v3, %v12111_v14  ;;  %v8665_v25 = vadd.f32 %v12151_v1, %v12142_v56 }
 0x2a8   : > { %v12391_v60 = vadd.f32 %v8726_v19, %v8662_v9  ;;  %v4649_v19 = vsel %vm11145_vm2, %v4641_v42, %v4648_v41  ;;  %v12412_v9 = vrot.slane %v14233_v8, 5  ;;  %v10532_v42 = vld [vmem:[#allocation11 + $0x18] sm:$0xff]   ;;  %v8732_v15 = vadd.f32 %v12103_v24, %v12085_v32 }
 0x2a9   : > { %v12394_v26 = vpop.f32.mrf.mxu1  ;;  %14401 = vst [vmem:[#allocation65_spill] sm:$0xff] %v12402_v48  ;;  %v4512_v44 = vld [vmem:[#allocation2 + $0x154] sm:$0x8]  ;;  %v8159_v8 = vcombine.low %v4640_v43, %v4649_v19  ;;  %9331 = vmatprep.subr.bf16.mxu1 %v10532_v42  ;;  %v8668_v5 = vadd.f32 %v12171_v33, %v12160_v16  ;;  %v8741_v45 = vadd.f32 %v12173_v50, %v12162_v30  ;;  %v4680_v50 = vrot.slane %v4678_v37, 7 }
 0x2aa   : > { %14398 = vst [vmem:[#allocation62_spill] sm:$0xff] %v12391_v60  ;;  %v12404_v12 = vpop.f32.mrf.mxu0  ;;  %14402 = vst [vmem:[#allocation66_spill] sm:$0xff] %v12412_v9  ;;  %v4651_v51 = vshrl.u32 %v4512_v44, 16  ;;  %v12442_v44 = vadd.f32 %v8729_v27, %v8665_v25  ;;  %9332 = vmatpush3.bf16.msra.mxu1 %v10532_v42  ;;  %v4671_v3 = vsel %vm11145_vm2, %v4663_v46, %v4670_v18  ;;  %v4689_v1 = vrot.slane %v4687_v38, 7  ;;  %v12466_v46 = vld [vmem:[#allocation2 + $0xf8] sm:$0xf] }
 0x2ab   : > { %v12416_v0 = vpop.f32.mrf.mxu1  ;;  %v8671_v32 = vadd.f32 %v12191_v28, %v12178_v55  ;;  %v8744_v24 = vadd.f32 %v12193_v22, %v12180_v49  ;;  %v12460_v30 = vadd.f32 %v8732_v15, %v8668_v5  ;;  %v6149_v28 = vld [vmem:[#allocation2 + $0xfc] sm:$0xf]  ;;  %v8738_v37 = vadd.f32 %v12144_v57, %v12132_v13  ;;  %v12637_v9 = vld [vmem:[#allocation2 + $0xe4] sm:$0xf] }
 0x2ac   : > { %v12420_v54 = vpop.f32.mrf.mxu0  ;;  %v8152_v19 = vrot.slane %v4651_v51, 11  ;;  %v4515_v16 = vld [vmem:[#allocation2 + $0x16c] sm:$0x8]  ;;  %v10533_v51 = vld [vmem:[#allocation11 + $0x10] sm:$0xff]   ;;  %v8674_v38 = vadd.f32 %v12216_v58, %v12203_v52  ;;  %v4685_v42 = vrot.slane %v4680_v50, 4  ;;  %v14407_v61 = vshll.u32 %v12367_v7, 16 }
 0x2ad   : > { %v12424_v41 = vpop.f32.mrf.mxu1  ;;  %v4673_v27 = vshrl.u32 %v4515_v16, 16  ;;  %v12464_v18 = vadd.f32 %v8735_v29, %v8671_v32  ;;  %9333 = vmatprep.subr.bf16.mxu1 %v10533_v51  ;;  %v6177_v5 = vshrl.u32 %v12466_v46, 16  ;;  %v6180_v57 = vshll.u32 %v12466_v46, 16 }
 0x2ae   : > { %v12428_v60 = vpop.f32.mrf.mxu0  ;;  %5585 = vmatmul.mubr.bf16.gmra.mxu0 %v8159_v8  ;;  %v4662_v56 = vsel %vm11145_vm2, %v8152_v19, %v4661_v31  ;;  %v8169_v31 = vcombine.low %v12365_v17, %v12367_v7  ;;  %9334 = vmatpush3.bf16.msra.mxu1 %v10533_v51  ;;  %v10534_v8 = vld [vmem:[#allocation11 + $0x8] sm:$0xff]   ;;  %v4692_v53 = vor.u32 %v14407_v61, %v4689_v1  ;;  %v6147_v19 = vld [vmem:[#allocation2 + $0xf4] sm:$0x8] }
 0x2af   : > { %5592 = vmatprep.mubr.bf16.mxu0 %v8168_v11  ;;  %14405 = vst [vmem:[#allocation67_spill] sm:$0xff] %v12464_v18  ;;  %v8160_v49 = vcombine.low %v4662_v56, %v4671_v3  ;;  %v14406_v11 = vshll.u32 %v12365_v17, 16  ;;  %v8153_v25 = vrot.slane %v4673_v27, 11  ;;  %v6186_v3 = vshrl.u32 %v6149_v28, 16  ;;  %9335 = vmatprep.subr.bf16.mxu1 %v10534_v8  ;;  %v12490_v17 = vld [vmem:[#allocation2 + $0x110] sm:$0xf] }
 0x2b0   : > { %v12438_v43 = vpop.f32.mrf.mxu1  ;;  %v12450_v14 = vpop.f32.mrf.mxu0  ;;  %v12485_v13 = vadd.f32 %v8738_v37, %v8674_v38  ;;  %v6172_v52 = vshrl.u32 %v6147_v19, 16  ;;  %v4693_v32 = vsel %vm11145_vm2, %v4685_v42, %v4692_v53  ;;  %v12496_v56 = vld [vmem:[#allocation2 + $0x114] sm:$0xf]  ;;  %v14409_v1 = vld [vmem:[#allocation45_spill] sm:$0xff]  ;;  %v6189_v37 = vshll.u32 %v6149_v28, 16  ;;  %v14410_v38 = vld [vmem:[#allocation46_spill] sm:$0xff] }
 0x2b1   : > { %v4683_v29 = vor.u32 %v14406_v11, %v4680_v50  ;;  %v8747_v50 = vadd.f32 %v12218_v4, %v12205_v35  ;;  %v8677_v16 = vadd.f32 %v14409_v1, %v12246_v34  ;;  %v6208_v4 = vshrl.u32 %v12496_v56, 16  ;;  %v14414_v19 = vld [vmem:[#allocation47_spill] sm:$0xff] }
 0x2b2   : > { %v12448_v40 = vpop.f32.mrf.mxu1  ;;  %14408 = vst [vmem:[#allocation68_spill] sm:$0xff] %v12485_v13  ;;  %9336 = vmatpush3.bf16.msra.mxu1 %v10534_v8  ;;  %v14411_v8 = vld [vmem:[#allocation49_spill] sm:$0xff]  ;;  %v8258_v53 = vrot.slane %v6172_v52, 11 }
 0x2b3   : > { %v4684_v7 = vsel %vm11145_vm2, %v8153_v25, %v4683_v29  ;;  %v8680_v11 = vadd.f32 %v14411_v8, %v14410_v38  ;;  %v6199_v29 = vshrl.u32 %v12490_v17, 16  ;;  %v12509_v42 = vadd.f32 %v8741_v45, %v8677_v16  ;;  %v6150_v25 = vld [vmem:[#allocation2 + $0x10c] sm:$0x8] }
 0x2b4   : > { %v12462_v33 = vpop.f32.mrf.mxu1  ;;  %v8161_v35 = vcombine.low %v4684_v7, %v4693_v32  ;;  %v8683_v45 = vadd.f32 %v12327_v59, %v12305_v62  ;;  %v8274_v16 = vcombine.low %v12466_v46, %v6149_v28  ;;  %v6202_v32 = vshll.u32 %v12490_v17, 16  ;;  %v6155_v46 = vld [vmem:[#allocation2 + $0x12c] sm:$0xf] }
 0x2b5   : > { %v12470_v22 = vpop.f32.mrf.mxu0  ;;  %14412 = vst [vmem:[#allocation45_spill] sm:$0xff] %v12509_v42  ;;  %v12514_v34 = vadd.f32 %v8744_v24, %v8680_v11  ;;  %v6201_v7 = vrot.slane %v6199_v29, 7  ;;  %v12524_v24 = vld [vmem:[#allocation2 + $0x128] sm:$0xf]  ;;  %v6210_v11 = vrot.slane %v6208_v4, 7  ;;  %v8759_v29 = vadd.f32 %v12351_v21, %v12335_v20 }
 0x2b6   : > { %v12468_v55 = vpop.f32.mrf.mxu1  ;;  %5593 = vmatmul.mubr.bf16.gmra.mxu0 %v8160_v49  ;;  %v6179_v49 = vrot.slane %v6177_v5, 7  ;;  %v14415_v5 = vld [vmem:[#allocation50_spill] sm:$0xff]  ;;  %v6221_v28 = vshrl.u32 %v12524_v24, 16 }
 0x2b7   : > { %v12482_v15 = vpop.f32.mrf.mxu0  ;;  %5600 = vmatprep.mubr.bf16.mxu0 %v8169_v31  ;;  %v6188_v31 = vrot.slane %v6186_v3, 7  ;;  %14413 = vst [vmem:[#allocation46_spill] sm:$0xff] %v12514_v34  ;;  %v8753_v3 = vadd.f32 %v14415_v5, %v14414_v19  ;;  %v6211_v19 = vshll.u32 %v12496_v56, 16  ;;  %v6194_v5 = vshrl.u32 %v6150_v25, 16 }
 0x2b8   : > { %v6182_v48 = vor.u32 %v6180_v57, %v6179_v49  ;;  %v6184_v38 = vrot.slane %v6179_v49, 4  ;;  %v12529_v57 = vadd.f32 %v8747_v50, %v8683_v45  ;;  %v8689_v50 = vadd.f32 %v12394_v26, %v12381_v6  ;;  %v6153_v6 = vld [vmem:[#allocation2 + $0x124] sm:$0x8] }
 0x2b9   : > { %v12487_v58 = vpop.f32.mrf.mxu1  ;;  %v12504_v27 = vpop.f32.mrf.mxu0  ;;  %v6191_v8 = vor.u32 %v6189_v37, %v6188_v31  ;;  %v6204_v31 = vor.u32 %v6202_v32, %v6201_v7  ;;  %v6206_v37 = vrot.slane %v6201_v7, 4  ;;  %v6213_v4 = vor.u32 %v6211_v19, %v6210_v11 }
 0x2ba   : > { %14416 = vst [vmem:[#allocation49_spill] sm:$0xff] %v12529_v57  ;;  %v6183_v62 = vsel %vm11145_vm2, %v8258_v53, %v6182_v48  ;;  %v8259_v25 = vrot.slane %v6194_v5, 11  ;;  %v8756_v48 = vadd.f32 %v12329_v47, %v12307_v23  ;;  %v8692_v53 = vadd.f32 %v12424_v41, %v12416_v0 }
 0x2bb   : > { %v12502_v51 = vpop.f32.mrf.mxu1  ;;  %v12518_v1 = vpop.f32.mrf.mxu0  ;;  %v6192_v59 = vsel %vm11145_vm2, %v6184_v38, %v6191_v8  ;;  %v8275_v38 = vcombine.low %v12490_v17, %v12496_v56  ;;  %v6230_v8 = vshrl.u32 %v6155_v46, 16  ;;  %v12550_v45 = vadd.f32 %v8753_v3, %v8689_v50  ;;  %v14418_v3 = vld [vmem:[#allocation61_spill] sm:$0xff]  ;;  %v12575_v50 = vld [vmem:[#allocation2 + $0x144] sm:$0xf] }
 0x2bc   : > { %v8266_v21 = vcombine.low %v6183_v62, %v6192_v59  ;;  %v12554_v26 = vadd.f32 %v8756_v48, %v8692_v53  ;;  %v6224_v7 = vshll.u32 %v12524_v24, 16  ;;  %v6205_v47 = vsel %vm11145_vm2, %v8259_v25, %v6204_v31  ;;  %v14419_v62 = vld [vmem:[#allocation23_spill] sm:$0xff]  ;;  %v12573_v31 = vld [vmem:[#allocation2 + $0x140] sm:$0xf]  ;;  %v1050_v48 = vld [vmem:[#allocation2 + $0x184] sm:$0x8] }
 0x2bd   : > { %v12511_v61 = vpop.f32.mrf.mxu1  ;;  %v6214_v23 = vsel %vm11145_vm2, %v6206_v37, %v6213_v4  ;;  %v6233_v0 = vshll.u32 %v6155_v46, 16  ;;  %v8695_v41 = vadd.f32 %v12448_v40, %v12438_v43  ;;  %v6232_v17 = vrot.slane %v6230_v8, 7  ;;  %v14420_v59 = vld [vmem:[#allocation27_spill] sm:$0xff]  ;;  %v10535_v37 = vld [vmem:[#allocation11] sm:$0xff]  }
 0x2be   : > { %5601 = vmatmul.mubr.bf16.gmra.mxu0 %v8161_v35  ;;  %14417 = vst [vmem:[#allocation47_spill] sm:$0xff] %v12554_v26  ;;  %v6216_v56 = vshrl.u32 %v6153_v6, 16  ;;  %v8762_v11 = vadd.f32 %v12383_v39, %v14418_v3  ;;  %v8698_v19 = vadd.f32 %v12468_v55, %v12462_v33  ;;  %v8267_v39 = vcombine.low %v6205_v47, %v6214_v23  ;;  %v14423_v6 = vld [vmem:[#allocation54_spill] sm:$0xff]  ;;  %v14424_v23 = vld [vmem:[#allocation25_spill] sm:$0xff] }
 0x2bf   : > { %v12526_v52 = vpop.f32.mrf.mxu1  ;;  %6587 = vmatprep.mubr.bf16.mxu0 %v8274_v16  ;;  %v6223_v16 = vrot.slane %v6221_v28, 7  ;;  %v8717_v28 = vadd.f32 %v14420_v59, %v14419_v62  ;;  %v12577_v43 = vadd.f32 %v8759_v29, %v8695_v41  ;;  %9337 = vmatprep.subr.bf16.mxu1 %v10535_v37  ;;  %v6235_v55 = vor.u32 %v6233_v0, %v6232_v17  ;;  %v14425_v0 = vld [vmem:[#allocation24_spill] sm:$0xff]  ;;  %v14428_v62 = vld [vmem:[#allocation31_spill] sm:$0xff] }
 0x2c0   : > { %v12579_v40 = vadd.f32 %v8762_v11, %v8698_v19  ;;  %v8260_v53 = vrot.slane %v6216_v56, 11  ;;  %9338 = vmatpush3.bf16.msra.mxu1 %v10535_v37  ;;  %v6252_v41 = vshrl.u32 %v12575_v50, 16  ;;  %v8781_v3 = vadd.f32 %v12502_v51, %v12487_v58  ;;  %v6156_v11 = vld [vmem:[#allocation2 + $0x13c] sm:$0x8]  ;;  %14438 = vst [vmem:[#allocation54_spill] sm:$0xff] %v12637_v9 }
 0x2c1   : > { %v12531_v49 = vpop.f32.mrf.mxu0  ;;  %v12542_v35 = vpop.f32.mrf.mxu1  ;;  %14421 = vst [vmem:[#allocation50_spill] sm:$0xff] %v12577_v43  ;;  %v6226_v25 = vor.u32 %v6224_v7, %v6223_v16  ;;  %v6228_v33 = vrot.slane %v6223_v16, 4  ;;  %v2306_v29 = vadd.f32 %v8717_v28, %v14423_v6  ;;  %v8276_v7 = vcombine.low %v12524_v24, %v6155_v46  ;;  %v14431_v6 = vld [vmem:[#allocation35_spill] sm:$0xff] }
 0x2c2   : > { %14422 = vst [vmem:[#allocation61_spill] sm:$0xff] %v12579_v40  ;;  %v1051_v16 = vsel %vm11153_vm5, 0, %v1050_v48  ;;  %v14426_v17 = vor.u32 %v14424_v23, %v14425_v0  ;;  %v6246_v24 = vshll.u32 %v12573_v31, 16  ;;  %v14429_v59 = vshrl.u32 %v14428_v62, 16  ;;  %v12614_v48 = vld [vmem:[#allocation2 + $0x158] sm:$0xf] }
 0x2c3   : > { %v12552_v20 = vpop.f32.mrf.mxu0  ;;  %v12557_v32 = vpop.f32.mrf.mxu1  ;;  %v12600_v19 = vadd.f32 %v8781_v3, %v2306_v29  ;;  %1052 = vst [vmem:[#allocation2 + $0x184] sm:$0x8] %v1051_v16  ;;  %v6227_v58 = vsel %vm11145_vm2, %v8260_v53, %v6226_v25  ;;  %v6236_v10 = vsel %vm11145_vm2, %v6228_v33, %v6235_v55  ;;  %v6254_v37 = vrot.slane %v6252_v41, 7  ;;  %v14435_v23 = vld [vmem:[#allocation28_spill] sm:$0xff]  ;;  %v14436_v0 = vld [vmem:[#allocation26_spill] sm:$0xff] }
 0x2c4   : > { %v12598_v56 = vrot.slane %v14426_v17, 4  ;;  %v12611_v28 = vrot.slane %v14429_v59, 4  ;;  %v14430_v25 = vshll.u32 %v14428_v62, 16  ;;  %v14432_v33 = vshrl.u32 %v14431_v6, 16  ;;  %v4807_v9 = vld [vmem:[#allocation2 + $0xe8] sm:$0x1] }
 0x2c5   : > { %v12569_v5 = vpop.f32.mrf.mxu0  ;;  %v12581_v4 = vpop.f32.mrf.mxu1  ;;  %v6238_v3 = vshrl.u32 %v6156_v11, 16  ;;  %v14437_v17 = vor.u32 %v14435_v23, %v14436_v0  ;;  %v8268_v62 = vcombine.low %v6227_v58, %v6236_v10  ;;  %v6265_v11 = vshrl.u32 %v12614_v48, 16 }
 0x2c6   : > { %6588 = vmatmul.mubr.bf16.vlgmr.msra.gmra.mxu0 %v8266_v21  ;;  %v10536_v21 = vld [vmem:[#allocation8 + $0xf8] sm:$0xff]   ;;  %v4829_v53 = vrot.slane %v14430_v25, 5  ;;  %v12620_v55 = vrot.slane %v14432_v33, 4  ;;  %v8277_v25 = vcombine.low %v12573_v31, %v12575_v50  ;;  %v12635_v33 = vld [vmem:[#allocation2 + $0xe0] sm:$0xf]  ;;  %v4819_v58 = vsel %vm11168_vm10, %v12598_v56, %v14436_v0 }
 0x2c7   : > { %6595 = vmatprep.mubr.bf16.mxu0 %v8275_v38  ;;  %v6243_v38 = vshrl.u32 %v12573_v31, 16  ;;  %v12584_v8 = vpop.f32.mrf.mxu0  ;;  %v12593_v47 = vpop.f32.mrf.mxu1  ;;  %8939 = vmatprep.subr.bf16.mxu1 %v10536_v21  ;;  %v4806_v21 = vld [vmem:[#allocation2 + $0xd0] sm:$0x1]  ;;  %v4822_v59 = vrot.slane %v14437_v17, 4  ;;  %v8261_v40 = vrot.slane %v6238_v3, 11 }
 0x2c8   : > { %v4824_v34 = vshll.u32 %v4806_v21, 16  ;;  %v4830_v42 = vor.u32 %v4829_v53, %v12611_v28 }
 0x2c9   : > { %v6245_v51 = vrot.slane %v6243_v38, 7  ;;  %v14433_v38 = vshll.u32 %v14431_v6, 16 }
 0x2ca   : > { %v4826_v21 = vrot.slane %v4824_v34, 5 }
 0x2cb   : > { %v12624_v29 = vrot.slane %v14433_v38, 5  ;;  %v6248_v6 = vor.u32 %v6246_v24, %v6245_v51  ;;  %v6250_v10 = vrot.slane %v6245_v51, 4  ;;  %v6159_v24 = vld [vmem:[#allocation2 + $0x154] sm:$0x8]  ;;  %v6267_v51 = vrot.slane %v6265_v11, 7 }
 0x2cc   : > { %v6260_v53 = vshrl.u32 %v6159_v24, 16  ;;  %v4827_v11 = vsel %vm11168_vm10, %v4822_v59, %v4826_v21  ;;  %v1083_v24 = vld [vmem:[#allocation2 + $0x100] sm:$0x1] }
 0x2cd   : > { %v6272_v21 = vrot.slane %v6267_v51, 4 }
 0x2ce   : > { %6596 = vmatmul.mubr.bf16.gmra.mxu0 %v8267_v39  ;;  %v6255_v39 = vshll.u32 %v12575_v50, 16 }
 0x2cf   : > { %6603 = vmatprep.mubr.bf16.mxu0 %v8276_v7  ;;  %v12626_v7 = vld [vmem:[#allocation2 + $0x15c] sm:$0xf] }
 0x2d0   : > { %v6257_v31 = vor.u32 %v6255_v39, %v6254_v37  ;;  %v6274_v50 = vshrl.u32 %v12626_v7, 16  ;;  %v6268_v37 = vshll.u32 %v12614_v48, 16  ;;  %v12660_v39 = vld [vmem:[#allocation2 + $0x170] sm:$0xf]  ;;  %v6277_v28 = vshll.u32 %v12626_v7, 16 }
 0x2d2   : > { %v6276_v0 = vrot.slane %v6274_v50, 7  ;;  %v6287_v50 = vshrl.u32 %v12660_v39, 16  ;;  %v6270_v13 = vor.u32 %v6268_v37, %v6267_v51  ;;  %v4831_v37 = vrot.slane %v4830_v42, 4 }
 0x2d3   : > { %v12607_v46 = vpop.f32.mrf.mxu0 }
 0x2d4   : > { %14427 = vst [vmem:[#allocation23_spill] sm:$0xff] %v12607_v46  ;;  %v14451_v46 = vld [vmem:[#allocation36_spill] sm:$0xff] }
 0x2d5   : > { %v12628_v16 = vpop.f32.mrf.mxu0 }
 0x2d6   : > { %v8791_v41 = vpop.f32.mrf.mxu1  ;;  %14434 = vst [vmem:[#allocation27_spill] sm:$0xff] %v12628_v16  ;;  %6604 = vmatmul.mubr.bf16.gmra.mxu0 %v8268_v62  ;;  %v6258_v62 = vsel %vm11145_vm2, %v6250_v10, %v6257_v31  ;;  %v12687_v31 = vcombine.low %v4819_v58, %v4827_v11  ;;  %v1084_v16 = vsel %vm11162_vm7, 0, %v1083_v24 }
 0x2d7   : > { %v12640_v36 = vpop.f32.mrf.mxu0  ;;  %6611 = vmatprep.mubr.bf16.mxu0 %v8277_v25  ;;  %1085 = vst [vmem:[#allocation2 + $0x100] sm:$0x1] %v1084_v16 }
 0x2d8   : > { %v8792_v38 = vpop.f32.mrf.mxu1  ;;  %14439 = vst [vmem:[#allocation25_spill] sm:$0xff] %v12640_v36 }
 0x2d9   : > { %v8793_v17 = vadd.f32 %v8792_v38, %v8791_v41  ;;  %v12651_v57 = vpop.f32.mrf.mxu0  ;;  %v12667_v38 = vld [vmem:[#allocation2 + $0x174] sm:$0xf] }
 0x2da   : > { %v12649_v43 = vpop.f32.mrf.mxu1  ;;  %14441 = vst [vmem:[#allocation24_spill] sm:$0xff] %v12651_v57  ;;  %v6299_v51 = vshll.u32 %v12667_v38, 16 }
 0x2db   : > { %v12657_v56 = vadd.f32 %v8793_v17, %v12442_v44  ;;  %v12664_v41 = vpop.f32.mrf.mxu0  ;;  %v6249_v44 = vsel %vm11145_vm2, %v8261_v40, %v6248_v6  ;;  %v14445_v17 = vld [vmem:[#allocation34_spill] sm:$0xff]  ;;  %v6296_v40 = vshrl.u32 %v12667_v38, 16 }
 0x2dc   : > { %v12662_v3 = vpop.f32.mrf.mxu1  ;;  %14443 = vst [vmem:[#allocation35_spill] sm:$0xff] %v12664_v41  ;;  %v14446_v26 = vshrl.u32 %v14445_v17, 16  ;;  %v8278_v41 = vcombine.low %v12614_v48, %v12626_v7  ;;  %14448 = vst [vmem:[#allocation34_spill] sm:$0xff] %v12687_v31  ;;  %v8269_v59 = vcombine.low %v6249_v44, %v6258_v62  ;;  %v14449_v36 = vshll.u32 %v14445_v17, 16 }
 0x2dd   : > { %14442 = vst [vmem:[#allocation31_spill] sm:$0xff] %v12657_v56  ;;  %v12673_v25 = vpop.f32.mrf.mxu0  ;;  %v4838_v7 = vshll.u32 %v4807_v9, 16  ;;  %v6289_v44 = vrot.slane %v6287_v50, 7  ;;  %v6290_v17 = vshll.u32 %v12660_v39, 16 }
 0x2de   : > { %14444 = vst [vmem:[#allocation28_spill] sm:$0xff] %v12673_v25  ;;  %v4834_v34 = vrot.slane %v14446_v26, 4  ;;  %v6279_v25 = vor.u32 %v6277_v28, %v6276_v0  ;;  %v8262_v26 = vrot.slane %v6260_v53, 11  ;;  %v4832_v48 = vrot.slane %v14449_v36, 5  ;;  %6612 = vmatmul.mubr.bf16.gmra.mxu0 %v8269_v59  ;;  %v6162_v0 = vld [vmem:[#allocation2 + $0x16c] sm:$0x8] }
 0x2df   : > { %v12683_v6 = vpop.f32.mrf.mxu1  ;;  %v12685_v10 = vpop.f32.mrf.mxu0  ;;  %6619 = vmatprep.mubr.bf16.mxu0 %v8278_v41  ;;  %v6298_v28 = vrot.slane %v6296_v40, 7  ;;  %v4840_v62 = vrot.slane %v4838_v7, 5  ;;  %v14453_v36 = vshll.u32 %v14451_v46, 16  ;;  %v6282_v16 = vshrl.u32 %v6162_v0, 16 }
 0x2e0   : > { %14447 = vst [vmem:[#allocation26_spill] sm:$0xff] %v12685_v10  ;;  %v14452_v10 = vshrl.u32 %v14451_v46, 16  ;;  %v4835_v42 = vor.u32 %v4834_v34, %v4832_v48  ;;  %v6280_v11 = vsel %vm11145_vm2, %v6272_v21, %v6279_v25  ;;  %v6271_v50 = vsel %vm11145_vm2, %v8262_v26, %v6270_v13  ;;  %v6167_v46 = vld [vmem:[#allocation2 + $0x18c] sm:$0xf] }
 0x2e1   : > { %v12689_v56 = vpop.f32.mrf.mxu1  ;;  %v12691_v57 = vpop.f32.mrf.mxu0  ;;  %v4846_v9 = vrot.slane %v14453_v36, 5  ;;  %v4833_v34 = vsel %vm11168_vm10, %v4831_v37, %v4832_v48  ;;  %v6294_v25 = vrot.slane %v6289_v44, 4  ;;  %v6301_v21 = vor.u32 %v6299_v51, %v6298_v28  ;;  %v12725_v37 = vld [vmem:[#allocation2 + $0xf8] sm:$0xf]  ;;  %v12727_v48 = vld [vmem:[#allocation2 + $0xfc] sm:$0xf] }
 0x2e2   : > { %v4848_v58 = vrot.slane %v14452_v10, 4  ;;  %v4836_v40 = vrot.slane %v4835_v42, 4  ;;  %v6166_v10 = vld [vmem:[#allocation2 + $0x188] sm:$0xf]  ;;  %v8279_v36 = vcombine.low %v12660_v39, %v12667_v38  ;;  %v8270_v26 = vcombine.low %v6271_v50, %v6280_v11  ;;  %14456 = vst [vmem:[#allocation69_spill] sm:$0xff] %v12725_v37  ;;  %14457 = vst [vmem:[#allocation70_spill] sm:$0xff] %v12727_v48 }
 0x2e3   : > { %v12700_v53 = vpop.f32.mrf.mxu1  ;;  %v6292_v0 = vor.u32 %v6290_v17, %v6289_v44  ;;  %v8263_v39 = vrot.slane %v6282_v16, 11  ;;  %v6309_v38 = vshrl.u32 %v6166_v10, 16  ;;  %v6318_v28 = vshrl.u32 %v6167_v46, 16  ;;  %v6165_v11 = vld [vmem:[#allocation2 + $0x184] sm:$0x8] }
 0x2e4   : > { %v12707_v24 = vpop.f32.mrf.mxu0  ;;  %v4849_v7 = vor.u32 %v4848_v58, %v4846_v9  ;;  %v4841_v13 = vsel %vm11168_vm10, %v4836_v40, %v4840_v62  ;;  %v14459_v58 = vor.u32 %v12624_v29, %v12620_v55  ;;  %v4808_v62 = vld [vmem:[#allocation2 + $0x100] sm:$0x1]  ;;  %v6302_v55 = vsel %vm11145_vm2, %v6294_v25, %v6301_v21 }
 0x2e5   : > { %14454 = vst [vmem:[#allocation21_spill] sm:$0xff] %v12707_v24  ;;  %v12711_v41 = vpop.f32.mrf.mxu1  ;;  %v12729_v42 = vcombine.low %v4833_v34, %v4841_v13  ;;  %v4852_v34 = vshll.u32 %v4808_v62, 16  ;;  %v6312_v16 = vshll.u32 %v6166_v10, 16  ;;  %v6321_v40 = vshll.u32 %v6167_v46, 16 }
 0x2e6   : > { %v12715_v59 = vpop.f32.mrf.mxu0  ;;  %v4845_v51 = vrot.slane %v14459_v58, 4  ;;  %6620 = vmatmul.mubr.bf16.gmra.mxu0 %v8270_v26  ;;  %v4850_v50 = vrot.slane %v4849_v7, 4  ;;  %v6293_v26 = vsel %vm11145_vm2, %v8263_v39, %v6292_v0  ;;  %v6311_v44 = vrot.slane %v6309_v38, 7 }
 0x2e7   : > { %14455 = vst [vmem:[#allocation36_spill] sm:$0xff] %v12715_v59  ;;  %v12719_v31 = vpop.f32.mrf.mxu1  ;;  %14458 = vst [vmem:[#allocation71_spill] sm:$0xff] %v12729_v42  ;;  %6627 = vmatprep.mubr.bf16.mxu0 %v8279_v36  ;;  %v4854_v58 = vrot.slane %v4852_v34, 5  ;;  %v6320_v42 = vrot.slane %v6318_v28, 7  ;;  %v6304_v48 = vshrl.u32 %v6165_v11, 16  ;;  %v8271_v37 = vcombine.low %v6293_v26, %v6302_v55  ;;  %v14464_v26 = vld [vmem:[#allocation32_spill] sm:$0xff] }
 0x2e8   : > { %v12723_v24 = vpop.f32.mrf.mxu0  ;;  %v4847_v13 = vsel %vm11168_vm10, %v4845_v51, %v4846_v9  ;;  %v8280_v9 = vcombine.low %v6166_v10, %v6167_v46  ;;  %v6314_v51 = vor.u32 %v6312_v16, %v6311_v44  ;;  %v6316_v34 = vrot.slane %v6311_v44, 4  ;;  %v14462_v16 = vld [vmem:[#allocation29_spill] sm:$0xff] }
 0x2e9   : > { %v12734_v59 = vpop.f32.mrf.mxu1  ;;  %v4855_v25 = vsel %vm11168_vm10, %v4850_v50, %v4854_v58  ;;  %v8264_v0 = vrot.slane %v6304_v48, 11 }
 0x2ea   : > { %v12738_v17 = vpop.f32.mrf.mxu0  ;;  %v12756_v62 = vcombine.low %v4847_v13, %v4855_v25  ;;  %v14465_v25 = vld [vmem:[#allocation33_spill] sm:$0xff] }
 0x2eb   : > { %14460 = vst [vmem:[#allocation72_spill] sm:$0xff] %v12738_v17  ;;  %v12742_v29 = vpop.f32.mrf.mxu1  ;;  %v6323_v17 = vor.u32 %v6321_v40, %v6320_v42  ;;  %v6315_v11 = vsel %vm11145_vm2, %v8264_v0, %v6314_v51  ;;  %v14463_v40 = vld [vmem:[#allocation30_spill] sm:$0xff] }
 0x2ec   : > { %v12750_v36 = vpop.f32.mrf.mxu0  ;;  %14461 = vst [vmem:[#allocation73_spill] sm:$0xff] %v12756_v62  ;;  %v8720_v58 = vadd.f32 %v14463_v40, %v14462_v16 }
 0x2ed   : > { %v12748_v7 = vpop.f32.mrf.mxu1  ;;  %v6324_v50 = vsel %vm11145_vm2, %v6316_v34, %v6323_v17  ;;  %v8784_v34 = vadd.f32 %v12526_v52, %v12511_v61 }
 0x2ee   : > { %6628 = vmatmul.mubr.bf16.gmra.mxu0 %v8271_v37  ;;  %v12758_v38 = vpop.f32.mrf.mxu0  ;;  %v8272_v42 = vcombine.low %v6315_v11, %v6324_v50  ;;  %v8787_v11 = vadd.f32 %v12557_v32, %v12542_v35  ;;  %v8790_v50 = vadd.f32 %v12593_v47, %v12581_v4  ;;  %v14472_v35 = vld [vmem:[#allocation38_spill] sm:$0xff]  ;;  %v14474_v4 = vld [vmem:[#allocation39_spill] sm:$0xff]  ;;  %v14475_v47 = vld [vmem:[#allocation41_spill] sm:$0xff] }
 0x2ef   : > { %6635 = vmatprep.mubr.bf16.mxu0 %v8280_v9  ;;  %v8656_v9 = vadd.f32 %v14465_v25, %v14464_v26  ;;  %v14473_v32 = vshrl.u32 %v14472_v35, 16 }
 0x2f0   : > { %v12754_v21 = vpop.f32.mrf.mxu1  ;;  %v12768_v10 = vpop.f32.mrf.mxu0 }
 0x2f1   : > { %v12807_v62 = vrot.slane %v14473_v32, 4  ;;  %v8799_v32 = vadd.f32 %v12689_v56, %v12683_v6  ;;  %v8802_v56 = vadd.f32 %v12711_v41, %v12700_v53  ;;  %v14478_v6 = vld [vmem:[#allocation27_spill] sm:$0xff] }
 0x2f2   : > { %v8810_v39 = vpop.f32.mrf.mxu1  ;;  %v12770_v37 = vpop.f32.mrf.mxu0 }
 0x2f4   : > { %v12760_v28 = vpop.f32.mrf.mxu1 }
 0x2f6   : > { %v12766_v13 = vpop.f32.mrf.mxu1  ;;  %6636 = vmatmul.mubr.bf16.gmra.mxu0 %v8272_v42  ;;  %v14467_v42 = vld [vmem:[#allocation55_spill] sm:$0xff] }
 0x2f8   : > { %v8815_v46 = vpop.f32.mrf.mxu1 }
 0x2fa   : > { %v8816_v48 = vpop.f32.mrf.mxu1 }
 0x2fb   : > { %v8817_v44 = vadd.f32 %v8816_v48, %v8815_v46  ;;  %v2309_v46 = vadd.f32 %v8720_v58, %v8656_v9  ;;  %v14468_v48 = vld [vmem:[#allocation58_spill] sm:$0xff]  ;;  %v8750_v58 = vadd.f32 %v14475_v47, %v14474_v4 }
 0x2fc   : > { %v12772_v55 = vpop.f32.mrf.mxu1  ;;  %v8686_v16 = vadd.f32 %v14468_v48, %v14467_v42  ;;  %v8796_v42 = vadd.f32 %v12662_v3, %v12649_v43  ;;  %v8851_v43 = vadd.f32 %v12482_v15, %v12470_v22  ;;  %v8854_v3 = vadd.f32 %v12518_v1, %v12504_v27  ;;  %v12861_v47 = vld [vmem:[%s14174_s5] ss:$0 sm:$0xff] }
 0x2fd   : > { %v12779_v17 = vadd.f32 %v8817_v44, %v12550_v45  ;;  %v14469_v44 = vld [vmem:[#allocation37_spill] sm:$0xff]  ;;  %v2891_v9 = vadd.f32 %v8784_v34, %v2309_v46  ;;  %v8848_v34 = vadd.f32 %v12450_v14, %v12428_v60  ;;  %v8805_v22 = vadd.f32 %v12734_v59, %v12719_v31 }
 0x2fe   : > { %v12781_v51 = vpop.f32.mrf.mxu1  ;;  %v12785_v0 = vpop.f32.mrf.mxu0  ;;  %v14470_v26 = vshrl.u32 %v14469_v44, 16  ;;  %v14471_v61 = vshll.u32 %v14469_v44, 16  ;;  %v8845_v44 = vadd.f32 %v12420_v54, %v12404_v12  ;;  %v2349_v23 = vadd.f32 %v8750_v58, %v8686_v16  ;;  %v14482_v58 = vld [vmem:[#allocation31_spill] sm:$0xff] }
 0x2ff   : > { %14466 = vst [vmem:[#allocation29_spill] sm:$0xff] %v12779_v17  ;;  %v8860_v54 = vadd.f32 %v12584_v8, %v12569_v5  ;;  %v2895_v14 = vadd.f32 %v8796_v42, %v12460_v30  ;;  %v3414_v1 = vadd.f32 %v8848_v34, %v2891_v9  ;;  %v14479_v8 = vld [vmem:[#allocation67_spill] sm:$0xff]  ;;  %v8808_v31 = vadd.f32 %v12748_v7, %v12742_v29  ;;  %v14484_v42 = vld [vmem:[#allocation28_spill] sm:$0xff]  ;;  %v1086_v29 = vld [vmem:[#allocation2 + $0x118] sm:$0x1] }
 0x300   : > { %v12793_v40 = vpop.f32.mrf.mxu0  ;;  %v12799_v25 = vrot.slane %v14470_v26, 4  ;;  %v12803_v52 = vrot.slane %v14471_v61, 5  ;;  %v2892_v26 = vadd.f32 %v8787_v11, %v12386_v63  ;;  %v14476_v61 = vld [vmem:[#allocation62_spill] sm:$0xff]  ;;  %v8857_v63 = vadd.f32 %v12552_v20, %v12531_v49  ;;  %v14477_v20 = vld [vmem:[#allocation23_spill] sm:$0xff] }
 0x301   : > { %v12795_v45 = vpop.f32.mrf.mxu1  ;;  %v2893_v17 = vadd.f32 %v8790_v50, %v14476_v61  ;;  %v3413_v60 = vadd.f32 %v8845_v44, %v12600_v19  ;;  %v8863_v5 = vadd.f32 %v14478_v6, %v14477_v20  ;;  %v2896_v11 = vadd.f32 %v8799_v32, %v14479_v8  ;;  %v14480_v19 = vld [vmem:[#allocation25_spill] sm:$0xff]  ;;  %v14481_v50 = vld [vmem:[#allocation24_spill] sm:$0xff]  ;;  %v14487_v6 = vld [vmem:[#allocation26_spill] sm:$0xff] }
 0x302   : > { %v12813_v48 = vpop.f32.mrf.mxu0  ;;  %v3415_v53 = vadd.f32 %v8851_v43, %v2892_v26  ;;  %v8866_v30 = vadd.f32 %v14481_v50, %v14480_v19  ;;  %v8811_v59 = vadd.f32 %v8810_v39, %v12754_v21  ;;  %v12864_v9 = vadd.f32 %v8857_v63, %v14482_v58  ;;  %v14485_v26 = vld [vmem:[#allocation68_spill] sm:$0xff]  ;;  %v14486_v21 = vld [vmem:[#allocation45_spill] sm:$0xff] }
 0x303   : > { %v12815_v2 = vpop.f32.mrf.mxu1  ;;  %v3416_v41 = vadd.f32 %v8854_v3, %v2893_v17  ;;  %v14483_v17 = vld [vmem:[#allocation35_spill] sm:$0xff]  ;;  %v2897_v61 = vadd.f32 %v8802_v56, %v14485_v26  ;;  %v4858_v7 = vor.u32 %v12803_v52, %v12799_v25  ;;  %v2898_v39 = vadd.f32 %v8805_v22, %v14486_v21  ;;  %v14488_v52 = vld [vmem:[#allocation21_spill] sm:$0xff]  ;;  %v14489_v22 = vld [vmem:[#allocation36_spill] sm:$0xff] }
 0x304   : > { %v12829_v46 = vpop.f32.mrf.mxu0  ;;  %v8869_v44 = vadd.f32 %v14484_v42, %v14483_v17  ;;  %v8814_v34 = vadd.f32 %v12766_v13, %v12760_v28  ;;  %v12876_v63 = vadd.f32 %v8860_v54, %v2895_v14  ;;  %v1087_v20 = vsel %vm11162_vm7, 0, %v1086_v29  ;;  %v14490_v13 = vld [vmem:[#allocation46_spill] sm:$0xff]  ;;  %v14491_v50 = vld [vmem:[#allocation49_spill] sm:$0xff]  ;;  %v14493_v42 = vld [vmem:[#allocation72_spill] sm:$0xff] }
 0x305   : > { %v12831_v12 = vpop.f32.mrf.mxu1  ;;  %v8872_v56 = vadd.f32 %v12691_v57, %v14487_v6  ;;  %v12883_v25 = vadd.f32 %v8863_v5, %v2896_v11  ;;  %1088 = vst [vmem:[#allocation2 + $0x118] sm:$0x1] %v1087_v20  ;;  %v8875_v28 = vadd.f32 %v14489_v22, %v14488_v52  ;;  %v2899_v19 = vadd.f32 %v8808_v31, %v14490_v13 }
 0x306   : > { %v12843_v15 = vpop.f32.mrf.mxu0  ;;  %v2900_v54 = vadd.f32 %v8811_v59, %v14491_v50  ;;  %v14492_v58 = vshll.u32 %v14472_v35, 16  ;;  %v12896_v11 = vadd.f32 %v8866_v30, %v2897_v61  ;;  %v8878_v26 = vadd.f32 %v14493_v42, %v12723_v24 }
 0x307   : > { %v12845_v27 = vpop.f32.mrf.mxu1  ;;  %v12902_v31 = vadd.f32 %v12758_v38, %v12750_v36  ;;  %v2901_v59 = vadd.f32 %v8814_v34, %v2349_v23  ;;  %v12906_v35 = vadd.f32 %v8869_v44, %v2898_v39  ;;  %v12911_v30 = vadd.f32 %v12770_v37, %v12768_v10 }
 0x308   : > { %v12856_v16 = vpop.f32.mrf.mxu0  ;;  %v12893_v17 = vrot.slane %v14492_v58, 5  ;;  %v12915_v61 = vadd.f32 %v8875_v28, %v2900_v54  ;;  %v12917_v36 = vadd.f32 %v8872_v56, %v2899_v19  ;;  %v12926_v10 = vadd.f32 %v12793_v40, %v12785_v0  ;;  %v14494_v0 = vld [vmem:[#allocation42_spill] sm:$0xff]  ;;  %v14495_v40 = vld [vmem:[#allocation40_spill] sm:$0xff] }
 0x309   : > { %v9309_v4 = vpop.f32.mrf.mxu1  ;;  %v12930_v37 = vadd.f32 %v12781_v51, %v12772_v55  ;;  %v12934_v56 = vadd.f32 %v8878_v26, %v2901_v59  ;;  %v14496_v55 = vor.u32 %v14494_v0, %v14495_v40  ;;  %v4859_v50 = vrot.slane %v4858_v7, 4 }
 0x30a   : > { %v3840_v32 = vadd.f32 %v9309_v4, %v3415_v53  ;;  %v12874_v43 = vpop.f32.mrf.mxu0  ;;  %v4863_v23 = vor.u32 %v12807_v62, %v12893_v17 }
 0x30b   : > { %v3775_v3 = vpop.f32.mrf.mxu1  ;;  %v12946_v51 = vrot.slane %v14496_v55, 4 }
 0x30c   : > { %v3863_v8 = vadd.f32 %v12861_v47, %v3840_v32  ;;  %v3838_v53 = vadd.f32 %v3775_v3, %v3413_v60  ;;  %v12889_v14 = vpop.f32.mrf.mxu0  ;;  %v4809_v62 = vld [vmem:[#allocation2 + $0x118] sm:$0x1]  ;;  %v4864_v58 = vrot.slane %v4863_v23, 4 }
 0x30d   : > { %v9310_v4 = vpop.f32.mrf.mxu1  ;;  %v4866_v54 = vshll.u32 %v4809_v62, 16 }
 0x30e   : > { %v3879_v57 = vmax.f32 %v3863_v8, 0.0  ;;  %v3861_v60 = vadd.f32 %v12861_v47, %v3838_v53  ;;  %v3841_v5 = vadd.f32 %v9310_v4, %v3416_v41  ;;  %v12904_v32 = vpop.f32.mrf.mxu0  ;;  %v8823_v53 = vadd.f32 %v12815_v2, %v12795_v45 }
 0x30f   : > { %v3778_v29 = vpop.f32.mrf.mxu1  ;;  %v12952_v4 = vadd.f32 %v12829_v46, %v12813_v48  ;;  %v4868_v26 = vrot.slane %v4866_v54, 5 }
 0x310   : > { %v3895_v21 = vmin.f32 %v3879_v57, 1.0  ;;  %v3877_v3 = vmax.f32 %v3861_v60, 0.0  ;;  %v3864_v20 = vadd.f32 %v12861_v47, %v3841_v5  ;;  %v3839_v41 = vadd.f32 %v3778_v29, %v3414_v1  ;;  %v12913_v24 = vpop.f32.mrf.mxu0  ;;  %v1089_v1 = vld [vmem:[#allocation2 + $0x130] sm:$0x1] }
 0x311   : > { %v1090_v8 = vsel %vm11162_vm7, 0, %v1089_v1  ;;  %v4869_v62 = vsel %vm11168_vm10, %v4864_v58, %v4868_v26 }
 0x312   : > { %v12921_v38 = vmul.f32 15.0, %v3895_v21  ;;  %v3893_v44 = vmin.f32 %v3877_v3, 1.0  ;;  %v3880_v39 = vmax.f32 %v3864_v20, 0.0  ;;  %v3862_v34 = vadd.f32 %v12861_v47, %v3839_v41  ;;  %v12932_v6 = vpop.f32.mrf.mxu0  ;;  %1091 = vst [vmem:[#allocation2 + $0x130] sm:$0x1] %v1090_v8  ;;  %v14497_v21 = vld [vmem:[#allocation43_spill] sm:$0xff] }
 0x313   : > { %v4875_v48 = vsel %vm11168_vm10, %v12946_v51, %v14497_v21  ;;  %v14499_v8 = vld [vmem:[#allocation50_spill] sm:$0xff]  ;;  %v10537_v51 = vld [vmem:[#allocation8 + $0xb8] sm:$0xff]  }
 0x314   : > { %v9757_v52 = vcvt.f32.s32 %v12921_v38  ;;  %v12941_v22 = vmul.f32 15.0, %v3893_v44  ;;  %v3896_v28 = vmin.f32 %v3880_v39, 1.0  ;;  %v12948_v13 = vpop.f32.mrf.mxu0  ;;  %v3878_v19 = vmax.f32 %v3862_v34, 0.0 }
 0x315   : > { %v9755_v57 = vand.u32 2147483647, %v12921_v38  ;;  %v9760_v29 = vand.u32 2147483648, %v12921_v38  ;;  %v4861_v44 = vsel %vm11168_vm10, %v4859_v50, %v12893_v17 }
 0x316   : > { %v9758_v2 = vcvt.s32.f32 %v9757_v52  ;;  %v9741_v45 = vcvt.f32.s32 %v12941_v22  ;;  %v3912_v60 = vmul.f32 15.0, %v3896_v28  ;;  %v3894_v5 = vmin.f32 %v3878_v19, 1.0  ;;  %v12956_v42 = vpop.f32.mrf.mxu0 }
 0x317   : > { %v9739_v23 = vand.u32 2147483647, %v12941_v22  ;;  %v12974_v52 = vadd.f32 %v8823_v53, %v14499_v8  ;;  %vm12976_vm5 = vcmp.lt.f32.partialorder %v9755_v57, 8388608.0  ;;  %v9744_v19 = vand.u32 2147483648, %v12941_v22 }
 0x318   : > { %v9759_v59 = vand.u32 2147483647, %v9758_v2  ;;  %v9742_v7 = vcvt.s32.f32 %v9741_v45  ;;  %v9765_v46 = vcvt.f32.s32 %v3912_v60  ;;  %v12963_v20 = vmul.f32 15.0, %v3894_v5  ;;  %v12965_v41 = vpop.f32.mrf.mxu0 }
 0x319   : > { %v9763_v34 = vand.u32 2147483647, %v3912_v60  ;;  %v12988_v53 = vcombine.low %v4861_v44, %v4869_v62  ;;  %v9768_v45 = vand.u32 2147483648, %v3912_v60  ;;  %vm12993_vm4 = vcmp.lt.f32.partialorder %v9739_v23, 8388608.0  ;;  %v4810_v26 = vld [vmem:[#allocation2 + $0x130] sm:$0x1] }
 0x31a   : > { %v9761_v39 = vor.u32 %v9760_v29, %v9759_v59  ;;  %v9743_v1 = vand.u32 2147483647, %v9742_v7  ;;  %v9766_v40 = vcvt.s32.f32 %v9765_v46  ;;  %v9749_v55 = vcvt.f32.s32 %v12963_v20  ;;  %v12981_v28 = vpop.f32.mrf.mxu0 }
 0x31b   : > { %14502 = vst [vmem:[#allocation30_spill] sm:$0xff] %v12981_v28  ;;  %v9313_v50 = vpop.f32.mrf.mxu1  ;;  %v9747_v54 = vand.u32 2147483647, %v12963_v20  ;;  %vm12997_vm6 = vcmp.lt.f32.partialorder %v9763_v34, 8388608.0  ;;  %v9752_v46 = vand.u32 2147483648, %v12963_v20 }
 0x31c   : > { %v9762_v17 = vsel %vm12976_vm5, %v9761_v39, %v12921_v38  ;;  %v9767_v2 = vand.u32 2147483647, %v9766_v40  ;;  %v3844_v58 = vadd.f32 %v9313_v50, %v12883_v25  ;;  %v12991_v57 = vpop.f32.mrf.mxu0  ;;  %v9745_v29 = vor.u32 %v9744_v19, %v9743_v1  ;;  %v14511_v40 = vld [vmem:[#allocation44_spill] sm:$0xff] }
 0x31d   : > { %14503 = vst [vmem:[#allocation32_spill] sm:$0xff] %v12991_v57  ;;  %v3791_v59 = vpop.f32.mrf.mxu1  ;;  %v9750_v7 = vcvt.s32.f32 %v9749_v55  ;;  %v13002_v44 = vmul.f32 0.06666667, %v9762_v17  ;;  %vm13008_vm8 = vcmp.lt.f32.partialorder %v9747_v54, 8388608.0  ;;  %v14512_v1 = vor.u32 %v14511_v40, %v14497_v21 }
 0x31e   : > { %v9769_v39 = vor.u32 %v9768_v45, %v9767_v2  ;;  %v3867_v25 = vadd.f32 %v12861_v47, %v3844_v58  ;;  %v3842_v23 = vadd.f32 %v3791_v59, %v12864_v9  ;;  %v13006_v62 = vpop.f32.mrf.mxu0  ;;  %v4880_v19 = vshll.u32 %v4810_v26, 16 }
 0x31f   : > { %14508 = vst [vmem:[#allocation33_spill] sm:$0xff] %v13006_v62  ;;  %v9314_v8 = vpop.f32.mrf.mxu1  ;;  %v9751_v0 = vand.u32 2147483647, %v9750_v7  ;;  %v4878_v55 = vrot.slane %v14512_v1, 4  ;;  %v9746_v59 = vsel %vm12993_vm4, %v9745_v29, %v12941_v22 }
 0x320   : > { %v9770_v17 = vsel %vm12997_vm6, %v9769_v39, %v3912_v60  ;;  %v3883_v50 = vmax.f32 %v3867_v25, 0.0  ;;  %v3865_v2 = vadd.f32 %v12861_v47, %v3842_v23  ;;  %v3845_v9 = vadd.f32 %v9314_v8, %v12896_v11  ;;  %v13019_v45 = vpop.f32.mrf.mxu0 }
 0x321   : > { %14513 = vst [vmem:[#allocation55_spill] sm:$0xff] %v13019_v45  ;;  %v3944_v54 = vmul.f32 0.06666667, %v9770_v17  ;;  %v3794_v58 = vpop.f32.mrf.mxu1  ;;  %v9753_v7 = vor.u32 %v9752_v46, %v9751_v0  ;;  %v4882_v40 = vrot.slane %v4880_v19, 5  ;;  %v13030_v11 = vadd.f32 %v12845_v27, %v12831_v12  ;;  %v10567_v45 = vld [vmem:[#allocation8 + $0x140] sm:$0xff]  }
 0x322   : > { %v3899_v1 = vmin.f32 %v3883_v50, 1.0  ;;  %v3881_v26 = vmax.f32 %v3865_v2, 0.0  ;;  %v3868_v38 = vadd.f32 %v12861_v47, %v3845_v9  ;;  %v3843_v60 = vadd.f32 %v3794_v58, %v12876_v63  ;;  %v13026_v39 = vpop.f32.mrf.mxu0 }
 0x323   : > { %14514 = vst [vmem:[#allocation58_spill] sm:$0xff] %v13026_v39  ;;  %v9754_v25 = vsel %vm13008_vm8, %v9753_v7, %v12963_v20  ;;  %v3958_v22 = vpack.c.bf16 %v3944_v54, %v13002_v44  ;;  %v4883_v5 = vsel %vm11168_vm10, %v4878_v55, %v4882_v40  ;;  %v3941_v27 = vmul.f32 0.06666667, %v9746_v59 }
 0x324   : > { %v13038_v29 = vmul.f32 15.0, %v3899_v1  ;;  %v3897_v46 = vmin.f32 %v3881_v26, 1.0  ;;  %v3884_v23 = vmax.f32 %v3868_v38, 0.0  ;;  %v3866_v63 = vadd.f32 %v12861_v47, %v3843_v60  ;;  %v13041_v0 = vpop.f32.mrf.mxu0  ;;  %v10538_v26 = vld [vmem:[#allocation8 + $0xf0] sm:$0xff]  }
 0x325   : > { %v9317_v8 = vpop.f32.mrf.mxu1  ;;  %14515 = vst [vmem:[#allocation37_spill] sm:$0xff] %v13041_v0  ;;  %v3942_v19 = vmul.f32 0.06666667, %v9754_v25  ;;  %v13049_v20 = vcombine.low %v4875_v48, %v4883_v5  ;;  %v13056_v2 = vadd.f32 %v12926_v10, %v12974_v52 }
 0x326   : > { %v3848_v12 = vadd.f32 %v9317_v8, %v12915_v61  ;;  %v9789_v44 = vcvt.f32.s32 %v13038_v29  ;;  %v13052_v34 = vmul.f32 15.0, %v3897_v46  ;;  %v3900_v55 = vmin.f32 %v3884_v23, 1.0  ;;  %v9019_v50 = vpop.f32.mrf.mxu0 }
 0x327   : > { %v3807_v17 = vpop.f32.mrf.mxu1  ;;  %v3882_v61 = vmax.f32 %v3866_v63, 0.0  ;;  %v3957_v58 = vpack.c.bf16 %v3942_v19, %v3941_v27 }
 0x328   : > { %v3871_v9 = vadd.f32 %v12861_v47, %v3848_v12  ;;  %v3846_v54 = vadd.f32 %v3807_v17, %v12906_v35  ;;  %v13060_v21 = vcvt.s32.f32 %v9789_v44  ;;  %v9773_v59 = vcvt.f32.s32 %v13052_v34  ;;  %v9020_v1 = vpop.f32.mrf.mxu0  ;;  %v10539_v44 = vld [vmem:[#allocation8 + $0xb0] sm:$0xff]  }
 0x329   : > { %v13064_v7 = vmul.f32 15.0, %v3900_v55  ;;  %v9318_v40 = vpop.f32.mrf.mxu1  ;;  %v3898_v10 = vmin.f32 %v3882_v61, 1.0  ;;  %9339 = vmatprep.mubr.bf16.mxu1 %v3957_v58  ;;  %v9776_v25 = vand.u32 2147483648, %v13052_v34  ;;  %v13070_v23 = vadd.f32 %v9020_v1, %v9019_v50  ;;  %v10540_v50 = vld [vmem:[#allocation8 + $0xe8] sm:$0xff]  }
 0x32a   : > { %v3887_v52 = vmax.f32 %v3871_v9, 0.0  ;;  %v3869_v38 = vadd.f32 %v12861_v47, %v3846_v54  ;;  %v3849_v60 = vadd.f32 %v9318_v40, %v12934_v56  ;;  %v9774_v35 = vcvt.s32.f32 %v9773_v59  ;;  %v9022_v63 = vpop.f32.mrf.mxu0  ;;  %9340 = vmatmul.mubr.bf16.vlgmr.msra.gmra.mxu1 %v3958_v22 }
 0x32b   : > { %v9797_v5 = vcvt.f32.s32 %v13064_v7  ;;  %v3810_v46 = vpop.f32.mrf.mxu1  ;;  %14516 = vst [vmem:[#allocation38_spill] sm:$0xff] %v13070_v23  ;;  %v3914_v8 = vmul.f32 15.0, %v3898_v10  ;;  %8940 = vmatpush3.bf16.msra.mxu1 %v10537_v51  ;;  %v9800_v56 = vand.u32 2147483648, %v13064_v7  ;;  %v9771_v61 = vand.u32 2147483647, %v13052_v34 }
 0x32c   : > { %v3903_v12 = vmin.f32 %v3887_v52, 1.0  ;;  %v3885_v27 = vmax.f32 %v3869_v38, 0.0  ;;  %v3872_v19 = vadd.f32 %v12861_v47, %v3849_v60  ;;  %v3847_v55 = vadd.f32 %v3810_v46, %v12917_v36  ;;  %v9023_v17 = vpop.f32.mrf.mxu0  ;;  %8941 = vmatprep.subr.bf16.mxu1 %v10538_v26  ;;  %v10541_v60 = vld [vmem:[#allocation8 + $0xa8] sm:$0xff]  }
 0x32d   : > { %v9775_v9 = vand.u32 2147483647, %v9774_v35  ;;  %v9781_v54 = vcvt.f32.s32 %v3914_v8  ;;  %v9798_v40 = vcvt.s32.f32 %v9797_v5  ;;  %v13079_v51 = vadd.f32 %v9023_v17, %v9022_v63  ;;  %v10546_v17 = vld [vmem:[#allocation8 + $0xd0] sm:$0xff]  }
 0x32e   : > { %v13076_v58 = vmul.f32 15.0, %v3903_v12  ;;  %v3901_v22 = vmin.f32 %v3885_v27, 1.0  ;;  %v3888_v59 = vmax.f32 %v3872_v19, 0.0  ;;  %v3870_v1 = vadd.f32 %v12861_v47, %v3847_v55 }
 0x32f   : > { %14517 = vst [vmem:[#allocation39_spill] sm:$0xff] %v13079_v51  ;;  %v9777_v10 = vor.u32 %v9776_v25, %v9775_v9  ;;  %8942 = vmatpush3.bf16.msra.mxu1 %v10539_v44  ;;  %vm13084_vm9 = vcmp.lt.f32.partialorder %v9771_v61, 8388608.0  ;;  %v9779_v46 = vand.u32 2147483647, %v3914_v8  ;;  %v9782_v63 = vcvt.s32.f32 %v9781_v54  ;;  %v10542_v25 = vld [vmem:[#allocation8 + $0xe0] sm:$0xff]   ;;  %v10566_v51 = vld [vmem:[#allocation8 + $0x108] sm:$0xff]  }
 0x330   : > { %v9821_v52 = vcvt.f32.s32 %v13076_v58  ;;  %v13082_v36 = vmul.f32 15.0, %v3901_v22  ;;  %v3904_v26 = vmin.f32 %v3888_v59, 1.0  ;;  %v3886_v35 = vmax.f32 %v3870_v1, 0.0  ;;  %8943 = vmatprep.subr.bf16.mxu1 %v10540_v50  ;;  %v10543_v59 = vld [vmem:[#allocation8 + $0xa0] sm:$0xff]  }
 0x331   : > { %v9778_v5 = vsel %vm13084_vm9, %v9777_v10, %v13052_v34  ;;  %vm13096_vm11 = vcmp.lt.f32.partialorder %v9779_v46, 8388608.0  ;;  %v9783_v61 = vand.u32 2147483647, %v9782_v63  ;;  %v9784_v9 = vand.u32 2147483648, %v3914_v8 }
 0x332   : > { %v9805_v27 = vcvt.f32.s32 %v13082_v36  ;;  %v9808_v19 = vand.u32 2147483648, %v13082_v36  ;;  %v13094_v44 = vmul.f32 15.0, %v3904_v26  ;;  %v3902_v55 = vmin.f32 %v3886_v35, 1.0  ;;  %v10544_v35 = vld [vmem:[#allocation8 + $0xd8] sm:$0xff]  }
 0x333   : > { %v3945_v22 = vmul.f32 0.06666667, %v9778_v5  ;;  %8944 = vmatpush3.bf16.msra.mxu1 %v10541_v60  ;;  %v9785_v10 = vor.u32 %v9784_v9, %v9783_v61  ;;  %v9787_v26 = vand.u32 2147483647, %v13038_v29  ;;  %v9791_v38 = vand.u32 2147483647, %v13060_v21 }
 0x334   : > { %v9806_v34 = vcvt.s32.f32 %v9805_v27  ;;  %v9829_v54 = vcvt.f32.s32 %v13094_v44  ;;  %v9832_v50 = vand.u32 2147483648, %v13094_v44  ;;  %v3918_v1 = vmul.f32 15.0, %v3902_v55  ;;  %8945 = vmatprep.subr.bf16.mxu1 %v10542_v25  ;;  %v10545_v25 = vld [vmem:[#allocation8 + $0x98] sm:$0xff]  }
 0x335   : > { %v9822_v46 = vcvt.s32.f32 %v9821_v52  ;;  %v9795_v63 = vand.u32 2147483647, %v13064_v7  ;;  %v9799_v49 = vand.u32 2147483647, %v9798_v40  ;;  %v9803_v27 = vand.u32 2147483647, %v13082_v36 }
 0x336   : > { %v9830_v12 = vcvt.s32.f32 %v9829_v54  ;;  %v9813_v48 = vcvt.f32.s32 %v3918_v1  ;;  %v9786_v60 = vsel %vm13096_vm11, %v9785_v10, %v3914_v8  ;;  %v14522_v5 = vand.u32 2147483648, %v13038_v29 }
 0x337   : > { %v3946_v61 = vmul.f32 0.06666667, %v9786_v60  ;;  %vm9788_vm12 = vcmp.lt.f32.partialorder %v9787_v26, 8388608.0  ;;  %vm9796_vm13 = vcmp.lt.f32.partialorder %v9795_v63, 8388608.0  ;;  %v9801_v21 = vor.u32 %v9800_v56, %v9799_v49  ;;  %8946 = vmatpush3.bf16.msra.mxu1 %v10543_v59  ;;  %v10547_v59 = vld [vmem:[#allocation8 + $0x90] sm:$0xff]  }
 0x338   : > { %v9793_v55 = vor.u32 %v14522_v5, %v9791_v38  ;;  %vm13111_vm14 = vcmp.lt.f32.partialorder %v9803_v27, 8388608.0  ;;  %v9807_v9 = vand.u32 2147483647, %v9806_v34  ;;  %v9814_v54 = vcvt.s32.f32 %v9813_v48  ;;  %8947 = vmatprep.subr.bf16.mxu1 %v10544_v35  ;;  %v14525_v5 = vld [vmem:[#allocation61_spill] sm:$0xff] }
 0x339   : > { %v3959_v8 = vpack.c.bf16 %v3946_v61, %v3945_v22  ;;  %v9802_v10 = vsel %vm9796_vm13, %v9801_v21, %v13064_v7  ;;  %v9811_v60 = vand.u32 2147483647, %v3918_v1  ;;  %v9816_v56 = vand.u32 2147483648, %v3918_v1  ;;  %v14526_v61 = vld [vmem:[#allocation47_spill] sm:$0xff] }
 0x33a   : > { %v9794_v52 = vsel %vm9788_vm12, %v9793_v55, %v13038_v29  ;;  %v3948_v26 = vmul.f32 0.06666667, %v9802_v10  ;;  %v9809_v63 = vor.u32 %v9808_v19, %v9807_v9  ;;  %v9815_v49 = vand.u32 2147483647, %v9814_v54  ;;  %v10548_v55 = vld [vmem:[#allocation8 + $0xc8] sm:$0xff]  }
 0x33b   : > { %v3947_v38 = vmul.f32 0.06666667, %v9794_v52  ;;  %v2905_v29 = vadd.f32 %v13030_v11, %v14525_v5  ;;  %9343 = vmatprep.mubr.bf16.mxu1 %v3959_v8  ;;  %v9819_v27 = vand.u32 2147483647, %v13076_v58  ;;  %v9823_v34 = vand.u32 2147483647, %v9822_v46  ;;  %8948 = vmatpush3.bf16.msra.mxu1 %v10545_v25 }
 0x33c   : > { %v9827_v48 = vand.u32 2147483647, %v13094_v44  ;;  %v9810_v7 = vsel %vm13111_vm14, %v9809_v63, %v13082_v36  ;;  %v9817_v35 = vor.u32 %v9816_v56, %v9815_v49  ;;  %v9831_v19 = vand.u32 2147483647, %v9830_v12  ;;  %8949 = vmatprep.subr.bf16.mxu1 %v10546_v17  ;;  %v9321_v11 = vpop.f32.mrf.mxu1  ;;  %v14527_v52 = vld [vmem:[#allocation29_spill] sm:$0xff]  ;;  %v10551_v63 = vld [vmem:[#allocation8 + $0xc0] sm:$0xff]  }
 0x33d   : > { %v3960_v22 = vpack.c.bf16 %v3948_v26, %v3947_v38  ;;  %v2903_v21 = vadd.f32 %v12930_v37, %v14526_v61  ;;  %v3425_v9 = vadd.f32 %v12902_v31, %v14527_v52  ;;  %vm9812_vm15 = vcmp.lt.f32.partialorder %v9811_v60, 8388608.0  ;;  %v1092_v17 = vld [vmem:[#allocation2 + $0x148] sm:$0x1]  ;;  %v10549_v38 = vld [vmem:[#allocation8 + $0x88] sm:$0xff]  }
 0x33e   : > { %v14528_v46 = vand.u32 2147483648, %v13076_v58  ;;  %v3852_v54 = vadd.f32 %v9321_v11, %v13056_v2  ;;  %v9818_v40 = vsel %vm9812_vm15, %v9817_v35, %v3918_v1  ;;  %vm13130_vm0 = vcmp.lt.f32.partialorder %v9819_v27, 8388608.0  ;;  %v3823_v8 = vpop.f32.mrf.mxu1  ;;  %v10552_v35 = vld [vmem:[#allocation8 + $0x80] sm:$0xff]  }
 0x33f   : > { %9344 = vmatmul.mubr.bf16.gmra.mxu1 %v3960_v22  ;;  %v9833_v12 = vor.u32 %v9832_v50, %v9831_v19  ;;  %v3949_v37 = vmul.f32 0.06666667, %v9810_v7  ;;  %v3950_v10 = vmul.f32 0.06666667, %v9818_v40  ;;  %vm9828_vm1 = vcmp.lt.f32.partialorder %v9827_v48, 8388608.0  ;;  %v14531_v19 = vld [vmem:[#allocation51_spill] sm:$0xff] }
 0x340   : > { %v9825_v25 = vor.u32 %v14528_v46, %v9823_v34  ;;  %8950 = vmatpush3.bf16.msra.mxu1 %v10547_v59  ;;  %v3875_v2 = vadd.f32 %v12861_v47, %v3852_v54  ;;  %v3850_v60 = vadd.f32 %v3823_v8, %v3425_v9  ;;  %v3428_v1 = vadd.f32 %v12952_v4, %v2905_v29  ;;  %v4927_v50 = vld [vmem:[#allocation2 + $0xdc] sm:$0x8]  ;;  %v9322_v49 = vpop.f32.mrf.mxu1  ;;  %v10553_v46 = vld [vmem:[#allocation8 + $0x178] sm:$0xff]   ;;  %v14536_v8 = vld [vmem:[#allocation52_spill] sm:$0xff] }
 0x341   : > { %v9834_v26 = vsel %vm9828_vm1, %v9833_v12, %v13094_v44  ;;  %8951 = vmatprep.subr.bf16.mxu1 %v10548_v55  ;;  %v3426_v56 = vadd.f32 %v12911_v30, %v2903_v21  ;;  %v3961_v5 = vpack.c.bf16 %v3950_v10, %v3949_v37  ;;  %v1093_v22 = vsel %vm11162_vm7, 0, %v1092_v17  ;;  %v14532_v30 = vld [vmem:[#allocation48_spill] sm:$0xff]  ;;  %v14535_v12 = vld [vmem:[#allocation54_spill] sm:$0xff] }
 0x342   : > { %v9826_v31 = vsel %vm13130_vm0, %v9825_v25, %v13076_v58  ;;  %v3952_v34 = vmul.f32 0.06666667, %v9834_v26  ;;  %v3891_v58 = vmax.f32 %v3875_v2, 0.0  ;;  %v3873_v59 = vadd.f32 %v12861_v47, %v3850_v60  ;;  %v3826_v7 = vpop.f32.mrf.mxu1  ;;  %v9025_v4 = vpop.f32.mrf.mxu0  ;;  %1094 = vst [vmem:[#allocation2 + $0x148] sm:$0x1] %v1093_v22 }
 0x343   : > { %v3951_v27 = vmul.f32 0.06666667, %v9826_v31  ;;  %v3853_v48 = vadd.f32 %v9322_v49, %v3428_v1  ;;  %9347 = vmatprep.mubr.bf16.mxu1 %v3961_v5  ;;  %v4952_v29 = vshrl.u32 %v4927_v50, 16  ;;  %v14533_v55 = vor.u32 %v14531_v19, %v14532_v30 }
 0x344   : > { %8952 = vmatpush3.bf16.msra.mxu1 %v10549_v38  ;;  %v3907_v21 = vmin.f32 %v3891_v58, 1.0  ;;  %v3889_v11 = vmax.f32 %v3873_v59, 0.0  ;;  %v3851_v9 = vadd.f32 %v3826_v7, %v3426_v56  ;;  %v9026_v25 = vpop.f32.mrf.mxu0  ;;  %v14534_v54 = vshrl.u32 %v12635_v33, 16 }
 0x345   : > { %v3962_v44 = vpack.c.bf16 %v3952_v34, %v3951_v27  ;;  %v13147_v61 = vrot.slane %v14533_v55, 4  ;;  %v3876_v52 = vadd.f32 %v12861_v47, %v3853_v48  ;;  %8953 = vmatprep.subr.bf16.mxu1 %v10551_v63  ;;  %v4960_v36 = vshll.u32 %v12635_v33, 16  ;;  %v10611_v34 = vld [vmem:[#allocation2 + $0xe4] sm:$0xf] }
 0x346   : > { %v13152_v40 = vrot.slane %v14534_v54, 7  ;;  %v4966_v17 = vshrl.u32 %v14535_v12, 16  ;;  %v13160_v10 = vmul.f32 15.0, %v3907_v21  ;;  %v3905_v31 = vmin.f32 %v3889_v11, 1.0  ;;  %v9028_v1 = vpop.f32.mrf.mxu0 }
 0x347   : > { %v4889_v37 = vsel %vm11168_vm10, %v13147_v61, %v14536_v8  ;;  %v3892_v38 = vmax.f32 %v3876_v52, 0.0  ;;  %v3874_v2 = vadd.f32 %v12861_v47, %v3851_v9  ;;  %9348 = vmatmul.mubr.bf16.gmra.mxu1 %v3962_v44  ;;  %v13163_v60 = vadd.f32 %v9026_v25, %v9025_v4  ;;  %v14539_v52 = vld [vmem:[#allocation53_spill] sm:$0xff] }
 0x348   : > { %8954 = vmatpush3.bf16.msra.mxu1 %v10552_v35  ;;  %v9853_v26 = vcvt.f32.s32 %v13160_v10  ;;  %v13166_v50 = vmul.f32 15.0, %v3905_v31  ;;  %v9029_v56 = vpop.f32.mrf.mxu0  ;;  %v13168_v5 = vrot.slane %v4952_v29, 11  ;;  %v4968_v27 = vrot.slane %v4966_v17, 7 }
 0x349   : > { %14537 = vst [vmem:[#allocation41_spill] sm:$0xff] %v13163_v60  ;;  %v3908_v63 = vmin.f32 %v3892_v38, 1.0  ;;  %9067 = vmatprep.subr.bf16.mxu1 %v10553_v46  ;;  %v3890_v49 = vmax.f32 %v3874_v2, 0.0  ;;  %v4969_v58 = vshll.u32 %v10611_v34, 16  ;;  %v13172_v22 = vor.u32 %v4960_v36, %v13152_v40  ;;  %v4811_v7 = vld [vmem:[#allocation2 + $0x148] sm:$0x1] }
 0x34a   : > { %v9854_v59 = vcvt.s32.f32 %v9853_v26  ;;  %v9837_v47 = vcvt.f32.s32 %v13166_v50  ;;  %v9856_v4 = vand.u32 2147483648, %v13160_v10  ;;  %v13175_v35 = vadd.f32 %v9029_v56, %v9028_v1  ;;  %v14541_v26 = vld [vmem:[#allocation69_spill] sm:$0xff] }
 0x34b   : > { %v3924_v48 = vmul.f32 15.0, %v3908_v63  ;;  %v3906_v44 = vmin.f32 %v3890_v49, 1.0  ;;  %v9851_v55 = vand.u32 2147483647, %v13160_v10  ;;  %v4971_v11 = vor.u32 %v4969_v58, %v4968_v27 }
 0x34c   : > { %14538 = vst [vmem:[#allocation62_spill] sm:$0xff] %v13175_v35  ;;  %v9838_v29 = vcvt.s32.f32 %v9837_v47  ;;  %v9855_v61 = vand.u32 2147483647, %v9854_v59  ;;  %v14540_v9 = vor.u32 %v14539_v52, %v14536_v8  ;;  %v4894_v25 = vshll.u32 %v4811_v7, 16  ;;  %v14544_v47 = vld [vmem:[#allocation70_spill] sm:$0xff] }
 0x34d   : > { %v9861_v30 = vcvt.f32.s32 %v3924_v48  ;;  %v3922_v21 = vmul.f32 15.0, %v3906_v44  ;;  %v9835_v36 = vand.u32 2147483647, %v13166_v50  ;;  %v9840_v38 = vand.u32 2147483648, %v13166_v50 }
 0x34e   : > { %v4892_v46 = vrot.slane %v14540_v9, 4  ;;  %v9839_v17 = vand.u32 2147483647, %v9838_v29  ;;  %v9857_v31 = vor.u32 %v9856_v4, %v9855_v61  ;;  %v9859_v1 = vand.u32 2147483647, %v3924_v48  ;;  %v9031_v44 = vpop.f32.mrf.mxu0 }
 0x34f   : > { %v9862_v54 = vcvt.s32.f32 %v9861_v30  ;;  %v9845_v2 = vcvt.f32.s32 %v3922_v21  ;;  %v4979_v63 = vshrl.u32 %v14541_v26, 16  ;;  %v9864_v49 = vand.u32 2147483648, %v3924_v48  ;;  %v1095_v4 = vld [vmem:[#allocation2 + $0x160] sm:$0x1] }
 0x350   : > { %vm13185_vm3 = vcmp.lt.f32.partialorder %v9851_v55, 8388608.0  ;;  %v4896_v8 = vrot.slane %v4894_v25, 5  ;;  %v9841_v34 = vor.u32 %v9840_v38, %v9839_v17  ;;  %v4988_v7 = vshrl.u32 %v14544_v47, 16  ;;  %v4930_v25 = vld [vmem:[#allocation2 + $0xf4] sm:$0x8]  ;;  %v14547_v38 = vld [vmem:[#allocation57_spill] sm:$0xff] }
 0x351   : > { %v9863_v27 = vand.u32 2147483647, %v9862_v54  ;;  %v9846_v58 = vcvt.s32.f32 %v9845_v2  ;;  %v9858_v59 = vsel %vm13185_vm3, %v9857_v31, %v13160_v10  ;;  %vm13193_vm5 = vcmp.lt.f32.partialorder %v9835_v36, 8388608.0  ;;  %v9032_v10 = vpop.f32.mrf.mxu0  ;;  %v14548_v2 = vld [vmem:[#allocation56_spill] sm:$0xff] }
 0x352   : > { %v9843_v30 = vand.u32 2147483647, %v3922_v21  ;;  %v4897_v61 = vsel %vm11168_vm10, %v4892_v46, %v4896_v8  ;;  %v9848_v9 = vand.u32 2147483648, %v3922_v21  ;;  %vm9860_vm4 = vcmp.lt.f32.partialorder %v9859_v1, 8388608.0  ;;  %v14551_v8 = vld [vmem:[#allocation59_spill] sm:$0xff] }
 0x353   : > { %v9865_v55 = vor.u32 %v9864_v49, %v9863_v27  ;;  %v9847_v52 = vand.u32 2147483647, %v9846_v58  ;;  %v13199_v54 = vcombine.low %v4889_v37, %v4897_v61  ;;  %v3955_v31 = vmul.f32 0.06666667, %v9858_v59  ;;  %v9034_v37 = vpop.f32.mrf.mxu0  ;;  %v13215_v61 = vld [vmem:[#allocation2 + $0x110] sm:$0xf] }
 0x354   : > { %v1096_v36 = vsel %vm11162_vm7, 0, %v1095_v4  ;;  %v14549_v56 = vor.u32 %v14547_v38, %v14548_v2  ;;  %v13206_v49 = vadd.f32 %v9032_v10, %v9031_v44  ;;  %v9842_v46 = vsel %vm13193_vm5, %v9841_v34, %v13166_v50  ;;  %v1098_v10 = vld [vmem:[#allocation2 + $0x178] sm:$0x1] }
 0x355   : > { %v9866_v17 = vsel %vm9860_vm4, %v9865_v55, %v3924_v48  ;;  %v9849_v1 = vor.u32 %v9848_v9, %v9847_v52  ;;  %1097 = vst [vmem:[#allocation2 + $0x160] sm:$0x1] %v1096_v36  ;;  %vm9844_vm6 = vcmp.lt.f32.partialorder %v9843_v30, 8388608.0  ;;  %v4974_v48 = vshrl.u32 %v4930_v25, 16  ;;  %v9035_v29 = vpop.f32.mrf.mxu0  ;;  %v13221_v9 = vld [vmem:[#allocation2 + $0x114] sm:$0xf] }
 0x356   : > { %v4901_v19 = vrot.slane %v14549_v56, 4  ;;  %14550 = vst [vmem:[#allocation23_spill] sm:$0xff] %v13206_v49  ;;  %v3956_v27 = vmul.f32 0.06666667, %v9866_v17  ;;  %v4981_v55 = vrot.slane %v4979_v63, 7  ;;  %v4982_v44 = vshll.u32 %v14541_v26, 16 }
 0x357   : > { %v9850_v59 = vsel %vm9844_vm6, %v9849_v1, %v3922_v21  ;;  %v3953_v50 = vmul.f32 0.06666667, %v9842_v46  ;;  %v4963_v30 = vsel %vm11145_vm2, %v13168_v5, %v13172_v22  ;;  %v13223_v25 = vadd.f32 %v9035_v29, %v9034_v37  ;;  %v10612_v17 = vld [vmem:[#allocation2 + $0xfc] sm:$0xf]  ;;  %v4933_v56 = vld [vmem:[#allocation2 + $0x10c] sm:$0x8] }
 0x358   : > { %v4903_v58 = vsel %vm11168_vm10, %v4901_v19, %v14551_v8  ;;  %v3964_v4 = vpack.c.bf16 %v3956_v27, %v3955_v31  ;;  %v3954_v34 = vmul.f32 0.06666667, %v9850_v59  ;;  %v14554_v19 = vrot.slane %v13152_v40, 4  ;;  %v14555_v22 = vld [vmem:[#allocation64_spill] sm:$0xff]  ;;  %v14556_v46 = vld [vmem:[#allocation63_spill] sm:$0xff] }
 0x359   : > { %14553 = vst [vmem:[#allocation27_spill] sm:$0xff] %v13223_v25  ;;  %v4990_v63 = vrot.slane %v4988_v7, 7  ;;  %v4991_v31 = vshll.u32 %v10612_v17, 16  ;;  %v5001_v38 = vshrl.u32 %v13215_v61, 16  ;;  %v1099_v2 = vsel %vm11162_vm7, 0, %v1098_v10  ;;  %v14560_v17 = vld [vmem:[#allocation66_spill] sm:$0xff] }
 0x35a   : > { %v4972_v21 = vsel %vm11145_vm2, %v14554_v19, %v4971_v11  ;;  %v3963_v36 = vpack.c.bf16 %v3954_v34, %v3953_v50  ;;  %v5010_v5 = vshrl.u32 %v13221_v9, 16  ;;  %1100 = vst [vmem:[#allocation2 + $0x178] sm:$0x1] %v1099_v2  ;;  %v14557_v1 = vor.u32 %v14555_v22, %v14556_v46  ;;  %v14558_v50 = vld [vmem:[#allocation60_spill] sm:$0xff] }
 0x35b   : > { %v8186_v27 = vcombine.low %v4963_v30, %v4972_v21  ;;  %v8171_v11 = vrot.slane %v4974_v48, 11  ;;  %v4984_v7 = vor.u32 %v4982_v44, %v4981_v55  ;;  %v4986_v37 = vrot.slane %v4981_v55, 4  ;;  %v13248_v21 = vld [vmem:[#allocation2 + $0x128] sm:$0xf] }
 0x35c   : > { %v4915_v40 = vrot.slane %v14557_v1, 4  ;;  %9351 = vmatprep.mubr.bf16.mxu1 %v3963_v36  ;;  %v4812_v59 = vld [vmem:[#allocation2 + $0x160] sm:$0x1]  ;;  %v4993_v29 = vor.u32 %v4991_v31, %v4990_v63  ;;  %v14559_v34 = vor.u32 %v14558_v50, %v14551_v8  ;;  %v4996_v22 = vshrl.u32 %v4933_v56, 16  ;;  %v10554_v36 = vld [vmem:[#allocation8 + $0x138] sm:$0xff]  }
 0x35d   : > { %9352 = vmatmul.mubr.bf16.gmra.mxu1 %v3964_v4  ;;  %v4908_v19 = vshll.u32 %v4812_v59, 16  ;;  %v5003_v46 = vrot.slane %v5001_v38, 7  ;;  %v5004_v30 = vshll.u32 %v13215_v61, 16  ;;  %v5012_v48 = vrot.slane %v5010_v5, 7  ;;  %v13252_v1 = vld [vmem:[#allocation2 + $0x12c] sm:$0xf] }
 0x35e   : > { %v4906_v10 = vrot.slane %v14559_v34, 4  ;;  %v4917_v2 = vsel %vm11168_vm10, %v4915_v40, %v14560_v17  ;;  %5351 = vmatprep.mubr.bf16.mxu1 %v8186_v27  ;;  %v5013_v55 = vshll.u32 %v13221_v9, 16  ;;  %v4985_v4 = vsel %vm11145_vm2, %v8171_v11, %v4984_v7  ;;  %v9037_v31 = vpop.f32.mrf.mxu0  ;;  %v10555_v27 = vld [vmem:[#allocation8 + $0x170] sm:$0xff]   ;;  %v14561_v7 = vld [vmem:[#allocation65_spill] sm:$0xff] }
 0x35f   : > { %v4910_v44 = vrot.slane %v4908_v19, 5  ;;  %v4994_v8 = vsel %vm11145_vm2, %v4986_v37, %v4993_v29  ;;  %v8172_v38 = vrot.slane %v4996_v22, 11  ;;  %v5006_v56 = vor.u32 %v5004_v30, %v5003_v46  ;;  %v14564_v22 = vld [vmem:[#allocation34_spill] sm:$0xff] }
 0x360   : > { %v5008_v59 = vrot.slane %v5003_v46, 4  ;;  %v5015_v11 = vor.u32 %v5013_v55, %v5012_v48  ;;  %v14562_v37 = vor.u32 %v14561_v7, %v14560_v17  ;;  %v9038_v34 = vpop.f32.mrf.mxu0  ;;  %v8187_v19 = vcombine.low %v4985_v4, %v4994_v8  ;;  %v4936_v30 = vld [vmem:[#allocation2 + $0x124] sm:$0x8]  ;;  %v13264_v48 = vld [vmem:[#allocation2 + $0x140] sm:$0xf]  ;;  %v10557_v4 = vld [vmem:[#allocation8 + $0x168] sm:$0xff]  }
 0x361   : > { %v4911_v63 = vsel %vm11168_vm10, %v4906_v10, %v4910_v44  ;;  %v4813_v40 = vld [vmem:[#allocation2 + $0x178] sm:$0x1]  ;;  %v5023_v10 = vshrl.u32 %v13248_v21, 16  ;;  %v13260_v44 = vadd.f32 %v9038_v34, %v9037_v31  ;;  %v10556_v46 = vld [vmem:[#allocation8 + $0x130] sm:$0xff]   ;;  %v5007_v17 = vsel %vm11145_vm2, %v8172_v38, %v5006_v56 }
 0x362   : > { %v13254_v5 = vcombine.low %v4903_v58, %v4911_v63  ;;  %v4920_v29 = vrot.slane %v14562_v37, 4  ;;  %v4922_v50 = vshll.u32 %v4813_v40, 16  ;;  %v5032_v58 = vshrl.u32 %v13252_v1, 16  ;;  %v9040_v25 = vpop.f32.mrf.mxu0  ;;  %v13270_v8 = vld [vmem:[#allocation2 + $0x144] sm:$0xf] }
 0x363   : > { %14563 = vst [vmem:[#allocation67_spill] sm:$0xff] %v13260_v44  ;;  %v5016_v55 = vsel %vm11145_vm2, %v5008_v59, %v5015_v11  ;;  %v5018_v7 = vshrl.u32 %v4936_v30, 16  ;;  %v5026_v37 = vshll.u32 %v13248_v21, 16  ;;  %v5035_v38 = vshll.u32 %v13252_v1, 16  ;;  %v10558_v11 = vld [vmem:[#allocation8 + $0x128] sm:$0xff]  }
 0x364   : > { %v4924_v63 = vrot.slane %v4922_v50, 5  ;;  %v9041_v40 = vpop.f32.mrf.mxu0  ;;  %v5034_v34 = vrot.slane %v5032_v58, 7  ;;  %v5045_v56 = vshrl.u32 %v13264_v48, 16  ;;  %v8188_v30 = vcombine.low %v5007_v17, %v5016_v55  ;;  %v14567_v58 = vld [vmem:[#allocation71_spill] sm:$0xff] }
 0x365   : > { %5352 = vmatmul.mubr.bf16.vlgmr.msra.gmra.mxu1 %v14564_v22  ;;  %v10559_v22 = vld [vmem:[#allocation8 + $0x160] sm:$0xff]   ;;  %v5048_v35 = vshll.u32 %v13264_v48, 16  ;;  %v5057_v60 = vshll.u32 %v13270_v8, 16  ;;  %v10561_v17 = vld [vmem:[#allocation8 + $0x158] sm:$0xff]  }
 0x366   : > { %9068 = vmatpush3.bf16.msra.mxu1 %v10554_v36  ;;  %5359 = vmatprep.mubr.bf16.mxu1 %v8187_v19  ;;  %v4925_v31 = vsel %vm11168_vm10, %v4920_v29, %v4924_v63  ;;  %v5025_v36 = vrot.slane %v5023_v10, 7  ;;  %v9043_v59 = vpop.f32.mrf.mxu0  ;;  %v4939_v19 = vld [vmem:[#allocation2 + $0x13c] sm:$0x8]  ;;  %v5054_v29 = vshrl.u32 %v13270_v8, 16  ;;  %v8173_v63 = vrot.slane %v5018_v7, 11 }
 0x367   : > { %9069 = vmatprep.subr.bf16.mxu1 %v10555_v27  ;;  %v13275_v50 = vcombine.low %v4917_v2, %v4925_v31  ;;  %v13277_v27 = vadd.f32 %v9041_v40, %v9040_v25  ;;  %v5037_v40 = vor.u32 %v5035_v38, %v5034_v34  ;;  %v5047_v44 = vrot.slane %v5045_v56, 7 }
 0x368   : > { %v9044_v10 = vpop.f32.mrf.mxu0  ;;  %v5028_v2 = vor.u32 %v5026_v37, %v5025_v36  ;;  %v5030_v31 = vrot.slane %v5025_v36, 4  ;;  %v13289_v36 = vld [vmem:[#allocation2 + $0x158] sm:$0xf]  ;;  %v1101_v37 = vld [vmem:[#allocation2 + $0x190] sm:$0x1] }
 0x369   : > { %14565 = vst [vmem:[#allocation25_spill] sm:$0xff] %v13277_v27  ;;  %v13282_v25 = vadd.f32 %v9044_v10, %v9043_v59  ;;  %v5040_v27 = vshrl.u32 %v4939_v19, 16  ;;  %v5052_v59 = vrot.slane %v5047_v44, 4  ;;  %v13295_v10 = vld [vmem:[#allocation2 + $0x15c] sm:$0xf] }
 0x36a   : > { %9070 = vmatpush3.bf16.msra.mxu1 %v10556_v46  ;;  %v9046_v49 = vpop.f32.mrf.mxu0  ;;  %v10560_v46 = vld [vmem:[#allocation8 + $0x120] sm:$0xff]   ;;  %v5029_v7 = vsel %vm11145_vm2, %v8173_v63, %v5028_v2  ;;  %v5038_v38 = vsel %vm11145_vm2, %v5030_v31, %v5037_v40  ;;  %v1102_v31 = vsel %vm11162_vm7, 0, %v1101_v37  ;;  %v10564_v37 = vld [vmem:[#allocation8 + $0x110] sm:$0xff]  }
 0x36b   : > { %9071 = vmatprep.subr.bf16.mxu1 %v10557_v4  ;;  %14566 = vst [vmem:[#allocation24_spill] sm:$0xff] %v13282_v25  ;;  %v5056_v4 = vrot.slane %v5054_v29, 7  ;;  %v8174_v56 = vrot.slane %v5040_v27, 11  ;;  %v5050_v29 = vor.u32 %v5048_v35, %v5047_v44  ;;  %v13299_v63 = vld [vmem:[#allocation2 + $0x174] sm:$0xf]  ;;  %v8189_v35 = vcombine.low %v5029_v7, %v5038_v38 }
 0x36c   : > { %v9047_v55 = vpop.f32.mrf.mxu0  ;;  %v4942_v2 = vld [vmem:[#allocation2 + $0x154] sm:$0x8]  ;;  %1103 = vst [vmem:[#allocation2 + $0x190] sm:$0x1] %v1102_v31  ;;  %v13314_v7 = vld [vmem:[#allocation2 + $0x188] sm:$0xf] }
 0x36d   : > { %5360 = vmatmul.mubr.bf16.gmra.mxu1 %v14567_v58  ;;  %v13291_v34 = vadd.f32 %v9047_v55, %v9046_v49  ;;  %v5067_v49 = vshrl.u32 %v13289_v36, 16  ;;  %v10563_v58 = vld [vmem:[#allocation8 + $0x150] sm:$0xff]   ;;  %v5051_v55 = vsel %vm11145_vm2, %v8174_v56, %v5050_v29  ;;  %v5062_v18 = vshrl.u32 %v4942_v2, 16  ;;  %v13316_v38 = vld [vmem:[#allocation2 + $0x18c] sm:$0xf] }
 0x36e   : > { %5367 = vmatprep.mubr.bf16.mxu1 %v8188_v30  ;;  %9072 = vmatpush3.bf16.msra.mxu1 %v10558_v11  ;;  %v10562_v11 = vld [vmem:[#allocation8 + $0x118] sm:$0xff]   ;;  %v9049_v19 = vpop.f32.mrf.mxu0  ;;  %v13297_v30 = vld [vmem:[#allocation2 + $0x170] sm:$0xf]  ;;  %v5070_v31 = vshll.u32 %v13289_v36, 16 }
 0x36f   : > { %9073 = vmatprep.subr.bf16.mxu1 %v10559_v22  ;;  %14568 = vst [vmem:[#allocation31_spill] sm:$0xff] %v13291_v34  ;;  %v5059_v22 = vor.u32 %v5057_v60, %v5056_v4  ;;  %v6169_v60 = vld [vmem:[#allocation2 + $0x1a0] sm:$0xf]  ;;  %v5076_v4 = vshrl.u32 %v13295_v10, 16  ;;  %v6168_v34 = vld [vmem:[#allocation2 + $0x19c] sm:$0x8] }
 0x370   : > { %v9050_v40 = vpop.f32.mrf.mxu0  ;;  %v6331_v56 = vshrl.u32 %v6169_v60, 16  ;;  %v8175_v0 = vrot.slane %v5062_v18, 11  ;;  %v5098_v18 = vshrl.u32 %v13299_v63, 16 }
 0x371   : > { %v13306_v44 = vadd.f32 %v9050_v40, %v9049_v19  ;;  %v5060_v27 = vsel %vm11145_vm2, %v5052_v59, %v5059_v22  ;;  %v5069_v19 = vrot.slane %v5067_v49, 7  ;;  %v10565_v40 = vld [vmem:[#allocation8 + $0x148] sm:$0xff]   ;;  %v5079_v22 = vshll.u32 %v13295_v10, 16 }
 0x372   : > { %9074 = vmatpush3.bf16.msra.mxu1 %v10560_v46  ;;  %v14570_v46 = vld [vmem:[#allocation73_spill] sm:$0xff]  ;;  %v6333_v2 = vrot.slane %v6331_v56, 7  ;;  %v8190_v49 = vcombine.low %v5051_v55, %v5060_v27  ;;  %v6326_v56 = vshrl.u32 %v6168_v34, 16 }
 0x373   : > { %9075 = vmatprep.subr.bf16.mxu1 %v10561_v17  ;;  %14569 = vst [vmem:[#allocation35_spill] sm:$0xff] %v13306_v44  ;;  %v9052_v17 = vpop.f32.mrf.mxu0  ;;  %v6334_v44 = vshll.u32 %v6169_v60, 16  ;;  %v5072_v39 = vor.u32 %v5070_v31, %v5069_v19  ;;  %v5074_v27 = vrot.slane %v5069_v19, 4 }
 0x375   : > { %5368 = vmatmul.mubr.bf16.gmra.mxu1 %v14570_v46  ;;  %v6170_v46 = vld [vmem:[#allocation2 + $0x1a4] sm:$0xf]  ;;  %v9053_v29 = vpop.f32.mrf.mxu0 }
 0x376   : > { %5375 = vmatprep.mubr.bf16.mxu1 %v8189_v35  ;;  %9076 = vmatpush3.bf16.msra.mxu1 %v10562_v11  ;;  %v13321_v59 = vadd.f32 %v9053_v29, %v9052_v17  ;;  %v5078_v11 = vrot.slane %v5076_v4, 7  ;;  %v6343_v23 = vshll.u32 %v6170_v46, 16  ;;  %v5089_v35 = vshrl.u32 %v13297_v30, 16  ;;  %v4945_v29 = vld [vmem:[#allocation2 + $0x16c] sm:$0x8] }
 0x377   : > { %9077 = vmatprep.subr.bf16.mxu1 %v10563_v58  ;;  %v9055_v25 = vpop.f32.mrf.mxu0  ;;  %v6340_v58 = vshrl.u32 %v6170_v46, 16  ;;  %v8281_v62 = vcombine.low %v6169_v60, %v6170_v46  ;;  %v6336_v4 = vor.u32 %v6334_v44, %v6333_v2  ;;  %v10568_v60 = vld [vmem:[#allocation8 + $0x100] sm:$0xff]   ;;  %v5073_v44 = vsel %vm11145_vm2, %v8175_v0, %v5072_v39 }
 0x378   : > { %14571 = vst [vmem:[#allocation28_spill] sm:$0xff] %v13321_v59  ;;  %v6338_v59 = vrot.slane %v6333_v2, 4  ;;  %v5081_v55 = vor.u32 %v5079_v22, %v5078_v11  ;;  %v5084_v34 = vshrl.u32 %v4945_v29, 16  ;;  %v5091_v19 = vrot.slane %v5089_v35, 7 }
 0x379   : > { %v9056_v17 = vpop.f32.mrf.mxu0  ;;  %v6342_v57 = vrot.slane %v6340_v58, 7  ;;  %6643 = vmatprep.mubr.bf16.mxu0 %v8281_v62  ;;  %v5092_v46 = vshll.u32 %v13297_v30, 16  ;;  %v5101_v39 = vshll.u32 %v13299_v63, 16  ;;  %v5609_v58 = vld [vmem:[#allocation2 + $0xe0] sm:$0xf] }
 0x37a   : > { %9078 = vmatpush3.bf16.msra.mxu1 %v10564_v37  ;;  %v13325_v28 = vadd.f32 %v9056_v17, %v9055_v25  ;;  %v13333_v25 = vld [vmem:[#allocation9 + $0x38] sm:$0xff]   ;;  %v8176_v22 = vrot.slane %v5084_v34, 11  ;;  %v5610_v17 = vld [vmem:[#allocation2 + $0xe4] sm:$0xf] }
 0x37b   : > { %9079 = vmatprep.subr.bf16.mxu1 %v10565_v40  ;;  %v13329_v37 = vpop.f32.mrf.mxu0  ;;  %v6345_v31 = vor.u32 %v6343_v23, %v6342_v57  ;;  %v8265_v40 = vrot.slane %v6326_v56, 11  ;;  %v5082_v57 = vsel %vm11145_vm2, %v5074_v27, %v5081_v55  ;;  %v5100_v23 = vrot.slane %v5098_v18, 7 }
 0x37c   : > { %v8191_v11 = vcombine.low %v5073_v44, %v5082_v57  ;;  %v5094_v2 = vor.u32 %v5092_v46, %v5091_v19  ;;  %v5111_v56 = vshrl.u32 %v13314_v7, 16  ;;  %v5120_v27 = vshrl.u32 %v13316_v38, 16 }
 0x37d   : > { %5376 = vmatmul.mubr.bf16.gmra.mxu1 %v12988_v53  ;;  %v13335_v53 = vpop.f32.mrf.mxu0  ;;  %v6337_v62 = vsel %vm11145_vm2, %v8265_v40, %v6336_v4  ;;  %v5103_v29 = vor.u32 %v5101_v39, %v5100_v23  ;;  %v4948_v4 = vld [vmem:[#allocation2 + $0x184] sm:$0x8]  ;;  %v5634_v55 = vshrl.u32 %v5609_v58, 16  ;;  %v5637_v18 = vshll.u32 %v5609_v58, 16  ;;  %v5611_v39 = vld [vmem:[#allocation2 + $0xe8] sm:$0x1] }
 0x37e   : > { %5383 = vmatprep.mubr.bf16.mxu1 %v8190_v49  ;;  %9080 = vmatpush3.bf16.msra.mxu1 %v10566_v51  ;;  %v6346_v51 = vsel %vm11145_vm2, %v6338_v59, %v6345_v31  ;;  %v5096_v49 = vrot.slane %v5091_v19, 4  ;;  %v5095_v31 = vsel %vm11145_vm2, %v8176_v22, %v5094_v2  ;;  %v5106_v40 = vshrl.u32 %v4948_v4, 16 }
 0x37f   : > { %9081 = vmatprep.subr.bf16.mxu1 %v10567_v45  ;;  %v8273_v45 = vcombine.low %v6337_v62, %v6346_v51  ;;  %v9061_v0 = vpop.f32.mrf.mxu0  ;;  %v5114_v44 = vshll.u32 %v13314_v7, 16  ;;  %v5647_v34 = vshrl.u32 %v5610_v17, 16  ;;  %v5113_v19 = vrot.slane %v5111_v56, 7 }
 0x380   : > { %v5122_v46 = vrot.slane %v5120_v27, 7  ;;  %v5123_v62 = vshll.u32 %v13316_v38, 16  ;;  %v5636_v51 = vrot.slane %v5634_v55, 4  ;;  %v5639_v57 = vrot.slane %v5637_v18, 5 }
 0x381   : > { %6644 = vmatmul.mubr.bf16.gmra.mxu0 %v8273_v45  ;;  %v9062_v35 = vpop.f32.mrf.mxu0  ;;  %v5116_v22 = vor.u32 %v5114_v44, %v5113_v19  ;;  %v5118_v2 = vrot.slane %v5113_v19, 4 }
 0x382   : > { %9082 = vmatpush3.bf16.msra.mxu1 %v10568_v60  ;;  %v13346_v59 = vadd.f32 %v9062_v35, %v9061_v0  ;;  %v5643_v60 = vshll.u32 %v5610_v17, 16  ;;  %v5649_v0 = vrot.slane %v5647_v34, 4  ;;  %v5612_v35 = vld [vmem:[#allocation2 + $0xf8] sm:$0xf]  ;;  %v5125_v58 = vor.u32 %v5123_v62, %v5122_v46  ;;  %v5613_v17 = vld [vmem:[#allocation2 + $0xfc] sm:$0xf] }
 0x383   : > { %9387 = vmatprep.subr.bf16.mxu1 %v13333_v25  ;;  %v5658_v4 = vshrl.u32 %v5612_v35, 16  ;;  %v5661_v56 = vshll.u32 %v5612_v35, 16  ;;  %v5667_v55 = vshll.u32 %v5613_v17, 16  ;;  %v5671_v18 = vshrl.u32 %v5613_v17, 16  ;;  %v5614_v46 = vld [vmem:[#allocation2 + $0x100] sm:$0x1] }
 0x384   : > { %v5645_v45 = vrot.slane %v5643_v60, 5  ;;  %v5677_v52 = vshll.u32 %v5614_v46, 16 }
 0x385   : > { %5384 = vmatmul.mubr.bf16.gmra.mxu1 %v13049_v20  ;;  %v5104_v20 = vsel %vm11145_vm2, %v5096_v49, %v5103_v29  ;;  %v5640_v49 = vor.u32 %v5639_v57, %v5636_v51  ;;  %v5653_v29 = vshll.u32 %v5611_v39, 16  ;;  %v5660_v44 = vrot.slane %v5658_v4, 4  ;;  %v5615_v57 = vld [vmem:[#allocation2 + $0x110] sm:$0xf] }
 0x386   : > { %5391 = vmatprep.mubr.bf16.mxu1 %v8191_v11  ;;  %v8192_v23 = vcombine.low %v5095_v31, %v5104_v20  ;;  %v8177_v11 = vrot.slane %v5106_v40, 11  ;;  %v5650_v27 = vor.u32 %v5649_v0, %v5645_v45  ;;  %v5126_v31 = vsel %vm11145_vm2, %v5118_v2, %v5125_v58 }
 0x387   : > { %v5655_v40 = vrot.slane %v5653_v29, 5  ;;  %v5663_v34 = vrot.slane %v5661_v56, 5  ;;  %v5669_v62 = vrot.slane %v5667_v55, 5  ;;  %v5673_v51 = vrot.slane %v5671_v18, 4  ;;  %v5617_v55 = vld [vmem:[#allocation2 + $0x118] sm:$0x1] }
 0x388   : > { %v5117_v60 = vsel %vm11145_vm2, %v8177_v11, %v5116_v22  ;;  %v5651_v19 = vrot.slane %v5650_v27, 4  ;;  %v5682_v22 = vshrl.u32 %v5615_v57, 16  ;;  %v5685_v2 = vshll.u32 %v5615_v57, 16 }
 0x389   : > { %v8193_v20 = vcombine.low %v5117_v60, %v5126_v31  ;;  %v5664_v0 = vor.u32 %v5663_v34, %v5660_v44  ;;  %v5674_v11 = vor.u32 %v5673_v51, %v5669_v62  ;;  %v5618_v60 = vld [vmem:[#allocation2 + $0x128] sm:$0xf]  ;;  %v5619_v31 = vld [vmem:[#allocation2 + $0x12c] sm:$0xf]  ;;  %v5701_v34 = vshll.u32 %v5617_v55, 16 }
 0x38a   : > { %v5656_v35 = vsel %vm11168_vm10, %v5651_v19, %v5655_v40  ;;  %v5684_v56 = vrot.slane %v5682_v22, 4  ;;  %v5687_v27 = vrot.slane %v5685_v2, 5  ;;  %v5709_v46 = vshll.u32 %v5618_v60, 16  ;;  %v5620_v2 = vld [vmem:[#allocation2 + $0x130] sm:$0x1] }
 0x38b   : > { %v5665_v29 = vrot.slane %v5664_v0, 4  ;;  %v5675_v4 = vrot.slane %v5674_v11, 4  ;;  %v5715_v51 = vshll.u32 %v5619_v31, 16  ;;  %v5719_v57 = vshrl.u32 %v5619_v31, 16  ;;  %v5622_v11 = vld [vmem:[#allocation2 + $0x144] sm:$0xf] }
 0x38c   : > { %v5688_v44 = vor.u32 %v5687_v27, %v5684_v56  ;;  %v5739_v56 = vshll.u32 %v5622_v11, 16  ;;  %v5743_v27 = vshrl.u32 %v5622_v11, 16  ;;  %v5725_v55 = vshll.u32 %v5620_v2, 16 }
 0x38d   : > { %5392 = vmatmul.mubr.bf16.gmra.mxu1 %v13199_v54  ;;  %v5641_v54 = vrot.slane %v5640_v49, 4 }
 0x38e   : > { %5399 = vmatprep.mubr.bf16.mxu1 %v8192_v23  ;;  %v5616_v23 = vld [vmem:[#allocation2 + $0x114] sm:$0xf]  ;;  %v5689_v0 = vrot.slane %v5688_v44, 4  ;;  %v5745_v44 = vrot.slane %v5743_v27, 4 }
 0x38f   : > { %v5646_v39 = vsel %vm11168_vm10, %v5641_v54, %v5645_v45  ;;  %v5691_v58 = vshll.u32 %v5616_v23, 16  ;;  %v5695_v17 = vshrl.u32 %v5616_v23, 16  ;;  %v5670_v54 = vsel %vm11168_vm10, %v5665_v29, %v5669_v62  ;;  %v5621_v23 = vld [vmem:[#allocation2 + $0x140] sm:$0xf] }
 0x390   : > { %v8234_v49 = vcombine.low %v5646_v39, %v5656_v35  ;;  %v14572_v62 = vcombine.low %v12635_v33, %v14535_v12  ;;  %v5730_v29 = vshrl.u32 %v5621_v23, 16 }
 0x391   : > { %v5693_v45 = vrot.slane %v5691_v58, 5  ;;  %v5697_v18 = vrot.slane %v5695_v17, 4  ;;  %v5711_v58 = vrot.slane %v5709_v46, 5  ;;  %v5717_v17 = vrot.slane %v5715_v51, 5 }
 0x392   : > { %v5732_v31 = vrot.slane %v5730_v29, 4  ;;  %v14573_v46 = vcombine.low %v14541_v26, %v14544_v47  ;;  %v8228_v47 = vcombine.low %v13215_v61, %v13221_v9 }
 0x393   : > { %v5698_v19 = vor.u32 %v5697_v18, %v5693_v45  ;;  %v5694_v18 = vsel %vm11168_vm10, %v5689_v0, %v5693_v45 }
 0x395   : > { %5400 = vmatmul.mubr.bf16.gmra.mxu1 %v13254_v5  ;;  %v5679_v5 = vrot.slane %v5677_v52, 5  ;;  %v5703_v52 = vrot.slane %v5701_v34, 5  ;;  %v5699_v22 = vrot.slane %v5698_v19, 4  ;;  %v5624_v19 = vld [vmem:[#allocation2 + $0x158] sm:$0xf] }
 0x396   : > { %5407 = vmatprep.mubr.bf16.mxu1 %v8193_v20  ;;  %v5706_v20 = vshrl.u32 %v5618_v60, 16  ;;  %v5757_v11 = vshll.u32 %v5624_v19, 16 }
 0x397   : > { %v5680_v40 = vsel %vm11168_vm10, %v5675_v4, %v5679_v5  ;;  %v5733_v4 = vshll.u32 %v5621_v23, 16  ;;  %v10572_v5 = vld [vmem:[#allocation9 + $0x28] sm:$0xff]   ;;  %v5704_v33 = vsel %vm11168_vm10, %v5699_v22, %v5703_v52  ;;  %v10576_v52 = vld [vmem:[#allocation9 + $0x18] sm:$0xff]  }
 0x398   : > { %v8235_v39 = vcombine.low %v5670_v54, %v5680_v40  ;;  %v5708_v35 = vrot.slane %v5706_v20, 4  ;;  %v5741_v40 = vrot.slane %v5739_v56, 5  ;;  %v8236_v34 = vcombine.low %v5694_v18, %v5704_v33  ;;  %v5623_v20 = vld [vmem:[#allocation2 + $0x148] sm:$0x1]  ;;  %v5625_v23 = vld [vmem:[#allocation2 + $0x15c] sm:$0xf] }
 0x399   : > { %v5735_v54 = vrot.slane %v5733_v4, 5  ;;  %v5749_v0 = vshll.u32 %v5623_v20, 16  ;;  %v5767_v22 = vshrl.u32 %v5625_v23, 16  ;;  %v5759_v27 = vrot.slane %v5757_v11, 5  ;;  %v5630_v11 = vld [vmem:[#allocation2 + $0x188] sm:$0xf] }
 0x39a   : > { %v5712_v12 = vor.u32 %v5711_v58, %v5708_v35  ;;  %v5754_v35 = vshrl.u32 %v5624_v19, 16 }
 0x39b   : > { %v5751_v4 = vrot.slane %v5749_v0, 5  ;;  %v5769_v33 = vrot.slane %v5767_v22, 4 }
 0x39c   : > { %v5713_v45 = vrot.slane %v5712_v12, 4  ;;  %v5756_v56 = vrot.slane %v5754_v35, 4  ;;  %v5627_v12 = vld [vmem:[#allocation2 + $0x170] sm:$0xf] }
 0x39d   : > { %5408 = vmatmul.mubr.bf16.gmra.mxu1 %v13275_v50  ;;  %v10570_v50 = vld [vmem:[#allocation9 + $0x30] sm:$0xff]  }
 0x39e   : > { %6065 = vmatprep.mubr.bf16.mxu1 %v8234_v49  ;;  %v5721_v49 = vrot.slane %v5719_v57, 4  ;;  %v5727_v57 = vrot.slane %v5725_v55, 5  ;;  %v5718_v2 = vsel %vm11168_vm10, %v5713_v45, %v5717_v17 }
 0x3a0   : > { %v5722_v60 = vor.u32 %v5721_v49, %v5717_v17  ;;  %v10578_v49 = vld [vmem:[#allocation9 + $0x10] sm:$0xff]   ;;  %v5628_v17 = vld [vmem:[#allocation2 + $0x174] sm:$0xf] }
 0x3a1   : > { %v5787_v20 = vshll.u32 %v5628_v17, 16  ;;  %v5791_v19 = vshrl.u32 %v5628_v17, 16  ;;  %v6669_v17 = vld [vmem:[#allocation2 + $0xfc] sm:$0xf] }
 0x3a2   : > { %v5723_v51 = vrot.slane %v5722_v60, 4 }
 0x3a3   : > { %v5793_v35 = vrot.slane %v5791_v19, 4 }
 0x3a4   : > { %v5728_v26 = vsel %vm11168_vm10, %v5723_v51, %v5727_v57 }
 0x3a5   : > { %6066 = vmatmul.mubr.bf16.vlgmr.msra.gmra.mxu1 %v14572_v62  ;;  %v5763_v62 = vshll.u32 %v5625_v23, 16  ;;  %v8237_v55 = vcombine.low %v5718_v2, %v5728_v26 }
 0x3a6   : > { %9388 = vmatpush3.bf16.msra.mxu1 %v13333_v25  ;;  %6073 = vmatprep.mubr.bf16.mxu1 %v8235_v39  ;;  %v10574_v25 = vld [vmem:[#allocation9 + $0x20] sm:$0xff]   ;;  %v5746_v39 = vor.u32 %v5745_v44, %v5741_v40 }
 0x3a7   : > { %9389 = vmatprep.subr.bf16.mxu1 %v10570_v50  ;;  %v5765_v18 = vrot.slane %v5763_v62, 5  ;;  %v5631_v62 = vld [vmem:[#allocation2 + $0x18c] sm:$0xf] }
 0x3a8   : > { %v5747_v29 = vrot.slane %v5746_v39, 4  ;;  %v5629_v39 = vld [vmem:[#allocation2 + $0x178] sm:$0x1] }
 0x3a9   : > { %v5770_v44 = vor.u32 %v5769_v33, %v5765_v18  ;;  %v5797_v22 = vshll.u32 %v5629_v39, 16 }
 0x3aa   : > { %9390 = vmatpush3.bf16.msra.mxu1 %v10570_v50  ;;  %v5736_v50 = vor.u32 %v5735_v54, %v5732_v31  ;;  %v5752_v9 = vsel %vm11168_vm10, %v5747_v29, %v5751_v4  ;;  %v5760_v31 = vor.u32 %v5759_v27, %v5756_v56  ;;  %v5778_v54 = vshrl.u32 %v5627_v12, 16 }
 0x3ab   : > { %9391 = vmatprep.subr.bf16.mxu1 %v10572_v5  ;;  %v5811_v29 = vshll.u32 %v5631_v62, 16  ;;  %v5815_v4 = vshrl.u32 %v5631_v62, 16 }
 0x3ac   : > { %v5737_v58 = vrot.slane %v5736_v50, 4  ;;  %v5761_v51 = vrot.slane %v5760_v31, 4  ;;  %v5780_v23 = vrot.slane %v5778_v54, 4  ;;  %v5771_v50 = vrot.slane %v5770_v44, 4  ;;  %v5632_v54 = vld [vmem:[#allocation2 + $0x190] sm:$0x1] }
 0x3ad   : > { %6074 = vmatmul.mubr.bf16.gmra.mxu1 %v14573_v46  ;;  %v8229_v46 = vcombine.low %v13248_v21, %v13252_v1  ;;  %v5817_v31 = vrot.slane %v5815_v4, 4  ;;  %v6706_v44 = vshrl.u32 %v6669_v17, 16 }
 0x3ae   : > { %6081 = vmatprep.mubr.bf16.mxu1 %v8236_v34  ;;  %9392 = vmatpush3.bf16.msra.mxu1 %v10572_v5  ;;  %v5626_v5 = vld [vmem:[#allocation2 + $0x160] sm:$0x1]  ;;  %v5742_v61 = vsel %vm11168_vm10, %v5737_v58, %v5741_v40  ;;  %v5781_v34 = vshll.u32 %v5627_v12, 16  ;;  %v10582_v40 = vld [vmem:[#allocation9] sm:$0xff]   ;;  %v5766_v21 = vsel %vm11168_vm10, %v5761_v51, %v5765_v18  ;;  %v5802_v58 = vshrl.u32 %v5630_v11, 16 }
 0x3af   : > { %9393 = vmatprep.subr.bf16.mxu1 %v10574_v25  ;;  %v5773_v60 = vshll.u32 %v5626_v5, 16  ;;  %v8238_v45 = vcombine.low %v5742_v61, %v5752_v9  ;;  %v8230_v5 = vcombine.low %v13264_v48, %v13270_v8  ;;  %v5799_v18 = vrot.slane %v5797_v22, 5  ;;  %v6671_v51 = vld [vmem:[#allocation2 + $0x110] sm:$0xf] }
 0x3b0   : > { %v5783_v0 = vrot.slane %v5781_v34, 5  ;;  %v5813_v9 = vrot.slane %v5811_v29, 5  ;;  %v6708_v39 = vrot.slane %v6706_v44, 4  ;;  %v6720_v62 = vshll.u32 %v6671_v51, 16 }
 0x3b1   : > { %v5775_v57 = vrot.slane %v5773_v60, 5  ;;  %v5804_v60 = vrot.slane %v5802_v58, 4 }
 0x3b2   : > { %9394 = vmatpush3.bf16.msra.mxu1 %v10574_v25  ;;  %v10580_v25 = vld [vmem:[#allocation9 + $0x8] sm:$0xff]   ;;  %v5784_v2 = vor.u32 %v5783_v0, %v5780_v23  ;;  %v5818_v19 = vor.u32 %v5817_v31, %v5813_v9  ;;  %v8231_v23 = vcombine.low %v13289_v36, %v13295_v10  ;;  %v6674_v0 = vld [vmem:[#allocation2 + $0x128] sm:$0xf] }
 0x3b3   : > { %9395 = vmatprep.subr.bf16.mxu1 %v10576_v52  ;;  %v5776_v1 = vsel %vm11168_vm10, %v5771_v50, %v5775_v57  ;;  %v6672_v57 = vld [vmem:[#allocation2 + $0x114] sm:$0xf]  ;;  %v6741_v58 = vshrl.u32 %v6674_v0, 16 }
 0x3b4   : > { %v5785_v33 = vrot.slane %v5784_v2, 4  ;;  %v6726_v22 = vshll.u32 %v6672_v57, 16  ;;  %v5819_v2 = vrot.slane %v5818_v19, 4 }
 0x3b5   : > { %6082 = vmatmul.mubr.bf16.gmra.mxu1 %v8228_v47  ;;  %v6668_v47 = vld [vmem:[#allocation2 + $0xf8] sm:$0xf] }
 0x3b6   : > { %6089 = vmatprep.mubr.bf16.mxu1 %v8237_v55  ;;  %9396 = vmatpush3.bf16.msra.mxu1 %v10576_v52  ;;  %v5789_v52 = vrot.slane %v5787_v20, 5  ;;  %v6693_v56 = vshrl.u32 %v6668_v47, 16  ;;  %v6696_v27 = vshll.u32 %v6668_v47, 16  ;;  %v8239_v55 = vcombine.low %v5766_v21, %v5776_v1 }
 0x3b7   : > { %9397 = vmatprep.subr.bf16.mxu1 %v10578_v49  ;;  %v6730_v21 = vshrl.u32 %v6672_v57, 16 }
 0x3b8   : > { %v5794_v26 = vor.u32 %v5793_v35, %v5789_v52  ;;  %v5790_v34 = vsel %vm11168_vm10, %v5785_v33, %v5789_v52  ;;  %v6695_v8 = vrot.slane %v6693_v56, 4  ;;  %v6675_v35 = vld [vmem:[#allocation2 + $0x12c] sm:$0xf]  ;;  %v6670_v52 = vld [vmem:[#allocation2 + $0x100] sm:$0x1] }
 0x3b9   : > { %v6750_v36 = vshll.u32 %v6675_v35, 16  ;;  %v6754_v10 = vshrl.u32 %v6675_v35, 16  ;;  %v6712_v4 = vshll.u32 %v6670_v52, 16  ;;  %v6732_v33 = vrot.slane %v6730_v21, 4  ;;  %v6681_v52 = vld [vmem:[#allocation2 + $0x15c] sm:$0xf] }
 0x3ba   : > { %9398 = vmatpush3.bf16.msra.mxu1 %v10578_v49  ;;  %v5805_v49 = vshll.u32 %v5630_v11, 16  ;;  %v5795_v12 = vrot.slane %v5794_v26, 4  ;;  %v6717_v11 = vshrl.u32 %v6671_v51, 16 }
 0x3bb   : > { %9399 = vmatprep.subr.bf16.mxu1 %v10580_v25 }
 0x3bc   : > { %v5807_v61 = vrot.slane %v5805_v49, 5  ;;  %v5800_v48 = vsel %vm11168_vm10, %v5795_v12, %v5799_v18  ;;  %v6744_v49 = vshll.u32 %v6674_v0, 16  ;;  %v6719_v56 = vrot.slane %v6717_v11, 4 }
 0x3bd   : > { %6090 = vmatmul.mubr.bf16.gmra.mxu1 %v8229_v46  ;;  %v5821_v46 = vshll.u32 %v5632_v54, 16  ;;  %v13416_v54 = vrot.slane %v6750_v36, 5 }
 0x3be   : > { %6097 = vmatprep.mubr.bf16.mxu1 %v8238_v45  ;;  %9400 = vmatpush3.bf16.msra.mxu1 %v10580_v25  ;;  %v6702_v25 = vshll.u32 %v6669_v17, 16  ;;  %v5808_v20 = vor.u32 %v5807_v61, %v5804_v60  ;;  %v6698_v45 = vrot.slane %v6696_v27, 5  ;;  %v6722_v27 = vrot.slane %v6720_v62, 5  ;;  %v6676_v60 = vld [vmem:[#allocation2 + $0x130] sm:$0x1] }
 0x3bf   : > { %9401 = vmatprep.subr.bf16.mxu1 %v10582_v40  ;;  %v5823_v26 = vrot.slane %v5821_v46, 5  ;;  %v6743_v61 = vrot.slane %v6741_v58, 4  ;;  %v6746_v31 = vrot.slane %v6744_v49, 5  ;;  %v6760_v57 = vshll.u32 %v6676_v60, 16 }
 0x3c0   : > { %v13407_v50 = vrot.slane %v6702_v25, 5  ;;  %v5809_v1 = vrot.slane %v5808_v20, 4  ;;  %v6699_v47 = vor.u32 %v6698_v45, %v6695_v8  ;;  %v6756_v25 = vrot.slane %v6754_v10, 4  ;;  %v6677_v8 = vld [vmem:[#allocation2 + $0x140] sm:$0xf] }
 0x3c1   : > { %v5824_v18 = vsel %vm11168_vm10, %v5819_v2, %v5823_v26  ;;  %v6723_v19 = vor.u32 %v6722_v27, %v6719_v56  ;;  %v6678_v45 = vld [vmem:[#allocation2 + $0x144] sm:$0xf]  ;;  %v6765_v0 = vshrl.u32 %v6677_v8, 16  ;;  %v6768_v35 = vshll.u32 %v6677_v8, 16 }
 0x3c2   : > { %9402 = vmatpush3.bf16.msra.mxu1 %v10582_v40  ;;  %v8240_v40 = vcombine.low %v5790_v34, %v5800_v48  ;;  %v6709_v29 = vor.u32 %v6708_v39, %v13407_v50  ;;  %v5814_v12 = vsel %vm11168_vm10, %v5809_v1, %v5813_v9  ;;  %v6700_v17 = vrot.slane %v6699_v47, 4 }
 0x3c3   : > { %v6714_v34 = vrot.slane %v6712_v4, 5  ;;  %v8241_v20 = vcombine.low %v5814_v12, %v5824_v18  ;;  %v14574_v9 = vcombine.low %v13297_v30, %v13299_v63  ;;  %v6757_v39 = vor.u32 %v6756_v25, %v13416_v54 }
 0x3c4   : > { %v6710_v44 = vrot.slane %v6709_v29, 4  ;;  %v6705_v51 = vsel %vm11168_vm10, %v6700_v17, %v13407_v50  ;;  %v6778_v30 = vshrl.u32 %v6678_v45, 16  ;;  %v6724_v63 = vrot.slane %v6723_v19, 4  ;;  %v6683_v29 = vld [vmem:[#allocation2 + $0x170] sm:$0xf] }
 0x3c5   : > { %6098 = vmatmul.mubr.bf16.gmra.mxu1 %v8230_v5  ;;  %v6673_v5 = vld [vmem:[#allocation2 + $0x118] sm:$0x1]  ;;  %v6762_v50 = vrot.slane %v6760_v57, 5  ;;  %v6798_v26 = vshll.u32 %v6681_v52, 16  ;;  %v6802_v47 = vshrl.u32 %v6681_v52, 16  ;;  %v6758_v49 = vrot.slane %v6757_v39, 4 }
 0x3c6   : > { %6105 = vmatprep.mubr.bf16.mxu1 %v8239_v55  ;;  %v13410_v55 = vrot.slane %v6726_v22, 5  ;;  %v6736_v48 = vshll.u32 %v6673_v5, 16  ;;  %v6715_v11 = vsel %vm11168_vm10, %v6710_v44, %v6714_v34  ;;  %v6774_v22 = vshll.u32 %v6678_v45, 16  ;;  %v6679_v5 = vld [vmem:[#allocation2 + $0x148] sm:$0x1] }
 0x3c7   : > { %v6767_v36 = vrot.slane %v6765_v0, 4  ;;  %v6770_v10 = vrot.slane %v6768_v35, 5  ;;  %v8298_v4 = vcombine.low %v6705_v51, %v6715_v11  ;;  %v6780_v27 = vrot.slane %v6778_v30, 4  ;;  %v6682_v17 = vld [vmem:[#allocation2 + $0x160] sm:$0x1] }
 0x3c8   : > { %v6733_v46 = vor.u32 %v6732_v33, %v13410_v55  ;;  %v6738_v62 = vrot.slane %v6736_v48, 5  ;;  %v13428_v56 = vrot.slane %v6774_v22, 5  ;;  %v6684_v33 = vld [vmem:[#allocation2 + $0x174] sm:$0xf]  ;;  %v6729_v12 = vsel %vm11168_vm10, %v6724_v63, %v13410_v55  ;;  %v6689_v30 = vld [vmem:[#allocation2 + $0x1a0] sm:$0xf] }
 0x3c9   : > { %v14575_v25 = vcombine.low %v13314_v7, %v13316_v38  ;;  %v13438_v44 = vrot.slane %v6798_v26, 5  ;;  %v6804_v34 = vrot.slane %v6802_v47, 4  ;;  %v6813_v48 = vshrl.u32 %v6683_v29, 16  ;;  %v6685_v26 = vld [vmem:[#allocation2 + $0x178] sm:$0x1] }
 0x3ca   : > { %v6734_v21 = vrot.slane %v6733_v46, 4  ;;  %v6816_v8 = vshll.u32 %v6683_v29, 16  ;;  %v6763_v19 = vsel %vm11168_vm10, %v6758_v49, %v6762_v50  ;;  %v6771_v46 = vor.u32 %v6770_v10, %v6767_v36  ;;  %v6690_v50 = vld [vmem:[#allocation2 + $0x1a4] sm:$0xf] }
 0x3cb   : > { %v6784_v45 = vshll.u32 %v6679_v5, 16  ;;  %v6808_v7 = vshll.u32 %v6682_v17, 16  ;;  %v6822_v38 = vshll.u32 %v6684_v33, 16  ;;  %v6826_v51 = vshrl.u32 %v6684_v33, 16 }
 0x3cc   : > { %v6739_v18 = vsel %vm11168_vm10, %v6734_v21, %v6738_v62  ;;  %v6805_v35 = vor.u32 %v6804_v34, %v13438_v44  ;;  %v6815_v52 = vrot.slane %v6813_v48, 4  ;;  %v6818_v11 = vrot.slane %v6816_v8, 5 }
 0x3cd   : > { %6106 = vmatmul.mubr.bf16.gmra.mxu1 %v8231_v23  ;;  %v6680_v23 = vld [vmem:[#allocation2 + $0x158] sm:$0xf]  ;;  %v6786_v22 = vrot.slane %v6784_v45, 5  ;;  %v6772_v63 = vrot.slane %v6771_v46, 4  ;;  %v6861_v33 = vshrl.u32 %v6689_v30, 16  ;;  %v6874_v17 = vshrl.u32 %v6690_v50, 16 }
 0x3ce   : > { %6113 = vmatprep.mubr.bf16.mxu1 %v8240_v40  ;;  %v6747_v40 = vor.u32 %v6746_v31, %v6743_v61  ;;  %v6789_v1 = vshrl.u32 %v6680_v23, 16  ;;  %v6792_v2 = vshll.u32 %v6680_v23, 16  ;;  %v6686_v31 = vld [vmem:[#allocation2 + $0x188] sm:$0xf]  ;;  %v6806_v29 = vrot.slane %v6805_v35, 4 }
 0x3cf   : > { %v6837_v57 = vshrl.u32 %v6686_v31, 16  ;;  %v6840_v23 = vshll.u32 %v6686_v31, 16  ;;  %v6819_v5 = vor.u32 %v6818_v11, %v6815_v52  ;;  %v6832_v31 = vshll.u32 %v6685_v26, 16 }
 0x3d0   : > { %v6748_v58 = vrot.slane %v6747_v40, 4  ;;  %v6791_v60 = vrot.slane %v6789_v1, 4  ;;  %v6794_v61 = vrot.slane %v6792_v2, 5  ;;  %v13447_v1 = vrot.slane %v6822_v38, 5 }
 0x3d1   : > { %v6828_v2 = vrot.slane %v6826_v51, 4  ;;  %v6839_v47 = vrot.slane %v6837_v57, 4  ;;  %v6863_v46 = vrot.slane %v6861_v33, 4 }
 0x3d2   : > { %v6753_v55 = vsel %vm11168_vm10, %v6748_v58, %v13416_v54  ;;  %v6795_v0 = vor.u32 %v6794_v61, %v6791_v60  ;;  %v8299_v54 = vcombine.low %v6729_v12, %v6739_v18  ;;  %v6842_v58 = vrot.slane %v6840_v23, 5 }
 0x3d3   : > { %v8300_v62 = vcombine.low %v6753_v55, %v6763_v19  ;;  %v6864_v12 = vshll.u32 %v6689_v30, 16  ;;  %v6870_v18 = vshll.u32 %v6690_v50, 16  ;;  %v6777_v60 = vsel %vm11168_vm10, %v6772_v63, %v13428_v56 }
 0x3d4   : > { %v6796_v10 = vrot.slane %v6795_v0, 4  ;;  %v6829_v61 = vor.u32 %v6828_v2, %v13447_v1  ;;  %v6843_v34 = vor.u32 %v6842_v58, %v6839_v47  ;;  %v6820_v19 = vrot.slane %v6819_v5, 4 }
 0x3d5   : > { %6114 = vmatmul.mubr.bf16.gmra.mxu1 %v14574_v9  ;;  %v6781_v9 = vor.u32 %v6780_v27, %v13428_v56  ;;  %v6688_v27 = vld [vmem:[#allocation2 + $0x190] sm:$0x1]  ;;  %v6866_v45 = vrot.slane %v6864_v12, 5  ;;  %v6834_v23 = vrot.slane %v6832_v31, 5 }
 0x3d6   : > { %6121 = vmatprep.mubr.bf16.mxu1 %v8241_v20  ;;  %v6687_v20 = vld [vmem:[#allocation2 + $0x18c] sm:$0xf]  ;;  %v6856_v8 = vshll.u32 %v6688_v27, 16  ;;  %v6801_v55 = vsel %vm11168_vm10, %v6796_v10, %v13438_v44  ;;  %v6830_v57 = vrot.slane %v6829_v61, 4  ;;  %v6844_v35 = vrot.slane %v6843_v34, 4 }
 0x3d7   : > { %v6846_v40 = vshll.u32 %v6687_v20, 16  ;;  %v6850_v39 = vshrl.u32 %v6687_v20, 16  ;;  %v6782_v21 = vrot.slane %v6781_v9, 4  ;;  %v13461_v20 = vld [vmem:[%s14176_s7] ss:$0 sm:$0xff]  ;;  %v6872_v9 = vrot.slane %v6870_v18, 5 }
 0x3d8   : > { %v6858_v11 = vrot.slane %v6856_v8, 5  ;;  %v13472_v44 = vld [vmem:[%s14178_s9] ss:$0 sm:$0xff]  ;;  %v6825_v30 = vsel %vm11168_vm10, %v6820_v19, %v13447_v1  ;;  %v6867_v63 = vor.u32 %v6866_v45, %v6863_v46  ;;  %v6835_v26 = vsel %vm11168_vm10, %v6830_v57, %v6834_v23 }
 0x3d9   : > { %v13449_v49 = vrot.slane %v6846_v40, 5  ;;  %v6852_v36 = vrot.slane %v6850_v39, 4  ;;  %v6691_v40 = vld [vmem:[#allocation2 + $0x1a8] sm:$0x1]  ;;  %v8303_v33 = vcombine.low %v6825_v30, %v6835_v26 }
 0x3da   : > { %v6880_v2 = vshll.u32 %v6691_v40, 16  ;;  %v6868_v12 = vrot.slane %v6867_v63, 4 }
 0x3db   : > { %v6853_v48 = vor.u32 %v6852_v36, %v13449_v49  ;;  %v6849_v36 = vsel %vm11168_vm10, %v6844_v35, %v13449_v49 }
 0x3dc   : > { %v6882_v18 = vrot.slane %v6880_v2, 5 }
 0x3dd   : > { %6122 = vmatmul.mubr.bf16.gmra.mxu1 %v14575_v25  ;;  %v6787_v25 = vsel %vm11168_vm10, %v6782_v21, %v6786_v22  ;;  %v6854_v52 = vrot.slane %v6853_v48, 4 }
 0x3de   : > { %9403 = vmatprep.mubr.bf16.mxu1 %v8298_v4  ;;  %v6810_v4 = vrot.slane %v6808_v7, 5  ;;  %v6876_v7 = vrot.slane %v6874_v17, 4  ;;  %v8301_v51 = vcombine.low %v6777_v60, %v6787_v25 }
 0x3df   : > { %v6859_v1 = vsel %vm11168_vm10, %v6854_v52, %v6858_v11 }
 0x3e0   : > { %v6811_v56 = vsel %vm11168_vm10, %v6806_v29, %v6810_v4  ;;  %v6877_v21 = vor.u32 %v6876_v7, %v6872_v9  ;;  %v8304_v31 = vcombine.low %v6849_v36, %v6859_v1 }
 0x3e1   : > { %v8302_v0 = vcombine.low %v6801_v55, %v6811_v56 }
 0x3e5   : > { %9404 = vmatmul.mubr.bf16.vlgmr.msra.gmra.mxu1 %v8299_v54 }
 0x3e6   : > { %9407 = vmatprep.mubr.bf16.mxu1 %v8300_v62 }
 0x3ea   : > { %v9341_v38 = vpop.f32.mrf.mxu1 }
 0x3eb   : > { %v4079_v39 = vadd.f32 %v9341_v38, %v13461_v20 }
 0x3ec   : > { %v4070_v54 = vpop.f32.mrf.mxu1 }
 0x3ed   : > { %9408 = vmatmul.mubr.bf16.gmra.mxu1 %v8301_v51  ;;  %v4296_v62 = vadd.f32 %v12843_v15, %v4079_v39  ;;  %v4071_v22 = vadd.f32 %v13461_v20, %v4070_v54 }
 0x3ee   : > { %9411 = vmatprep.mubr.bf16.mxu1 %v8302_v0  ;;  %v9342_v50 = vpop.f32.mrf.mxu1 }
 0x3ef   : > { %v4319_v47 = vadd.f32 %v13472_v44, %v4296_v62  ;;  %v4294_v58 = vadd.f32 %v12856_v16, %v4071_v22  ;;  %v4082_v15 = vadd.f32 %v9342_v50, %v13461_v20  ;;  %v6878_v16 = vrot.slane %v6877_v21, 4  ;;  %v10613_v21 = vld [vmem:[%s11110_s23 + $0x40] sm:$0xff]  }
 0x3f0   : > { %v4073_v10 = vpop.f32.mrf.mxu1 }
 0x3f1   : > { %v4335_v29 = vmax.f32 %v4319_v47, 0.0  ;;  %v4317_v4 = vadd.f32 %v13472_v44, %v4294_v58  ;;  %v4297_v5 = vadd.f32 %v12874_v43, %v4082_v15  ;;  %v4074_v27 = vadd.f32 %v13461_v20, %v4073_v10 }
 0x3f2   : > { %v6873_v43 = vsel %vm11168_vm10, %v6868_v12, %v6872_v9  ;;  %v6883_v55 = vsel %vm11168_vm10, %v6878_v16, %v6882_v18 }
 0x3f3   : > { %v4351_v17 = vmin.f32 %v4335_v29, 1.0  ;;  %v4333_v60 = vmax.f32 %v4317_v4, 0.0  ;;  %v4320_v61 = vadd.f32 %v13472_v44, %v4297_v5  ;;  %v4295_v49 = vadd.f32 %v12889_v14, %v4074_v27 }
 0x3f4   : > { %v8305_v7 = vcombine.low %v6873_v43, %v6883_v55 }
 0x3f5   : > { %9412 = vmatmul.mubr.bf16.gmra.mxu1 %v8303_v33  ;;  %v4367_v25 = vmul.f32 15.0, %v4351_v17  ;;  %v4349_v34 = vmin.f32 %v4333_v60, 1.0  ;;  %v4336_v48 = vmax.f32 %v4320_v61, 0.0  ;;  %v4318_v8 = vadd.f32 %v13472_v44, %v4295_v49 }
 0x3f6   : > { %9415 = vmatprep.mubr.bf16.mxu1 %v8304_v31 }
 0x3f7   : > { %v9885_v56 = vcvt.f32.s32 %v4367_v25  ;;  %v4365_v19 = vmul.f32 15.0, %v4349_v34  ;;  %v4352_v46 = vmin.f32 %v4336_v48, 1.0  ;;  %v4334_v45 = vmax.f32 %v4318_v8, 0.0 }
 0x3f8   : > { %v9883_v23 = vand.u32 2147483647, %v4367_v25  ;;  %v9888_v39 = vand.u32 2147483648, %v4367_v25 }
 0x3f9   : > { %v9886_v14 = vcvt.s32.f32 %v9885_v56  ;;  %v9869_v38 = vcvt.f32.s32 %v4365_v19  ;;  %v4368_v51 = vmul.f32 15.0, %v4352_v46  ;;  %v4350_v57 = vmin.f32 %v4334_v45, 1.0 }
 0x3fa   : > { %v9867_v3 = vand.u32 2147483647, %v4365_v19  ;;  %v9872_v54 = vand.u32 2147483648, %v4365_v19  ;;  %vm13500_vm2 = vcmp.lt.f32.partialorder %v9883_v23, 8388608.0 }
 0x3fb   : > { %v9887_v40 = vand.u32 2147483647, %v9886_v14  ;;  %v9870_v0 = vcvt.s32.f32 %v9869_v38  ;;  %v9893_v35 = vcvt.f32.s32 %v4368_v51  ;;  %v4366_v52 = vmul.f32 15.0, %v4350_v57 }
 0x3fc   : > { %v9891_v62 = vand.u32 2147483647, %v4368_v51  ;;  %v9896_v58 = vand.u32 2147483648, %v4368_v51  ;;  %vm13507_vm7 = vcmp.lt.f32.partialorder %v9867_v3, 8388608.0 }
 0x3fd   : > { %9416 = vmatmul.mubr.bf16.gmra.mxu1 %v8305_v7  ;;  %v9889_v9 = vor.u32 %v9888_v39, %v9887_v40  ;;  %v9871_v11 = vand.u32 2147483647, %v9870_v0  ;;  %v9894_v22 = vcvt.s32.f32 %v9893_v35  ;;  %v9877_v30 = vcvt.f32.s32 %v4366_v52 }
 0x3fe   : > { %9467 = vmatprep.mubr.bf16.mxu1 %v10613_v21  ;;  %v9875_v15 = vand.u32 2147483647, %v4366_v52  ;;  %vm9892_vm10 = vcmp.lt.f32.partialorder %v9891_v62, 8388608.0  ;;  %v9880_v12 = vand.u32 2147483648, %v4366_v52 }
 0x3ff   : > { %v9345_v63 = vpop.f32.mrf.mxu1  ;;  %v9873_v50 = vor.u32 %v9872_v54, %v9871_v11  ;;  %v9895_v47 = vand.u32 2147483647, %v9894_v22  ;;  %v9878_v36 = vcvt.s32.f32 %v9877_v30  ;;  %v9890_v10 = vsel %vm13500_vm2, %v9889_v9, %v4367_v25 }
 0x400   : > { %v4095_v26 = vadd.f32 %v9345_v63, %v13461_v20  ;;  %v4399_v49 = vmul.f32 0.06666667, %v9890_v10  ;;  %vm9876_vm8 = vcmp.lt.f32.partialorder %v9875_v15, 8388608.0 }
 0x401   : > { %v4086_v1 = vpop.f32.mrf.mxu1  ;;  %v9897_v27 = vor.u32 %v9896_v58, %v9895_v47  ;;  %v9879_v33 = vand.u32 2147483647, %v9878_v36  ;;  %v9874_v18 = vsel %vm13507_vm7, %v9873_v50, %v4365_v19  ;;  %v10586_v58 = vld [vmem:[#allocation11 + $0x30] sm:$0xff]  }
 0x402   : > { %v4300_v4 = vadd.f32 %v12904_v32, %v4095_v26  ;;  %v4087_v5 = vadd.f32 %v13461_v20, %v4086_v1  ;;  %v4397_v55 = vmul.f32 0.06666667, %v9874_v18 }
 0x403   : > { %v9346_v16 = vpop.f32.mrf.mxu1  ;;  %v9898_v31 = vsel %vm9892_vm10, %v9897_v27, %v4368_v51  ;;  %v9881_v32 = vor.u32 %v9880_v12, %v9879_v33 }
 0x404   : > { %v4323_v17 = vadd.f32 %v13472_v44, %v4300_v4  ;;  %v4298_v60 = vadd.f32 %v12913_v24, %v4087_v5  ;;  %v4098_v61 = vadd.f32 %v9346_v16, %v13461_v20  ;;  %v4400_v34 = vmul.f32 0.06666667, %v9898_v31  ;;  %v10585_v24 = vld [vmem:[#allocation11 + $0x38] sm:$0xff]  }
 0x405   : > { %v4089_v25 = vpop.f32.mrf.mxu1  ;;  %v9882_v56 = vsel %vm9876_vm8, %v9881_v32, %v4366_v52  ;;  %9419 = vmatprep.subr.bf16.mxu0 %v10585_v24 }
 0x406   : > { %v4339_v48 = vmax.f32 %v4323_v17, 0.0  ;;  %v4321_v8 = vadd.f32 %v13472_v44, %v4298_v60  ;;  %v4301_v43 = vadd.f32 %v12932_v6, %v4098_v61  ;;  %v4090_v19 = vadd.f32 %v13461_v20, %v4089_v25  ;;  %9420 = vmatpush3.bf16.msra.mxu0 %v10585_v24 }
 0x407   : > { %v9349_v46 = vpop.f32.mrf.mxu1  ;;  %v8508_v45 = vpack.c.bf16 %v4400_v34, %v4399_v49  ;;  %v4398_v7 = vmul.f32 0.06666667, %v9882_v56  ;;  %9421 = vmatprep.subr.bf16.mxu0 %v10586_v58 }
 0x408   : > { %v4355_v14 = vmin.f32 %v4339_v48, 1.0  ;;  %v4337_v38 = vmax.f32 %v4321_v8, 0.0  ;;  %v4324_v51 = vadd.f32 %v13472_v44, %v4301_v43  ;;  %v4299_v57 = vadd.f32 %v12948_v13, %v4090_v19 }
 0x409   : > { %v4111_v23 = vadd.f32 %v9349_v46, %v13461_v20  ;;  %v4102_v40 = vpop.f32.mrf.mxu1  ;;  %8596 = vst [vmem:[%s13526_s1 + $0x8] sm:$0xff] %v8508_v45   ;;  %v8503_v6 = vpack.c.bf16 %v4398_v7, %v4397_v55  ;;  %v10589_v55 = vld [vmem:[#allocation12 + $0x38] sm:$0xff]  }
 0x40a   : > { %v4371_v39 = vmul.f32 15.0, %v4355_v14  ;;  %v4353_v0 = vmin.f32 %v4337_v38, 1.0  ;;  %v4103_v35 = vadd.f32 %v13461_v20, %v4102_v40  ;;  %v4340_v52 = vmax.f32 %v4324_v51, 0.0  ;;  %9422 = vmatpush3.bf16.msra.mxu0 %v10586_v58  ;;  %v10587_v14 = vld [vmem:[#allocation11 + $0x28] sm:$0xff]   ;;  %9451 = vmatprep.subr.bf16.mxu1 %v10589_v55 }
 0x40b   : > { %v4322_v9 = vadd.f32 %v13472_v44, %v4299_v57  ;;  %v4304_v13 = vadd.f32 %v12956_v42, %v4111_v23  ;;  %8504 = vst [vmem:[%s13526_s1] sm:$0xff] %v8503_v6   ;;  %v9350_v27 = vpop.f32.mrf.mxu1  ;;  %9423 = vmatprep.subr.bf16.mxu0 %v10587_v14  ;;  %9452 = vmatpush3.bf16.msra.mxu1 %v10589_v55 }
 0x40c   : > { %v9917_v3 = vcvt.f32.s32 %v4371_v39  ;;  %v4369_v11 = vmul.f32 15.0, %v4353_v0  ;;  %v4356_v54 = vmin.f32 %v4340_v52, 1.0  ;;  %v4302_v30 = vadd.f32 %v12965_v41, %v4103_v35  ;;  %v14586_v52 = vld [vmem:[#allocation30_spill] sm:$0xff] }
 0x40d   : > { %v4338_v62 = vmax.f32 %v4322_v9, 0.0  ;;  %v4327_v22 = vadd.f32 %v13472_v44, %v4304_v13  ;;  %v9915_v2 = vand.u32 2147483647, %v4371_v39  ;;  %v9920_v36 = vand.u32 2147483648, %v4371_v39  ;;  %v4105_v8 = vpop.f32.mrf.mxu1  ;;  %v14587_v13 = vld [vmem:[#allocation32_spill] sm:$0xff] }
 0x40e   : > { %v9918_v63 = vcvt.s32.f32 %v9917_v3  ;;  %v9901_v21 = vcvt.f32.s32 %v4369_v11  ;;  %v4372_v50 = vmul.f32 15.0, %v4356_v54  ;;  %v4325_v42 = vadd.f32 %v13472_v44, %v4302_v30  ;;  %9424 = vmatpush3.bf16.msra.mxu0 %v10587_v14 }
 0x40f   : > { %v4354_v26 = vmin.f32 %v4338_v62, 1.0  ;;  %v4343_v47 = vmax.f32 %v4327_v22, 0.0  ;;  %v9899_v10 = vand.u32 2147483647, %v4369_v11  ;;  %v9904_v29 = vand.u32 2147483648, %v4369_v11 }
 0x410   : > { %v9919_v15 = vand.u32 2147483647, %v9918_v63  ;;  %v9902_v1 = vcvt.s32.f32 %v9901_v21  ;;  %v9925_v4 = vcvt.f32.s32 %v4372_v50  ;;  %v9923_v12 = vand.u32 2147483647, %v4372_v50 }
 0x411   : > { %v4370_v5 = vmul.f32 15.0, %v4354_v26  ;;  %v4359_v16 = vmin.f32 %v4343_v47, 1.0  ;;  %v4341_v60 = vmax.f32 %v4325_v42, 0.0  ;;  %vm13536_vm9 = vcmp.lt.f32.partialorder %v9915_v2, 8388608.0 }
 0x412   : > { %v9921_v33 = vor.u32 %v9920_v36, %v9919_v15  ;;  %v9903_v41 = vand.u32 2147483647, %v9902_v1  ;;  %v9926_v18 = vcvt.s32.f32 %v9925_v4  ;;  %vm13542_vm11 = vcmp.lt.f32.partialorder %v9899_v10, 8388608.0  ;;  %v13569_v1 = vpop.f32.mrf.mxu0 }
 0x413   : > { %v9909_v17 = vcvt.f32.s32 %v4370_v5  ;;  %v13540_v31 = vmul.f32 15.0, %v4359_v16  ;;  %v9928_v34 = vand.u32 2147483648, %v4372_v50  ;;  %vm13548_vm12 = vcmp.lt.f32.partialorder %v9923_v12, 8388608.0  ;;  %v14588_v16 = vld [vmem:[#allocation33_spill] sm:$0xff] }
 0x414   : > { %v9905_v49 = vor.u32 %v9904_v29, %v9903_v41  ;;  %v9927_v25 = vand.u32 2147483647, %v9926_v18  ;;  %v9922_v43 = vsel %vm13536_vm9, %v9921_v33, %v4371_v39  ;;  %v9907_v56 = vand.u32 2147483647, %v4370_v5  ;;  %v10588_v29 = vld [vmem:[#allocation11 + $0x20] sm:$0xff]   ;;  %v13582_v32 = vpop.f32.mrf.mxu0 }
 0x415   : > { %v9910_v48 = vcvt.s32.f32 %v9909_v17  ;;  %v9949_v19 = vcvt.f32.s32 %v13540_v31  ;;  %v9912_v45 = vand.u32 2147483648, %v4370_v5  ;;  %v4357_v7 = vmin.f32 %v4341_v60, 1.0  ;;  %9425 = vmatprep.subr.bf16.mxu0 %v10588_v29 }
 0x416   : > { %v9929_v46 = vor.u32 %v9928_v34, %v9927_v25  ;;  %v9906_v38 = vsel %vm13542_vm11, %v9905_v49, %v4369_v11  ;;  %v4114_v57 = vadd.f32 %v9350_v27, %v13461_v20  ;;  %v4106_v23 = vadd.f32 %v13461_v20, %v4105_v8  ;;  %9426 = vmatpush3.bf16.msra.mxu0 %v10588_v29  ;;  %v14591_v8 = vld [vmem:[#allocation55_spill] sm:$0xff] }
 0x417   : > { %v9911_v24 = vand.u32 2147483647, %v9910_v48  ;;  %v9950_v51 = vcvt.s32.f32 %v9949_v19  ;;  %v4403_v40 = vmul.f32 0.06666667, %v9922_v43  ;;  %v13559_v0 = vmul.f32 15.0, %v4357_v7 }
 0x418   : > { %v9930_v6 = vsel %vm13548_vm12, %v9929_v46, %v4372_v50  ;;  %vm9908_vm13 = vcmp.lt.f32.partialorder %v9907_v56, 8388608.0  ;;  %v4305_v9 = vadd.f32 %v14586_v52, %v4114_v57  ;;  %v4303_v3 = vadd.f32 %v14587_v13, %v4106_v23  ;;  %v10590_v13 = vld [vmem:[#allocation11 + $0x18] sm:$0xff]  }
 0x419   : > { %v9913_v39 = vor.u32 %v9912_v45, %v9911_v24  ;;  %v4404_v35 = vmul.f32 0.06666667, %v9930_v6  ;;  %v4401_v11 = vmul.f32 0.06666667, %v9906_v38  ;;  %v9933_v62 = vcvt.f32.s32 %v13559_v0  ;;  %9427 = vmatprep.subr.bf16.mxu0 %v10590_v13 }
 0x41a   : > { %v9951_v63 = vand.u32 2147483647, %v9950_v51  ;;  %v4328_v21 = vadd.f32 %v13472_v44, %v4305_v9  ;;  %v4326_v50 = vadd.f32 %v13472_v44, %v4303_v3  ;;  %v9947_v47 = vand.u32 2147483647, %v13540_v31  ;;  %v10591_v3 = vld [vmem:[#allocation12 + $0x30] sm:$0xff]   ;;  %9428 = vmatpush3.bf16.msra.mxu0 %v10590_v13 }
 0x41b   : > { %v9914_v54 = vsel %vm9908_vm13, %v9913_v39, %v4370_v5  ;;  %v8518_v22 = vpack.c.bf16 %v4404_v35, %v4403_v40  ;;  %v9934_v2 = vcvt.s32.f32 %v9933_v62  ;;  %v9952_v58 = vand.u32 2147483648, %v13540_v31  ;;  %9453 = vmatprep.subr.bf16.mxu1 %v10591_v3 }
 0x41c   : > { %v4402_v30 = vmul.f32 0.06666667, %v9914_v54  ;;  %v4344_v15 = vmax.f32 %v4328_v21, 0.0  ;;  %v4342_v42 = vmax.f32 %v4326_v50, 0.0  ;;  %v9931_v5 = vand.u32 2147483647, %v13559_v0  ;;  %9454 = vmatpush3.bf16.msra.mxu1 %v10591_v3 }
 0x41d   : > { %8598 = vst [vmem:[%s13526_s1 + $0x18] sm:$0xff] %v8518_v22   ;;  %v9353_v36 = vpop.f32.mrf.mxu1  ;;  %v13573_v4 = vor.u32 %v9952_v58, %v9951_v63  ;;  %v9935_v41 = vand.u32 2147483647, %v9934_v2  ;;  %vm13578_vm14 = vcmp.lt.f32.partialorder %v9947_v47, 8388608.0  ;;  %v9936_v25 = vand.u32 2147483648, %v13559_v0  ;;  %v14594_v22 = vld [vmem:[#allocation58_spill] sm:$0xff] }
 0x41e   : > { %v8513_v26 = vpack.c.bf16 %v4402_v30, %v4401_v11  ;;  %v4127_v10 = vadd.f32 %v9353_v36, %v13461_v20  ;;  %v4360_v27 = vmin.f32 %v4344_v15, 1.0  ;;  %v4358_v12 = vmin.f32 %v4342_v42, 1.0  ;;  %v14595_v50 = vld [vmem:[#allocation37_spill] sm:$0xff] }
 0x41f   : > { %v4118_v33 = vpop.f32.mrf.mxu1  ;;  %v9954_v56 = vsel %vm13578_vm14, %v13573_v4, %v13540_v31  ;;  %vm13591_vm15 = vcmp.lt.f32.partialorder %v9931_v5, 8388608.0  ;;  %v9937_v45 = vor.u32 %v9936_v25, %v9935_v41  ;;  %v13597_v31 = vpop.f32.mrf.mxu0 }
 0x420   : > { %8597 = vst [vmem:[%s13526_s1 + $0x10] sm:$0xff] %v8513_v26   ;;  %v4308_v18 = vadd.f32 %v14588_v16, %v4127_v10  ;;  %v4119_v17 = vadd.f32 %v13461_v20, %v4118_v33  ;;  %v4376_v61 = vmul.f32 15.0, %v4360_v27  ;;  %v4374_v34 = vmul.f32 15.0, %v4358_v12 }
 0x421   : > { %v9354_v49 = vpop.f32.mrf.mxu1  ;;  %v13608_v10 = vpop.f32.mrf.mxu0  ;;  %v4407_v12 = vmul.f32 0.06666667, %v9954_v56 }
 0x422   : > { %v4331_v48 = vadd.f32 %v13472_v44, %v4308_v18  ;;  %v4306_v43 = vadd.f32 %v14591_v8, %v4119_v17  ;;  %v9957_v46 = vcvt.f32.s32 %v4376_v61  ;;  %v9955_v7 = vand.u32 2147483647, %v4376_v61 }
 0x423   : > { %v4121_v24 = vpop.f32.mrf.mxu1  ;;  %v9941_v14 = vcvt.f32.s32 %v4374_v34  ;;  %v9960_v57 = vand.u32 2147483648, %v4376_v61  ;;  %v4130_v40 = vadd.f32 %v9354_v49, %v13461_v20  ;;  %v9939_v39 = vand.u32 2147483647, %v4374_v34  ;;  %v13615_v8 = vpop.f32.mrf.mxu0 }
 0x424   : > { %v4347_v38 = vmax.f32 %v4331_v48, 0.0  ;;  %v9958_v51 = vcvt.s32.f32 %v9957_v46  ;;  %v4329_v23 = vadd.f32 %v13472_v44, %v4306_v43  ;;  %v4122_v9 = vadd.f32 %v13461_v20, %v4121_v24 }
 0x425   : > { %v8955_v6 = vpop.f32.mrf.mxu1  ;;  %v9942_v35 = vcvt.s32.f32 %v9941_v14  ;;  %v9944_v54 = vand.u32 2147483648, %v4374_v34  ;;  %v4309_v30 = vadd.f32 %v14594_v22, %v4130_v40  ;;  %v9938_v20 = vsel %vm13591_vm15, %v9937_v45, %v13559_v0 }
 0x426   : > { %v4363_v52 = vmin.f32 %v4347_v38, 1.0  ;;  %v9959_v11 = vand.u32 2147483647, %v9958_v51  ;;  %v4345_v62 = vmax.f32 %v4329_v23, 0.0  ;;  %v4307_v26 = vadd.f32 %v14595_v50, %v4122_v9 }
 0x427   : > { %v8956_v63 = vpop.f32.mrf.mxu1  ;;  %v9943_v21 = vand.u32 2147483647, %v9942_v35  ;;  %v4332_v36 = vadd.f32 %v13472_v44, %v4309_v30  ;;  %vm9956_vm0 = vcmp.lt.f32.partialorder %v9955_v7, 8388608.0  ;;  %vm9940_vm1 = vcmp.lt.f32.partialorder %v9939_v39, 8388608.0 }
 0x428   : > { %v13601_v2 = vmul.f32 15.0, %v4363_v52  ;;  %v8957_v47 = vadd.f32 %v8956_v63, %v8955_v6  ;;  %v9961_v58 = vor.u32 %v9960_v57, %v9959_v11  ;;  %v4361_v15 = vmin.f32 %v4345_v62, 1.0  ;;  %v13622_v57 = vpop.f32.mrf.mxu0  ;;  %v14597_v52 = vld [vmem:[#allocation39_spill] sm:$0xff] }
 0x429   : > { %v8958_v42 = vpop.f32.mrf.mxu1  ;;  %v9945_v29 = vor.u32 %v9944_v54, %v9943_v21  ;;  %v4348_v33 = vmax.f32 %v4332_v36, 0.0  ;;  %v4330_v0 = vadd.f32 %v13472_v44, %v4307_v26  ;;  %v4405_v60 = vmul.f32 0.06666667, %v9938_v20  ;;  %v14596_v44 = vld [vmem:[#allocation38_spill] sm:$0xff]  ;;  %v14598_v54 = vld [vmem:[#allocation41_spill] sm:$0xff] }
 0x42a   : > { %v9981_v4 = vcvt.f32.s32 %v13601_v2  ;;  %v9962_v5 = vsel %vm9956_vm0, %v9961_v58, %v4376_v61  ;;  %v13611_v27 = vmul.f32 15.0, %v4361_v15  ;;  %v13618_v24 = vadd.f32 %v14596_v44, %v8957_v47  ;;  %v13633_v26 = vpop.f32.mrf.mxu0  ;;  %v14600_v15 = vld [vmem:[#allocation62_spill] sm:$0xff] }
 0x42b   : > { %v8959_v41 = vpop.f32.mrf.mxu1  ;;  %v4408_v16 = vmul.f32 0.06666667, %v9962_v5  ;;  %v9946_v18 = vsel %vm9940_vm1, %v9945_v29, %v4374_v34  ;;  %v4364_v43 = vmin.f32 %v4348_v33, 1.0  ;;  %v4346_v55 = vmax.f32 %v4330_v0, 0.0 }
 0x42c   : > { %v9982_v17 = vcvt.s32.f32 %v9981_v4  ;;  %v4406_v49 = vmul.f32 0.06666667, %v9946_v18  ;;  %v9965_v25 = vcvt.f32.s32 %v13611_v27  ;;  %v8960_v14 = vadd.f32 %v8959_v41, %v8958_v42 }
 0x42d   : > { %v8961_v48 = vpop.f32.mrf.mxu1  ;;  %v8528_v61 = vpack.c.bf16 %v4408_v16, %v4407_v12  ;;  %v4380_v45 = vmul.f32 15.0, %v4364_v43  ;;  %v4362_v7 = vmin.f32 %v4346_v55, 1.0  ;;  %v9984_v23 = vand.u32 2147483648, %v13601_v2 }
 0x42e   : > { %v8523_v19 = vpack.c.bf16 %v4406_v49, %v4405_v60  ;;  %v9966_v46 = vcvt.s32.f32 %v9965_v25  ;;  %v9983_v34 = vand.u32 2147483647, %v9982_v17  ;;  %v9979_v6 = vand.u32 2147483647, %v13601_v2  ;;  %v10592_v60 = vld [vmem:[#allocation12 + $0x28] sm:$0xff]   ;;  %v13646_v49 = vpop.f32.mrf.mxu0 }
 0x42f   : > { %v8962_v56 = vpop.f32.mrf.mxu1  ;;  %8600 = vst [vmem:[%s13526_s1 + $0x28] sm:$0xff] %v8528_v61   ;;  %v9989_v40 = vcvt.f32.s32 %v4380_v45  ;;  %v4378_v35 = vmul.f32 15.0, %v4362_v7  ;;  %v13627_v9 = vadd.f32 %v14597_v52, %v8960_v14  ;;  %v9968_v30 = vand.u32 2147483648, %v13611_v27  ;;  %v14606_v61 = vld [vmem:[#allocation23_spill] sm:$0xff]  ;;  %9455 = vmatprep.subr.bf16.mxu1 %v10592_v60  ;;  %v10593_v52 = vld [vmem:[#allocation11 + $0x10] sm:$0xff]  }
 0x430   : > { %8599 = vst [vmem:[%s13526_s1 + $0x20] sm:$0xff] %v8523_v19   ;;  %v8963_v38 = vadd.f32 %v8962_v56, %v8961_v48  ;;  %v9967_v39 = vand.u32 2147483647, %v9966_v46  ;;  %v9985_v3 = vor.u32 %v9984_v23, %v9983_v34  ;;  %v9987_v63 = vand.u32 2147483647, %v4380_v45  ;;  %9456 = vmatpush3.bf16.msra.mxu1 %v10592_v60  ;;  %v13658_v14 = vpop.f32.mrf.mxu0  ;;  %v14608_v23 = vld [vmem:[#allocation27_spill] sm:$0xff]  ;;  %9429 = vmatprep.subr.bf16.mxu0 %v10593_v52 }
 0x431   : > { %v8964_v51 = vpop.f32.mrf.mxu1  ;;  %v9990_v11 = vcvt.s32.f32 %v9989_v40  ;;  %v9973_v21 = vcvt.f32.s32 %v4378_v35  ;;  %v9963_v47 = vand.u32 2147483647, %v13611_v27  ;;  %v9992_v58 = vand.u32 2147483648, %v4380_v45  ;;  %9430 = vmatpush3.bf16.msra.mxu0 %v10593_v52  ;;  %v14616_v60 = vld [vmem:[#allocation31_spill] sm:$0xff]  ;;  %v10615_v52 = vld [vmem:[%s11110_s23 + $0x50] sm:$0xff]  }
 0x432   : > { %v13630_v62 = vadd.f32 %v14598_v54, %v8963_v38  ;;  %vm13639_vm3 = vcmp.lt.f32.partialorder %v9979_v6, 8388608.0  ;;  %v9969_v29 = vor.u32 %v9968_v30, %v9967_v39  ;;  %v9971_v41 = vand.u32 2147483647, %v4378_v35  ;;  %v13664_v54 = vpop.f32.mrf.mxu0 }
 0x433   : > { %v8965_v13 = vpop.f32.mrf.mxu1  ;;  %v9991_v20 = vand.u32 2147483647, %v9990_v11  ;;  %v9974_v4 = vcvt.s32.f32 %v9973_v21  ;;  %v9986_v33 = vsel %vm13639_vm3, %v9985_v3, %v13601_v2  ;;  %vm9988_vm5 = vcmp.lt.f32.partialorder %v9987_v63, 8388608.0  ;;  %v10595_v3 = vld [vmem:[#allocation12 + $0x18] sm:$0xff]  }
 0x434   : > { %14599 = vst [vmem:[#allocation68_spill] sm:$0xff] %v13630_v62  ;;  %v8966_v22 = vadd.f32 %v8965_v13, %v8964_v51  ;;  %v9976_v18 = vand.u32 2147483648, %v4378_v35  ;;  %vm13648_vm4 = vcmp.lt.f32.partialorder %v9963_v47, 8388608.0  ;;  %v4411_v55 = vmul.f32 0.06666667, %v9986_v33  ;;  %v10594_v13 = vld [vmem:[#allocation12 + $0x20] sm:$0xff]  }
 0x435   : > { %v8967_v50 = vpop.f32.mrf.mxu1  ;;  %v9993_v0 = vor.u32 %v9992_v58, %v9991_v20  ;;  %v9975_v16 = vand.u32 2147483647, %v9974_v4  ;;  %v9970_v2 = vsel %vm13648_vm4, %v9969_v29, %v13611_v27  ;;  %vm9972_vm6 = vcmp.lt.f32.partialorder %v9971_v41, 8388608.0  ;;  %9457 = vmatprep.subr.bf16.mxu1 %v10594_v13  ;;  %v10597_v47 = vld [vmem:[#allocation12 + $0x10] sm:$0xff]   ;;  %v13670_v20 = vpop.f32.mrf.mxu0  ;;  %v14612_v58 = vld [vmem:[#allocation25_spill] sm:$0xff]  ;;  %v14614_v33 = vld [vmem:[#allocation24_spill] sm:$0xff] }
 0x436   : > { %v13637_v36 = vadd.f32 %v14600_v15, %v8966_v22  ;;  %v4409_v38 = vmul.f32 0.06666667, %v9970_v2  ;;  %9458 = vmatpush3.bf16.msra.mxu1 %v10594_v13  ;;  %v10599_v2 = vld [vmem:[#allocation11] sm:$0xff]   ;;  %v9155_v62 = vadd.f32 %v13646_v49, %v13633_v26 }
 0x437   : > { %v8968_v5 = vpop.f32.mrf.mxu1  ;;  %v9994_v48 = vsel %vm9988_vm5, %v9993_v0, %v4380_v45  ;;  %v9977_v46 = vor.u32 %v9976_v18, %v9975_v16  ;;  %9459 = vmatprep.subr.bf16.mxu1 %v10595_v3  ;;  %v10598_v16 = vld [vmem:[#allocation12 + $0x8] sm:$0xff]  }
 0x438   : > { %14601 = vst [vmem:[#allocation45_spill] sm:$0xff] %v13637_v36  ;;  %v8969_v12 = vadd.f32 %v8968_v5, %v8967_v50  ;;  %v4412_v19 = vmul.f32 0.06666667, %v9994_v48  ;;  %v10596_v50 = vld [vmem:[#allocation11 + $0x8] sm:$0xff]   ;;  %v13675_v5 = vpop.f32.mrf.mxu0  ;;  %v9149_v36 = vadd.f32 %v13608_v10, %v13597_v31 }
 0x439   : > { %v8970_v17 = vpop.f32.mrf.mxu1  ;;  %v9978_v7 = vsel %vm9972_vm6, %v9977_v46, %v4378_v35  ;;  %v14610_v35 = vld [vmem:[#allocation67_spill] sm:$0xff]  ;;  %9431 = vmatprep.subr.bf16.mxu0 %v10596_v50 }
 0x43a   : > { %v13653_v43 = vadd.f32 %v14606_v61, %v8969_v12  ;;  %v8538_v34 = vpack.c.bf16 %v4412_v19, %v4411_v55  ;;  %v4410_v51 = vmul.f32 0.06666667, %v9978_v7  ;;  %9460 = vmatpush3.bf16.msra.mxu1 %v10595_v3  ;;  %9432 = vmatpush3.bf16.msra.mxu0 %v10596_v50  ;;  %v10600_v19 = vld [vmem:[#allocation12] sm:$0xff]  }
 0x43b   : > { %v8971_v44 = vpop.f32.mrf.mxu1  ;;  %9461 = vmatprep.subr.bf16.mxu1 %v10597_v47  ;;  %9433 = vmatprep.subr.bf16.mxu0 %v10599_v2 }
 0x43c   : > { %14607 = vst [vmem:[#allocation26_spill] sm:$0xff] %v13653_v43  ;;  %v8972_v56 = vadd.f32 %v8971_v44, %v8970_v17  ;;  %8602 = vst [vmem:[%s13526_s1 + $0x38] sm:$0xff] %v8538_v34   ;;  %v8533_v6 = vpack.c.bf16 %v4410_v51, %v4409_v38  ;;  %v13680_v17 = vpop.f32.mrf.mxu0  ;;  %v14618_v44 = vld [vmem:[#allocation35_spill] sm:$0xff]  ;;  %v14620_v51 = vld [vmem:[#allocation28_spill] sm:$0xff]  ;;  %v9066_v43 = vadd.f32 %v13582_v32, %v13569_v1 }
 0x43d   : > { %v8973_v45 = vpop.f32.mrf.mxu1 }
 0x43e   : > { %v13661_v40 = vadd.f32 %v14608_v23, %v8972_v56  ;;  %8601 = vst [vmem:[%s13526_s1 + $0x30] sm:$0xff] %v8533_v6   ;;  %9462 = vmatpush3.bf16.msra.mxu1 %v10597_v47  ;;  %v13685_v46 = vpop.f32.mrf.mxu0  ;;  %9434 = vmatpush3.bf16.msra.mxu0 %v10599_v2  ;;  %v10614_v6 = vld [vmem:[%s11110_s23 + $0x48] sm:$0xff]   ;;  %v10616_v47 = vld [vmem:[%s11110_s23 + $0x58] sm:$0xff]  }
 0x43f   : > { %v8974_v27 = vpop.f32.mrf.mxu1  ;;  %9463 = vmatprep.subr.bf16.mxu1 %v10598_v16 }
 0x440   : > { %14609 = vst [vmem:[#allocation21_spill] sm:$0xff] %v13661_v40  ;;  %v8975_v39 = vadd.f32 %v8974_v27, %v8973_v45  ;;  %v13690_v38 = vpop.f32.mrf.mxu0 }
 0x441   : > { %v8976_v11 = vpop.f32.mrf.mxu1 }
 0x442   : > { %v13668_v22 = vadd.f32 %v14610_v35, %v8975_v39  ;;  %9464 = vmatpush3.bf16.msra.mxu1 %v10598_v16  ;;  %v13697_v3 = vpop.f32.mrf.mxu0 }
 0x443   : > { %v8977_v30 = vpop.f32.mrf.mxu1  ;;  %9465 = vmatprep.subr.bf16.mxu1 %v10600_v19  ;;  %v9167_v1 = vadd.f32 %v13697_v3, %v13690_v38  ;;  %v14637_v38 = vld [vmem:[#allocation45_spill] sm:$0xff] }
 0x444   : > { %14611 = vst [vmem:[#allocation36_spill] sm:$0xff] %v13668_v22  ;;  %v8978_v63 = vadd.f32 %v8977_v30, %v8976_v11 }
 0x445   : > { %v8979_v21 = vpop.f32.mrf.mxu1 }
 0x446   : > { %v13673_v15 = vadd.f32 %v14612_v58, %v8978_v63  ;;  %9466 = vmatpush3.bf16.msra.mxu1 %v10600_v19 }
 0x447   : > { %v8980_v42 = vpop.f32.mrf.mxu1 }
 0x448   : > { %14613 = vst [vmem:[#allocation46_spill] sm:$0xff] %v13673_v15  ;;  %v8981_v29 = vadd.f32 %v8980_v42, %v8979_v21  ;;  %v13704_v21 = vpop.f32.mrf.mxu0  ;;  %v10617_v42 = vld [vmem:[%s11110_s23 + $0x60] sm:$0xff]  }
 0x449   : > { %v8982_v4 = vpop.f32.mrf.mxu1  ;;  %9468 = vmatmul.mubr.bf16.vlgmr.msra.gmra.mxu1 %v10614_v6  ;;  %14624 = vst [vmem:[#allocation50_spill] sm:$0xff] %v13704_v21 }
 0x44a   : > { %v13678_v0 = vadd.f32 %v14614_v33, %v8981_v29  ;;  %9471 = vmatprep.mubr.bf16.mxu1 %v10615_v52 }
 0x44b   : > { %v8983_v41 = vpop.f32.mrf.mxu1 }
 0x44c   : > { %14615 = vst [vmem:[#allocation49_spill] sm:$0xff] %v13678_v0  ;;  %v8984_v12 = vadd.f32 %v8983_v41, %v8982_v4  ;;  %v13708_v4 = vpop.f32.mrf.mxu0 }
 0x44d   : > { %v8985_v18 = vpop.f32.mrf.mxu1  ;;  %14625 = vst [vmem:[#allocation44_spill] sm:$0xff] %v13708_v4 }
 0x44e   : > { %v13683_v25 = vadd.f32 %v14616_v60, %v8984_v12  ;;  %v13715_v16 = vpop.f32.mrf.mxu0  ;;  %v10618_v60 = vld [vmem:[%s11110_s23 + $0x68] sm:$0xff]  }
 0x44f   : > { %v8986_v48 = vpop.f32.mrf.mxu1  ;;  %14628 = vst [vmem:[#allocation29_spill] sm:$0xff] %v13715_v16  ;;  %v9152_v16 = vadd.f32 %v13622_v57, %v13615_v8  ;;  %v14634_v57 = vld [vmem:[#allocation68_spill] sm:$0xff] }
 0x450   : > { %14617 = vst [vmem:[#allocation72_spill] sm:$0xff] %v13683_v25  ;;  %v8987_v61 = vadd.f32 %v8986_v48, %v8985_v18  ;;  %v13719_v2 = vpop.f32.mrf.mxu0  ;;  %v14632_v31 = vld [vmem:[#allocation50_spill] sm:$0xff] }
 0x451   : > { %v8988_v55 = vpop.f32.mrf.mxu1  ;;  %9472 = vmatmul.mubr.bf16.gmra.mxu1 %v10616_v47  ;;  %14629 = vst [vmem:[#allocation51_spill] sm:$0xff] %v13719_v2 }
 0x452   : > { %v13688_v56 = vadd.f32 %v14618_v44, %v8987_v61  ;;  %9475 = vmatprep.mubr.bf16.mxu1 %v10617_v42  ;;  %v10619_v61 = vld [vmem:[%s11110_s23 + $0x70] sm:$0xff]  }
 0x453   : > { %v8989_v34 = vpop.f32.mrf.mxu1 }
 0x454   : > { %14619 = vst [vmem:[#allocation42_spill] sm:$0xff] %v13688_v56  ;;  %v8990_v7 = vadd.f32 %v8989_v34, %v8988_v55  ;;  %v14633_v10 = vld [vmem:[#allocation44_spill] sm:$0xff] }
 0x455   : > { %v8991_v45 = vpop.f32.mrf.mxu1  ;;  %v9170_v8 = vadd.f32 %v14633_v10, %v14632_v31 }
 0x456   : > { %v13693_v23 = vadd.f32 %v14620_v51, %v8990_v7  ;;  %v9174_v7 = vpop.f32.mrf.mxu0 }
 0x457   : > { %v8992_v27 = vpop.f32.mrf.mxu1 }
 0x458   : > { %14621 = vst [vmem:[#allocation40_spill] sm:$0xff] %v13693_v23  ;;  %v8993_v39 = vadd.f32 %v8992_v27, %v8991_v45  ;;  %v10620_v27 = vld [vmem:[%s11110_s23 + $0x78] sm:$0xff]   ;;  %s10785_s23 = scalar_lea.vmem %s10784_s6, 4096 }
 0x459   : > { %v8994_v13 = vpop.f32.mrf.mxu1  ;;  %9476 = vmatmul.mubr.bf16.gmra.mxu1 %v10618_v60  ;;  %p10787_p9 = scmp.lt.s32.totalorder %s10785_s23, %s10779_s19 }
 0x45a   : > { %v13700_v11 = vadd.f32 %v13325_v28, %v8993_v39  ;;  %9479 = vmatprep.mubr.bf16.mxu1 %v10619_v61  ;;  %v9175_v39 = vpop.f32.mrf.mxu0 }
 0x45b   : > { %v8995_v35 = vpop.f32.mrf.mxu1  ;;  %p10788_p1 = por %p10787_p9, %p10786_p5 }
 0x45c   : > { %14622 = vst [vmem:[#allocation43_spill] sm:$0xff] %v13700_v11  ;;  %v13702_v30 = vadd.f32 %v8995_v35, %v8994_v13  ;;  %v9177_v35 = vpop.f32.mrf.mxu0 }
 0x45d   : > { %v8997_v63 = vpop.f32.mrf.mxu1  ;;  %p10789_p3 = pnand %p10788_p1, %p10782_p13 }
 0x45e   : > { %14623 = vst [vmem:[#allocation22_spill] sm:$0xff] %v13702_v30  ;;  %v9178_v47 = vpop.f32.mrf.mxu0  ;;  %v9060_v30 = vadd.f32 %v13335_v53, %v13329_v37  ;;  %v9161_v37 = vadd.f32 %v13675_v5, %v13670_v20  ;;  %v9164_v53 = vadd.f32 %v13685_v46, %v13680_v17 }
 0x45f   : > { %v8998_v50 = vpop.f32.mrf.mxu1  ;;  %v13751_v20 = vadd.f32 %v9178_v47, %v9177_v35  ;;  %v14641_v47 = vld [vmem:[#allocation21_spill] sm:$0xff] }
 0x460   : > { %v8999_v58 = vadd.f32 %v8998_v50, %v8997_v63  ;;  %v9180_v42 = vpop.f32.mrf.mxu0 }
 0x461   : > { %v9000_v29 = vpop.f32.mrf.mxu1  ;;  %9480 = vmatmul.mubr.bf16.gmra.mxu1 %v10620_v27 }
 0x462   : > { %v13711_v28 = vadd.f32 %v13346_v59, %v8999_v58 }
 0x463   : > { %v9001_v33 = vpop.f32.mrf.mxu1 }
 0x464   : > { %14626 = vst [vmem:[#allocation61_spill] sm:$0xff] %v13711_v28  ;;  %v13713_v41 = vadd.f32 %v9001_v33, %v9000_v29 }
 0x465   : > { %v9083_v12 = vpop.f32.mrf.mxu1 }
 0x466   : > { %14627 = vst [vmem:[#allocation47_spill] sm:$0xff] %v13713_v41 }
 0x467   : > { %v9084_v18 = vpop.f32.mrf.mxu1 }
 0x468   : > { %v9085_v48 = vadd.f32 %v9084_v18, %v9083_v12  ;;  %v9181_v12 = vpop.f32.mrf.mxu0 }
 0x469   : > { %v9086_v55 = vpop.f32.mrf.mxu1  ;;  %v13753_v5 = vadd.f32 %v9181_v12, %v9180_v42  ;;  %v14642_v12 = vld [vmem:[#allocation36_spill] sm:$0xff] }
 0x46a   : > { %v13722_v19 = vadd.f32 %v9085_v48, %v13618_v24  ;;  %v9183_v60 = vpop.f32.mrf.mxu0 }
 0x46b   : > { %v9087_v59 = vpop.f32.mrf.mxu1 }
 0x46c   : > { %14630 = vst [vmem:[#allocation48_spill] sm:$0xff] %v13722_v19  ;;  %v9088_v44 = vadd.f32 %v9087_v59, %v9086_v55  ;;  %v9184_v55 = vpop.f32.mrf.mxu0 }
 0x46d   : > { %v9089_v34 = vpop.f32.mrf.mxu1  ;;  %v13755_v46 = vadd.f32 %v9184_v55, %v9183_v60 }
 0x46e   : > { %v13725_v45 = vadd.f32 %v9088_v44, %v13627_v9  ;;  %v9186_v27 = vpop.f32.mrf.mxu0 }
 0x46f   : > { %v9090_v51 = vpop.f32.mrf.mxu1 }
 0x470   : > { %14631 = vst [vmem:[#allocation54_spill] sm:$0xff] %v13725_v45  ;;  %v9187_v23 = vpop.f32.mrf.mxu0  ;;  %v9091_v40 = vadd.f32 %v9090_v51, %v9089_v34  ;;  %v9158_v34 = vadd.f32 %v13664_v54, %v13658_v14  ;;  %v14636_v14 = vld [vmem:[#allocation51_spill] sm:$0xff] }
 0x471   : > { %v9092_v6 = vpop.f32.mrf.mxu1 }
 0x472   : > { %v9189_v25 = vpop.f32.mrf.mxu0  ;;  %v6132_v26 = vadd.f32 %v9091_v40, %v14634_v57  ;;  %v13759_v40 = vadd.f32 %v9187_v23, %v9186_v27  ;;  %v13772_v23 = vld [vmem:[%s14174_s5] ss:$0 sm:$0xff] }
 0x473   : > { %v9093_v52 = vpop.f32.mrf.mxu1 }
 0x474   : > { %v9190_v45 = vpop.f32.mrf.mxu0  ;;  %v9094_v4 = vadd.f32 %v9093_v52, %v9092_v6  ;;  %v14635_v52 = vld [vmem:[#allocation29_spill] sm:$0xff]  ;;  %v6654_v55 = vadd.f32 %v9155_v62, %v6132_v26 }
 0x475   : > { %v9095_v13 = vpop.f32.mrf.mxu1  ;;  %v9173_v54 = vadd.f32 %v14636_v14, %v14635_v52  ;;  %v14646_v14 = vld [vmem:[#allocation49_spill] sm:$0xff] }
 0x476   : > { %v9192_v41 = vpop.f32.mrf.mxu0  ;;  %v6133_v3 = vadd.f32 %v9094_v4, %v14637_v38 }
 0x477   : > { %v9096_v63 = vpop.f32.mrf.mxu1 }
 0x478   : > { %v9097_v21 = vadd.f32 %v9096_v63, %v9095_v13  ;;  %v9193_v6 = vpop.f32.mrf.mxu0  ;;  %v9176_v13 = vadd.f32 %v9175_v39, %v9174_v7  ;;  %v14638_v63 = vld [vmem:[#allocation26_spill] sm:$0xff]  ;;  %v14640_v39 = vld [vmem:[#allocation47_spill] sm:$0xff]  ;;  %v6655_v27 = vadd.f32 %v9158_v34, %v6133_v3 }
 0x479   : > { %v9098_v50 = vpop.f32.mrf.mxu1  ;;  %v13764_v7 = vadd.f32 %v9193_v6, %v9192_v41  ;;  %v5606_v35 = vadd.f32 %v9066_v43, %v14640_v39 }
 0x47a   : > { %v6134_v31 = vadd.f32 %v9097_v21, %v14638_v63 }
 0x47b   : > { %v9099_v24 = vpop.f32.mrf.mxu1 }
 0x47c   : > { %v9100_v49 = vadd.f32 %v9099_v24, %v9098_v50  ;;  %v14639_v50 = vld [vmem:[#allocation22_spill] sm:$0xff] }
 0x47d   : > { %v9101_v58 = vpop.f32.mrf.mxu1  ;;  %v5598_v24 = vadd.f32 %v9060_v30, %v14639_v50 }
 0x47e   : > { %v6135_v42 = vadd.f32 %v9100_v49, %v14641_v47  ;;  %v6656_v49 = vadd.f32 %v9161_v37, %v6134_v31 }
 0x47f   : > { %v9102_v29 = vpop.f32.mrf.mxu1 }
 0x480   : > { %v9103_v51 = vadd.f32 %v9102_v29, %v9101_v58  ;;  %v13762_v58 = vadd.f32 %v9190_v45, %v9189_v25  ;;  %v14643_v25 = vld [vmem:[#allocation48_spill] sm:$0xff]  ;;  %v14644_v45 = vld [vmem:[#allocation54_spill] sm:$0xff]  ;;  %v6657_v52 = vadd.f32 %v9164_v53, %v6135_v42 }
 0x481   : > { %v9104_v33 = vpop.f32.mrf.mxu1  ;;  %v6652_v30 = vadd.f32 %v9149_v36, %v14643_v25  ;;  %v6653_v41 = vadd.f32 %v9152_v16, %v14644_v45  ;;  %v14647_v36 = vld [vmem:[#allocation72_spill] sm:$0xff] }
 0x482   : > { %v6136_v60 = vadd.f32 %v9103_v51, %v14642_v12 }
 0x483   : > { %v9105_v18 = vpop.f32.mrf.mxu1 }
 0x484   : > { %v9106_v10 = vadd.f32 %v9105_v18, %v9104_v33  ;;  %v14645_v33 = vld [vmem:[#allocation46_spill] sm:$0xff]  ;;  %v6658_v26 = vadd.f32 %v9167_v1, %v6136_v60 }
 0x485   : > { %v9107_v9 = vpop.f32.mrf.mxu1 }
 0x486   : > { %v6137_v18 = vadd.f32 %v9106_v10, %v14645_v33 }
 0x487   : > { %v9108_v48 = vpop.f32.mrf.mxu1 }
 0x488   : > { %v9109_v4 = vadd.f32 %v9108_v48, %v9107_v9 }
 0x489   : > { %v9110_v61 = vpop.f32.mrf.mxu1 }
 0x48a   : > { %v6138_v38 = vadd.f32 %v9109_v4, %v14646_v14 }
 0x48b   : > { %v9111_v59 = vpop.f32.mrf.mxu1 }
 0x48c   : > { %v9112_v57 = vadd.f32 %v9111_v59, %v9110_v61  ;;  %v13786_v42 = vadd.f32 %v9173_v54, %v6138_v38 }
 0x48d   : > { %v9113_v44 = vpop.f32.mrf.mxu1 }
 0x48e   : > { %v6139_v63 = vadd.f32 %v9112_v57, %v14647_v36 }
 0x48f   : > { %v9114_v28 = vpop.f32.mrf.mxu1 }
 0x490   : > { %v9115_v6 = vadd.f32 %v9114_v28, %v9113_v44 }
 0x491   : > { %v9116_v11 = vpop.f32.mrf.mxu1 }
 0x493   : > { %v9117_v56 = vpop.f32.mrf.mxu1 }
 0x494   : > { %v9118_v51 = vadd.f32 %v9117_v56, %v9116_v11  ;;  %v6659_v56 = vadd.f32 %v9170_v8, %v6137_v18  ;;  %v13788_v8 = vadd.f32 %v9176_v13, %v6139_v63 }
 0x495   : > { %v9119_v0 = vpop.f32.mrf.mxu1 }
 0x497   : > { %v9120_v15 = vpop.f32.mrf.mxu1 }
 0x498   : > { %v9121_v62 = vadd.f32 %v9120_v15, %v9119_v0  ;;  %v14648_v15 = vld [vmem:[#allocation42_spill] sm:$0xff]  ;;  %v14649_v0 = vld [vmem:[#allocation40_spill] sm:$0xff] }
 0x499   : > { %v9122_v19 = vpop.f32.mrf.mxu1  ;;  %v6141_v11 = vadd.f32 %v9118_v51, %v14649_v0 }
 0x49b   : > { %v9123_v22 = vpop.f32.mrf.mxu1  ;;  %v13793_v25 = vadd.f32 %v13753_v5, %v6141_v11 }
 0x49c   : > { %v9124_v9 = vadd.f32 %v9123_v22, %v9122_v19  ;;  %v6140_v22 = vadd.f32 %v9115_v6, %v14648_v15  ;;  %v14650_v19 = vld [vmem:[#allocation43_spill] sm:$0xff] }
 0x49d   : > { %v9125_v2 = vpop.f32.mrf.mxu1  ;;  %v6142_v44 = vadd.f32 %v9121_v62, %v14650_v19 }
 0x49e   : > { %v6143_v37 = vadd.f32 %v9124_v9, %v5598_v24 }
 0x49f   : > { %v9126_v32 = vpop.f32.mrf.mxu1 }
 0x4a0   : > { %v9127_v16 = vadd.f32 %v9126_v32, %v9125_v2  ;;  %v14651_v32 = vld [vmem:[#allocation61_spill] sm:$0xff]  ;;  %v13801_v13 = vadd.f32 %v13759_v40, %v6143_v37 }
 0x4a1   : > { %v9128_v17 = vpop.f32.mrf.mxu1 }
 0x4a3   : > { %v9129_v29 = vpop.f32.mrf.mxu1 }
 0x4a4   : > { %v9130_v50 = vadd.f32 %v9129_v29, %v9128_v17  ;;  %v6144_v17 = vadd.f32 %v9127_v16, %v14651_v32 }
 0x4a5   : > { %v9405_v21 = vpop.f32.mrf.mxu1 }
 0x4a6   : > { %v7079_v43 = vadd.f32 %v9405_v21, %v6654_v55  ;;  %v6145_v29 = vadd.f32 %v9130_v50, %v5606_v35  ;;  %v6662_v21 = vadd.f32 %v13751_v20, %v6140_v22  ;;  %v13806_v6 = vadd.f32 %v13762_v58, %v6144_v17 }
 0x4a7   : > { %v7014_v48 = vpop.f32.mrf.mxu1 }
 0x4a8   : > { %v7102_v61 = vadd.f32 %v13772_v23, %v7079_v43  ;;  %v7077_v59 = vadd.f32 %v7014_v48, %v6652_v30  ;;  %v13796_v30 = vadd.f32 %v13755_v46, %v6142_v44  ;;  %v13809_v46 = vadd.f32 %v13764_v7, %v6145_v29 }
 0x4a9   : > { %v9406_v10 = vpop.f32.mrf.mxu1 }
 0x4aa   : > { %v7118_v39 = vmax.f32 %v7102_v61, 0.0  ;;  %v7100_v34 = vadd.f32 %v13772_v23, %v7077_v59  ;;  %v7080_v28 = vadd.f32 %v9406_v10, %v6655_v27 }
 0x4ab   : > { %v7017_v53 = vpop.f32.mrf.mxu1 }
 0x4ac   : > { %v7134_v1 = vmin.f32 %v7118_v39, 1.0  ;;  %v7116_v3 = vmax.f32 %v7100_v34, 0.0  ;;  %v7103_v31 = vadd.f32 %v13772_v23, %v7080_v28  ;;  %v7078_v2 = vadd.f32 %v7017_v53, %v6653_v41 }
 0x4ad   : > { %v9409_v47 = vpop.f32.mrf.mxu1 }
 0x4ae   : > { %v7150_v12 = vmul.f32 15.0, %v7134_v1  ;;  %v7132_v60 = vmin.f32 %v7116_v3, 1.0  ;;  %v7119_v55 = vmax.f32 %v7103_v31, 0.0  ;;  %v7101_v4 = vadd.f32 %v13772_v23, %v7078_v2 }
 0x4af   : > { %v7083_v24 = vadd.f32 %v9409_v47, %v6658_v26  ;;  %v7030_v57 = vpop.f32.mrf.mxu1 }
 0x4b0   : > { %v10011_v35 = vand.u32 2147483647, %v7150_v12  ;;  %v10013_v54 = vcvt.f32.s32 %v7150_v12  ;;  %v13798_v45 = vmul.f32 15.0, %v7132_v60  ;;  %v7135_v41 = vmin.f32 %v7119_v55, 1.0 }
 0x4b1   : > { %v7117_v33 = vmax.f32 %v7101_v4, 0.0  ;;  %v7106_v18 = vadd.f32 %v13772_v23, %v7083_v24  ;;  %v7081_v43 = vadd.f32 %v7030_v57, %v6656_v49  ;;  %v9410_v27 = vpop.f32.mrf.mxu1  ;;  %v10016_v59 = vand.u32 2147483648, %v7150_v12 }
 0x4b2   : > { %v10014_v20 = vcvt.s32.f32 %v10013_v54  ;;  %v9997_v5 = vcvt.f32.s32 %v13798_v45  ;;  %v7151_v51 = vmul.f32 15.0, %v7135_v41  ;;  %vm13812_vm2 = vcmp.lt.f32.partialorder %v10011_v35, 8388608.0 }
 0x4b3   : > { %v7133_v62 = vmin.f32 %v7117_v33, 1.0  ;;  %v7122_v9 = vmax.f32 %v7106_v18, 0.0  ;;  %v7104_v40 = vadd.f32 %v13772_v23, %v7081_v43  ;;  %v7033_v48 = vpop.f32.mrf.mxu1  ;;  %v7084_v26 = vadd.f32 %v9410_v27, %v6659_v56 }
 0x4b4   : > { %v10015_v49 = vand.u32 2147483647, %v10014_v20  ;;  %v10019_v14 = vand.u32 2147483647, %v7151_v51  ;;  %v10021_v38 = vcvt.f32.s32 %v7151_v51  ;;  %v7082_v36 = vadd.f32 %v7033_v48, %v6657_v52 }
 0x4b5   : > { %v13816_v58 = vmul.f32 15.0, %v7133_v62  ;;  %v9413_v7 = vpop.f32.mrf.mxu1  ;;  %v7138_v16 = vmin.f32 %v7122_v9, 1.0  ;;  %v7120_v50 = vmax.f32 %v7104_v40, 0.0  ;;  %v7107_v10 = vadd.f32 %v13772_v23, %v7084_v26 }
 0x4b6   : > { %v10017_v63 = vor.u32 %v10016_v59, %v10015_v49  ;;  %v13819_v39 = vcvt.s32.f32 %v9997_v5  ;;  %v10000_v34 = vand.u32 2147483648, %v13798_v45  ;;  %v10022_v28 = vcvt.s32.f32 %v10021_v38 }
 0x4b7   : > { %v10005_v15 = vcvt.f32.s32 %v13816_v58  ;;  %v7046_v22 = vpop.f32.mrf.mxu1  ;;  %v13825_v0 = vmul.f32 15.0, %v7138_v16  ;;  %v7136_v52 = vmin.f32 %v7120_v50, 1.0  ;;  %v7123_v11 = vmax.f32 %v7107_v10, 0.0 }
 0x4b8   : > { %v10018_v56 = vsel %vm13812_vm2, %v10017_v63, %v7150_v12  ;;  %vm13827_vm7 = vcmp.lt.f32.partialorder %v10019_v14, 8388608.0  ;;  %v10023_v44 = vand.u32 2147483647, %v10022_v28  ;;  %v10024_v37 = vand.u32 2147483648, %v7151_v51 }
 0x4b9   : > { %v7105_v53 = vadd.f32 %v13772_v23, %v7082_v36  ;;  %v9414_v1 = vpop.f32.mrf.mxu1  ;;  %v13832_v3 = vmul.f32 0.06666667, %v10018_v56  ;;  %v10008_v31 = vand.u32 2147483648, %v13816_v58  ;;  %v10045_v2 = vcvt.f32.s32 %v13825_v0 }
 0x4ba   : > { %v13836_v32 = vmul.f32 15.0, %v7136_v52  ;;  %v10025_v17 = vor.u32 %v10024_v37, %v10023_v44  ;;  %v7139_v29 = vmin.f32 %v7123_v11, 1.0  ;;  %v7087_v12 = vadd.f32 %v9413_v7, %v6662_v21 }
 0x4bb   : > { %v7121_v47 = vmax.f32 %v7105_v53, 0.0  ;;  %v7049_v60 = vpop.f32.mrf.mxu1  ;;  %v13838_v55 = vcvt.s32.f32 %v10005_v15  ;;  %v10046_v4 = vcvt.s32.f32 %v10045_v2  ;;  %v7085_v57 = vadd.f32 %v7046_v22, %v13786_v42 }
 0x4bc   : > { %v10029_v24 = vcvt.f32.s32 %v13836_v32  ;;  %v10026_v35 = vsel %vm13827_vm7, %v10025_v17, %v7151_v51  ;;  %v13844_v54 = vmul.f32 15.0, %v7139_v29  ;;  %v7110_v33 = vadd.f32 %v13772_v23, %v7087_v12 }
 0x4bd   : > { %v7137_v41 = vmin.f32 %v7121_v47, 1.0  ;;  %v9417_v18 = vpop.f32.mrf.mxu1  ;;  %v13847_v43 = vmul.f32 0.06666667, %v10026_v35  ;;  %v10043_v21 = vand.u32 2147483647, %v13825_v0  ;;  %v10048_v27 = vand.u32 2147483648, %v13825_v0 }
 0x4be   : > { %v7108_v20 = vadd.f32 %v13772_v23, %v7085_v57  ;;  %v10047_v5 = vand.u32 2147483647, %v10046_v4  ;;  %v10032_v42 = vand.u32 2147483648, %v13836_v32  ;;  %v10053_v62 = vcvt.f32.s32 %v13844_v54 }
 0x4bf   : > { %v13854_v51 = vmul.f32 15.0, %v7137_v41  ;;  %v7062_v9 = vpop.f32.mrf.mxu1  ;;  %v7197_v40 = vpack.c.bf16 %v13847_v43, %v13832_v3  ;;  %v13858_v48 = vcvt.s32.f32 %v10029_v24  ;;  %v7126_v61 = vmax.f32 %v7110_v33, 0.0 }
 0x4c0   : > { %v7124_v49 = vmax.f32 %v7108_v20, 0.0  ;;  %v10051_v59 = vand.u32 2147483647, %v13844_v54  ;;  %v10054_v26 = vcvt.s32.f32 %v10053_v62  ;;  %v7088_v38 = vadd.f32 %v9414_v1, %v13793_v25 }
 0x4c1   : > { %v10037_v14 = vcvt.f32.s32 %v13854_v51  ;;  %v7142_v36 = vmin.f32 %v7126_v61, 1.0  ;;  %v7086_v63 = vadd.f32 %v7049_v60, %v13788_v8  ;;  %v7091_v16 = vadd.f32 %v9417_v18, %v13806_v6  ;;  %v9418_v50 = vpop.f32.mrf.mxu1 }
 0x4c2   : > { %v7140_v7 = vmin.f32 %v7124_v49, 1.0  ;;  %v10055_v10 = vand.u32 2147483647, %v10054_v26  ;;  %v10056_v28 = vand.u32 2147483648, %v13844_v54  ;;  %v7111_v15 = vadd.f32 %v13772_v23, %v7088_v38 }
 0x4c3   : > { %v7089_v22 = vadd.f32 %v7062_v9, %v13796_v30  ;;  %v13868_v56 = vmul.f32 15.0, %v7142_v36  ;;  %v7109_v25 = vadd.f32 %v13772_v23, %v7086_v63  ;;  %v7114_v11 = vadd.f32 %v13772_v23, %v7091_v16  ;;  %v7065_v2 = vpop.f32.mrf.mxu1 }
 0x4c4   : > { %v13870_v52 = vmul.f32 15.0, %v7140_v7  ;;  %v13874_v19 = vor.u32 %v10048_v27, %v10047_v5  ;;  %v7127_v8 = vmax.f32 %v7111_v15, 0.0  ;;  %v7092_v44 = vadd.f32 %v9418_v50, %v13809_v46 }
 0x4c5   : > { %v7112_v6 = vadd.f32 %v13772_v23, %v7089_v22  ;;  %v13878_v37 = vor.u32 %v10056_v28, %v10055_v10  ;;  %v13880_v53 = vcvt.s32.f32 %v10037_v14  ;;  %v10040_v30 = vand.u32 2147483648, %v13854_v51 }
 0x4c6   : > { %v10077_v1 = vcvt.f32.s32 %v13868_v56  ;;  %v10061_v17 = vcvt.f32.s32 %v13870_v52  ;;  %v7143_v29 = vmin.f32 %v7127_v8, 1.0  ;;  %v7125_v47 = vmax.f32 %v7109_v25, 0.0 }
 0x4c7   : > { %v7130_v12 = vmax.f32 %v7114_v11, 0.0  ;;  %v10075_v60 = vand.u32 2147483647, %v13868_v56  ;;  %v7128_v24 = vmax.f32 %v7112_v6, 0.0  ;;  %v7115_v46 = vadd.f32 %v13772_v23, %v7092_v44 }
 0x4c8   : > { %v10078_v4 = vcvt.s32.f32 %v10077_v1  ;;  %v13887_v57 = vmul.f32 15.0, %v7143_v29  ;;  %v7141_v35 = vmin.f32 %v7125_v47, 1.0  ;;  %v7090_v33 = vadd.f32 %v7065_v2, %v13801_v13 }
 0x4c9   : > { %v7146_v41 = vmin.f32 %v7130_v12, 1.0  ;;  %v10080_v27 = vand.u32 2147483648, %v13868_v56  ;;  %v7144_v20 = vmin.f32 %v7128_v24, 1.0  ;;  %v7131_v5 = vmax.f32 %v7115_v46, 0.0 }
 0x4ca   : > { %v10079_v18 = vand.u32 2147483647, %v10078_v4  ;;  %v13891_v62 = vcvt.s32.f32 %v10061_v17  ;;  %v10064_v9 = vand.u32 2147483648, %v13870_v52  ;;  %v10085_v61 = vcvt.f32.s32 %v13887_v57 }
 0x4cb   : > { %v13895_v49 = vmul.f32 15.0, %v7141_v35  ;;  %v13897_v26 = vmul.f32 15.0, %v7146_v41  ;;  %v13899_v14 = vmul.f32 15.0, %v7144_v20  ;;  %v7147_v38 = vmin.f32 %v7131_v5, 1.0 }
 0x4cc   : > { %v9995_v13 = vand.u32 2147483647, %v13798_v45  ;;  %v10083_v36 = vand.u32 2147483647, %v13887_v57  ;;  %v10086_v7 = vcvt.s32.f32 %v10085_v61  ;;  %v7113_v16 = vadd.f32 %v13772_v23, %v7090_v33 }
 0x4cd   : > { %v10069_v63 = vcvt.f32.s32 %v13895_v49  ;;  %v13905_v50 = vor.u32 %v10080_v27, %v10079_v18  ;;  %v10088_v10 = vand.u32 2147483648, %v13887_v57  ;;  %v10109_v28 = vcvt.f32.s32 %v13897_v26 }
 0x4ce   : > { %v10093_v15 = vcvt.f32.s32 %v13899_v14  ;;  %v10087_v22 = vand.u32 2147483647, %v10086_v7  ;;  %v10072_v25 = vand.u32 2147483648, %v13895_v49  ;;  %v10107_v11 = vand.u32 2147483647, %v13897_v26 }
 0x4cf   : > { %v13912_v8 = vmul.f32 15.0, %v7147_v38  ;;  %v10070_v6 = vcvt.s32.f32 %v10069_v63  ;;  %v10110_v44 = vcvt.s32.f32 %v10109_v28  ;;  %v10112_v1 = vand.u32 2147483648, %v13897_v26 }
 0x4d0   : > { %v7129_v23 = vmax.f32 %v7113_v16, 0.0  ;;  %v13915_v2 = vcvt.s32.f32 %v10093_v15  ;;  %v10096_v17 = vand.u32 2147483648, %v13899_v14  ;;  %vm13919_vm10 = vcmp.lt.f32.partialorder %v9995_v13, 8388608.0 }
 0x4d1   : > { %v10117_v29 = vcvt.f32.s32 %v13912_v8  ;;  %v10089_v12 = vor.u32 %v10088_v10, %v10087_v22  ;;  %v10111_v4 = vand.u32 2147483647, %v10110_v44  ;;  %v9999_v46 = vand.u32 2147483647, %v13819_v39 }
 0x4d2   : > { %v7145_v24 = vmin.f32 %v7129_v23, 1.0  ;;  %v10003_v41 = vand.u32 2147483647, %v13816_v58  ;;  %v10007_v33 = vand.u32 2147483647, %v13838_v55  ;;  %v10120_v39 = vand.u32 2147483648, %v13912_v8 }
 0x4d3   : > { %v10118_v35 = vcvt.s32.f32 %v10117_v29  ;;  %v10027_v18 = vand.u32 2147483647, %v13836_v32  ;;  %v10115_v27 = vand.u32 2147483647, %v13912_v8  ;;  %v10001_v5 = vor.u32 %v10000_v34, %v9999_v46 }
 0x4d4   : > { %v13928_v20 = vmul.f32 15.0, %v7145_v24  ;;  %v10031_v61 = vand.u32 2147483647, %v13858_v48  ;;  %v13933_v38 = vor.u32 %v10112_v1, %v10111_v4  ;;  %v10009_v13 = vor.u32 %v10008_v31, %v10007_v33 }
 0x4d5   : > { %vm13940_vm8 = vcmp.lt.f32.partialorder %v10043_v21, 8388608.0  ;;  %v10119_v7 = vand.u32 2147483647, %v10118_v35  ;;  %v10002_v34 = vsel %vm13919_vm10, %v10001_v5, %v13798_v45  ;;  %vm10004_vm9 = vcmp.lt.f32.partialorder %v10003_v41, 8388608.0 }
 0x4d6   : > { %v10033_v48 = vor.u32 %v10032_v42, %v10031_v61  ;;  %v10101_v63 = vcvt.f32.s32 %v13928_v20  ;;  %v10010_v16 = vsel %vm10004_vm9, %v10009_v13, %v13816_v58  ;;  %vm10028_vm11 = vcmp.lt.f32.partialorder %v10027_v18, 8388608.0 }
 0x4d7   : > { %v10035_v31 = vand.u32 2147483647, %v13854_v51  ;;  %v7180_v21 = vmul.f32 0.06666667, %v10002_v34  ;;  %v7181_v10 = vmul.f32 0.06666667, %v10010_v16  ;;  %v10050_v42 = vsel %vm13940_vm8, %v13874_v19, %v13825_v0 }
 0x4d8   : > { %v10034_v28 = vsel %vm10028_vm11, %v10033_v48, %v13836_v32  ;;  %v10039_v15 = vand.u32 2147483647, %v13880_v53  ;;  %vm10052_vm13 = vcmp.lt.f32.partialorder %v10051_v59, 8388608.0  ;;  %v7186_v53 = vmul.f32 0.06666667, %v10050_v42 }
 0x4d9   : > { %vm13954_vm12 = vcmp.lt.f32.partialorder %v10035_v31, 8388608.0  ;;  %v7184_v45 = vmul.f32 0.06666667, %v10034_v28  ;;  %v7196_v58 = vpack.c.bf16 %v7181_v10, %v7180_v21  ;;  %v10058_v32 = vsel %vm10052_vm13, %v13878_v37, %v13844_v54 }
 0x4da   : > { %v10041_v44 = vor.u32 %v10040_v30, %v10039_v15  ;;  %v10102_v1 = vcvt.s32.f32 %v10101_v63  ;;  %v7187_v23 = vmul.f32 0.06666667, %v10058_v32  ;;  %v10059_v29 = vand.u32 2147483647, %v13870_v52 }
 0x4db   : > { %v10063_v47 = vand.u32 2147483647, %v13891_v62  ;;  %9435 = vmatprep.mubr.bf16.mxu0 %v7196_v58  ;;  %v10067_v59 = vand.u32 2147483647, %v13895_v49  ;;  %v10071_v19 = vand.u32 2147483647, %v10070_v6  ;;  %v10121_v46 = vor.u32 %v10120_v39, %v10119_v7 }
 0x4dc   : > { %v10042_v0 = vsel %vm13954_vm12, %v10041_v44, %v13854_v51  ;;  %vm10076_vm14 = vcmp.lt.f32.partialorder %v10075_v60, 8388608.0  ;;  %9436 = vmatmul.mubr.bf16.vlgmr.msra.gmra.mxu0 %v7197_v40  ;;  %v7199_v37 = vpack.c.bf16 %v7187_v23, %v7186_v53  ;;  %vm10060_vm15 = vcmp.lt.f32.partialorder %v10059_v29, 8388608.0  ;;  %v14012_v7 = vld [vmem:[%s14178_s9] ss:$0 sm:$0xff] }
 0x4dd   : > { %v7185_v54 = vmul.f32 0.06666667, %v10042_v0  ;;  %v10065_v30 = vor.u32 %v10064_v9, %v10063_v47  ;;  %vm10068_vm0 = vcmp.lt.f32.partialorder %v10067_v59, 8388608.0  ;;  %v10073_v62 = vor.u32 %v10072_v25, %v10071_v19 }
 0x4de   : > { %v10082_v51 = vsel %vm10076_vm14, %v13905_v50, %v13868_v56  ;;  %vm10084_vm1 = vcmp.lt.f32.partialorder %v10083_v36, 8388608.0  ;;  %v10091_v9 = vand.u32 2147483647, %v13899_v14  ;;  %v10095_v56 = vand.u32 2147483647, %v13915_v2 }
 0x4df   : > { %v7198_v6 = vpack.c.bf16 %v7185_v54, %v7184_v45  ;;  %v10066_v60 = vsel %vm10060_vm15, %v10065_v30, %v13870_v52  ;;  %v10090_v3 = vsel %vm10084_vm1, %v10089_v12, %v13887_v57  ;;  %v7190_v43 = vmul.f32 0.06666667, %v10082_v51 }
 0x4e0   : > { %v10074_v40 = vsel %vm10068_vm0, %v10073_v62, %v13895_v49  ;;  %v7188_v4 = vmul.f32 0.06666667, %v10066_v60  ;;  %v7191_v24 = vmul.f32 0.06666667, %v10090_v3  ;;  %v10099_v50 = vand.u32 2147483647, %v13928_v20 }
 0x4e1   : > { %9439 = vmatprep.mubr.bf16.mxu0 %v7198_v6  ;;  %v7189_v25 = vmul.f32 0.06666667, %v10074_v40  ;;  %v10104_v36 = vand.u32 2147483648, %v13928_v20  ;;  %v10103_v52 = vand.u32 2147483647, %v10102_v1  ;;  %vm10108_vm3 = vcmp.lt.f32.partialorder %v10107_v11, 8388608.0 }
 0x4e2   : > { %v7201_v35 = vpack.c.bf16 %v7191_v24, %v7190_v43  ;;  %v10097_v49 = vor.u32 %v10096_v17, %v10095_v56  ;;  %v10114_v12 = vsel %vm10108_vm3, %v13933_v38, %v13897_v26  ;;  %vm10092_vm5 = vcmp.lt.f32.partialorder %v10091_v9, 8388608.0 }
 0x4e3   : > { %v7200_v57 = vpack.c.bf16 %v7189_v25, %v7188_v4  ;;  %v10105_v41 = vor.u32 %v10104_v36, %v10103_v52  ;;  %vm10116_vm4 = vcmp.lt.f32.partialorder %v10115_v27, 8388608.0  ;;  %vm10100_vm6 = vcmp.lt.f32.partialorder %v10099_v50, 8388608.0 }
 0x4e4   : > { %9440 = vmatmul.mubr.bf16.gmra.mxu0 %v7199_v37  ;;  %v10098_v2 = vsel %vm10092_vm5, %v10097_v49, %v13899_v14  ;;  %v10122_v33 = vsel %vm10116_vm4, %v10121_v46, %v13912_v8  ;;  %v7194_v18 = vmul.f32 0.06666667, %v10114_v12  ;;  %v14006_v14 = vld [vmem:[%s14176_s7] ss:$0 sm:$0xff] }
 0x4e5   : > { %9443 = vmatprep.mubr.bf16.mxu0 %v7200_v57  ;;  %v10106_v11 = vsel %vm10100_vm6, %v10105_v41, %v13928_v20  ;;  %v7195_v5 = vmul.f32 0.06666667, %v10122_v33  ;;  %v7192_v17 = vmul.f32 0.06666667, %v10098_v2 }
 0x4e6   : > { %v7193_v61 = vmul.f32 0.06666667, %v10106_v11 }
 0x4e7   : > { %v7203_v39 = vpack.c.bf16 %v7195_v5, %v7194_v18 }
 0x4e8   : > { %v7202_v26 = vpack.c.bf16 %v7193_v61, %v7192_v17 }
 0x4ec   : > { %9444 = vmatmul.mubr.bf16.gmra.mxu0 %v7201_v35 }
 0x4ed   : > { %9447 = vmatprep.mubr.bf16.mxu0 %v7202_v26 }
 0x4f4   : > { %9448 = vmatmul.mubr.bf16.gmra.mxu0 %v7203_v39 }
 0x509   : > { %v9469_v38 = vpop.f32.mrf.mxu1 }
 0x50b   : > { %v7470_v27 = vpop.f32.mrf.mxu1 }
 0x50d   : > { %v9470_v13 = vpop.f32.mrf.mxu1 }
 0x50f   : > { %v7473_v55 = vpop.f32.mrf.mxu1 }
 0x511   : > { %v9473_v28 = vpop.f32.mrf.mxu1 }
 0x513   : > { %v7486_v29 = vpop.f32.mrf.mxu1 }
 0x515   : > { %v9474_v43 = vpop.f32.mrf.mxu1 }
 0x517   : > { %v7489_v11 = vpop.f32.mrf.mxu1 }
 0x59c   : > { %v9437_v8 = vpop.f32.mrf.mxu0 }
 0x59d   : > { %v7318_v20 = vadd.f32 %v9437_v8, %v14006_v14 }
 0x59e   : > { %v7309_v34 = vpop.f32.mrf.mxu0 }
 0x59f   : > { %v7535_v48 = vadd.f32 %v9469_v38, %v7318_v20  ;;  %v7310_v63 = vadd.f32 %v14006_v14, %v7309_v34 }
 0x5a0   : > { %v9438_v16 = vpop.f32.mrf.mxu0 }
 0x5a1   : > { %v7558_v31 = vadd.f32 %v14012_v7, %v7535_v48  ;;  %v7533_v21 = vadd.f32 %v7470_v27, %v7310_v63  ;;  %v7321_v10 = vadd.f32 %v9438_v16, %v14006_v14 }
 0x5a2   : > { %v7312_v15 = vpop.f32.mrf.mxu0 }
 0x5a3   : > { %v7574_v22 = vmax.f32 %v7558_v31, 0.0  ;;  %v7556_v45 = vadd.f32 %v14012_v7, %v7533_v21  ;;  %v7536_v42 = vadd.f32 %v9470_v13, %v7321_v10  ;;  %v7313_v58 = vadd.f32 %v14006_v14, %v7312_v15  ;;  %v9477_v21 = vpop.f32.mrf.mxu1 }
 0x5a4   : > { %v9441_v44 = vpop.f32.mrf.mxu0 }
 0x5a5   : > { %v7590_v32 = vmin.f32 %v7574_v22, 1.0  ;;  %v7572_v53 = vmax.f32 %v7556_v45, 0.0  ;;  %v7559_v1 = vadd.f32 %v14012_v7, %v7536_v42  ;;  %v7534_v23 = vadd.f32 %v7473_v55, %v7313_v58 }
 0x5a6   : > { %v7334_v47 = vadd.f32 %v9441_v44, %v14006_v14  ;;  %v7325_v0 = vpop.f32.mrf.mxu0 }
 0x5a7   : > { %v7606_v59 = vmul.f32 15.0, %v7590_v32  ;;  %v7588_v19 = vmin.f32 %v7572_v53, 1.0  ;;  %v7575_v54 = vmax.f32 %v7559_v1, 0.0  ;;  %v7557_v37 = vadd.f32 %v14012_v7, %v7534_v23 }
 0x5a8   : > { %v7539_v30 = vadd.f32 %v9473_v28, %v7334_v47  ;;  %v7326_v62 = vadd.f32 %v14006_v14, %v7325_v0  ;;  %v9442_v51 = vpop.f32.mrf.mxu0 }
 0x5a9   : > { %v10139_v6 = vand.u32 2147483647, %v7606_v59  ;;  %v10141_v60 = vcvt.f32.s32 %v7606_v59  ;;  %v14023_v3 = vmul.f32 15.0, %v7588_v19  ;;  %v7591_v40 = vmin.f32 %v7575_v54, 1.0  ;;  %v7502_v54 = vpop.f32.mrf.mxu1 }
 0x5aa   : > { %v7573_v4 = vmax.f32 %v7557_v37, 0.0  ;;  %v7562_v24 = vadd.f32 %v14012_v7, %v7539_v30  ;;  %v7537_v9 = vadd.f32 %v7486_v29, %v7326_v62  ;;  %v7328_v46 = vpop.f32.mrf.mxu0  ;;  %v10144_v36 = vand.u32 2147483648, %v7606_v59 }
 0x5ab   : > { %v10142_v25 = vcvt.s32.f32 %v10141_v60  ;;  %v10123_v56 = vand.u32 2147483647, %v14023_v3  ;;  %v10125_v50 = vcvt.f32.s32 %v14023_v3  ;;  %v7607_v35 = vmul.f32 15.0, %v7591_v40 }
 0x5ac   : > { %v7589_v52 = vmin.f32 %v7573_v4, 1.0  ;;  %v7578_v57 = vmax.f32 %v7562_v24, 0.0  ;;  %v9445_v49 = vpop.f32.mrf.mxu0  ;;  %vm14028_vm2 = vcmp.lt.f32.partialorder %v10139_v6, 8388608.0  ;;  %v7560_v33 = vadd.f32 %v14012_v7, %v7537_v9 }
 0x5ad   : > { %v10143_v41 = vand.u32 2147483647, %v10142_v25  ;;  %v10126_v2 = vcvt.s32.f32 %v10125_v50  ;;  %v10128_v18 = vand.u32 2147483648, %v14023_v3  ;;  %v10147_v5 = vand.u32 2147483647, %v7607_v35 }
 0x5ae   : > { %v10149_v17 = vcvt.f32.s32 %v7607_v35  ;;  %v7605_v61 = vmul.f32 15.0, %v7589_v52  ;;  %vm14034_vm7 = vcmp.lt.f32.partialorder %v10123_v56, 8388608.0  ;;  %v7594_v27 = vmin.f32 %v7578_v57, 1.0  ;;  %v7341_v13 = vpop.f32.mrf.mxu0  ;;  %v9478_v52 = vpop.f32.mrf.mxu1 }
 0x5af   : > { %v10145_v39 = vor.u32 %v10144_v36, %v10143_v41  ;;  %v10127_v38 = vand.u32 2147483647, %v10126_v2  ;;  %v7576_v34 = vmax.f32 %v7560_v33, 0.0  ;;  %v10152_v16 = vand.u32 2147483648, %v7607_v35 }
 0x5b0   : > { %v10150_v8 = vcvt.s32.f32 %v10149_v17  ;;  %v10131_v20 = vand.u32 2147483647, %v7605_v61  ;;  %v10133_v55 = vcvt.f32.s32 %v7605_v61  ;;  %v14040_v31 = vmul.f32 15.0, %v7594_v27  ;;  %v9446_v32 = vpop.f32.mrf.mxu0  ;;  %v7505_v27 = vpop.f32.mrf.mxu1 }
 0x5b1   : > { %v10146_v48 = vsel %vm14028_vm2, %v10145_v39, %v7606_v59  ;;  %v10129_v63 = vor.u32 %v10128_v18, %v10127_v38  ;;  %vm14042_vm10 = vcmp.lt.f32.partialorder %v10147_v5, 8388608.0  ;;  %v10136_v22 = vand.u32 2147483648, %v7605_v61 }
 0x5b2   : > { %v10151_v28 = vand.u32 2147483647, %v10150_v8  ;;  %v10134_v15 = vcvt.s32.f32 %v10133_v55  ;;  %v7638_v45 = vmul.f32 0.06666667, %v10146_v48  ;;  %vm14049_vm8 = vcmp.lt.f32.partialorder %v10131_v20, 8388608.0  ;;  %v7344_v24 = vpop.f32.mrf.mxu0 }
 0x5b3   : > { %v10130_v42 = vsel %vm14034_vm7, %v10129_v63, %v14023_v3  ;;  %v10173_v44 = vcvt.f32.s32 %v14040_v31  ;;  %v10171_v23 = vand.u32 2147483647, %v14040_v31  ;;  %v7592_v29 = vmin.f32 %v7576_v34, 1.0 }
 0x5b4   : > { %v10153_v53 = vor.u32 %v10152_v16, %v10151_v28  ;;  %v10135_v1 = vand.u32 2147483647, %v10134_v15  ;;  %v10176_v0 = vand.u32 2147483648, %v14040_v31  ;;  %v7337_v59 = vadd.f32 %v9442_v51, %v14006_v14  ;;  %v9449_v18 = vpop.f32.mrf.mxu0 }
 0x5b5   : > { %v10174_v47 = vcvt.s32.f32 %v10173_v44  ;;  %v7329_v19 = vadd.f32 %v14006_v14, %v7328_v46  ;;  %v7608_v62 = vmul.f32 15.0, %v7592_v29  ;;  %v7350_v6 = vadd.f32 %v9445_v49, %v14006_v14 }
 0x5b6   : > { %v10154_v37 = vsel %vm14042_vm10, %v10153_v53, %v7607_v35  ;;  %v10137_v30 = vor.u32 %v10136_v22, %v10135_v1  ;;  %v7540_v40 = vadd.f32 %v9474_v43, %v7337_v59  ;;  %v7636_v9 = vmul.f32 0.06666667, %v10130_v42 }
 0x5b7   : > { %v7639_v60 = vmul.f32 0.06666667, %v10154_v37  ;;  %v10175_v3 = vand.u32 2147483647, %v10174_v47  ;;  %v7538_v4 = vadd.f32 %v7489_v11, %v7329_v19  ;;  %vm14063_vm9 = vcmp.lt.f32.partialorder %v10171_v23, 8388608.0 }
 0x5b8   : > { %v10138_v51 = vsel %vm14049_vm8, %v10137_v30, %v7605_v61  ;;  %v10157_v25 = vcvt.f32.s32 %v7608_v62  ;;  %v7563_v35 = vadd.f32 %v14012_v7, %v7540_v40  ;;  %v10155_v43 = vand.u32 2147483647, %v7608_v62 }
 0x5b9   : > { %v8548_v56 = vpack.c.bf16 %v7639_v60, %v7638_v45  ;;  %v7637_v50 = vmul.f32 0.06666667, %v10138_v51  ;;  %v10177_v36 = vor.u32 %v10176_v0, %v10175_v3  ;;  %v7561_v49 = vadd.f32 %v14012_v7, %v7538_v4  ;;  %v9481_v45 = vpop.f32.mrf.mxu1 }
 0x5ba   : > { %v10158_v57 = vcvt.s32.f32 %v10157_v25  ;;  %v7543_v12 = vadd.f32 %v9477_v21, %v7350_v6  ;;  %v10160_v2 = vand.u32 2147483648, %v7608_v62  ;;  %v7579_v33 = vmax.f32 %v7563_v35, 0.0 }
 0x5bb   : > { %8604 = vst [vmem:[%s13526_s1 + $0x48] sm:$0xff] %v8548_v56   ;;  %v8543_v41 = vpack.c.bf16 %v7637_v50, %v7636_v9  ;;  %v7342_v11 = vadd.f32 %v14006_v14, %v7341_v13  ;;  %v10178_v5 = vsel %vm14063_vm9, %v10177_v36, %v14040_v31  ;;  %v7577_v61 = vmax.f32 %v7561_v49, 0.0 }
 0x5bc   : > { %v10159_v17 = vand.u32 2147483647, %v10158_v57  ;;  %v7566_v39 = vadd.f32 %v14012_v7, %v7543_v12  ;;  %v7595_v26 = vmin.f32 %v7579_v33, 1.0  ;;  %v7353_v8 = vadd.f32 %v9446_v32, %v14006_v14 }
 0x5bd   : > { %8603 = vst [vmem:[%s13526_s1 + $0x40] sm:$0xff] %v8543_v41   ;;  %v7541_v38 = vadd.f32 %v7502_v54, %v7342_v11  ;;  %v7345_v20 = vadd.f32 %v14006_v14, %v7344_v24  ;;  %v7593_v34 = vmin.f32 %v7577_v61, 1.0  ;;  %v7366_v48 = vadd.f32 %v9449_v18, %v14006_v14  ;;  %v7357_v54 = vpop.f32.mrf.mxu0  ;;  %v7518_v41 = vpop.f32.mrf.mxu1 }
 0x5be   : > { %v10161_v55 = vor.u32 %v10160_v2, %v10159_v17  ;;  %v7582_v13 = vmax.f32 %v7566_v39, 0.0  ;;  %v7611_v63 = vmul.f32 15.0, %v7595_v26  ;;  %v7544_v31 = vadd.f32 %v9478_v52, %v7353_v8 }
 0x5bf   : > { %v7564_v16 = vadd.f32 %v14012_v7, %v7541_v38  ;;  %vm10156_vm11 = vcmp.lt.f32.partialorder %v10155_v43, 8388608.0  ;;  %v7609_v21 = vmul.f32 15.0, %v7593_v34  ;;  %v7642_v28 = vmul.f32 0.06666667, %v10178_v5  ;;  %v9450_v50 = vpop.f32.mrf.mxu0 }
 0x5c0   : > { %v7598_v10 = vmin.f32 %v7582_v13, 1.0  ;;  %v10162_v15 = vsel %vm10156_vm11, %v10161_v55, %v7608_v62  ;;  %v10181_v22 = vcvt.f32.s32 %v7611_v63  ;;  %v7542_v44 = vadd.f32 %v7505_v27, %v7345_v20 }
 0x5c1   : > { %v10165_v42 = vcvt.f32.s32 %v7609_v21  ;;  %v7547_v32 = vadd.f32 %v9481_v45, %v7366_v48  ;;  %v10179_v53 = vand.u32 2147483647, %v7611_v63  ;;  %v7580_v23 = vmax.f32 %v7564_v16, 0.0  ;;  %v7360_v26 = vpop.f32.mrf.mxu0 }
 0x5c2   : > { %v14080_v58 = vmul.f32 15.0, %v7598_v10  ;;  %v10182_v1 = vcvt.s32.f32 %v10181_v22  ;;  %v7567_v29 = vadd.f32 %v14012_v7, %v7544_v31  ;;  %v7640_v47 = vmul.f32 0.06666667, %v10162_v15 }
 0x5c3   : > { %v10163_v0 = vand.u32 2147483647, %v7609_v21  ;;  %v10166_v59 = vcvt.s32.f32 %v10165_v42  ;;  %v10184_v30 = vand.u32 2147483648, %v7611_v63  ;;  %v7596_v62 = vmin.f32 %v7580_v23, 1.0 }
 0x5c4   : > { %v10205_v19 = vcvt.f32.s32 %v14080_v58  ;;  %v10183_v37 = vand.u32 2147483647, %v10182_v1  ;;  %v7583_v6 = vmax.f32 %v7567_v29, 0.0  ;;  %v10168_v3 = vand.u32 2147483648, %v7609_v21 }
 0x5c5   : > { %v10167_v60 = vand.u32 2147483647, %v10166_v59  ;;  %v7565_v4 = vadd.f32 %v14012_v7, %v7542_v44  ;;  %vm10180_vm12 = vcmp.lt.f32.partialorder %v10179_v53, 8388608.0  ;;  %v14085_v9 = vmul.f32 15.0, %v7596_v62 }
 0x5c6   : > { %v10206_v40 = vcvt.s32.f32 %v10205_v19  ;;  %v10185_v24 = vor.u32 %v10184_v30, %v10183_v37  ;;  %v7599_v51 = vmin.f32 %v7583_v6, 1.0  ;;  %vm10164_vm13 = vcmp.lt.f32.partialorder %v10163_v0, 8388608.0 }
 0x5c7   : > { %v10169_v46 = vor.u32 %v10168_v3, %v10167_v60  ;;  %v7581_v56 = vmax.f32 %v7565_v4, 0.0  ;;  %v10203_v35 = vand.u32 2147483647, %v14080_v58  ;;  %v10208_v52 = vand.u32 2147483648, %v14080_v58 }
 0x5c8   : > { %v10207_v25 = vand.u32 2147483647, %v10206_v40  ;;  %v10186_v36 = vsel %vm10180_vm12, %v10185_v24, %v7611_v63  ;;  %v10189_v43 = vcvt.f32.s32 %v14085_v9  ;;  %v7615_v12 = vmul.f32 15.0, %v7599_v51  ;;  %v9482_v63 = vpop.f32.mrf.mxu1 }
 0x5c9   : > { %v7643_v57 = vmul.f32 0.06666667, %v10186_v36  ;;  %v10170_v49 = vsel %vm10164_vm13, %v10169_v46, %v7609_v21  ;;  %v7570_v2 = vadd.f32 %v14012_v7, %v7547_v32  ;;  %v7597_v18 = vmin.f32 %v7581_v56, 1.0 }
 0x5ca   : > { %v7641_v33 = vmul.f32 0.06666667, %v10170_v49  ;;  %v10190_v11 = vcvt.s32.f32 %v10189_v43  ;;  %v7358_v5 = vadd.f32 %v14006_v14, %v7357_v54  ;;  %v10209_v61 = vor.u32 %v10208_v52, %v10207_v25 }
 0x5cb   : > { %v8558_v17 = vpack.c.bf16 %v7643_v57, %v7642_v28  ;;  %v10213_v39 = vcvt.f32.s32 %v7615_v12  ;;  %vm14092_vm14 = vcmp.lt.f32.partialorder %v10203_v35, 8388608.0  ;;  %v10187_v8 = vand.u32 2147483647, %v14085_v9 }
 0x5cc   : > { %v8553_v38 = vpack.c.bf16 %v7641_v33, %v7640_v47  ;;  %v10191_v20 = vand.u32 2147483647, %v10190_v11  ;;  %v10211_v55 = vand.u32 2147483647, %v7615_v12  ;;  %v7613_v13 = vmul.f32 15.0, %v7597_v18  ;;  %v7521_v47 = vpop.f32.mrf.mxu1 }
 0x5cd   : > { %8606 = vst [vmem:[%s13526_s1 + $0x58] sm:$0xff] %v8558_v17   ;;  %v10214_v34 = vcvt.s32.f32 %v10213_v39  ;;  %v7586_v48 = vmax.f32 %v7570_v2, 0.0  ;;  %v10192_v16 = vand.u32 2147483648, %v14085_v9  ;;  %v7545_v31 = vadd.f32 %v7518_v41, %v7358_v5 }
 0x5ce   : > { %8605 = vst [vmem:[%s13526_s1 + $0x50] sm:$0xff] %v8553_v38   ;;  %v7369_v21 = vadd.f32 %v9450_v50, %v14006_v14  ;;  %v7361_v10 = vadd.f32 %v14006_v14, %v7360_v26  ;;  %v10210_v28 = vsel %vm14092_vm14, %v10209_v61, %v14080_v58  ;;  %v10216_v22 = vand.u32 2147483648, %v7615_v12 }
 0x5cf   : > { %v10215_v15 = vand.u32 2147483647, %v10214_v34  ;;  %v10197_v45 = vcvt.f32.s32 %v7613_v13  ;;  %v10193_v42 = vor.u32 %v10192_v16, %v10191_v20  ;;  %v7602_v44 = vmin.f32 %v7586_v48, 1.0 }
 0x5d0   : > { %v7568_v32 = vadd.f32 %v14012_v7, %v7545_v31  ;;  %v7548_v53 = vadd.f32 %v9482_v63, %v7369_v21  ;;  %vm10212_vm15 = vcmp.lt.f32.partialorder %v10211_v55, 8388608.0  ;;  %v10195_v23 = vand.u32 2147483647, %v7613_v13 }
 0x5d1   : > { %v10217_v1 = vor.u32 %v10216_v22, %v10215_v15  ;;  %v10198_v29 = vcvt.s32.f32 %v10197_v45  ;;  %v7618_v0 = vmul.f32 15.0, %v7602_v44  ;;  %v7546_v19 = vadd.f32 %v7521_v47, %v7361_v10 }
 0x5d2   : > { %v7584_v59 = vmax.f32 %v7568_v32, 0.0  ;;  %v7571_v14 = vadd.f32 %v14012_v7, %v7548_v53  ;;  %vm14107_vm0 = vcmp.lt.f32.partialorder %v10187_v8, 8388608.0  ;;  %v10200_v30 = vand.u32 2147483648, %v7613_v13 }
 0x5d3   : > { %v10218_v54 = vsel %vm10212_vm15, %v10217_v1, %v7615_v12  ;;  %v10199_v37 = vand.u32 2147483647, %v10198_v29  ;;  %v7646_v62 = vmul.f32 0.06666667, %v10210_v28  ;;  %v10194_v6 = vsel %vm14107_vm0, %v10193_v42, %v14085_v9 }
 0x5d4   : > { %v7647_v60 = vmul.f32 0.06666667, %v10218_v54  ;;  %v10237_v3 = vcvt.f32.s32 %v7618_v0  ;;  %v7600_v4 = vmin.f32 %v7584_v59, 1.0  ;;  %v7587_v24 = vmax.f32 %v7571_v14, 0.0 }
 0x5d5   : > { %v10201_v40 = vor.u32 %v10200_v30, %v10199_v37  ;;  %v7569_v51 = vadd.f32 %v14012_v7, %v7546_v19  ;;  %vm10196_vm1 = vcmp.lt.f32.partialorder %v10195_v23, 8388608.0  ;;  %v7644_v52 = vmul.f32 0.06666667, %v10194_v6 }
 0x5d6   : > { %v8568_v46 = vpack.c.bf16 %v7647_v60, %v7646_v62  ;;  %v10238_v25 = vcvt.s32.f32 %v10237_v3  ;;  %v7616_v50 = vmul.f32 15.0, %v7600_v4  ;;  %v7603_v36 = vmin.f32 %v7587_v24, 1.0 }
 0x5d7   : > { %v10202_v56 = vsel %vm10196_vm1, %v10201_v40, %v7613_v13  ;;  %v7585_v35 = vmax.f32 %v7569_v51, 0.0  ;;  %v10240_v2 = vand.u32 2147483648, %v7618_v0  ;;  %v10235_v7 = vand.u32 2147483647, %v7618_v0 }
 0x5d8   : > { %8608 = vst [vmem:[%s13526_s1 + $0x68] sm:$0xff] %v8568_v46   ;;  %v7645_v43 = vmul.f32 0.06666667, %v10202_v56  ;;  %v10239_v57 = vand.u32 2147483647, %v10238_v25  ;;  %v10221_v9 = vcvt.f32.s32 %v7616_v50  ;;  %v7619_v49 = vmul.f32 15.0, %v7603_v36 }
 0x5d9   : > { %v7601_v41 = vmin.f32 %v7585_v35, 1.0  ;;  %v10224_v39 = vand.u32 2147483648, %v7616_v50  ;;  %v10219_v27 = vand.u32 2147483647, %v7616_v50  ;;  %vm10236_vm3 = vcmp.lt.f32.partialorder %v10235_v7, 8388608.0 }
 0x5da   : > { %v8563_v12 = vpack.c.bf16 %v7645_v43, %v7644_v52  ;;  %v10222_v33 = vcvt.s32.f32 %v10221_v9  ;;  %v10245_v11 = vcvt.f32.s32 %v7619_v49  ;;  %v10241_v5 = vor.u32 %v10240_v2, %v10239_v57 }
 0x5db   : > { %v7617_v18 = vmul.f32 15.0, %v7601_v41  ;;  %v10243_v26 = vand.u32 2147483647, %v7619_v49  ;;  %v10248_v20 = vand.u32 2147483648, %v7619_v49  ;;  %vm10220_vm4 = vcmp.lt.f32.partialorder %v10219_v27, 8388608.0 }
 0x5dc   : > { %8607 = vst [vmem:[%s13526_s1 + $0x60] sm:$0xff] %v8563_v12   ;;  %v10223_v17 = vand.u32 2147483647, %v10222_v33  ;;  %v10246_v61 = vcvt.s32.f32 %v10245_v11  ;;  %v10242_v13 = vsel %vm10236_vm3, %v10241_v5, %v7618_v0 }
 0x5dd   : > { %v10229_v38 = vcvt.f32.s32 %v7617_v18  ;;  %v10227_v63 = vand.u32 2147483647, %v7617_v18  ;;  %vm10244_vm5 = vcmp.lt.f32.partialorder %v10243_v26, 8388608.0  ;;  %v10232_v31 = vand.u32 2147483648, %v7617_v18 }
 0x5de   : > { %v10247_v8 = vand.u32 2147483647, %v10246_v61  ;;  %v10225_v55 = vor.u32 %v10224_v39, %v10223_v17  ;;  %v7650_v10 = vmul.f32 0.06666667, %v10242_v13 }
 0x5df   : > { %v10230_v34 = vcvt.s32.f32 %v10229_v38  ;;  %vm10228_vm6 = vcmp.lt.f32.partialorder %v10227_v63, 8388608.0 }
 0x5e0   : > { %v10249_v48 = vor.u32 %v10248_v20, %v10247_v8  ;;  %v10226_v28 = vsel %vm10220_vm4, %v10225_v55, %v7616_v50 }
 0x5e1   : > { %v10231_v16 = vand.u32 2147483647, %v10230_v34  ;;  %v7648_v44 = vmul.f32 0.06666667, %v10226_v28 }
 0x5e2   : > { %v10250_v21 = vsel %vm10244_vm5, %v10249_v48, %v7619_v49 }
 0x5e3   : > { %v7651_v15 = vmul.f32 0.06666667, %v10250_v21  ;;  %v10233_v22 = vor.u32 %v10232_v31, %v10231_v16 }
 0x5e5   : > { %v8578_v45 = vpack.c.bf16 %v7651_v15, %v7650_v10  ;;  %v10234_v42 = vsel %vm10228_vm6, %v10233_v22, %v7617_v18 }
 0x5e6   : > { %v7649_v32 = vmul.f32 0.06666667, %v10234_v42 }
 0x5e7   : > { %8610 = vst [vmem:[%s13526_s1 + $0x78] sm:$0xff] %v8578_v45  }
 0x5e8   : > { %v8573_v53 = vpack.c.bf16 %v7649_v32, %v7648_v44 }
 0x5ea   : > { %8609 = vst [vmem:[%s13526_s1 + $0x70] sm:$0xff] %v8573_v53  }
 0x5eb   : > { %10792 = shalt.err (!%p10789_p3)
}
 0x5ec   : > { %s10793_s1 = scalar_lea.hbm %s14123_s3, 2048  ;;  %s10797_s17 = scalar_lea.hbm %s14179_s10, 4096 }
 0x5ed   : > { %p10794_p4 = scmp.ne.s32.totalorder %s14123_s3, %s10793_s1  ;;  %p10798_p2 = scmp.lt.s32.totalorder %s14123_s3, %s14179_s10 }
 0x5ee   : > { %p10799_p7 = scmp.lt.s32.totalorder %s10797_s17, %s10793_s1 }
 0x5ef   : > { %p10795_p12 = pnand %p10794_p4, %p14676_p11 }
 0x5f0   : > { %p10800_p8 = por %p10799_p7, %p10798_p2 }
 0x5f1   : > { %p10796_p6 = pneg %p10795_p12 }
 0x5f3   : > { %p10801_p10 = pnand %p10800_p8, %p10796_p6 }
 0x5f5   : > { %10804 = shalt.err (!%p10801_p10)
}
 0x5f6   : > { %s10867_s25 = smov 64   ;;  %s10868_s24 = smov 4  }
 0x5f7   : > { %10273 = dma.vmem_to_hbm [thread:$0]  (%p14676_p11), %s14125_s22, 2048, %s14123_s3, %s7733_s27, %s10867_s25, %s10867_s25, %s10868_s24  }
 0x5f8 PF: > { %s7761_s19 = sand.u32 1, %s10843_s13   ;;  %p14677_p0 = scmp.ne.s32.totalorder %s14265_s21, 0 }
 0x5f9   : > { %p14678_p13 = scmp.ge.s32.totalorder %s10855_s16, 2  ;;  %s7762_s18 = scalar_lea.sflag [#allocation5], %s7761_s19 }
 0x5fb   : > { %p10296_p5 = pnand %p14678_p13, %p14677_p0 }
 0x5fd   : > { %p10297_p9 = pneg %p10296_p5 }
 0x5ff   : > { %10838 = dma.done.wait (%p10297_p9), %s7762_s18, 2048  }
 0x600   : > { %10840 = vsyncadd (%p10297_p9), %s7762_s18, 4294965248  ;;  %p26_p1 = scmp.ge.s32.totalorder %s11035_s26, 4   ;;  %s14679_s13 = smov %s10847_s14 }
 0x601   : > { %s14680_s14 = smov %s10851_s15  ;;  %s14681_s15 = smov %s11047_s11 }
 0x602   : > { %s14682_s16 = smov %s11035_s26  ;;  %28 = sbr.rel (!%p26_p1) target bundleno = 13 (0xd), region = 134 }
 0x607   :  { %7767 = vsyncpa [#allocation4], 1 }
 0x608   :  { %7769 = vsyncpa [#allocation4 + $0x1], 1 }
 0x609   :  { %7770 = vsyncpa [#allocation7], 1 }
 0x60a   :  { %7771 = vsyncpa [#allocation10], 1 }
 0x60b   :  { %7772 = vsyncpa [#allocation13], 1 }
 0x60c   :  { %7773 = vsyncpa [#allocation5], 1 }
 0x60d   :  { %7775 = vsyncpa [#allocation5 + $0x1], 1 }

</bundles_post_ra>
